<compile_context>
chip_gen: v5e
topology: v5e:2x2
jax: 0.10.0
libtpu: 0.0.40
codegen_flags: <defaults>
</compile_context>

<pallas_src>
import functools

import jax
import jax.numpy as jnp
from jax.experimental import pallas as pl
from jax.experimental.pallas import tpu as pltpu


def _round_up(x, m):
    return ((x + m - 1) // m) * m


# ----------------------------------------------------------------------------
# Fused PredRNN kernel
# ----------------------------------------------------------------------------
def make_predrnn_kernel(num_layers, num_hidden, cin_pads, kpads, input_length,
                        activation, H, W, B):
    HW = H * W
    NL = B * HW                                       # lanes = batch * pixels
    tap_shifts = [(dy - 1) * W + (dx - 1) for dy in range(3) for dx in range(3)]
    n_w = 2 * num_layers + 1

    def kernel(*args):
        frame_ref, maskv_ref, mtap_ref = args[0:3]
        w_refs = args[3:3 + n_w]
        out_ref = args[3 + n_w]
        scratch = args[4 + n_w:]
        xhm_s = scratch[0:num_layers]                 # per-layer [x; h; m] slab
        cm_s = scratch[num_layers:2 * num_layers]     # per-layer [c; m_new]
        xgen_s = scratch[2 * num_layers]              # previous prediction
        stack_s = scratch[2 * num_layers + 1]         # bf16 9-tap stack (reused)
        gates_s = scratch[2 * num_layers + 2]         # staged gate slab (f32)

        t = pl.program_id(0)

        # ---- t == 0: zero the recurrent state ------------------------------
        @pl.when(t == 0)
        def _init():
            for r in (*xhm_s, *cm_s, xgen_s, stack_s):
                r[...] = jnp.zeros_like(r)

        # ---- input selection / scheduled sampling --------------------------
        cp0 = cin_pads[0]

        @pl.when(t < input_length)
        def _copy_frame():
            xhm_s[0][0:cp0, :] = frame_ref[0]

        @pl.when(t >= input_length)
        def _blend():
            mv = maskv_ref[0]
            xhm_s[0][0:cp0, :] = mv * frame_ref[0] + (1.0 - mv) * xgen_s[...]

        nh_last = num_hidden[-1]
        # spatio-temporal memory from the last layer of the previous timestep
        m_val = cm_s[num_layers - 1][nh_last:2 * nh_last, :]

        def build_stack(src, blk):
            """Roll `src` (blk rows, NL lanes) by every 3x3 tap, mask lanes whose
            source pixel is out of image, store bf16 into tap-block k of stack_s."""
            for k, d in enumerate(tap_shifts):
                if d == 0:
                    masked = src                       # centre tap: always valid
                else:
                    rolled = pltpu.roll(src, shift=(-d) % NL, axis=1)
                    masked = rolled * mtap_ref[k, 0:blk, :]
                stack_s[k * blk:(k + 1) * blk, :] = masked.astype(jnp.bfloat16)

        h_new = None
        for i in range(num_layers):
            nh = num_hidden[i]
            cp = cin_pads[i]
            kpad = kpads[i]

            # write this layer's input and the incoming memory into its slab
            if i > 0:
                xhm_s[i][0:cp, :] = h_new
            xhm_s[i][cp + nh:cp + 2 * nh, :] = m_val

            # fused conv_x / conv_h / conv_m : one MXU matmul over the tap stack
            build_stack(xhm_s[i][...], kpad)
            gates_s[0:14 * nh, :] = jnp.dot(
                w_refs[2 * i][...], stack_s[0:9 * kpad, :],
                preferred_element_type=jnp.float32)

            def g(idx, nh=nh):
                return gates_s[idx * nh:(idx + 1) * nh, :]

            # ---- c branch ----
            c_old = cm_s[i][0:nh, :]
            i_t = jax.nn.sigmoid(g(0) + g(7))
            f_t = jax.nn.sigmoid(g(1) + g(8) + 1.0)    # forget bias = 1.0
            g_t = jnp.tanh(g(2) + g(9))
            c_new = f_t * c_old + i_t * g_t
            cm_s[i][0:nh, :] = c_new

            # ---- m branch ----
            i_tp = jax.nn.sigmoid(g(3) + g(11))
            f_tp = jax.nn.sigmoid(g(4) + g(12) + 1.0)
            g_tp = jnp.tanh(g(5) + g(13))
            m_new = f_tp * m_val + i_tp * g_tp
            cm_s[i][nh:2 * nh, :] = m_new

            # fused conv_o + cell-level 1x1 conv_last over [c_new; m_new]
            build_stack(cm_s[i][...], 2 * nh)
            om = jnp.dot(w_refs[2 * i + 1][...], stack_s[0:9 * 2 * nh, :],
                         preferred_element_type=jnp.float32)      # (2nh, NL)
            o_t = jax.nn.sigmoid(g(6) + g(10) + om[0:nh, :])
            h_new = o_t * jnp.tanh(om[nh:2 * nh, :])
            xhm_s[i][cp:cp + nh, :] = h_new            # persist h for next step
            m_val = m_new

        # ---- model-level 1x1 conv_last + activation (epilogue) --------------
        xg = jnp.dot(w_refs[2 * num_layers][...], h_new.astype(jnp.bfloat16),
                     preferred_element_type=jnp.float32)          # (cpad, NL)
        if activation == "sigmoid":
            xg = jax.nn.sigmoid(xg)
        elif activation == "leaky":
            xg = jnp.where(xg > 0, xg, 0.01 * xg)
        xgen_s[...] = xg
        out_ref[0] = xg

    return kernel


# ----------------------------------------------------------------------------
# Weight fusion (one-time glue): HWIO conv weights -> transposed fused matrices
# ----------------------------------------------------------------------------
def build_fused_weights(raw, cfg):
    num_layers = cfg["num_layers"]
    nhs = cfg["num_hidden"]
    C = cfg["frame_channel"]
    cpad = _round_up(C, 8)

    weights = []
    for i in range(num_layers):
        nh = nhs[i]
        cin = C if i == 0 else nhs[i - 1]
        cin_pad = _round_up(cin, 8)
        kpad = _round_up(cin_pad + 2 * nh, 16)          # bf16-tile aligned tap block
        p = raw["cells"][i]
        w1 = jnp.zeros((14 * nh, 9 * kpad), jnp.float32)
        w2 = jnp.zeros((2 * nh, 9 * 2 * nh), jnp.float32)
        for dy in range(3):
            for dx in range(3):
                k = dy * 3 + dx
                c0 = k * kpad
                w1 = w1.at[0:7 * nh, c0:c0 + cin].set(p["Wx"][dy, dx].T)
                w1 = w1.at[7 * nh:11 * nh,
                           c0 + cin_pad:c0 + cin_pad + nh].set(p["Wh"][dy, dx].T)
                w1 = w1.at[11 * nh:14 * nh,
                           c0 + cin_pad + nh:c0 + cin_pad + 2 * nh].set(p["Wm"][dy, dx].T)
                w2 = w2.at[0:nh, k * 2 * nh:(k + 1) * 2 * nh].set(p["Wo"][dy, dx].T)
        # cell-level 1x1 conv_last uses only the centre tap (dy=dx=1 -> k=4)
        w2 = w2.at[nh:2 * nh, 4 * 2 * nh:5 * 2 * nh].set(p["Wlast"].T)
        weights += [w1.astype(jnp.bfloat16), w2.astype(jnp.bfloat16)]

    wfin = (jnp.zeros((cpad, nhs[-1]), jnp.float32)
            .at[:C, :].set(raw["W_final"].T).astype(jnp.bfloat16))
    weights.append(wfin)
    return weights


def build_tap_mask_expanded(H, W, B, rows):
    """(9, rows, B*H*W) f32; page k = validity of tap k, replicated over rows
    and tiled over the batch (lane = b*HW + y*W + x)."""
    ys = jnp.arange(H).reshape(H, 1)
    xs = jnp.arange(W).reshape(1, W)
    taps = []
    for dy in range(3):
        for dx in range(3):
            oy, ox = dy - 1, dx - 1
            m = ((ys + oy >= 0) & (ys + oy < H) &
                 (xs + ox >= 0) & (xs + ox < W)).astype(jnp.float32)
            taps.append(jnp.tile(m.reshape(H * W), (B,)))       # (B*HW,)
    tap = jnp.stack(taps, axis=0)                               # (9, B*HW)
    return jnp.asarray(jnp.broadcast_to(tap[:, None, :], (9, rows, B * H * W)))


# ----------------------------------------------------------------------------
# Forward (single pallas_call)
# ----------------------------------------------------------------------------
def predrnn_forward_pallas(weights, frames, mask_true, cfg):
    """frames: (B, T, H, W, C); mask_true: (B, T-input_length-1, H, W, C)."""
    B, T, H, W, C = frames.shape
    num_layers = cfg["num_layers"]
    nhs = list(cfg["num_hidden"])
    input_length = cfg["input_length"]
    HW = H * W
    NL = B * HW
    cpad = _round_up(C, 8)

    assert all(nh == nhs[0] for nh in nhs), "PredRNN memory path needs equal num_hidden"
    assert nhs[0] % 8 == 0, "num_hidden must be a multiple of 8"
    assert NL % 128 == 0, "batch * H * W must be a multiple of 128 lanes"
    assert not cfg["layer_norm"]  # TODO(synk): layer_norm=True branch not implemented

    cin_pads = [cpad] + [_round_up(nhs[i - 1], 8) for i in range(1, num_layers)]
    kpads = [_round_up(cin_pads[i] + 2 * nhs[i], 16) for i in range(num_layers)]
    kpad_max = max(kpads)
    rows_mask = max(kpad_max, 2 * max(nhs))

    # (B, n, H, W, C) -> (n, cpad, B*H*W): channel-first, batch merged into lanes
    def to_tcl(x):
        n = x.shape[1]
        xt = jnp.transpose(x, (1, 4, 0, 2, 3)).reshape(n, C, NL)
        return jnp.pad(xt, ((0, 0), (0, cpad - C), (0, 0)))

    frames_t = to_tcl(frames)
    mask_t = to_tcl(mask_true)
    mtap = build_tap_mask_expanded(H, W, B, rows_mask)

    kernel = make_predrnn_kernel(num_layers, nhs, cin_pads, kpads, input_length,
                                 cfg["activation"], H, W, B)

    in_specs = [
        pl.BlockSpec((1, cpad, NL), lambda t: (t, 0, 0)),
        pl.BlockSpec((1, cpad, NL),
                     lambda t: (jnp.maximum(t - input_length, 0), 0, 0)),
        pl.BlockSpec(mtap.shape, lambda t: (0, 0, 0)),
    ]
    for w in weights:
        in_specs.append(pl.BlockSpec(w.shape, lambda t: (0, 0)))

    scratch_shapes = (
        [pltpu.VMEM((kpads[i], NL), jnp.float32) for i in range(num_layers)]   # [x;h;m]
        + [pltpu.VMEM((2 * nhs[i], NL), jnp.float32) for i in range(num_layers)]  # [c;m]
        + [pltpu.VMEM((cpad, NL), jnp.float32),                                 # x_gen
           pltpu.VMEM((9 * kpad_max, NL), jnp.bfloat16),                        # tap stack
           pltpu.VMEM((14 * max(nhs), NL), jnp.float32)])                       # gates

    # advisory cost estimate for the XLA scheduler
    flops = trans = 0
    for i in range(num_layers):
        nh = nhs[i]
        flops += 2 * (14 * nh) * (9 * kpads[i]) * NL + 2 * (2 * nh) * (9 * 2 * nh) * NL
        trans += 8 * nh * NL
    flops += 2 * cpad * nhs[-1] * NL
    trans += cpad * NL
    steps = T - 1
    bytes_acc = ((frames_t.size + mask_t.size + mtap.size) * 4
                 + steps * cpad * NL * 4
                 + sum(int(w.size) * 2 for w in weights))
    cost = pl.CostEstimate(flops=int(flops * steps),
                           transcendentals=int(trans * steps),
                           bytes_accessed=int(bytes_acc))

    out = pl.pallas_call(
        kernel,
        out_shape=jax.ShapeDtypeStruct((T - 1, cpad, NL), jnp.float32),
        grid=(T - 1,),
        in_specs=in_specs,
        out_specs=pl.BlockSpec((1, cpad, NL), lambda t: (t, 0, 0)),
        scratch_shapes=scratch_shapes,
        compiler_params=pltpu.CompilerParams(dimension_semantics=("arbitrary",)),
        cost_estimate=cost,
    )(frames_t, mask_t, mtap, *weights)

    out = out[:, :C, :].reshape(T - 1, C, B, H, W)
    return jnp.transpose(out, (2, 0, 3, 4, 1))        # (B, T-1, H, W, C)


# ----------------------------------------------------------------------------
# Pure-JAX reference (mirrors the PyTorch module; used for a correctness check)
# ----------------------------------------------------------------------------
def predrnn_reference(raw, frames, mask_true, cfg):
    B, T, H, W, C = frames.shape
    num_layers = cfg["num_layers"]
    nhs = cfg["num_hidden"]
    input_length = cfg["input_length"]

    def conv3x3(x, w):   # x: (B,H,W,Cin), w: (3,3,Cin,Cout), SAME, no bias
        xp = jnp.pad(x, ((0, 0), (1, 1), (1, 1), (0, 0)))
        out = jnp.zeros(x.shape[:3] + (w.shape[-1],), jnp.float32)
        for dy in range(3):
            for dx in range(3):
                out = out + jnp.einsum("bhwc,co->bhwo",
                                       xp[:, dy:dy + H, dx:dx + W, :], w[dy, dx],
                                       precision="highest")
        return out

    def cell(p, nh, x, h, c, m):
        xc = conv3x3(x, p["Wx"])
        hc = conv3x3(h, p["Wh"])
        mc = conv3x3(m, p["Wm"])
        i_x, f_x, g_x, i_xp, f_xp, g_xp, o_x = jnp.split(xc, 7, axis=-1)
        i_h, f_h, g_h, o_h = jnp.split(hc, 4, axis=-1)
        i_m, f_m, g_m = jnp.split(mc, 3, axis=-1)
        i_t = jax.nn.sigmoid(i_x + i_h)
        f_t = jax.nn.sigmoid(f_x + f_h + 1.0)
        g_t = jnp.tanh(g_x + g_h)
        c_new = f_t * c + i_t * g_t
        i_tp = jax.nn.sigmoid(i_xp + i_m)
        f_tp = jax.nn.sigmoid(f_xp + f_m + 1.0)
        g_tp = jnp.tanh(g_xp + g_m)
        m_new = f_tp * m + i_tp * g_tp
        mem = jnp.concatenate([c_new, m_new], axis=-1)
        o_t = jax.nn.sigmoid(o_x + o_h + conv3x3(mem, p["Wo"]))
        h_new = o_t * jnp.tanh(jnp.einsum("bhwc,co->bhwo", mem, p["Wlast"],
                                          precision="highest"))
        return h_new, c_new, m_new

    h_t = [jnp.zeros((B, H, W, nhs[i]), jnp.float32) for i in range(num_layers)]
    c_t = [jnp.zeros((B, H, W, nhs[i]), jnp.float32) for i in range(num_layers)]
    memory = jnp.zeros((B, H, W, nhs[0]), jnp.float32)
    outs = []
    x_gen = None
    for t in range(cfg["total_length"] - 1):
        if t < input_length:
            net = frames[:, t]
        else:
            mt = mask_true[:, t - input_length]
            net = mt * frames[:, t] + (1.0 - mt) * x_gen
        h_t[0], c_t[0], memory = cell(raw["cells"][0], nhs[0], net, h_t[0], c_t[0], memory)
        for i in range(1, num_layers):
            h_t[i], c_t[i], memory = cell(raw["cells"][i], nhs[i], h_t[i - 1], h_t[i],
                                          c_t[i], memory)
        x_gen = jnp.einsum("bhwc,co->bhwo", h_t[-1], raw["W_final"],
                           precision="highest")
        if cfg["activation"] == "sigmoid":
            x_gen = jax.nn.sigmoid(x_gen)
        elif cfg["activation"] == "leaky":
            x_gen = jnp.where(x_gen > 0, x_gen, 0.01 * x_gen)
        outs.append(x_gen)
    return jnp.stack(outs, axis=1)


# ----------------------------------------------------------------------------
# Deterministic parameter initialization (HWIO conv weights, bias=False)
# ----------------------------------------------------------------------------
def init_raw_params(key, cfg):
    num_layers = cfg["num_layers"]
    nhs = cfg["num_hidden"]
    C = cfg["frame_channel"]
    scale = 0.1
    cells = []
    for i in range(num_layers):
        cin = C if i == 0 else nhs[i - 1]
        nh = nhs[i]
        key, k1, k2, k3, k4, k5 = jax.random.split(key, 6)
        cells.append({
            "Wx": scale * jax.random.normal(k1, (3, 3, cin, 7 * nh), jnp.float32),
            "Wh": scale * jax.random.normal(k2, (3, 3, nh, 4 * nh), jnp.float32),
            "Wm": scale * jax.random.normal(k3, (3, 3, nh, 3 * nh), jnp.float32),
            "Wo": scale * jax.random.normal(k4, (3, 3, 2 * nh, nh), jnp.float32),
            "Wlast": scale * jax.random.normal(k5, (2 * nh, nh), jnp.float32),
        })
    key, kf = jax.random.split(key)
    w_final = scale * jax.random.normal(kf, (nhs[-1], C), jnp.float32)
    return {"cells": cells, "W_final": w_final}


# ----------------------------------------------------------------------------
# Main
# ----------------------------------------------------------------------------
if __name__ == "__main__":
    cfg = dict(
        num_layers=2,
        num_hidden=[8, 8],
        patch_size=1,
        img_channel=4,
        img_height=16,
        img_width=16,
        filter_size=3,
        stride=1,
        layer_norm=False,   # TODO(synk): layer_norm=True branch not implemented
        total_length=8,
        input_length=4,
        activation="sigmoid",
    )
    cfg["frame_channel"] = cfg["patch_size"] * cfg["patch_size"] * cfg["img_channel"]

    B = 2
    H = cfg["img_height"] // cfg["patch_size"]
    W = cfg["img_width"] // cfg["patch_size"]
    C = cfg["frame_channel"]
    T = cfg["total_length"]

    key = jax.random.PRNGKey(0)
    key, kx, km, kp = jax.random.split(key, 4)
    frames = jax.random.normal(kx, (B, T, H, W, C), jnp.float32)
    n_mask = cfg["total_length"] - cfg["input_length"] - 1
    mask_true = jax.random.bernoulli(km, 0.5, (B, n_mask, H, W, C)).astype(jnp.float32)

    raw = init_raw_params(kp, cfg)
    weights = build_fused_weights(raw, cfg)

    fwd = jax.jit(functools.partial(predrnn_forward_pallas, cfg=cfg))
    out = jax.block_until_ready(fwd(weights, frames, mask_true))

    assert out.shape == (B, T - 1, H, W, C), out.shape
    assert bool(jnp.all(jnp.isfinite(out)))

    ref = jax.block_until_ready(
        jax.jit(functools.partial(predrnn_reference, cfg=cfg))(raw, frames, mask_true))
    max_err = float(jnp.max(jnp.abs(out - ref)))
    # bf16 MXU operands with f32 accumulation: allow a slightly looser tolerance
    assert max_err < 3e-2, f"max abs err = {max_err}"

    print("KERNEL_OK")
</pallas_src>

<mosaic_0001>
module attributes {stable_mosaic.version = 11 : i64} {
  func.func @kernel(%arg0: i32, %arg1: memref<1x8x512xf32, #tpu.memory_space<vmem>>, %arg2: memref<1x8x512xf32, #tpu.memory_space<vmem>>, %arg3: memref<9x32x512xf32, #tpu.memory_space<vmem>>, %arg4: memref<112x288xbf16, #tpu.memory_space<vmem>>, %arg5: memref<16x144xbf16, #tpu.memory_space<vmem>>, %arg6: memref<112x288xbf16, #tpu.memory_space<vmem>>, %arg7: memref<16x144xbf16, #tpu.memory_space<vmem>>, %arg8: memref<8x8xbf16, #tpu.memory_space<vmem>>, %arg9: memref<1x8x512xf32, #tpu.memory_space<vmem>>, %arg10: memref<32x512xf32, #tpu.memory_space<vmem>>, %arg11: memref<32x512xf32, #tpu.memory_space<vmem>>, %arg12: memref<16x512xf32, #tpu.memory_space<vmem>>, %arg13: memref<16x512xf32, #tpu.memory_space<vmem>>, %arg14: memref<8x512xf32, #tpu.memory_space<vmem>>, %arg15: memref<288x512xbf16, #tpu.memory_space<vmem>>, %arg16: memref<112x512xf32, #tpu.memory_space<vmem>>) attributes {dimension_semantics = [#tpu.dimension_semantics<arbitrary>], iteration_bounds = array<i64: 7>, scalar_prefetch = 0 : i64, scratch_operands = 7 : i64, tpu.core_type = #tpu.core_type<tc>, window_params = [{transform_indices = @transform_0, window_bounds = array<i64: 1, 8, 512>}, {transform_indices = @transform_1, window_bounds = array<i64: 1, 8, 512>}, {pipeline_mode = #tpu.pipeline_mode<synchronous>, transform_indices = @transform_2, window_bounds = array<i64: 9, 32, 512>}, {pipeline_mode = #tpu.pipeline_mode<synchronous>, transform_indices = @transform_3, window_bounds = array<i64: 112, 288>}, {pipeline_mode = #tpu.pipeline_mode<synchronous>, transform_indices = @transform_4, window_bounds = array<i64: 16, 144>}, {pipeline_mode = #tpu.pipeline_mode<synchronous>, transform_indices = @transform_5, window_bounds = array<i64: 112, 288>}, {pipeline_mode = #tpu.pipeline_mode<synchronous>, transform_indices = @transform_6, window_bounds = array<i64: 16, 144>}, {pipeline_mode = #tpu.pipeline_mode<synchronous>, transform_indices = @transform_7, window_bounds = array<i64: 8, 8>}, {transform_indices = @transform_8, window_bounds = array<i64: 1, 8, 512>}]} {
    %c0_i32 = arith.constant 0 : i32
    %0 = arith.cmpi eq, %arg0, %c0_i32 : i32
    %1 = arith.extui %0 : i1 to i32
    %c0_i32_0 = arith.constant 0 : i32
    %2 = arith.cmpi ne, %1, %c0_i32_0 : i32
    scf.if %2 {
      %cst_304 = arith.constant 0.000000e+00 : f32
      %377 = vector.broadcast %cst_304 : f32 to vector<32x512xf32>
      %c0_305 = arith.constant 0 : index
      %c0_306 = arith.constant 0 : index
      %378 = vector.load %arg10[%c0_305, %c0_306] : memref<32x512xf32, #tpu.memory_space<vmem>>, vector<32x512xf32>
      tpu.vector_store %arg10[%c0_305, %c0_306], %377 {strides = array<i32>} : memref<32x512xf32, #tpu.memory_space<vmem>>, vector<32x512xf32>,
      %cst_307 = arith.constant 0.000000e+00 : f32
      %379 = vector.broadcast %cst_307 : f32 to vector<32x512xf32>
      %c0_308 = arith.constant 0 : index
      %c0_309 = arith.constant 0 : index
      %380 = vector.load %arg11[%c0_308, %c0_309] : memref<32x512xf32, #tpu.memory_space<vmem>>, vector<32x512xf32>
      tpu.vector_store %arg11[%c0_308, %c0_309], %379 {strides = array<i32>} : memref<32x512xf32, #tpu.memory_space<vmem>>, vector<32x512xf32>,
      %cst_310 = arith.constant 0.000000e+00 : f32
      %381 = vector.broadcast %cst_310 : f32 to vector<16x512xf32>
      %c0_311 = arith.constant 0 : index
      %c0_312 = arith.constant 0 : index
      %382 = vector.load %arg12[%c0_311, %c0_312] : memref<16x512xf32, #tpu.memory_space<vmem>>, vector<16x512xf32>
      tpu.vector_store %arg12[%c0_311, %c0_312], %381 {strides = array<i32>} : memref<16x512xf32, #tpu.memory_space<vmem>>, vector<16x512xf32>,
      %cst_313 = arith.constant 0.000000e+00 : f32
      %383 = vector.broadcast %cst_313 : f32 to vector<16x512xf32>
      %c0_314 = arith.constant 0 : index
      %c0_315 = arith.constant 0 : index
      %384 = vector.load %arg13[%c0_314, %c0_315] : memref<16x512xf32, #tpu.memory_space<vmem>>, vector<16x512xf32>
      tpu.vector_store %arg13[%c0_314, %c0_315], %383 {strides = array<i32>} : memref<16x512xf32, #tpu.memory_space<vmem>>, vector<16x512xf32>,
      %cst_316 = arith.constant 0.000000e+00 : f32
      %385 = vector.broadcast %cst_316 : f32 to vector<8x512xf32>
      %c0_317 = arith.constant 0 : index
      %c0_318 = arith.constant 0 : index
      %386 = vector.load %arg14[%c0_317, %c0_318] : memref<8x512xf32, #tpu.memory_space<vmem>>, vector<8x512xf32>
      tpu.vector_store %arg14[%c0_317, %c0_318], %385 {strides = array<i32>} : memref<8x512xf32, #tpu.memory_space<vmem>>, vector<8x512xf32>,
      %cst_319 = arith.constant 0.000000e+00 : bf16
      %387 = vector.broadcast %cst_319 : bf16 to vector<288x512xbf16>
      %c0_320 = arith.constant 0 : index
      %c0_321 = arith.constant 0 : index
      %388 = vector.load %arg15[%c0_320, %c0_321] : memref<288x512xbf16, #tpu.memory_space<vmem>>, vector<288x512xbf16>
      tpu.vector_store %arg15[%c0_320, %c0_321], %387 {strides = array<i32>} : memref<288x512xbf16, #tpu.memory_space<vmem>>, vector<288x512xbf16>,
    } else {
    }
    %c4_i32 = arith.constant 4 : i32
    %3 = arith.cmpi slt, %arg0, %c4_i32 : i32
    %4 = arith.extui %3 : i1 to i32
    %c0_i32_1 = arith.constant 0 : i32
    %5 = arith.cmpi ne, %4, %c0_i32_1 : i32
    scf.if %5 {
      %c0_304 = arith.constant 0 : index
      %c0_305 = arith.constant 0 : index
      %c0_306 = arith.constant 0 : index
      %377 = vector.load %arg1[%c0_304, %c0_305, %c0_306] : memref<1x8x512xf32, #tpu.memory_space<vmem>>, vector<1x8x512xf32>
      %378 = vector.shape_cast %377 : vector<1x8x512xf32> to vector<8x512xf32>
      %c0_307 = arith.constant 0 : index
      %c0_308 = arith.constant 0 : index
      %379 = vector.load %arg10[%c0_307, %c0_308] : memref<32x512xf32, #tpu.memory_space<vmem>>, vector<8x512xf32>
      tpu.vector_store %arg10[%c0_307, %c0_308], %378 {strides = array<i32>} : memref<32x512xf32, #tpu.memory_space<vmem>>, vector<8x512xf32>,
    } else {
    }
    %c4_i32_2 = arith.constant 4 : i32
    %6 = arith.cmpi sge, %arg0, %c4_i32_2 : i32
    %7 = arith.extui %6 : i1 to i32
    %c0_i32_3 = arith.constant 0 : i32
    %8 = arith.cmpi ne, %7, %c0_i32_3 : i32
    scf.if %8 {
      %c0_304 = arith.constant 0 : index
      %c0_305 = arith.constant 0 : index
      %c0_306 = arith.constant 0 : index
      %377 = vector.load %arg2[%c0_304, %c0_305, %c0_306] : memref<1x8x512xf32, #tpu.memory_space<vmem>>, vector<1x8x512xf32>
      %378 = vector.shape_cast %377 : vector<1x8x512xf32> to vector<8x512xf32>
      %c0_307 = arith.constant 0 : index
      %c0_308 = arith.constant 0 : index
      %c0_309 = arith.constant 0 : index
      %379 = vector.load %arg1[%c0_307, %c0_308, %c0_309] : memref<1x8x512xf32, #tpu.memory_space<vmem>>, vector<1x8x512xf32>
      %380 = vector.shape_cast %379 : vector<1x8x512xf32> to vector<8x512xf32>
      %381 = arith.mulf %378, %380 : vector<8x512xf32>
      %cst_310 = arith.constant 1.000000e+00 : f32
      %382 = vector.broadcast %cst_310 : f32 to vector<8x512xf32>
      %383 = arith.subf %382, %378 : vector<8x512xf32>
      %c0_311 = arith.constant 0 : index
      %c0_312 = arith.constant 0 : index
      %384 = vector.load %arg14[%c0_311, %c0_312] : memref<8x512xf32, #tpu.memory_space<vmem>>, vector<8x512xf32>
      %385 = arith.mulf %383, %384 : vector<8x512xf32>
      %386 = arith.addf %381, %385 : vector<8x512xf32>
      %c0_313 = arith.constant 0 : index
      %c0_314 = arith.constant 0 : index
      %387 = vector.load %arg10[%c0_313, %c0_314] : memref<32x512xf32, #tpu.memory_space<vmem>>, vector<8x512xf32>
      tpu.vector_store %arg10[%c0_313, %c0_314], %386 {strides = array<i32>} : memref<32x512xf32, #tpu.memory_space<vmem>>, vector<8x512xf32>,
    } else {
    }
    %c8 = arith.constant 8 : index
    %c0 = arith.constant 0 : index
    %9 = vector.load %arg13[%c8, %c0] : memref<16x512xf32, #tpu.memory_space<vmem>>, vector<8x512xf32>
    %c16 = arith.constant 16 : index
    %c0_4 = arith.constant 0 : index
    %10 = vector.load %arg10[%c16, %c0_4] : memref<32x512xf32, #tpu.memory_space<vmem>>, vector<8x512xf32>
    tpu.vector_store %arg10[%c16, %c0_4], %9 {strides = array<i32>} : memref<32x512xf32, #tpu.memory_space<vmem>>, vector<8x512xf32>,
    %c0_5 = arith.constant 0 : index
    %c0_6 = arith.constant 0 : index
    %11 = vector.load %arg10[%c0_5, %c0_6] : memref<32x512xf32, #tpu.memory_space<vmem>>, vector<32x512xf32>
    %c17_i32 = arith.constant 17 : i32
    %12 = tpu.dynamic_rotate %11 by %c17_i32 dim 1 : vector<32x512xf32>, i32 -> vector<32x512xf32>
    %c0_7 = arith.constant 0 : index
    %c0_8 = arith.constant 0 : index
    %c0_9 = arith.constant 0 : index
    %13 = vector.load %arg3[%c0_7, %c0_8, %c0_9] : memref<9x32x512xf32, #tpu.memory_space<vmem>>, vector<1x32x512xf32>
    %14 = vector.shape_cast %13 : vector<1x32x512xf32> to vector<32x512xf32>
    %15 = arith.mulf %12, %14 : vector<32x512xf32>
    %16 = arith.truncf %15 : vector<32x512xf32> to vector<32x512xbf16>
    %c0_10 = arith.constant 0 : index
    %c0_11 = arith.constant 0 : index
    %17 = vector.load %arg15[%c0_10, %c0_11] : memref<288x512xbf16, #tpu.memory_space<vmem>>, vector<32x512xbf16>
    tpu.vector_store %arg15[%c0_10, %c0_11], %16 {strides = array<i32>} : memref<288x512xbf16, #tpu.memory_space<vmem>>, vector<32x512xbf16>,
    %c16_i32 = arith.constant 16 : i32
    %18 = tpu.dynamic_rotate %11 by %c16_i32 dim 1 : vector<32x512xf32>, i32 -> vector<32x512xf32>
    %c1 = arith.constant 1 : index
    %c0_12 = arith.constant 0 : index
    %c0_13 = arith.constant 0 : index
    %19 = vector.load %arg3[%c1, %c0_12, %c0_13] : memref<9x32x512xf32, #tpu.memory_space<vmem>>, vector<1x32x512xf32>
    %20 = vector.shape_cast %19 : vector<1x32x512xf32> to vector<32x512xf32>
    %21 = arith.mulf %18, %20 : vector<32x512xf32>
    %22 = arith.truncf %21 : vector<32x512xf32> to vector<32x512xbf16>
    %c32 = arith.constant 32 : index
    %c0_14 = arith.constant 0 : index
    %23 = vector.load %arg15[%c32, %c0_14] : memref<288x512xbf16, #tpu.memory_space<vmem>>, vector<32x512xbf16>
    tpu.vector_store %arg15[%c32, %c0_14], %22 {strides = array<i32>} : memref<288x512xbf16, #tpu.memory_space<vmem>>, vector<32x512xbf16>,
    %c15_i32 = arith.constant 15 : i32
    %24 = tpu.dynamic_rotate %11 by %c15_i32 dim 1 : vector<32x512xf32>, i32 -> vector<32x512xf32>
    %c2 = arith.constant 2 : index
    %c0_15 = arith.constant 0 : index
    %c0_16 = arith.constant 0 : index
    %25 = vector.load %arg3[%c2, %c0_15, %c0_16] : memref<9x32x512xf32, #tpu.memory_space<vmem>>, vector<1x32x512xf32>
    %26 = vector.shape_cast %25 : vector<1x32x512xf32> to vector<32x512xf32>
    %27 = arith.mulf %24, %26 : vector<32x512xf32>
    %28 = arith.truncf %27 : vector<32x512xf32> to vector<32x512xbf16>
    %c64 = arith.constant 64 : index
    %c0_17 = arith.constant 0 : index
    %29 = vector.load %arg15[%c64, %c0_17] : memref<288x512xbf16, #tpu.memory_space<vmem>>, vector<32x512xbf16>
    tpu.vector_store %arg15[%c64, %c0_17], %28 {strides = array<i32>} : memref<288x512xbf16, #tpu.memory_space<vmem>>, vector<32x512xbf16>,
    %c1_i32 = arith.constant 1 : i32
    %30 = tpu.dynamic_rotate %11 by %c1_i32 dim 1 : vector<32x512xf32>, i32 -> vector<32x512xf32>
    %c3 = arith.constant 3 : index
    %c0_18 = arith.constant 0 : index
    %c0_19 = arith.constant 0 : index
    %31 = vector.load %arg3[%c3, %c0_18, %c0_19] : memref<9x32x512xf32, #tpu.memory_space<vmem>>, vector<1x32x512xf32>
    %32 = vector.shape_cast %31 : vector<1x32x512xf32> to vector<32x512xf32>
    %33 = arith.mulf %30, %32 : vector<32x512xf32>
    %34 = arith.truncf %33 : vector<32x512xf32> to vector<32x512xbf16>
    %c96 = arith.constant 96 : index
    %c0_20 = arith.constant 0 : index
    %35 = vector.load %arg15[%c96, %c0_20] : memref<288x512xbf16, #tpu.memory_space<vmem>>, vector<32x512xbf16>
    tpu.vector_store %arg15[%c96, %c0_20], %34 {strides = array<i32>} : memref<288x512xbf16, #tpu.memory_space<vmem>>, vector<32x512xbf16>,
    %36 = arith.truncf %11 : vector<32x512xf32> to vector<32x512xbf16>
    %c128 = arith.constant 128 : index
    %c0_21 = arith.constant 0 : index
    %37 = vector.load %arg15[%c128, %c0_21] : memref<288x512xbf16, #tpu.memory_space<vmem>>, vector<32x512xbf16>
    tpu.vector_store %arg15[%c128, %c0_21], %36 {strides = array<i32>} : memref<288x512xbf16, #tpu.memory_space<vmem>>, vector<32x512xbf16>,
    %c511_i32 = arith.constant 511 : i32
    %38 = tpu.dynamic_rotate %11 by %c511_i32 dim 1 : vector<32x512xf32>, i32 -> vector<32x512xf32>
    %c5 = arith.constant 5 : index
    %c0_22 = arith.constant 0 : index
    %c0_23 = arith.constant 0 : index
    %39 = vector.load %arg3[%c5, %c0_22, %c0_23] : memref<9x32x512xf32, #tpu.memory_space<vmem>>, vector<1x32x512xf32>
    %40 = vector.shape_cast %39 : vector<1x32x512xf32> to vector<32x512xf32>
    %41 = arith.mulf %38, %40 : vector<32x512xf32>
    %42 = arith.truncf %41 : vector<32x512xf32> to vector<32x512xbf16>
    %c160 = arith.constant 160 : index
    %c0_24 = arith.constant 0 : index
    %43 = vector.load %arg15[%c160, %c0_24] : memref<288x512xbf16, #tpu.memory_space<vmem>>, vector<32x512xbf16>
    tpu.vector_store %arg15[%c160, %c0_24], %42 {strides = array<i32>} : memref<288x512xbf16, #tpu.memory_space<vmem>>, vector<32x512xbf16>,
    %c497_i32 = arith.constant 497 : i32
    %44 = tpu.dynamic_rotate %11 by %c497_i32 dim 1 : vector<32x512xf32>, i32 -> vector<32x512xf32>
    %c6 = arith.constant 6 : index
    %c0_25 = arith.constant 0 : index
    %c0_26 = arith.constant 0 : index
    %45 = vector.load %arg3[%c6, %c0_25, %c0_26] : memref<9x32x512xf32, #tpu.memory_space<vmem>>, vector<1x32x512xf32>
    %46 = vector.shape_cast %45 : vector<1x32x512xf32> to vector<32x512xf32>
    %47 = arith.mulf %44, %46 : vector<32x512xf32>
    %48 = arith.truncf %47 : vector<32x512xf32> to vector<32x512xbf16>
    %c192 = arith.constant 192 : index
    %c0_27 = arith.constant 0 : index
    %49 = vector.load %arg15[%c192, %c0_27] : memref<288x512xbf16, #tpu.memory_space<vmem>>, vector<32x512xbf16>
    tpu.vector_store %arg15[%c192, %c0_27], %48 {strides = array<i32>} : memref<288x512xbf16, #tpu.memory_space<vmem>>, vector<32x512xbf16>,
    %c496_i32 = arith.constant 496 : i32
    %50 = tpu.dynamic_rotate %11 by %c496_i32 dim 1 : vector<32x512xf32>, i32 -> vector<32x512xf32>
    %c7 = arith.constant 7 : index
    %c0_28 = arith.constant 0 : index
    %c0_29 = arith.constant 0 : index
    %51 = vector.load %arg3[%c7, %c0_28, %c0_29] : memref<9x32x512xf32, #tpu.memory_space<vmem>>, vector<1x32x512xf32>
    %52 = vector.shape_cast %51 : vector<1x32x512xf32> to vector<32x512xf32>
    %53 = arith.mulf %50, %52 : vector<32x512xf32>
    %54 = arith.truncf %53 : vector<32x512xf32> to vector<32x512xbf16>
    %c224 = arith.constant 224 : index
    %c0_30 = arith.constant 0 : index
    %55 = vector.load %arg15[%c224, %c0_30] : memref<288x512xbf16, #tpu.memory_space<vmem>>, vector<32x512xbf16>
    tpu.vector_store %arg15[%c224, %c0_30], %54 {strides = array<i32>} : memref<288x512xbf16, #tpu.memory_space<vmem>>, vector<32x512xbf16>,
    %c495_i32 = arith.constant 495 : i32
    %56 = tpu.dynamic_rotate %11 by %c495_i32 dim 1 : vector<32x512xf32>, i32 -> vector<32x512xf32>
    %c8_31 = arith.constant 8 : index
    %c0_32 = arith.constant 0 : index
    %c0_33 = arith.constant 0 : index
    %57 = vector.load %arg3[%c8_31, %c0_32, %c0_33] : memref<9x32x512xf32, #tpu.memory_space<vmem>>, vector<1x32x512xf32>
    %58 = vector.shape_cast %57 : vector<1x32x512xf32> to vector<32x512xf32>
    %59 = arith.mulf %56, %58 : vector<32x512xf32>
    %60 = arith.truncf %59 : vector<32x512xf32> to vector<32x512xbf16>
    %c256 = arith.constant 256 : index
    %c0_34 = arith.constant 0 : index
    %61 = vector.load %arg15[%c256, %c0_34] : memref<288x512xbf16, #tpu.memory_space<vmem>>, vector<32x512xbf16>
    tpu.vector_store %arg15[%c256, %c0_34], %60 {strides = array<i32>} : memref<288x512xbf16, #tpu.memory_space<vmem>>, vector<32x512xbf16>,
    %c0_35 = arith.constant 0 : index
    %c0_36 = arith.constant 0 : index
    %62 = vector.load %arg4[%c0_35, %c0_36] : memref<112x288xbf16, #tpu.memory_space<vmem>>, vector<112x288xbf16>
    %c0_37 = arith.constant 0 : index
    %c0_38 = arith.constant 0 : index
    %63 = vector.load %arg15[%c0_37, %c0_38] : memref<288x512xbf16, #tpu.memory_space<vmem>>, vector<288x512xbf16>
    %cst = arith.constant dense<0.000000e+00> : vector<112x512xf32>
    %64 = tpu.matmul %62, %63, %cst {dimension_numbers = #tpu.dot_dimension_numbers<[1], [0], [0], [1], [0, 0, 1, 1], [], []>} : vector<112x288xbf16>, vector<288x512xbf16>, vector<112x512xf32> -> vector<112x512xf32>
    %c0_39 = arith.constant 0 : index
    %c0_40 = arith.constant 0 : index
    %65 = vector.load %arg16[%c0_39, %c0_40] : memref<112x512xf32, #tpu.memory_space<vmem>>, vector<112x512xf32>
    tpu.vector_store %arg16[%c0_39, %c0_40], %64 {strides = array<i32>} : memref<112x512xf32, #tpu.memory_space<vmem>>, vector<112x512xf32>,
    %c0_41 = arith.constant 0 : index
    %c0_42 = arith.constant 0 : index
    %66 = vector.load %arg12[%c0_41, %c0_42] : memref<16x512xf32, #tpu.memory_space<vmem>>, vector<8x512xf32>
    %c0_43 = arith.constant 0 : index
    %c0_44 = arith.constant 0 : index
    %67 = vector.load %arg16[%c0_43, %c0_44] : memref<112x512xf32, #tpu.memory_space<vmem>>, vector<8x512xf32>
    %c56 = arith.constant 56 : index
    %c0_45 = arith.constant 0 : index
    %68 = vector.load %arg16[%c56, %c0_45] : memref<112x512xf32, #tpu.memory_space<vmem>>, vector<8x512xf32>
    %69 = arith.addf %67, %68 : vector<8x512xf32>
    %70 = arith.negf %69 : vector<8x512xf32>
    %71 = math.exp %70 : vector<8x512xf32>
    %cst_46 = arith.constant 1.000000e+00 : f32
    %72 = vector.broadcast %cst_46 : f32 to vector<8x512xf32>
    %73 = arith.addf %72, %71 : vector<8x512xf32>
    %74 = arith.divf %72, %73 : vector<8x512xf32>
    %c8_47 = arith.constant 8 : index
    %c0_48 = arith.constant 0 : index
    %75 = vector.load %arg16[%c8_47, %c0_48] : memref<112x512xf32, #tpu.memory_space<vmem>>, vector<8x512xf32>
    %c64_49 = arith.constant 64 : index
    %c0_50 = arith.constant 0 : index
    %76 = vector.load %arg16[%c64_49, %c0_50] : memref<112x512xf32, #tpu.memory_space<vmem>>, vector<8x512xf32>
    %77 = arith.addf %75, %76 : vector<8x512xf32>
    %cst_51 = arith.constant 1.000000e+00 : f32
    %78 = vector.broadcast %cst_51 : f32 to vector<8x512xf32>
    %79 = arith.addf %77, %78 : vector<8x512xf32>
    %80 = arith.negf %79 : vector<8x512xf32>
    %81 = math.exp %80 : vector<8x512xf32>
    %cst_52 = arith.constant 1.000000e+00 : f32
    %82 = vector.broadcast %cst_52 : f32 to vector<8x512xf32>
    %83 = arith.addf %82, %81 : vector<8x512xf32>
    %84 = arith.divf %82, %83 : vector<8x512xf32>
    %c16_53 = arith.constant 16 : index
    %c0_54 = arith.constant 0 : index
    %85 = vector.load %arg16[%c16_53, %c0_54] : memref<112x512xf32, #tpu.memory_space<vmem>>, vector<8x512xf32>
    %c72 = arith.constant 72 : index
    %c0_55 = arith.constant 0 : index
    %86 = vector.load %arg16[%c72, %c0_55] : memref<112x512xf32, #tpu.memory_space<vmem>>, vector<8x512xf32>
    %87 = arith.addf %85, %86 : vector<8x512xf32>
    %88 = math.tanh %87 : vector<8x512xf32>
    %89 = arith.mulf %84, %66 : vector<8x512xf32>
    %90 = arith.mulf %74, %88 : vector<8x512xf32>
    %91 = arith.addf %89, %90 : vector<8x512xf32>
    %c0_56 = arith.constant 0 : index
    %c0_57 = arith.constant 0 : index
    %92 = vector.load %arg12[%c0_56, %c0_57] : memref<16x512xf32, #tpu.memory_space<vmem>>, vector<8x512xf32>
    tpu.vector_store %arg12[%c0_56, %c0_57], %91 {strides = array<i32>} : memref<16x512xf32, #tpu.memory_space<vmem>>, vector<8x512xf32>,
    %c24 = arith.constant 24 : index
    %c0_58 = arith.constant 0 : index
    %93 = vector.load %arg16[%c24, %c0_58] : memref<112x512xf32, #tpu.memory_space<vmem>>, vector<8x512xf32>
    %c88 = arith.constant 88 : index
    %c0_59 = arith.constant 0 : index
    %94 = vector.load %arg16[%c88, %c0_59] : memref<112x512xf32, #tpu.memory_space<vmem>>, vector<8x512xf32>
    %95 = arith.addf %93, %94 : vector<8x512xf32>
    %96 = arith.negf %95 : vector<8x512xf32>
    %97 = math.exp %96 : vector<8x512xf32>
    %cst_60 = arith.constant 1.000000e+00 : f32
    %98 = vector.broadcast %cst_60 : f32 to vector<8x512xf32>
    %99 = arith.addf %98, %97 : vector<8x512xf32>
    %100 = arith.divf %98, %99 : vector<8x512xf32>
    %c32_61 = arith.constant 32 : index
    %c0_62 = arith.constant 0 : index
    %101 = vector.load %arg16[%c32_61, %c0_62] : memref<112x512xf32, #tpu.memory_space<vmem>>, vector<8x512xf32>
    %c96_63 = arith.constant 96 : index
    %c0_64 = arith.constant 0 : index
    %102 = vector.load %arg16[%c96_63, %c0_64] : memref<112x512xf32, #tpu.memory_space<vmem>>, vector<8x512xf32>
    %103 = arith.addf %101, %102 : vector<8x512xf32>
    %cst_65 = arith.constant 1.000000e+00 : f32
    %104 = vector.broadcast %cst_65 : f32 to vector<8x512xf32>
    %105 = arith.addf %103, %104 : vector<8x512xf32>
    %106 = arith.negf %105 : vector<8x512xf32>
    %107 = math.exp %106 : vector<8x512xf32>
    %cst_66 = arith.constant 1.000000e+00 : f32
    %108 = vector.broadcast %cst_66 : f32 to vector<8x512xf32>
    %109 = arith.addf %108, %107 : vector<8x512xf32>
    %110 = arith.divf %108, %109 : vector<8x512xf32>
    %c40 = arith.constant 40 : index
    %c0_67 = arith.constant 0 : index
    %111 = vector.load %arg16[%c40, %c0_67] : memref<112x512xf32, #tpu.memory_space<vmem>>, vector<8x512xf32>
    %c104 = arith.constant 104 : index
    %c0_68 = arith.constant 0 : index
    %112 = vector.load %arg16[%c104, %c0_68] : memref<112x512xf32, #tpu.memory_space<vmem>>, vector<8x512xf32>
    %113 = arith.addf %111, %112 : vector<8x512xf32>
    %114 = math.tanh %113 : vector<8x512xf32>
    %115 = arith.mulf %110, %9 : vector<8x512xf32>
    %116 = arith.mulf %100, %114 : vector<8x512xf32>
    %117 = arith.addf %115, %116 : vector<8x512xf32>
    %c8_69 = arith.constant 8 : index
    %c0_70 = arith.constant 0 : index
    %118 = vector.load %arg12[%c8_69, %c0_70] : memref<16x512xf32, #tpu.memory_space<vmem>>, vector<8x512xf32>
    tpu.vector_store %arg12[%c8_69, %c0_70], %117 {strides = array<i32>} : memref<16x512xf32, #tpu.memory_space<vmem>>, vector<8x512xf32>,
    %c0_71 = arith.constant 0 : index
    %c0_72 = arith.constant 0 : index
    %119 = vector.load %arg12[%c0_71, %c0_72] : memref<16x512xf32, #tpu.memory_space<vmem>>, vector<16x512xf32>
    %c17_i32_73 = arith.constant 17 : i32
    %120 = tpu.dynamic_rotate %119 by %c17_i32_73 dim 1 : vector<16x512xf32>, i32 -> vector<16x512xf32>
    %c0_74 = arith.constant 0 : index
    %c0_75 = arith.constant 0 : index
    %c0_76 = arith.constant 0 : index
    %121 = vector.load %arg3[%c0_74, %c0_75, %c0_76] : memref<9x32x512xf32, #tpu.memory_space<vmem>>, vector<1x16x512xf32>
    %122 = vector.shape_cast %121 : vector<1x16x512xf32> to vector<16x512xf32>
    %123 = arith.mulf %120, %122 : vector<16x512xf32>
    %124 = arith.truncf %123 : vector<16x512xf32> to vector<16x512xbf16>
    %c0_77 = arith.constant 0 : index
    %c0_78 = arith.constant 0 : index
    %125 = vector.load %arg15[%c0_77, %c0_78] : memref<288x512xbf16, #tpu.memory_space<vmem>>, vector<16x512xbf16>
    tpu.vector_store %arg15[%c0_77, %c0_78], %124 {strides = array<i32>} : memref<288x512xbf16, #tpu.memory_space<vmem>>, vector<16x512xbf16>,
    %c16_i32_79 = arith.constant 16 : i32
    %126 = tpu.dynamic_rotate %119 by %c16_i32_79 dim 1 : vector<16x512xf32>, i32 -> vector<16x512xf32>
    %c1_80 = arith.constant 1 : index
    %c0_81 = arith.constant 0 : index
    %c0_82 = arith.constant 0 : index
    %127 = vector.load %arg3[%c1_80, %c0_81, %c0_82] : memref<9x32x512xf32, #tpu.memory_space<vmem>>, vector<1x16x512xf32>
    %128 = vector.shape_cast %127 : vector<1x16x512xf32> to vector<16x512xf32>
    %129 = arith.mulf %126, %128 : vector<16x512xf32>
    %130 = arith.truncf %129 : vector<16x512xf32> to vector<16x512xbf16>
    %c16_83 = arith.constant 16 : index
    %c0_84 = arith.constant 0 : index
    %131 = vector.load %arg15[%c16_83, %c0_84] : memref<288x512xbf16, #tpu.memory_space<vmem>>, vector<16x512xbf16>
    tpu.vector_store %arg15[%c16_83, %c0_84], %130 {strides = array<i32>} : memref<288x512xbf16, #tpu.memory_space<vmem>>, vector<16x512xbf16>,
    %c15_i32_85 = arith.constant 15 : i32
    %132 = tpu.dynamic_rotate %119 by %c15_i32_85 dim 1 : vector<16x512xf32>, i32 -> vector<16x512xf32>
    %c2_86 = arith.constant 2 : index
    %c0_87 = arith.constant 0 : index
    %c0_88 = arith.constant 0 : index
    %133 = vector.load %arg3[%c2_86, %c0_87, %c0_88] : memref<9x32x512xf32, #tpu.memory_space<vmem>>, vector<1x16x512xf32>
    %134 = vector.shape_cast %133 : vector<1x16x512xf32> to vector<16x512xf32>
    %135 = arith.mulf %132, %134 : vector<16x512xf32>
    %136 = arith.truncf %135 : vector<16x512xf32> to vector<16x512xbf16>
    %c32_89 = arith.constant 32 : index
    %c0_90 = arith.constant 0 : index
    %137 = vector.load %arg15[%c32_89, %c0_90] : memref<288x512xbf16, #tpu.memory_space<vmem>>, vector<16x512xbf16>
    tpu.vector_store %arg15[%c32_89, %c0_90], %136 {strides = array<i32>} : memref<288x512xbf16, #tpu.memory_space<vmem>>, vector<16x512xbf16>,
    %c1_i32_91 = arith.constant 1 : i32
    %138 = tpu.dynamic_rotate %119 by %c1_i32_91 dim 1 : vector<16x512xf32>, i32 -> vector<16x512xf32>
    %c3_92 = arith.constant 3 : index
    %c0_93 = arith.constant 0 : index
    %c0_94 = arith.constant 0 : index
    %139 = vector.load %arg3[%c3_92, %c0_93, %c0_94] : memref<9x32x512xf32, #tpu.memory_space<vmem>>, vector<1x16x512xf32>
    %140 = vector.shape_cast %139 : vector<1x16x512xf32> to vector<16x512xf32>
    %141 = arith.mulf %138, %140 : vector<16x512xf32>
    %142 = arith.truncf %141 : vector<16x512xf32> to vector<16x512xbf16>
    %c48 = arith.constant 48 : index
    %c0_95 = arith.constant 0 : index
    %143 = vector.load %arg15[%c48, %c0_95] : memref<288x512xbf16, #tpu.memory_space<vmem>>, vector<16x512xbf16>
    tpu.vector_store %arg15[%c48, %c0_95], %142 {strides = array<i32>} : memref<288x512xbf16, #tpu.memory_space<vmem>>, vector<16x512xbf16>,
    %144 = arith.truncf %119 : vector<16x512xf32> to vector<16x512xbf16>
    %c64_96 = arith.constant 64 : index
    %c0_97 = arith.constant 0 : index
    %145 = vector.load %arg15[%c64_96, %c0_97] : memref<288x512xbf16, #tpu.memory_space<vmem>>, vector<16x512xbf16>
    tpu.vector_store %arg15[%c64_96, %c0_97], %144 {strides = array<i32>} : memref<288x512xbf16, #tpu.memory_space<vmem>>, vector<16x512xbf16>,
    %c511_i32_98 = arith.constant 511 : i32
    %146 = tpu.dynamic_rotate %119 by %c511_i32_98 dim 1 : vector<16x512xf32>, i32 -> vector<16x512xf32>
    %c5_99 = arith.constant 5 : index
    %c0_100 = arith.constant 0 : index
    %c0_101 = arith.constant 0 : index
    %147 = vector.load %arg3[%c5_99, %c0_100, %c0_101] : memref<9x32x512xf32, #tpu.memory_space<vmem>>, vector<1x16x512xf32>
    %148 = vector.shape_cast %147 : vector<1x16x512xf32> to vector<16x512xf32>
    %149 = arith.mulf %146, %148 : vector<16x512xf32>
    %150 = arith.truncf %149 : vector<16x512xf32> to vector<16x512xbf16>
    %c80 = arith.constant 80 : index
    %c0_102 = arith.constant 0 : index
    %151 = vector.load %arg15[%c80, %c0_102] : memref<288x512xbf16, #tpu.memory_space<vmem>>, vector<16x512xbf16>
    tpu.vector_store %arg15[%c80, %c0_102], %150 {strides = array<i32>} : memref<288x512xbf16, #tpu.memory_space<vmem>>, vector<16x512xbf16>,
    %c497_i32_103 = arith.constant 497 : i32
    %152 = tpu.dynamic_rotate %119 by %c497_i32_103 dim 1 : vector<16x512xf32>, i32 -> vector<16x512xf32>
    %c6_104 = arith.constant 6 : index
    %c0_105 = arith.constant 0 : index
    %c0_106 = arith.constant 0 : index
    %153 = vector.load %arg3[%c6_104, %c0_105, %c0_106] : memref<9x32x512xf32, #tpu.memory_space<vmem>>, vector<1x16x512xf32>
    %154 = vector.shape_cast %153 : vector<1x16x512xf32> to vector<16x512xf32>
    %155 = arith.mulf %152, %154 : vector<16x512xf32>
    %156 = arith.truncf %155 : vector<16x512xf32> to vector<16x512xbf16>
    %c96_107 = arith.constant 96 : index
    %c0_108 = arith.constant 0 : index
    %157 = vector.load %arg15[%c96_107, %c0_108] : memref<288x512xbf16, #tpu.memory_space<vmem>>, vector<16x512xbf16>
    tpu.vector_store %arg15[%c96_107, %c0_108], %156 {strides = array<i32>} : memref<288x512xbf16, #tpu.memory_space<vmem>>, vector<16x512xbf16>,
    %c496_i32_109 = arith.constant 496 : i32
    %158 = tpu.dynamic_rotate %119 by %c496_i32_109 dim 1 : vector<16x512xf32>, i32 -> vector<16x512xf32>
    %c7_110 = arith.constant 7 : index
    %c0_111 = arith.constant 0 : index
    %c0_112 = arith.constant 0 : index
    %159 = vector.load %arg3[%c7_110, %c0_111, %c0_112] : memref<9x32x512xf32, #tpu.memory_space<vmem>>, vector<1x16x512xf32>
    %160 = vector.shape_cast %159 : vector<1x16x512xf32> to vector<16x512xf32>
    %161 = arith.mulf %158, %160 : vector<16x512xf32>
    %162 = arith.truncf %161 : vector<16x512xf32> to vector<16x512xbf16>
    %c112 = arith.constant 112 : index
    %c0_113 = arith.constant 0 : index
    %163 = vector.load %arg15[%c112, %c0_113] : memref<288x512xbf16, #tpu.memory_space<vmem>>, vector<16x512xbf16>
    tpu.vector_store %arg15[%c112, %c0_113], %162 {strides = array<i32>} : memref<288x512xbf16, #tpu.memory_space<vmem>>, vector<16x512xbf16>,
    %c495_i32_114 = arith.constant 495 : i32
    %164 = tpu.dynamic_rotate %119 by %c495_i32_114 dim 1 : vector<16x512xf32>, i32 -> vector<16x512xf32>
    %c8_115 = arith.constant 8 : index
    %c0_116 = arith.constant 0 : index
    %c0_117 = arith.constant 0 : index
    %165 = vector.load %arg3[%c8_115, %c0_116, %c0_117] : memref<9x32x512xf32, #tpu.memory_space<vmem>>, vector<1x16x512xf32>
    %166 = vector.shape_cast %165 : vector<1x16x512xf32> to vector<16x512xf32>
    %167 = arith.mulf %164, %166 : vector<16x512xf32>
    %168 = arith.truncf %167 : vector<16x512xf32> to vector<16x512xbf16>
    %c128_118 = arith.constant 128 : index
    %c0_119 = arith.constant 0 : index
    %169 = vector.load %arg15[%c128_118, %c0_119] : memref<288x512xbf16, #tpu.memory_space<vmem>>, vector<16x512xbf16>
    tpu.vector_store %arg15[%c128_118, %c0_119], %168 {strides = array<i32>} : memref<288x512xbf16, #tpu.memory_space<vmem>>, vector<16x512xbf16>,
    %c0_120 = arith.constant 0 : index
    %c0_121 = arith.constant 0 : index
    %170 = vector.load %arg5[%c0_120, %c0_121] : memref<16x144xbf16, #tpu.memory_space<vmem>>, vector<16x144xbf16>
    %c0_122 = arith.constant 0 : index
    %c0_123 = arith.constant 0 : index
    %171 = vector.load %arg15[%c0_122, %c0_123] : memref<288x512xbf16, #tpu.memory_space<vmem>>, vector<144x512xbf16>
    %cst_124 = arith.constant dense<0.000000e+00> : vector<16x512xf32>
    %172 = tpu.matmul %170, %171, %cst_124 {dimension_numbers = #tpu.dot_dimension_numbers<[1], [0], [0], [1], [0, 0, 1, 1], [], []>} : vector<16x144xbf16>, vector<144x512xbf16>, vector<16x512xf32> -> vector<16x512xf32>
    %c48_125 = arith.constant 48 : index
    %c0_126 = arith.constant 0 : index
    %173 = vector.load %arg16[%c48_125, %c0_126] : memref<112x512xf32, #tpu.memory_space<vmem>>, vector<8x512xf32>
    %c80_127 = arith.constant 80 : index
    %c0_128 = arith.constant 0 : index
    %174 = vector.load %arg16[%c80_127, %c0_128] : memref<112x512xf32, #tpu.memory_space<vmem>>, vector<8x512xf32>
    %175 = arith.addf %173, %174 : vector<8x512xf32>
    %176 = vector.extract_strided_slice %172 {offsets = [0, 0], sizes = [8, 512], strides = [1, 1]} : vector<16x512xf32> to vector<8x512xf32>
    %177 = arith.addf %175, %176 : vector<8x512xf32>
    %178 = arith.negf %177 : vector<8x512xf32>
    %179 = math.exp %178 : vector<8x512xf32>
    %cst_129 = arith.constant 1.000000e+00 : f32
    %180 = vector.broadcast %cst_129 : f32 to vector<8x512xf32>
    %181 = arith.addf %180, %179 : vector<8x512xf32>
    %182 = arith.divf %180, %181 : vector<8x512xf32>
    %183 = vector.extract_strided_slice %172 {offsets = [8, 0], sizes = [8, 512], strides = [1, 1]} : vector<16x512xf32> to vector<8x512xf32>
    %184 = math.tanh %183 : vector<8x512xf32>
    %185 = arith.mulf %182, %184 : vector<8x512xf32>
    %c8_130 = arith.constant 8 : index
    %c0_131 = arith.constant 0 : index
    %186 = vector.load %arg10[%c8_130, %c0_131] : memref<32x512xf32, #tpu.memory_space<vmem>>, vector<8x512xf32>
    tpu.vector_store %arg10[%c8_130, %c0_131], %185 {strides = array<i32>} : memref<32x512xf32, #tpu.memory_space<vmem>>, vector<8x512xf32>,
    %c0_132 = arith.constant 0 : index
    %c0_133 = arith.constant 0 : index
    %187 = vector.load %arg11[%c0_132, %c0_133] : memref<32x512xf32, #tpu.memory_space<vmem>>, vector<8x512xf32>
    tpu.vector_store %arg11[%c0_132, %c0_133], %185 {strides = array<i32>} : memref<32x512xf32, #tpu.memory_space<vmem>>, vector<8x512xf32>,
    %c16_134 = arith.constant 16 : index
    %c0_135 = arith.constant 0 : index
    %188 = vector.load %arg11[%c16_134, %c0_135] : memref<32x512xf32, #tpu.memory_space<vmem>>, vector<8x512xf32>
    tpu.vector_store %arg11[%c16_134, %c0_135], %117 {strides = array<i32>} : memref<32x512xf32, #tpu.memory_space<vmem>>, vector<8x512xf32>,
    %c0_136 = arith.constant 0 : index
    %c0_137 = arith.constant 0 : index
    %189 = vector.load %arg11[%c0_136, %c0_137] : memref<32x512xf32, #tpu.memory_space<vmem>>, vector<32x512xf32>
    %c17_i32_138 = arith.constant 17 : i32
    %190 = tpu.dynamic_rotate %189 by %c17_i32_138 dim 1 : vector<32x512xf32>, i32 -> vector<32x512xf32>
    %c0_139 = arith.constant 0 : index
    %c0_140 = arith.constant 0 : index
    %c0_141 = arith.constant 0 : index
    %191 = vector.load %arg3[%c0_139, %c0_140, %c0_141] : memref<9x32x512xf32, #tpu.memory_space<vmem>>, vector<1x32x512xf32>
    %192 = vector.shape_cast %191 : vector<1x32x512xf32> to vector<32x512xf32>
    %193 = arith.mulf %190, %192 : vector<32x512xf32>
    %194 = arith.truncf %193 : vector<32x512xf32> to vector<32x512xbf16>
    %c0_142 = arith.constant 0 : index
    %c0_143 = arith.constant 0 : index
    %195 = vector.load %arg15[%c0_142, %c0_143] : memref<288x512xbf16, #tpu.memory_space<vmem>>, vector<32x512xbf16>
    tpu.vector_store %arg15[%c0_142, %c0_143], %194 {strides = array<i32>} : memref<288x512xbf16, #tpu.memory_space<vmem>>, vector<32x512xbf16>,
    %c16_i32_144 = arith.constant 16 : i32
    %196 = tpu.dynamic_rotate %189 by %c16_i32_144 dim 1 : vector<32x512xf32>, i32 -> vector<32x512xf32>
    %c1_145 = arith.constant 1 : index
    %c0_146 = arith.constant 0 : index
    %c0_147 = arith.constant 0 : index
    %197 = vector.load %arg3[%c1_145, %c0_146, %c0_147] : memref<9x32x512xf32, #tpu.memory_space<vmem>>, vector<1x32x512xf32>
    %198 = vector.shape_cast %197 : vector<1x32x512xf32> to vector<32x512xf32>
    %199 = arith.mulf %196, %198 : vector<32x512xf32>
    %200 = arith.truncf %199 : vector<32x512xf32> to vector<32x512xbf16>
    %c32_148 = arith.constant 32 : index
    %c0_149 = arith.constant 0 : index
    %201 = vector.load %arg15[%c32_148, %c0_149] : memref<288x512xbf16, #tpu.memory_space<vmem>>, vector<32x512xbf16>
    tpu.vector_store %arg15[%c32_148, %c0_149], %200 {strides = array<i32>} : memref<288x512xbf16, #tpu.memory_space<vmem>>, vector<32x512xbf16>,
    %c15_i32_150 = arith.constant 15 : i32
    %202 = tpu.dynamic_rotate %189 by %c15_i32_150 dim 1 : vector<32x512xf32>, i32 -> vector<32x512xf32>
    %c2_151 = arith.constant 2 : index
    %c0_152 = arith.constant 0 : index
    %c0_153 = arith.constant 0 : index
    %203 = vector.load %arg3[%c2_151, %c0_152, %c0_153] : memref<9x32x512xf32, #tpu.memory_space<vmem>>, vector<1x32x512xf32>
    %204 = vector.shape_cast %203 : vector<1x32x512xf32> to vector<32x512xf32>
    %205 = arith.mulf %202, %204 : vector<32x512xf32>
    %206 = arith.truncf %205 : vector<32x512xf32> to vector<32x512xbf16>
    %c64_154 = arith.constant 64 : index
    %c0_155 = arith.constant 0 : index
    %207 = vector.load %arg15[%c64_154, %c0_155] : memref<288x512xbf16, #tpu.memory_space<vmem>>, vector<32x512xbf16>
    tpu.vector_store %arg15[%c64_154, %c0_155], %206 {strides = array<i32>} : memref<288x512xbf16, #tpu.memory_space<vmem>>, vector<32x512xbf16>,
    %c1_i32_156 = arith.constant 1 : i32
    %208 = tpu.dynamic_rotate %189 by %c1_i32_156 dim 1 : vector<32x512xf32>, i32 -> vector<32x512xf32>
    %c3_157 = arith.constant 3 : index
    %c0_158 = arith.constant 0 : index
    %c0_159 = arith.constant 0 : index
    %209 = vector.load %arg3[%c3_157, %c0_158, %c0_159] : memref<9x32x512xf32, #tpu.memory_space<vmem>>, vector<1x32x512xf32>
    %210 = vector.shape_cast %209 : vector<1x32x512xf32> to vector<32x512xf32>
    %211 = arith.mulf %208, %210 : vector<32x512xf32>
    %212 = arith.truncf %211 : vector<32x512xf32> to vector<32x512xbf16>
    %c96_160 = arith.constant 96 : index
    %c0_161 = arith.constant 0 : index
    %213 = vector.load %arg15[%c96_160, %c0_161] : memref<288x512xbf16, #tpu.memory_space<vmem>>, vector<32x512xbf16>
    tpu.vector_store %arg15[%c96_160, %c0_161], %212 {strides = array<i32>} : memref<288x512xbf16, #tpu.memory_space<vmem>>, vector<32x512xbf16>,
    %214 = arith.truncf %189 : vector<32x512xf32> to vector<32x512xbf16>
    %c128_162 = arith.constant 128 : index
    %c0_163 = arith.constant 0 : index
    %215 = vector.load %arg15[%c128_162, %c0_163] : memref<288x512xbf16, #tpu.memory_space<vmem>>, vector<32x512xbf16>
    tpu.vector_store %arg15[%c128_162, %c0_163], %214 {strides = array<i32>} : memref<288x512xbf16, #tpu.memory_space<vmem>>, vector<32x512xbf16>,
    %c511_i32_164 = arith.constant 511 : i32
    %216 = tpu.dynamic_rotate %189 by %c511_i32_164 dim 1 : vector<32x512xf32>, i32 -> vector<32x512xf32>
    %c5_165 = arith.constant 5 : index
    %c0_166 = arith.constant 0 : index
    %c0_167 = arith.constant 0 : index
    %217 = vector.load %arg3[%c5_165, %c0_166, %c0_167] : memref<9x32x512xf32, #tpu.memory_space<vmem>>, vector<1x32x512xf32>
    %218 = vector.shape_cast %217 : vector<1x32x512xf32> to vector<32x512xf32>
    %219 = arith.mulf %216, %218 : vector<32x512xf32>
    %220 = arith.truncf %219 : vector<32x512xf32> to vector<32x512xbf16>
    %c160_168 = arith.constant 160 : index
    %c0_169 = arith.constant 0 : index
    %221 = vector.load %arg15[%c160_168, %c0_169] : memref<288x512xbf16, #tpu.memory_space<vmem>>, vector<32x512xbf16>
    tpu.vector_store %arg15[%c160_168, %c0_169], %220 {strides = array<i32>} : memref<288x512xbf16, #tpu.memory_space<vmem>>, vector<32x512xbf16>,
    %c497_i32_170 = arith.constant 497 : i32
    %222 = tpu.dynamic_rotate %189 by %c497_i32_170 dim 1 : vector<32x512xf32>, i32 -> vector<32x512xf32>
    %c6_171 = arith.constant 6 : index
    %c0_172 = arith.constant 0 : index
    %c0_173 = arith.constant 0 : index
    %223 = vector.load %arg3[%c6_171, %c0_172, %c0_173] : memref<9x32x512xf32, #tpu.memory_space<vmem>>, vector<1x32x512xf32>
    %224 = vector.shape_cast %223 : vector<1x32x512xf32> to vector<32x512xf32>
    %225 = arith.mulf %222, %224 : vector<32x512xf32>
    %226 = arith.truncf %225 : vector<32x512xf32> to vector<32x512xbf16>
    %c192_174 = arith.constant 192 : index
    %c0_175 = arith.constant 0 : index
    %227 = vector.load %arg15[%c192_174, %c0_175] : memref<288x512xbf16, #tpu.memory_space<vmem>>, vector<32x512xbf16>
    tpu.vector_store %arg15[%c192_174, %c0_175], %226 {strides = array<i32>} : memref<288x512xbf16, #tpu.memory_space<vmem>>, vector<32x512xbf16>,
    %c496_i32_176 = arith.constant 496 : i32
    %228 = tpu.dynamic_rotate %189 by %c496_i32_176 dim 1 : vector<32x512xf32>, i32 -> vector<32x512xf32>
    %c7_177 = arith.constant 7 : index
    %c0_178 = arith.constant 0 : index
    %c0_179 = arith.constant 0 : index
    %229 = vector.load %arg3[%c7_177, %c0_178, %c0_179] : memref<9x32x512xf32, #tpu.memory_space<vmem>>, vector<1x32x512xf32>
    %230 = vector.shape_cast %229 : vector<1x32x512xf32> to vector<32x512xf32>
    %231 = arith.mulf %228, %230 : vector<32x512xf32>
    %232 = arith.truncf %231 : vector<32x512xf32> to vector<32x512xbf16>
    %c224_180 = arith.constant 224 : index
    %c0_181 = arith.constant 0 : index
    %233 = vector.load %arg15[%c224_180, %c0_181] : memref<288x512xbf16, #tpu.memory_space<vmem>>, vector<32x512xbf16>
    tpu.vector_store %arg15[%c224_180, %c0_181], %232 {strides = array<i32>} : memref<288x512xbf16, #tpu.memory_space<vmem>>, vector<32x512xbf16>,
    %c495_i32_182 = arith.constant 495 : i32
    %234 = tpu.dynamic_rotate %189 by %c495_i32_182 dim 1 : vector<32x512xf32>, i32 -> vector<32x512xf32>
    %c8_183 = arith.constant 8 : index
    %c0_184 = arith.constant 0 : index
    %c0_185 = arith.constant 0 : index
    %235 = vector.load %arg3[%c8_183, %c0_184, %c0_185] : memref<9x32x512xf32, #tpu.memory_space<vmem>>, vector<1x32x512xf32>
    %236 = vector.shape_cast %235 : vector<1x32x512xf32> to vector<32x512xf32>
    %237 = arith.mulf %234, %236 : vector<32x512xf32>
    %238 = arith.truncf %237 : vector<32x512xf32> to vector<32x512xbf16>
    %c256_186 = arith.constant 256 : index
    %c0_187 = arith.constant 0 : index
    %239 = vector.load %arg15[%c256_186, %c0_187] : memref<288x512xbf16, #tpu.memory_space<vmem>>, vector<32x512xbf16>
    tpu.vector_store %arg15[%c256_186, %c0_187], %238 {strides = array<i32>} : memref<288x512xbf16, #tpu.memory_space<vmem>>, vector<32x512xbf16>,
    %c0_188 = arith.constant 0 : index
    %c0_189 = arith.constant 0 : index
    %240 = vector.load %arg6[%c0_188, %c0_189] : memref<112x288xbf16, #tpu.memory_space<vmem>>, vector<112x288xbf16>
    %c0_190 = arith.constant 0 : index
    %c0_191 = arith.constant 0 : index
    %241 = vector.load %arg15[%c0_190, %c0_191] : memref<288x512xbf16, #tpu.memory_space<vmem>>, vector<288x512xbf16>
    %cst_192 = arith.constant dense<0.000000e+00> : vector<112x512xf32>
    %242 = tpu.matmul %240, %241, %cst_192 {dimension_numbers = #tpu.dot_dimension_numbers<[1], [0], [0], [1], [0, 0, 1, 1], [], []>} : vector<112x288xbf16>, vector<288x512xbf16>, vector<112x512xf32> -> vector<112x512xf32>
    %c0_193 = arith.constant 0 : index
    %c0_194 = arith.constant 0 : index
    %243 = vector.load %arg16[%c0_193, %c0_194] : memref<112x512xf32, #tpu.memory_space<vmem>>, vector<112x512xf32>
    tpu.vector_store %arg16[%c0_193, %c0_194], %242 {strides = array<i32>} : memref<112x512xf32, #tpu.memory_space<vmem>>, vector<112x512xf32>,
    %c0_195 = arith.constant 0 : index
    %c0_196 = arith.constant 0 : index
    %244 = vector.load %arg13[%c0_195, %c0_196] : memref<16x512xf32, #tpu.memory_space<vmem>>, vector<8x512xf32>
    %c0_197 = arith.constant 0 : index
    %c0_198 = arith.constant 0 : index
    %245 = vector.load %arg16[%c0_197, %c0_198] : memref<112x512xf32, #tpu.memory_space<vmem>>, vector<8x512xf32>
    %c56_199 = arith.constant 56 : index
    %c0_200 = arith.constant 0 : index
    %246 = vector.load %arg16[%c56_199, %c0_200] : memref<112x512xf32, #tpu.memory_space<vmem>>, vector<8x512xf32>
    %247 = arith.addf %245, %246 : vector<8x512xf32>
    %248 = arith.negf %247 : vector<8x512xf32>
    %249 = math.exp %248 : vector<8x512xf32>
    %cst_201 = arith.constant 1.000000e+00 : f32
    %250 = vector.broadcast %cst_201 : f32 to vector<8x512xf32>
    %251 = arith.addf %250, %249 : vector<8x512xf32>
    %252 = arith.divf %250, %251 : vector<8x512xf32>
    %c8_202 = arith.constant 8 : index
    %c0_203 = arith.constant 0 : index
    %253 = vector.load %arg16[%c8_202, %c0_203] : memref<112x512xf32, #tpu.memory_space<vmem>>, vector<8x512xf32>
    %c64_204 = arith.constant 64 : index
    %c0_205 = arith.constant 0 : index
    %254 = vector.load %arg16[%c64_204, %c0_205] : memref<112x512xf32, #tpu.memory_space<vmem>>, vector<8x512xf32>
    %255 = arith.addf %253, %254 : vector<8x512xf32>
    %cst_206 = arith.constant 1.000000e+00 : f32
    %256 = vector.broadcast %cst_206 : f32 to vector<8x512xf32>
    %257 = arith.addf %255, %256 : vector<8x512xf32>
    %258 = arith.negf %257 : vector<8x512xf32>
    %259 = math.exp %258 : vector<8x512xf32>
    %cst_207 = arith.constant 1.000000e+00 : f32
    %260 = vector.broadcast %cst_207 : f32 to vector<8x512xf32>
    %261 = arith.addf %260, %259 : vector<8x512xf32>
    %262 = arith.divf %260, %261 : vector<8x512xf32>
    %c16_208 = arith.constant 16 : index
    %c0_209 = arith.constant 0 : index
    %263 = vector.load %arg16[%c16_208, %c0_209] : memref<112x512xf32, #tpu.memory_space<vmem>>, vector<8x512xf32>
    %c72_210 = arith.constant 72 : index
    %c0_211 = arith.constant 0 : index
    %264 = vector.load %arg16[%c72_210, %c0_211] : memref<112x512xf32, #tpu.memory_space<vmem>>, vector<8x512xf32>
    %265 = arith.addf %263, %264 : vector<8x512xf32>
    %266 = math.tanh %265 : vector<8x512xf32>
    %267 = arith.mulf %262, %244 : vector<8x512xf32>
    %268 = arith.mulf %252, %266 : vector<8x512xf32>
    %269 = arith.addf %267, %268 : vector<8x512xf32>
    %c0_212 = arith.constant 0 : index
    %c0_213 = arith.constant 0 : index
    %270 = vector.load %arg13[%c0_212, %c0_213] : memref<16x512xf32, #tpu.memory_space<vmem>>, vector<8x512xf32>
    tpu.vector_store %arg13[%c0_212, %c0_213], %269 {strides = array<i32>} : memref<16x512xf32, #tpu.memory_space<vmem>>, vector<8x512xf32>,
    %c24_214 = arith.constant 24 : index
    %c0_215 = arith.constant 0 : index
    %271 = vector.load %arg16[%c24_214, %c0_215] : memref<112x512xf32, #tpu.memory_space<vmem>>, vector<8x512xf32>
    %c88_216 = arith.constant 88 : index
    %c0_217 = arith.constant 0 : index
    %272 = vector.load %arg16[%c88_216, %c0_217] : memref<112x512xf32, #tpu.memory_space<vmem>>, vector<8x512xf32>
    %273 = arith.addf %271, %272 : vector<8x512xf32>
    %274 = arith.negf %273 : vector<8x512xf32>
    %275 = math.exp %274 : vector<8x512xf32>
    %cst_218 = arith.constant 1.000000e+00 : f32
    %276 = vector.broadcast %cst_218 : f32 to vector<8x512xf32>
    %277 = arith.addf %276, %275 : vector<8x512xf32>
    %278 = arith.divf %276, %277 : vector<8x512xf32>
    %c32_219 = arith.constant 32 : index
    %c0_220 = arith.constant 0 : index
    %279 = vector.load %arg16[%c32_219, %c0_220] : memref<112x512xf32, #tpu.memory_space<vmem>>, vector<8x512xf32>
    %c96_221 = arith.constant 96 : index
    %c0_222 = arith.constant 0 : index
    %280 = vector.load %arg16[%c96_221, %c0_222] : memref<112x512xf32, #tpu.memory_space<vmem>>, vector<8x512xf32>
    %281 = arith.addf %279, %280 : vector<8x512xf32>
    %cst_223 = arith.constant 1.000000e+00 : f32
    %282 = vector.broadcast %cst_223 : f32 to vector<8x512xf32>
    %283 = arith.addf %281, %282 : vector<8x512xf32>
    %284 = arith.negf %283 : vector<8x512xf32>
    %285 = math.exp %284 : vector<8x512xf32>
    %cst_224 = arith.constant 1.000000e+00 : f32
    %286 = vector.broadcast %cst_224 : f32 to vector<8x512xf32>
    %287 = arith.addf %286, %285 : vector<8x512xf32>
    %288 = arith.divf %286, %287 : vector<8x512xf32>
    %c40_225 = arith.constant 40 : index
    %c0_226 = arith.constant 0 : index
    %289 = vector.load %arg16[%c40_225, %c0_226] : memref<112x512xf32, #tpu.memory_space<vmem>>, vector<8x512xf32>
    %c104_227 = arith.constant 104 : index
    %c0_228 = arith.constant 0 : index
    %290 = vector.load %arg16[%c104_227, %c0_228] : memref<112x512xf32, #tpu.memory_space<vmem>>, vector<8x512xf32>
    %291 = arith.addf %289, %290 : vector<8x512xf32>
    %292 = math.tanh %291 : vector<8x512xf32>
    %293 = arith.mulf %288, %117 : vector<8x512xf32>
    %294 = arith.mulf %278, %292 : vector<8x512xf32>
    %295 = arith.addf %293, %294 : vector<8x512xf32>
    %c8_229 = arith.constant 8 : index
    %c0_230 = arith.constant 0 : index
    %296 = vector.load %arg13[%c8_229, %c0_230] : memref<16x512xf32, #tpu.memory_space<vmem>>, vector<8x512xf32>
    tpu.vector_store %arg13[%c8_229, %c0_230], %295 {strides = array<i32>} : memref<16x512xf32, #tpu.memory_space<vmem>>, vector<8x512xf32>,
    %c0_231 = arith.constant 0 : index
    %c0_232 = arith.constant 0 : index
    %297 = vector.load %arg13[%c0_231, %c0_232] : memref<16x512xf32, #tpu.memory_space<vmem>>, vector<16x512xf32>
    %c17_i32_233 = arith.constant 17 : i32
    %298 = tpu.dynamic_rotate %297 by %c17_i32_233 dim 1 : vector<16x512xf32>, i32 -> vector<16x512xf32>
    %c0_234 = arith.constant 0 : index
    %c0_235 = arith.constant 0 : index
    %c0_236 = arith.constant 0 : index
    %299 = vector.load %arg3[%c0_234, %c0_235, %c0_236] : memref<9x32x512xf32, #tpu.memory_space<vmem>>, vector<1x16x512xf32>
    %300 = vector.shape_cast %299 : vector<1x16x512xf32> to vector<16x512xf32>
    %301 = arith.mulf %298, %300 : vector<16x512xf32>
    %302 = arith.truncf %301 : vector<16x512xf32> to vector<16x512xbf16>
    %c0_237 = arith.constant 0 : index
    %c0_238 = arith.constant 0 : index
    %303 = vector.load %arg15[%c0_237, %c0_238] : memref<288x512xbf16, #tpu.memory_space<vmem>>, vector<16x512xbf16>
    tpu.vector_store %arg15[%c0_237, %c0_238], %302 {strides = array<i32>} : memref<288x512xbf16, #tpu.memory_space<vmem>>, vector<16x512xbf16>,
    %c16_i32_239 = arith.constant 16 : i32
    %304 = tpu.dynamic_rotate %297 by %c16_i32_239 dim 1 : vector<16x512xf32>, i32 -> vector<16x512xf32>
    %c1_240 = arith.constant 1 : index
    %c0_241 = arith.constant 0 : index
    %c0_242 = arith.constant 0 : index
    %305 = vector.load %arg3[%c1_240, %c0_241, %c0_242] : memref<9x32x512xf32, #tpu.memory_space<vmem>>, vector<1x16x512xf32>
    %306 = vector.shape_cast %305 : vector<1x16x512xf32> to vector<16x512xf32>
    %307 = arith.mulf %304, %306 : vector<16x512xf32>
    %308 = arith.truncf %307 : vector<16x512xf32> to vector<16x512xbf16>
    %c16_243 = arith.constant 16 : index
    %c0_244 = arith.constant 0 : index
    %309 = vector.load %arg15[%c16_243, %c0_244] : memref<288x512xbf16, #tpu.memory_space<vmem>>, vector<16x512xbf16>
    tpu.vector_store %arg15[%c16_243, %c0_244], %308 {strides = array<i32>} : memref<288x512xbf16, #tpu.memory_space<vmem>>, vector<16x512xbf16>,
    %c15_i32_245 = arith.constant 15 : i32
    %310 = tpu.dynamic_rotate %297 by %c15_i32_245 dim 1 : vector<16x512xf32>, i32 -> vector<16x512xf32>
    %c2_246 = arith.constant 2 : index
    %c0_247 = arith.constant 0 : index
    %c0_248 = arith.constant 0 : index
    %311 = vector.load %arg3[%c2_246, %c0_247, %c0_248] : memref<9x32x512xf32, #tpu.memory_space<vmem>>, vector<1x16x512xf32>
    %312 = vector.shape_cast %311 : vector<1x16x512xf32> to vector<16x512xf32>
    %313 = arith.mulf %310, %312 : vector<16x512xf32>
    %314 = arith.truncf %313 : vector<16x512xf32> to vector<16x512xbf16>
    %c32_249 = arith.constant 32 : index
    %c0_250 = arith.constant 0 : index
    %315 = vector.load %arg15[%c32_249, %c0_250] : memref<288x512xbf16, #tpu.memory_space<vmem>>, vector<16x512xbf16>
    tpu.vector_store %arg15[%c32_249, %c0_250], %314 {strides = array<i32>} : memref<288x512xbf16, #tpu.memory_space<vmem>>, vector<16x512xbf16>,
    %c1_i32_251 = arith.constant 1 : i32
    %316 = tpu.dynamic_rotate %297 by %c1_i32_251 dim 1 : vector<16x512xf32>, i32 -> vector<16x512xf32>
    %c3_252 = arith.constant 3 : index
    %c0_253 = arith.constant 0 : index
    %c0_254 = arith.constant 0 : index
    %317 = vector.load %arg3[%c3_252, %c0_253, %c0_254] : memref<9x32x512xf32, #tpu.memory_space<vmem>>, vector<1x16x512xf32>
    %318 = vector.shape_cast %317 : vector<1x16x512xf32> to vector<16x512xf32>
    %319 = arith.mulf %316, %318 : vector<16x512xf32>
    %320 = arith.truncf %319 : vector<16x512xf32> to vector<16x512xbf16>
    %c48_255 = arith.constant 48 : index
    %c0_256 = arith.constant 0 : index
    %321 = vector.load %arg15[%c48_255, %c0_256] : memref<288x512xbf16, #tpu.memory_space<vmem>>, vector<16x512xbf16>
    tpu.vector_store %arg15[%c48_255, %c0_256], %320 {strides = array<i32>} : memref<288x512xbf16, #tpu.memory_space<vmem>>, vector<16x512xbf16>,
    %322 = arith.truncf %297 : vector<16x512xf32> to vector<16x512xbf16>
    %c64_257 = arith.constant 64 : index
    %c0_258 = arith.constant 0 : index
    %323 = vector.load %arg15[%c64_257, %c0_258] : memref<288x512xbf16, #tpu.memory_space<vmem>>, vector<16x512xbf16>
    tpu.vector_store %arg15[%c64_257, %c0_258], %322 {strides = array<i32>} : memref<288x512xbf16, #tpu.memory_space<vmem>>, vector<16x512xbf16>,
    %c511_i32_259 = arith.constant 511 : i32
    %324 = tpu.dynamic_rotate %297 by %c511_i32_259 dim 1 : vector<16x512xf32>, i32 -> vector<16x512xf32>
    %c5_260 = arith.constant 5 : index
    %c0_261 = arith.constant 0 : index
    %c0_262 = arith.constant 0 : index
    %325 = vector.load %arg3[%c5_260, %c0_261, %c0_262] : memref<9x32x512xf32, #tpu.memory_space<vmem>>, vector<1x16x512xf32>
    %326 = vector.shape_cast %325 : vector<1x16x512xf32> to vector<16x512xf32>
    %327 = arith.mulf %324, %326 : vector<16x512xf32>
    %328 = arith.truncf %327 : vector<16x512xf32> to vector<16x512xbf16>
    %c80_263 = arith.constant 80 : index
    %c0_264 = arith.constant 0 : index
    %329 = vector.load %arg15[%c80_263, %c0_264] : memref<288x512xbf16, #tpu.memory_space<vmem>>, vector<16x512xbf16>
    tpu.vector_store %arg15[%c80_263, %c0_264], %328 {strides = array<i32>} : memref<288x512xbf16, #tpu.memory_space<vmem>>, vector<16x512xbf16>,
    %c497_i32_265 = arith.constant 497 : i32
    %330 = tpu.dynamic_rotate %297 by %c497_i32_265 dim 1 : vector<16x512xf32>, i32 -> vector<16x512xf32>
    %c6_266 = arith.constant 6 : index
    %c0_267 = arith.constant 0 : index
    %c0_268 = arith.constant 0 : index
    %331 = vector.load %arg3[%c6_266, %c0_267, %c0_268] : memref<9x32x512xf32, #tpu.memory_space<vmem>>, vector<1x16x512xf32>
    %332 = vector.shape_cast %331 : vector<1x16x512xf32> to vector<16x512xf32>
    %333 = arith.mulf %330, %332 : vector<16x512xf32>
    %334 = arith.truncf %333 : vector<16x512xf32> to vector<16x512xbf16>
    %c96_269 = arith.constant 96 : index
    %c0_270 = arith.constant 0 : index
    %335 = vector.load %arg15[%c96_269, %c0_270] : memref<288x512xbf16, #tpu.memory_space<vmem>>, vector<16x512xbf16>
    tpu.vector_store %arg15[%c96_269, %c0_270], %334 {strides = array<i32>} : memref<288x512xbf16, #tpu.memory_space<vmem>>, vector<16x512xbf16>,
    %c496_i32_271 = arith.constant 496 : i32
    %336 = tpu.dynamic_rotate %297 by %c496_i32_271 dim 1 : vector<16x512xf32>, i32 -> vector<16x512xf32>
    %c7_272 = arith.constant 7 : index
    %c0_273 = arith.constant 0 : index
    %c0_274 = arith.constant 0 : index
    %337 = vector.load %arg3[%c7_272, %c0_273, %c0_274] : memref<9x32x512xf32, #tpu.memory_space<vmem>>, vector<1x16x512xf32>
    %338 = vector.shape_cast %337 : vector<1x16x512xf32> to vector<16x512xf32>
    %339 = arith.mulf %336, %338 : vector<16x512xf32>
    %340 = arith.truncf %339 : vector<16x512xf32> to vector<16x512xbf16>
    %c112_275 = arith.constant 112 : index
    %c0_276 = arith.constant 0 : index
    %341 = vector.load %arg15[%c112_275, %c0_276] : memref<288x512xbf16, #tpu.memory_space<vmem>>, vector<16x512xbf16>
    tpu.vector_store %arg15[%c112_275, %c0_276], %340 {strides = array<i32>} : memref<288x512xbf16, #tpu.memory_space<vmem>>, vector<16x512xbf16>,
    %c495_i32_277 = arith.constant 495 : i32
    %342 = tpu.dynamic_rotate %297 by %c495_i32_277 dim 1 : vector<16x512xf32>, i32 -> vector<16x512xf32>
    %c8_278 = arith.constant 8 : index
    %c0_279 = arith.constant 0 : index
    %c0_280 = arith.constant 0 : index
    %343 = vector.load %arg3[%c8_278, %c0_279, %c0_280] : memref<9x32x512xf32, #tpu.memory_space<vmem>>, vector<1x16x512xf32>
    %344 = vector.shape_cast %343 : vector<1x16x512xf32> to vector<16x512xf32>
    %345 = arith.mulf %342, %344 : vector<16x512xf32>
    %346 = arith.truncf %345 : vector<16x512xf32> to vector<16x512xbf16>
    %c128_281 = arith.constant 128 : index
    %c0_282 = arith.constant 0 : index
    %347 = vector.load %arg15[%c128_281, %c0_282] : memref<288x512xbf16, #tpu.memory_space<vmem>>, vector<16x512xbf16>
    tpu.vector_store %arg15[%c128_281, %c0_282], %346 {strides = array<i32>} : memref<288x512xbf16, #tpu.memory_space<vmem>>, vector<16x512xbf16>,
    %c0_283 = arith.constant 0 : index
    %c0_284 = arith.constant 0 : index
    %348 = vector.load %arg7[%c0_283, %c0_284] : memref<16x144xbf16, #tpu.memory_space<vmem>>, vector<16x144xbf16>
    %c0_285 = arith.constant 0 : index
    %c0_286 = arith.constant 0 : index
    %349 = vector.load %arg15[%c0_285, %c0_286] : memref<288x512xbf16, #tpu.memory_space<vmem>>, vector<144x512xbf16>
    %cst_287 = arith.constant dense<0.000000e+00> : vector<16x512xf32>
    %350 = tpu.matmul %348, %349, %cst_287 {dimension_numbers = #tpu.dot_dimension_numbers<[1], [0], [0], [1], [0, 0, 1, 1], [], []>} : vector<16x144xbf16>, vector<144x512xbf16>, vector<16x512xf32> -> vector<16x512xf32>
    %c48_288 = arith.constant 48 : index
    %c0_289 = arith.constant 0 : index
    %351 = vector.load %arg16[%c48_288, %c0_289] : memref<112x512xf32, #tpu.memory_space<vmem>>, vector<8x512xf32>
    %c80_290 = arith.constant 80 : index
    %c0_291 = arith.constant 0 : index
    %352 = vector.load %arg16[%c80_290, %c0_291] : memref<112x512xf32, #tpu.memory_space<vmem>>, vector<8x512xf32>
    %353 = arith.addf %351, %352 : vector<8x512xf32>
    %354 = vector.extract_strided_slice %350 {offsets = [0, 0], sizes = [8, 512], strides = [1, 1]} : vector<16x512xf32> to vector<8x512xf32>
    %355 = arith.addf %353, %354 : vector<8x512xf32>
    %356 = arith.negf %355 : vector<8x512xf32>
    %357 = math.exp %356 : vector<8x512xf32>
    %cst_292 = arith.constant 1.000000e+00 : f32
    %358 = vector.broadcast %cst_292 : f32 to vector<8x512xf32>
    %359 = arith.addf %358, %357 : vector<8x512xf32>
    %360 = arith.divf %358, %359 : vector<8x512xf32>
    %361 = vector.extract_strided_slice %350 {offsets = [8, 0], sizes = [8, 512], strides = [1, 1]} : vector<16x512xf32> to vector<8x512xf32>
    %362 = math.tanh %361 : vector<8x512xf32>
    %363 = arith.mulf %360, %362 : vector<8x512xf32>
    %c8_293 = arith.constant 8 : index
    %c0_294 = arith.constant 0 : index
    %364 = vector.load %arg11[%c8_293, %c0_294] : memref<32x512xf32, #tpu.memory_space<vmem>>, vector<8x512xf32>
    tpu.vector_store %arg11[%c8_293, %c0_294], %363 {strides = array<i32>} : memref<32x512xf32, #tpu.memory_space<vmem>>, vector<8x512xf32>,
    %c0_295 = arith.constant 0 : index
    %c0_296 = arith.constant 0 : index
    %365 = vector.load %arg8[%c0_295, %c0_296] : memref<8x8xbf16, #tpu.memory_space<vmem>>, vector<8x8xbf16>
    %366 = arith.truncf %363 : vector<8x512xf32> to vector<8x512xbf16>
    %cst_297 = arith.constant dense<0.000000e+00> : vector<8x512xf32>
    %367 = tpu.matmul %365, %366, %cst_297 {dimension_numbers = #tpu.dot_dimension_numbers<[1], [0], [0], [1], [0, 0, 1, 1], [], []>} : vector<8x8xbf16>, vector<8x512xbf16>, vector<8x512xf32> -> vector<8x512xf32>
    %368 = arith.negf %367 : vector<8x512xf32>
    %369 = math.exp %368 : vector<8x512xf32>
    %cst_298 = arith.constant 1.000000e+00 : f32
    %370 = vector.broadcast %cst_298 : f32 to vector<8x512xf32>
    %371 = arith.addf %370, %369 : vector<8x512xf32>
    %372 = arith.divf %370, %371 : vector<8x512xf32>
    %c0_299 = arith.constant 0 : index
    %c0_300 = arith.constant 0 : index
    %373 = vector.load %arg14[%c0_299, %c0_300] : memref<8x512xf32, #tpu.memory_space<vmem>>, vector<8x512xf32>
    tpu.vector_store %arg14[%c0_299, %c0_300], %372 {strides = array<i32>} : memref<8x512xf32, #tpu.memory_space<vmem>>, vector<8x512xf32>,
    %c0_301 = arith.constant 0 : index
    %c0_302 = arith.constant 0 : index
    %c0_303 = arith.constant 0 : index
    %374 = vector.load %arg9[%c0_301, %c0_302, %c0_303] : memref<1x8x512xf32, #tpu.memory_space<vmem>>, vector<1x8x512xf32>
    %375 = vector.shape_cast %374 : vector<1x8x512xf32> to vector<8x512xf32>
    %376 = vector.shape_cast %372 : vector<8x512xf32> to vector<1x8x512xf32>
    tpu.vector_store %arg9[%c0_301, %c0_302, %c0_303], %376 {strides = array<i32>} : memref<1x8x512xf32, #tpu.memory_space<vmem>>, vector<1x8x512xf32>,
    return
  }
  func.func @transform_0(%arg0: i32) -> (i32, i32, i32) {
    %c0_i32 = arith.constant 0 : i32
    %c0_i32_0 = arith.constant 0 : i32
    %c0_i32_1 = arith.constant 0 : i32
    return %arg0, %c0_i32, %c0_i32_0 : i32, i32, i32
  }
  func.func @transform_1(%arg0: i32) -> (i32, i32, i32) {
    %c4_i32 = arith.constant 4 : i32
    %0 = arith.subi %arg0, %c4_i32 : i32
    %c0_i32 = arith.constant 0 : i32
    %1 = arith.maxsi %0, %c0_i32 : i32
    %c0_i32_0 = arith.constant 0 : i32
    %c0_i32_1 = arith.constant 0 : i32
    %c0_i32_2 = arith.constant 0 : i32
    return %1, %c0_i32_0, %c0_i32_1 : i32, i32, i32
  }
  func.func @transform_2(%arg0: i32) -> (i32, i32, i32) {
    %c0_i32 = arith.constant 0 : i32
    %c0_i32_0 = arith.constant 0 : i32
    %c0_i32_1 = arith.constant 0 : i32
    %c0_i32_2 = arith.constant 0 : i32
    return %c0_i32, %c0_i32_0, %c0_i32_1 : i32, i32, i32
  }
  func.func @transform_3(%arg0: i32) -> (i32, i32) {
    %c0_i32 = arith.constant 0 : i32
    %c0_i32_0 = arith.constant 0 : i32
    %c0_i32_1 = arith.constant 0 : i32
    return %c0_i32, %c0_i32_0 : i32, i32
  }
  func.func @transform_4(%arg0: i32) -> (i32, i32) {
    %c0_i32 = arith.constant 0 : i32
    %c0_i32_0 = arith.constant 0 : i32
    %c0_i32_1 = arith.constant 0 : i32
    return %c0_i32, %c0_i32_0 : i32, i32
  }
  func.func @transform_5(%arg0: i32) -> (i32, i32) {
    %c0_i32 = arith.constant 0 : i32
    %c0_i32_0 = arith.constant 0 : i32
    %c0_i32_1 = arith.constant 0 : i32
    return %c0_i32, %c0_i32_0 : i32, i32
  }
  func.func @transform_6(%arg0: i32) -> (i32, i32) {
    %c0_i32 = arith.constant 0 : i32
    %c0_i32_0 = arith.constant 0 : i32
    %c0_i32_1 = arith.constant 0 : i32
    return %c0_i32, %c0_i32_0 : i32, i32
  }
  func.func @transform_7(%arg0: i32) -> (i32, i32) {
    %c0_i32 = arith.constant 0 : i32
    %c0_i32_0 = arith.constant 0 : i32
    %c0_i32_1 = arith.constant 0 : i32
    return %c0_i32, %c0_i32_0 : i32, i32
  }
  func.func @transform_8(%arg0: i32) -> (i32, i32, i32) {
    %c0_i32 = arith.constant 0 : i32
    %c0_i32_0 = arith.constant 0 : i32
    %c0_i32_1 = arith.constant 0 : i32
    return %arg0, %c0_i32, %c0_i32_0 : i32, i32, i32
  }
}

</mosaic_0001>

<bundles_post_ra>
// kernel: predrnn_forward_pallas.1
= control target key start
LH: loop header
LB: loop body
LE: loop exit
PB: predicated region body
PF: predicated region fallthrough
CT: control target
= control target key end

     0   :  { %s9407_s27 = smov 0   ;;  %s14469_s0 = inlined_call_operand.vmem [shape: f32[8,8,512], index: 0, kind: input, shape index: {}]   ;;  %s14470_s1 = inlined_call_operand.vmem [shape: f32[3,8,512], index: 1, kind: input, shape index: {}]   ;;  %s14471_s2 = inlined_call_operand.vmem [shape: f32[9,32,512], index: 2, kind: input, shape index: {}]   ;;  %s14472_s3 = inlined_call_operand.vmem [shape: bf16[112,288], index: 3, kind: input, shape index: {}]   ;;  %s14473_s4 = inlined_call_operand.vmem [shape: bf16[16,144], index: 4, kind: input, shape index: {}]   ;;  %s14474_s5 = inlined_call_operand.vmem [shape: bf16[112,288], index: 5, kind: input, shape index: {}]   ;;  %s14475_s6 = inlined_call_operand.vmem [shape: bf16[16,144], index: 6, kind: input, shape index: {}]   ;;  %s14476_s7 = inlined_call_operand.vmem [shape: bf16[8,8], index: 7, kind: input, shape index: {}]   ;;  %s14477_s8 = inlined_call_operand.vmem [shape: f32[7,8,512], index: 8, kind: output, shape index: {}]  }
   0x1 LB: > { %s9413_s28 = sadd.s32 4294967295, %s9350_s27   ;;  %p7278_p0 = scmp.ge.s32.totalorder %s9350_s27, 1  ;;  %s9350_s27 = sphi %s9407_s27, %s18_s27  }
   0x2   : > { %p284_p1 = scmp.lt.s32.totalorder %s9350_s27, 8 }
   0x4   : > { %p285_p2 = pnand %p7278_p0, %p284_p1 }
   0x6   : > { %288 = sbr.rel (%p285_p2) target bundleno = 2625 (0xa41), region = 52 }
   0xb   : > { %p326_p3 = scmp.lt.s32.totalorder %s9413_s28, 7  ;;  %s7281_s29 = sadd.s32 4294967292, %s9413_s28 }
   0xc   : > { %p332_p4 = scmp.gt.s32.totalorder %s7281_s29, 0  ;;  %p7282_p5 = scmp.lt.s32.totalorder %s7281_s29, 2 }
   0xd   : > { %s327_s30 = scalar_select %p326_p3, %s9413_s28, 7 }
   0xe   : > { %s14691_s29 = smov (!%p332_p4, %s7281_s29), 0  ;;  %p342_p6 = scmp.lt.s32.totalorder %s9413_s28, 6 }
   0xf   : > { %s8792_s9 = sshll.u32 %s327_s30, 5  ;;  %s14693_s29 = smov (!%p7282_p5, %s14691_s29), 2 }
  0x10   : > { %s9424_s12 = scalar_lea.vmem %s14469_s0, %s8792_s9  ;;  %s8795_s14 = sshll.u32 %s14693_s29, 5 }
  0x11   : > { %s343_s13 = scalar_select %p342_p6, %s9413_s28, 6 }
  0x12   : > { %s9430_s17 = scalar_lea.vmem %s14470_s1, %s8795_s14  ;;  %p7291_p7 = scmp.ne.s32.totalorder %s9413_s28, 0 }
  0x13   : > { %s8796_s18 = sshll.u32 %s343_s13, 5 }
  0x14   : > { %s9435_s21 = scalar_lea.vmem %s14477_s8, %s8796_s18  ;;  %351 = sbr.rel (%p7291_p7) target bundleno = 144 (0x90), region = 56 }
  0x19   : > { %v9352_v0 = vmov 0.0   ;;  %v9353_v1 = vmov 0  }
  0x1a   : > { %352 = vst [vmem:[#allocation2 + $0x30] sm:$0xff] %v9352_v0 }
  0x1b   : > { %353 = vst [vmem:[#allocation2] sm:$0xff] %v9352_v0 }
  0x1c   : > { %354 = vst [vmem:[#allocation2 + $0x58] sm:$0xff] %v9352_v0 }
  0x1d   : > { %355 = vst [vmem:[#allocation2 + $0x18] sm:$0xff] %v9352_v0 }
  0x1e   : > { %356 = vst [vmem:[#allocation2 + $0x50] sm:$0xff] %v9352_v0 }
  0x1f   : > { %357 = vst [vmem:[#allocation2 + $0x68] sm:$0xff] %v9352_v0 }
  0x20   : > { %358 = vst [vmem:[#allocation2 + $0x8] sm:$0xff] %v9352_v0 }
  0x21   : > { %359 = vst [vmem:[#allocation2 + $0x48] sm:$0xff] %v9352_v0 }
  0x22   : > { %360 = vst [vmem:[#allocation2 + $0x40] sm:$0xff] %v9352_v0 }
  0x23   : > { %361 = vst [vmem:[#allocation2 + $0x20] sm:$0xff] %v9352_v0 }
  0x24   : > { %362 = vst [vmem:[#allocation2 + $0x10] sm:$0xff] %v9352_v0 }
  0x25   : > { %363 = vst [vmem:[#allocation2 + $0x38] sm:$0xff] %v9352_v0 }
  0x26   : > { %364 = vst [vmem:[#allocation2 + $0x60] sm:$0xff] %v9352_v0 }
  0x27   : > { %365 = vst [vmem:[#allocation2 + $0x70] sm:$0xff] %v9352_v0 }
  0x28   : > { %366 = vst [vmem:[#allocation2 + $0x78] sm:$0xff] %v9352_v0 }
  0x29   : > { %367 = vst [vmem:[#allocation2 + $0x28] sm:$0xff] %v9352_v0 }
  0x2a   : > { %372 = vst [vmem:[#allocation3 + $0x48] sm:$0xff] %v9352_v0 }
  0x2b   : > { %373 = vst [vmem:[#allocation3 + $0x30] sm:$0xff] %v9352_v0 }
  0x2c   : > { %374 = vst [vmem:[#allocation3 + $0x70] sm:$0xff] %v9352_v0 }
  0x2d   : > { %375 = vst [vmem:[#allocation3 + $0x38] sm:$0xff] %v9352_v0 }
  0x2e   : > { %376 = vst [vmem:[#allocation3 + $0x20] sm:$0xff] %v9352_v0 }
  0x2f   : > { %379 = vst [vmem:[#allocation3 + $0x58] sm:$0xff] %v9352_v0 }
  0x30   : > { %380 = vst [vmem:[#allocation3] sm:$0xff] %v9352_v0 }
  0x31   : > { %381 = vst [vmem:[#allocation3 + $0x8] sm:$0xff] %v9352_v0 }
  0x32   : > { %382 = vst [vmem:[#allocation3 + $0x60] sm:$0xff] %v9352_v0 }
  0x33   : > { %383 = vst [vmem:[#allocation3 + $0x50] sm:$0xff] %v9352_v0 }
  0x34   : > { %384 = vst [vmem:[#allocation4 + $0x8] sm:$0xff] %v9352_v0 }
  0x35   : > { %385 = vst [vmem:[#allocation4] sm:$0xff] %v9352_v0 }
  0x36   : > { %386 = vst [vmem:[#allocation4 + $0x18] sm:$0xff] %v9352_v0 }
  0x37   : > { %387 = vst [vmem:[#allocation4 + $0x20] sm:$0xff] %v9352_v0 }
  0x38   : > { %388 = vst [vmem:[#allocation4 + $0x38] sm:$0xff] %v9352_v0 }
  0x39   : > { %389 = vst [vmem:[#allocation4 + $0x28] sm:$0xff] %v9352_v0 }
  0x3a   : > { %390 = vst [vmem:[#allocation4 + $0x30] sm:$0xff] %v9352_v0 }
  0x3b   : > { %391 = vst [vmem:[#allocation4 + $0x10] sm:$0xff] %v9352_v0 }
  0x3c   : > { %392 = vst [vmem:[#allocation5 + $0x18] sm:$0xff] %v9352_v0 }
  0x3d   : > { %393 = vst [vmem:[#allocation5 + $0x8] sm:$0xff] %v9352_v0 }
  0x3e   : > { %394 = vst [vmem:[#allocation5 + $0x10] sm:$0xff] %v9352_v0 }
  0x3f   : > { %395 = vst [vmem:[#allocation5 + $0x30] sm:$0xff] %v9352_v0 }
  0x40   : > { %396 = vst [vmem:[#allocation5 + $0x20] sm:$0xff] %v9352_v0 }
  0x41   : > { %397 = vst [vmem:[#allocation5] sm:$0xff] %v9352_v0 }
  0x42   : > { %398 = vst [vmem:[#allocation5 + $0x38] sm:$0xff] %v9352_v0 }
  0x43   : > { %399 = vst [vmem:[#allocation5 + $0x28] sm:$0xff] %v9352_v0 }
  0x44   : > { %400 = vst [vmem:[#allocation6 + $0x8] sm:$0xff] %v9352_v0 }
  0x45   : > { %401 = vst [vmem:[#allocation6 + $0x18] sm:$0xff] %v9352_v0 }
  0x46   : > { %402 = vst [vmem:[#allocation6 + $0x10] sm:$0xff] %v9352_v0 }
  0x47   : > { %403 = vst [vmem:[#allocation6] sm:$0xff] %v9352_v0 }
  0x48   : > { %404 = vst [vmem:[#allocation7] sm:$0xff] %v9353_v1 }
  0x49   : > { %405 = vst [vmem:[#allocation7 + $0x8] sm:$0xff] %v9353_v1 }
  0x4a   : > { %406 = vst [vmem:[#allocation7 + $0x10] sm:$0xff] %v9353_v1 }
  0x4b   : > { %407 = vst [vmem:[#allocation7 + $0x18] sm:$0xff] %v9353_v1 }
  0x4c   : > { %408 = vst [vmem:[#allocation7 + $0x20] sm:$0xff] %v9353_v1 }
  0x4d   : > { %409 = vst [vmem:[#allocation7 + $0x28] sm:$0xff] %v9353_v1 }
  0x4e   : > { %410 = vst [vmem:[#allocation7 + $0x30] sm:$0xff] %v9353_v1 }
  0x4f   : > { %411 = vst [vmem:[#allocation7 + $0x38] sm:$0xff] %v9353_v1 }
  0x50   : > { %412 = vst [vmem:[#allocation7 + $0x40] sm:$0xff] %v9353_v1 }
  0x51   : > { %413 = vst [vmem:[#allocation7 + $0x48] sm:$0xff] %v9353_v1 }
  0x52   : > { %414 = vst [vmem:[#allocation7 + $0x50] sm:$0xff] %v9353_v1 }
  0x53   : > { %415 = vst [vmem:[#allocation7 + $0x58] sm:$0xff] %v9353_v1 }
  0x54   : > { %416 = vst [vmem:[#allocation7 + $0x60] sm:$0xff] %v9353_v1 }
  0x55   : > { %417 = vst [vmem:[#allocation7 + $0x68] sm:$0xff] %v9353_v1 }
  0x56   : > { %418 = vst [vmem:[#allocation7 + $0x70] sm:$0xff] %v9353_v1 }
  0x57   : > { %419 = vst [vmem:[#allocation7 + $0x78] sm:$0xff] %v9353_v1 }
  0x58   : > { %420 = vst [vmem:[#allocation7 + $0x80] sm:$0xff] %v9353_v1 }
  0x59   : > { %421 = vst [vmem:[#allocation7 + $0x88] sm:$0xff] %v9353_v1 }
  0x5a   : > { %422 = vst [vmem:[#allocation7 + $0x90] sm:$0xff] %v9353_v1 }
  0x5b   : > { %423 = vst [vmem:[#allocation7 + $0x98] sm:$0xff] %v9353_v1 }
  0x5c   : > { %424 = vst [vmem:[#allocation7 + $0xa0] sm:$0xff] %v9353_v1 }
  0x5d   : > { %425 = vst [vmem:[#allocation7 + $0xa8] sm:$0xff] %v9353_v1 }
  0x5e   : > { %426 = vst [vmem:[#allocation7 + $0xb0] sm:$0xff] %v9353_v1 }
  0x5f   : > { %427 = vst [vmem:[#allocation7 + $0xb8] sm:$0xff] %v9353_v1 }
  0x60   : > { %428 = vst [vmem:[#allocation7 + $0xc0] sm:$0xff] %v9353_v1 }
  0x61   : > { %429 = vst [vmem:[#allocation7 + $0xc8] sm:$0xff] %v9353_v1 }
  0x62   : > { %430 = vst [vmem:[#allocation7 + $0xd0] sm:$0xff] %v9353_v1 }
  0x63   : > { %431 = vst [vmem:[#allocation7 + $0xd8] sm:$0xff] %v9353_v1 }
  0x64   : > { %432 = vst [vmem:[#allocation7 + $0xe0] sm:$0xff] %v9353_v1 }
  0x65   : > { %433 = vst [vmem:[#allocation7 + $0xe8] sm:$0xff] %v9353_v1 }
  0x66   : > { %434 = vst [vmem:[#allocation7 + $0xf0] sm:$0xff] %v9353_v1 }
  0x67   : > { %435 = vst [vmem:[#allocation7 + $0xf8] sm:$0xff] %v9353_v1 }
  0x68   : > { %436 = vst [vmem:[#allocation7 + $0x100] sm:$0xff] %v9353_v1 }
  0x69   : > { %437 = vst [vmem:[#allocation7 + $0x108] sm:$0xff] %v9353_v1 }
  0x6a   : > { %438 = vst [vmem:[#allocation7 + $0x110] sm:$0xff] %v9353_v1 }
  0x6b   : > { %439 = vst [vmem:[#allocation7 + $0x118] sm:$0xff] %v9353_v1 }
  0x6c   : > { %440 = vst [vmem:[#allocation7 + $0x120] sm:$0xff] %v9353_v1 }
  0x6d   : > { %441 = vst [vmem:[#allocation7 + $0x128] sm:$0xff] %v9353_v1 }
  0x6e   : > { %442 = vst [vmem:[#allocation7 + $0x130] sm:$0xff] %v9353_v1 }
  0x6f   : > { %443 = vst [vmem:[#allocation7 + $0x138] sm:$0xff] %v9353_v1 }
  0x70   : > { %444 = vst [vmem:[#allocation7 + $0x140] sm:$0xff] %v9353_v1 }
  0x71   : > { %445 = vst [vmem:[#allocation7 + $0x148] sm:$0xff] %v9353_v1 }
  0x72   : > { %446 = vst [vmem:[#allocation7 + $0x150] sm:$0xff] %v9353_v1 }
  0x73   : > { %447 = vst [vmem:[#allocation7 + $0x158] sm:$0xff] %v9353_v1 }
  0x74   : > { %448 = vst [vmem:[#allocation7 + $0x160] sm:$0xff] %v9353_v1 }
  0x75   : > { %449 = vst [vmem:[#allocation7 + $0x168] sm:$0xff] %v9353_v1 }
  0x76   : > { %450 = vst [vmem:[#allocation7 + $0x170] sm:$0xff] %v9353_v1 }
  0x77   : > { %451 = vst [vmem:[#allocation7 + $0x178] sm:$0xff] %v9353_v1 }
  0x78   : > { %452 = vst [vmem:[#allocation7 + $0x180] sm:$0xff] %v9353_v1 }
  0x79   : > { %453 = vst [vmem:[#allocation7 + $0x188] sm:$0xff] %v9353_v1 }
  0x7a   : > { %454 = vst [vmem:[#allocation7 + $0x190] sm:$0xff] %v9353_v1 }
  0x7b   : > { %455 = vst [vmem:[#allocation7 + $0x198] sm:$0xff] %v9353_v1 }
  0x7c   : > { %456 = vst [vmem:[#allocation7 + $0x1a0] sm:$0xff] %v9353_v1 }
  0x7d   : > { %457 = vst [vmem:[#allocation7 + $0x1a8] sm:$0xff] %v9353_v1 }
  0x7e   : > { %458 = vst [vmem:[#allocation7 + $0x1b0] sm:$0xff] %v9353_v1 }
  0x7f   : > { %459 = vst [vmem:[#allocation7 + $0x1b8] sm:$0xff] %v9353_v1 }
  0x80   : > { %460 = vst [vmem:[#allocation7 + $0x1c0] sm:$0xff] %v9353_v1 }
  0x81   : > { %461 = vst [vmem:[#allocation7 + $0x1c8] sm:$0xff] %v9353_v1 }
  0x82   : > { %462 = vst [vmem:[#allocation7 + $0x1d0] sm:$0xff] %v9353_v1 }
  0x83   : > { %463 = vst [vmem:[#allocation7 + $0x1d8] sm:$0xff] %v9353_v1 }
  0x84   : > { %464 = vst [vmem:[#allocation7 + $0x1e0] sm:$0xff] %v9353_v1 }
  0x85   : > { %465 = vst [vmem:[#allocation7 + $0x1e8] sm:$0xff] %v9353_v1 }
  0x86   : > { %466 = vst [vmem:[#allocation7 + $0x1f0] sm:$0xff] %v9353_v1 }
  0x87   : > { %467 = vst [vmem:[#allocation7 + $0x1f8] sm:$0xff] %v9353_v1 }
  0x88   : > { %468 = vst [vmem:[#allocation7 + $0x200] sm:$0xff] %v9353_v1 }
  0x89   : > { %469 = vst [vmem:[#allocation7 + $0x208] sm:$0xff] %v9353_v1 }
  0x8a   : > { %470 = vst [vmem:[#allocation7 + $0x210] sm:$0xff] %v9353_v1 }
  0x8b   : > { %471 = vst [vmem:[#allocation7 + $0x218] sm:$0xff] %v9353_v1 }
  0x8c   : > { %472 = vst [vmem:[#allocation7 + $0x220] sm:$0xff] %v9353_v1 }
  0x8d   : > { %473 = vst [vmem:[#allocation7 + $0x228] sm:$0xff] %v9353_v1 }
  0x8e   : > { %474 = vst [vmem:[#allocation7 + $0x230] sm:$0xff] %v9353_v1 }
  0x8f   : > { %475 = vst [vmem:[#allocation7 + $0x238] sm:$0xff] %v9353_v1 }
  0x90 PF: > { %p7292_p8 = scmp.ge.s32.totalorder %s9413_s28, 4 }
  0x92   : > { %479 = sbr.rel (%p7292_p8) target bundleno = 156 (0x9c), region = 60 }
  0x97   : > { %v480_v2 = vld [vmem:[%s9424_s12] sm:$0xff]  ;;  %v481_v3 = vld [vmem:[%s9424_s12 + $0x8] sm:$0xff]  ;;  %v482_v4 = vld [vmem:[%s9424_s12 + $0x10] sm:$0xff] }
  0x98   : > { %484 = vst [vmem:[#allocation2 + $0x30] sm:$0xff] %v480_v2  ;;  %v483_v5 = vld [vmem:[%s9424_s12 + $0x18] sm:$0xff] }
  0x99   : > { %485 = vst [vmem:[#allocation2] sm:$0xff] %v481_v3 }
  0x9a   : > { %486 = vst [vmem:[#allocation2 + $0x58] sm:$0xff] %v482_v4 }
  0x9b   : > { %487 = vst [vmem:[#allocation2 + $0x18] sm:$0xff] %v483_v5 }
  0x9c PF: > { %p7293_p9 = scmp.lt.s32.totalorder %s9413_s28, 4 }
  0x9e   : > { %491 = sbr.rel (%p7293_p9) target bundleno = 174 (0xae), region = 64 }
  0xa3   : > { %v492_v6 = vld [vmem:[%s9430_s17] sm:$0xff]  ;;  %v508_v8 = vld [vmem:[#allocation6 + $0x8] sm:$0xff]  ;;  %v509_v13 = vld [vmem:[#allocation6 + $0x18] sm:$0xff] }
  0xa4   : > { %v496_v7 = vld [vmem:[%s9424_s12] sm:$0xff]  ;;  %v504_v10 = vsub.f32 1.0, %v492_v6  ;;  %v493_v11 = vld [vmem:[%s9430_s17 + $0x8] sm:$0xff]  ;;  %v494_v16 = vld [vmem:[%s9430_s17 + $0x10] sm:$0xff] }
  0xa5   : > { %v500_v9 = vmul.f32 %v496_v7, %v492_v6  ;;  %v497_v12 = vld [vmem:[%s9424_s12 + $0x8] sm:$0xff]  ;;  %v505_v15 = vsub.f32 1.0, %v493_v11  ;;  %v498_v17 = vld [vmem:[%s9424_s12 + $0x10] sm:$0xff]  ;;  %v506_v21 = vsub.f32 1.0, %v494_v16  ;;  %v495_v22 = vld [vmem:[%s9430_s17 + $0x18] sm:$0xff] }
  0xa6   : > { %v501_v14 = vmul.f32 %v497_v12, %v493_v11  ;;  %v510_v18 = vld [vmem:[#allocation6 + $0x10] sm:$0xff]  ;;  %v512_v19 = vmul.f32 %v508_v8, %v504_v10  ;;  %v502_v20 = vmul.f32 %v498_v17, %v494_v16  ;;  %v499_v23 = vld [vmem:[%s9424_s12 + $0x18] sm:$0xff]  ;;  %v511_v24 = vld [vmem:[#allocation6] sm:$0xff]  ;;  %v507_v27 = vsub.f32 1.0, %v495_v22 }
  0xa7   : > { %v513_v25 = vmul.f32 %v509_v13, %v505_v15  ;;  %v503_v26 = vmul.f32 %v499_v23, %v495_v22  ;;  %v514_v29 = vmul.f32 %v510_v18, %v506_v21 }
  0xa8   : > { %v516_v28 = vadd.f32 %v512_v19, %v500_v9  ;;  %v515_v31 = vmul.f32 %v511_v24, %v507_v27 }
  0xa9   : > { %v517_v30 = vadd.f32 %v513_v25, %v501_v14  ;;  %v518_v32 = vadd.f32 %v514_v29, %v502_v20 }
  0xaa   : > { %520 = vst [vmem:[#allocation2 + $0x30] sm:$0xff] %v516_v28  ;;  %v519_v33 = vadd.f32 %v515_v31, %v503_v26 }
  0xab   : > { %521 = vst [vmem:[#allocation2] sm:$0xff] %v517_v30 }
  0xac   : > { %522 = vst [vmem:[#allocation2 + $0x58] sm:$0xff] %v518_v32 }
  0xad   : > { %523 = vst [vmem:[#allocation2 + $0x18] sm:$0xff] %v519_v33 }
  0xae PF: > { %v9524_v34 = vld [vmem:[#allocation2 + $0x28] sm:$0xff]  ;;  %v9526_v35 = vld [vmem:[#allocation2 + $0x70] sm:$0xff]  ;;  %v9528_v36 = vld [vmem:[#allocation2 + $0x60] sm:$0xff]  ;;  %s9354_s22 = smov 1   ;;  %s9355_s23 = smov 112   ;;  %v580_v52 = vlaneseq  ;;  %vm1914_vm6 = vcmask 261120  }
  0xaf   : > { %873 = vrot.lane.b32.xlu2 %v9524_v34, %s9354_s22  ;;  %857 = vrot.lane.b32.xlu1 %v9526_v35, %s9354_s22  ;;  %v9534_v37 = vld [vmem:[#allocation5 + $0x28] sm:$0xff]  ;;  %v9539_v38 = vld [vmem:[#allocation5] sm:$0xff]  ;;  %v9549_v40 = vld [vmem:[#allocation5 + $0x38] sm:$0xff]  ;;  %s9356_s24 = smov 15   ;;  %s9357_s25 = smov 111  }
  0xb0   : > { %849 = vrot.lane.b32.xlu0 %v9528_v36, %s9354_s22  ;;  %531 = vst [vmem:[#allocation2 + $0x38] sm:$0xff] %v9534_v37  ;;  %v9542_v39 = vld [vmem:[#allocation5 + $0x20] sm:$0xff]  ;;  %v9556_v42 = vld [vmem:[#allocation2 + $0x50] sm:$0xff]  ;;  %v9566_v44 = vld [vmem:[#allocation2 + $0x48] sm:$0xff]  ;;  %v9650_v54 = vand.u32 127, %v580_v52  ;;  %s9358_s26 = smov 113  }
  0xb1   : > { %529 = vst [vmem:[#allocation2 + $0x20] sm:$0xff] %v9539_v38  ;;  %v9558_v43 = vld [vmem:[#allocation2 + $0x30] sm:$0xff]  ;;  %v9570_v46 = vld [vmem:[#allocation2 + $0x68] sm:$0xff]  ;;  %v9584_v47 = vld [vmem:[#allocation2 + $0x78] sm:$0xff]  ;;  %s9359_s29 = smov 16   ;;  %s9360_s18 = smov 127  }
  0xb2   : > { %528 = vst [vmem:[#allocation2 + $0x40] sm:$0xff] %v9542_v39  ;;  %v9554_v41 = vld [vmem:[#allocation2] sm:$0xff]  ;;  %v9610_v48 = vld [vmem:[#allocation2 + $0x8] sm:$0xff]  ;;  %vm875_vm0 = vcmp.lt.s32.totalorder %v9650_v54, 1  ;;  %vm1185_vm1 = vcmp.lt.s32.totalorder %v9650_v54, 112  ;;  %vm777_vm2 = vcmp.lt.s32.totalorder %v9650_v54, 15 }
  0xb3   : > { %530 = vst [vmem:[#allocation2 + $0x10] sm:$0xff] %v9549_v40  ;;  %v9612_v49 = vld [vmem:[#allocation2 + $0x58] sm:$0xff]  ;;  %v7338_v56 = vld [vmem:[%s14471_s2 + $0x1e0] sm:$0xff]  ;;  %v7339_v57 = vld [vmem:[%s14471_s2 + $0x1e8] sm:$0xff]  ;;  %vm1283_vm3 = vcmp.lt.s32.totalorder %v9650_v54, 111  ;;  %s9361_s13 = smov 17  }
  0xb4   : > { %v9568_v45 = vld [vmem:[#allocation2 + $0x18] sm:$0xff]  ;;  %14548 = vst [vmem:[#allocation9_spill] sm:$0xff] %v9650_v54  ;;  %v7334_v3 = vld [vmem:[%s14471_s2 + $0x1c0] sm:$0xff]  ;;  %v7335_v4 = vld [vmem:[%s14471_s2 + $0x1c8] sm:$0xff]  ;;  %vm1087_vm4 = vcmp.lt.s32.totalorder %v9650_v54, 113  ;;  %vm679_vm5 = vcmp.lt.s32.totalorder %v9650_v54, 16 }
  0xb5   : > { %v7327_v18 = vld [vmem:[%s14471_s2 + $0x188] sm:$0xff]  ;;  %v7326_v20 = vld [vmem:[%s14471_s2 + $0x180] sm:$0xff]  ;;  %vm989_vm7 = vcmp.lt.s32.totalorder %v9650_v54, 127  ;;  %vm582_vm8 = vcmp.lt.s32.totalorder %v9650_v54, 17 }
  0xb6   : > { %v7330_v23 = vld [vmem:[%s14471_s2 + $0x1a0] sm:$0xff]  ;;  %v7331_v27 = vld [vmem:[%s14471_s2 + $0x1a8] sm:$0xff] }
  0xb7   : > { %871 = vrot.lane.b32.xlu2 %v9534_v37, %s9354_s22  ;;  %855 = vrot.lane.b32.xlu1 %v9539_v38, %s9354_s22 }
  0xb8   : > { %847 = vrot.lane.b32.xlu0 %v9542_v39, %s9354_s22 }
  0xbf   : > { %851 = vrot.lane.b32.xlu2 %v9554_v41, %s9354_s22  ;;  %845 = vrot.lane.b32.xlu1 %v9556_v42, %s9354_s22 }
  0xc0   : > { %843 = vrot.lane.b32.xlu0 %v9558_v43, %s9354_s22 }
  0xc7   : > { %869 = vrot.lane.b32.xlu2 %v9566_v44, %s9354_s22  ;;  %867 = vrot.lane.b32.xlu1 %v9568_v45, %s9354_s22 }
  0xc8   : > { %853 = vrot.lane.b32.xlu0 %v9570_v46, %s9354_s22 }
  0xcf   : > { %1165 = vrot.lane.b32.xlu2 %v9539_v38, %s9355_s23  ;;  %1159 = vrot.lane.b32.xlu1 %v9528_v36, %s9355_s23 }
  0xd0   : > { %1157 = vrot.lane.b32.xlu0 %v9542_v39, %s9355_s23 }
  0xd7   : > { %1175 = vrot.lane.b32.xlu2 %v9584_v47, %s9355_s23  ;;  %1173 = vrot.lane.b32.xlu1 %v9549_v40, %s9355_s23 }
  0xd8   : > { %1167 = vrot.lane.b32.xlu0 %v9526_v35, %s9355_s23 }
  0xdf   : > { %757 = vrot.lane.b32.xlu2 %v9539_v38, %s9356_s24  ;;  %751 = vrot.lane.b32.xlu1 %v9528_v36, %s9356_s24 }
  0xe0   : > { %749 = vrot.lane.b32.xlu0 %v9542_v39, %s9356_s24 }
  0xe7   : > { %775 = vrot.lane.b32.xlu2 %v9524_v34, %s9356_s24  ;;  %773 = vrot.lane.b32.xlu1 %v9534_v37, %s9356_s24 }
  0xe8   : > { %759 = vrot.lane.b32.xlu0 %v9526_v35, %s9356_s24 }
  0xef   : > { %1161 = vrot.lane.b32.xlu2 %v9554_v41, %s9355_s23  ;;  %1155 = vrot.lane.b32.xlu1 %v9556_v42, %s9355_s23 }
  0xf0   : > { %1153 = vrot.lane.b32.xlu0 %v9558_v43, %s9355_s23 }
  0xf7   : > { %1171 = vrot.lane.b32.xlu2 %v9610_v48, %s9355_s23  ;;  %1169 = vrot.lane.b32.xlu1 %v9612_v49, %s9355_s23 }
  0xf8   : > { %1163 = vrot.lane.b32.xlu0 %v9570_v46, %s9355_s23 }
  0xff   : > { %1263 = vrot.lane.b32.xlu2 %v9539_v38, %s9357_s25  ;;  %1257 = vrot.lane.b32.xlu1 %v9528_v36, %s9357_s25 }
 0x100   : > { %1255 = vrot.lane.b32.xlu0 %v9542_v39, %s9357_s25 }
 0x107   : > { %1273 = vrot.lane.b32.xlu2 %v9584_v47, %s9357_s25  ;;  %1271 = vrot.lane.b32.xlu1 %v9549_v40, %s9357_s25 }
 0x108   : > { %1265 = vrot.lane.b32.xlu0 %v9526_v35, %s9357_s25 }
 0x109   : > { %v9632_v50 = vpop.permute.xlu2 %873 }
 0x10f   : > { %753 = vrot.lane.b32.xlu2 %v9554_v41, %s9356_s24  ;;  %747 = vrot.lane.b32.xlu1 %v9556_v42, %s9356_s24 }
 0x110   : > { %745 = vrot.lane.b32.xlu0 %v9558_v43, %s9356_s24 }
 0x111   : > { %v9640_v51 = vpop.permute.xlu2 %871 }
 0x117   : > { %771 = vrot.lane.b32.xlu2 %v9566_v44, %s9356_s24  ;;  %769 = vrot.lane.b32.xlu1 %v9568_v45, %s9356_s24 }
 0x118   : > { %755 = vrot.lane.b32.xlu0 %v9570_v46, %s9356_s24 }
 0x119   : > { %v9648_v53 = vpop.permute.xlu2 %851 }
 0x11f   : > { %1067 = vrot.lane.b32.xlu2 %v9539_v38, %s9358_s26  ;;  %1061 = vrot.lane.b32.xlu1 %v9528_v36, %s9358_s26 }
 0x120   : > { %1059 = vrot.lane.b32.xlu0 %v9542_v39, %s9358_s26 }
 0x121   : > { %v9659_v55 = vpop.permute.xlu1 %857  ;;  %v9667_v58 = vpop.permute.xlu2 %869 }
 0x122   : > { %v850_v59 = vpop.permute.xlu0 %849 }
 0x123   : > { %v887_v60 = vsel %vm875_vm0, %v850_v59, %v9659_v55  ;;  %v891_v61 = vsel %vm875_vm0, %v9632_v50, %v850_v59 }
 0x124   : > { %v921_v62 = vmul.f32 %v7338_v56, %v891_v61  ;;  %v922_v63 = vmul.f32 %v7339_v57, %v887_v60 }
 0x126   : > { %v931_v0 = vpack.c.bf16 %v922_v63, %v921_v62 }
 0x127   : > { %1077 = vrot.lane.b32.xlu2 %v9584_v47, %s9358_s26  ;;  %1075 = vrot.lane.b32.xlu1 %v9549_v40, %s9358_s26 }
 0x128   : > { %939 = vst [vmem:[#allocation7 + $0xf0] sm:$0xff] %v931_v0  ;;  %1069 = vrot.lane.b32.xlu0 %v9526_v35, %s9358_s26 }
 0x129   : > { %v9681_v1 = vpop.permute.xlu2 %1165  ;;  %v9683_v2 = vpop.permute.xlu1 %855 }
 0x12a   : > { %v848_v5 = vpop.permute.xlu0 %847 }
 0x12b   : > { %v886_v6 = vsel %vm875_vm0, %v848_v5, %v9683_v2  ;;  %v890_v7 = vsel %vm875_vm0, %v9640_v51, %v848_v5 }
 0x12c   : > { %v917_v8 = vmul.f32 %v7334_v3, %v890_v7  ;;  %v918_v9 = vmul.f32 %v7335_v4, %v886_v6  ;;  %v7382_v4 = vld [vmem:[%s14471_s2 + $0x3c0] sm:$0xff]  ;;  %v7383_v6 = vld [vmem:[%s14471_s2 + $0x3c8] sm:$0xff] }
 0x12e   : > { %v929_v10 = vpack.c.bf16 %v918_v9, %v917_v8 }
 0x12f   : > { %1259 = vrot.lane.b32.xlu2 %v9554_v41, %s9357_s25  ;;  %1253 = vrot.lane.b32.xlu1 %v9556_v42, %s9357_s25  ;;  %v8848_v14 = vld [vmem:[#allocation7 + $0xec] sm:$0xf0]  ;;  %v7606_v17 = vld [vmem:[#allocation7 + $0xf0] sm:$0xf0] }
 0x130   : > { %937 = vst [vmem:[#allocation7 + $0xe0] sm:$0xff] %v929_v10  ;;  %1251 = vrot.lane.b32.xlu0 %v9558_v43, %s9357_s25 }
 0x131   : > { %v9703_v11 = vpop.permute.xlu2 %1175  ;;  %v846_v12 = vpop.permute.xlu1 %845 }
 0x132   : > { %v844_v13 = vpop.permute.xlu0 %843  ;;  %v889_v24 = vsel %vm875_vm0, %v9667_v58, %v846_v12 }
 0x133   : > { %v884_v19 = vsel %vm875_vm0, %v844_v13, %v9648_v53  ;;  %v913_v33 = vmul.f32 %v7330_v23, %v889_v24 }
 0x134   : > { %v910_v30 = vmul.f32 %v7327_v18, %v884_v19 }
 0x137   : > { %1269 = vrot.lane.b32.xlu2 %v9610_v48, %s9357_s25  ;;  %1267 = vrot.lane.b32.xlu1 %v9612_v49, %s9357_s25  ;;  %v7604_v15 = vld [vmem:[#allocation7 + $0xe0] sm:$0xf]  ;;  %v8846_v16 = vld [vmem:[#allocation7 + $0xe4] sm:$0xf] }
 0x138   : > { %1261 = vrot.lane.b32.xlu0 %v9570_v46, %s9357_s25  ;;  %v7605_v21 = vor.u32 %v8848_v14, %v7604_v15  ;;  %v7609_v22 = vor.u32 %v8846_v16, %v7606_v17 }
 0x139   : > { %v9726_v25 = vpop.permute.xlu2 %757  ;;  %v9728_v26 = vpop.permute.xlu1 %867 }
 0x13a   : > { %v888_v28 = vsel %vm875_vm0, %v9728_v26, %v844_v13  ;;  %1936 = vmatpush.bf16.msra.mxu0 %v7605_v21  ;;  %2068 = vmatpush.bf16.msra.mxu3 %v7609_v22  ;;  %v9736_v29 = vpop.permute.xlu0 %853  ;;  %v7387_v13 = vld [vmem:[%s14471_s2 + $0x3e8] sm:$0xff] }
 0x13b   : > { %v909_v31 = vmul.f32 %v7326_v20, %v888_v28  ;;  %v885_v32 = vsel %vm875_vm0, %v846_v12, %v9736_v29  ;;  %v7386_v12 = vld [vmem:[%s14471_s2 + $0x3e0] sm:$0xff] }
 0x13c   : > { %v914_v52 = vmul.f32 %v7331_v27, %v885_v32 }
 0x13d   : > { %v925_v56 = vpack.c.bf16 %v910_v30, %v909_v31  ;;  %v7319_v31 = vld [vmem:[%s14471_s2 + $0x148] sm:$0xff] }
 0x13e   : > { %v927_v57 = vpack.c.bf16 %v914_v52, %v913_v33  ;;  %v7318_v33 = vld [vmem:[%s14471_s2 + $0x140] sm:$0xff] }
 0x13f   : > { %933 = vst [vmem:[#allocation7 + $0xc0] sm:$0xff] %v925_v56  ;;  %659 = vrot.lane.b32.xlu2 %v9539_v38, %s9359_s29  ;;  %653 = vrot.lane.b32.xlu1 %v9528_v36, %s9359_s29  ;;  %v7322_v56 = vld [vmem:[%s14471_s2 + $0x160] sm:$0xff] }
 0x140   : > { %935 = vst [vmem:[#allocation7 + $0xd0] sm:$0xff] %v927_v57  ;;  %651 = vrot.lane.b32.xlu0 %v9542_v39, %s9359_s29 }
 0x141   : > { %v9747_v59 = vpop.permute.xlu2 %775  ;;  %v9749_v60 = vpop.permute.xlu1 %1159 }
 0x142   : > { %v9751_v61 = vpop.permute.xlu0 %1157 }
 0x143   : > { %v1196_v5 = vsel %vm1185_vm1, %v9751_v61, %v9681_v1 }
 0x144   : > { %v1227_v16 = vmul.f32 %v7382_v4, %v1196_v5 }
 0x146   : > { %v7588_v62 = vld [vmem:[#allocation7 + $0xc0] sm:$0xf]  ;;  %v8842_v63 = vld [vmem:[#allocation7 + $0xc4] sm:$0xf] }
 0x147   : > { %677 = vrot.lane.b32.xlu2 %v9524_v34, %s9359_s29  ;;  %675 = vrot.lane.b32.xlu1 %v9534_v37, %s9359_s29  ;;  %v8844_v0 = vld [vmem:[#allocation7 + $0xcc] sm:$0xf0]  ;;  %v7590_v3 = vld [vmem:[#allocation7 + $0xd0] sm:$0xf0] }
 0x148   : > { %661 = vrot.lane.b32.xlu0 %v9526_v35, %s9359_s29  ;;  %v7589_v7 = vor.u32 %v8844_v0, %v7588_v62  ;;  %v7593_v8 = vor.u32 %v8842_v63, %v7590_v3  ;;  %v7323_v0 = vld [vmem:[%s14471_s2 + $0x168] sm:$0xff] }
 0x149   : > { %v9770_v9 = vpop.permute.xlu2 %1161  ;;  %v9772_v10 = vpop.permute.xlu1 %1173 }
 0x14a   : > { %v1192_v14 = vsel %vm1185_vm1, %v9681_v1, %v9772_v10  ;;  %1937 = vmatpush.bf16.msra.mxu0 %v7589_v7  ;;  %2069 = vmatpush.bf16.msra.mxu3 %v7593_v8  ;;  %v1168_v15 = vpop.permute.xlu0 %1167 }
 0x14b   : > { %v1228_v17 = vmul.f32 %v7383_v6, %v1192_v14  ;;  %v1193_v18 = vsel %vm1185_vm1, %v1168_v15, %v9703_v11  ;;  %v1197_v19 = vsel %vm1185_vm1, %v9749_v60, %v1168_v15 }
 0x14c   : > { %v1231_v20 = vmul.f32 %v7386_v12, %v1197_v19  ;;  %v1232_v21 = vmul.f32 %v7387_v13, %v1193_v18 }
 0x14d   : > { %v1239_v22 = vpack.c.bf16 %v1228_v17, %v1227_v16 }
 0x14e   : > { %v1241_v23 = vpack.c.bf16 %v1232_v21, %v1231_v20 }
 0x14f   : > { %1247 = vst [vmem:[#allocation7 + $0x1e0] sm:$0xff] %v1239_v22  ;;  %1063 = vrot.lane.b32.xlu2 %v9554_v41, %s9358_s26  ;;  %1057 = vrot.lane.b32.xlu1 %v9556_v42, %s9358_s26  ;;  %v7374_v22 = vld [vmem:[%s14471_s2 + $0x380] sm:$0xff] }
 0x150   : > { %1249 = vst [vmem:[#allocation7 + $0x1f0] sm:$0xff] %v1241_v23  ;;  %1055 = vrot.lane.b32.xlu0 %v9558_v43, %s9358_s26 }
 0x151   : > { %v9796_v1 = vpop.permute.xlu2 %1171  ;;  %v752_v24 = vpop.permute.xlu1 %751 }
 0x152   : > { %v750_v27 = vpop.permute.xlu0 %749  ;;  %v793_v57 = vsel %vm777_vm2, %v9747_v59, %v752_v24 }
 0x153   : > { %v788_v32 = vsel %vm777_vm2, %v750_v27, %v9726_v25  ;;  %v823_v8 = vmul.f32 %v7322_v56, %v793_v57 }
 0x154   : > { %v820_v5 = vmul.f32 %v7319_v31, %v788_v32  ;;  %v7378_v32 = vld [vmem:[%s14471_s2 + $0x3a0] sm:$0xff] }
 0x156   : > { %v7732_v28 = vld [vmem:[#allocation7 + $0x1e0] sm:$0xf] }
 0x157   : > { %1073 = vrot.lane.b32.xlu2 %v9610_v48, %s9358_s26  ;;  %1071 = vrot.lane.b32.xlu1 %v9612_v49, %s9358_s26  ;;  %v8880_v30 = vld [vmem:[#allocation7 + $0x1ec] sm:$0xf0] }
 0x158   : > { %1065 = vrot.lane.b32.xlu0 %v9570_v46, %s9358_s26  ;;  %v7733_v52 = vor.u32 %v8880_v30, %v7732_v28 }
 0x159   : > { %v9820_v62 = vpop.permute.xlu2 %1263  ;;  %v9822_v63 = vpop.permute.xlu1 %773 }
 0x15a   : > { %v792_v3 = vsel %vm777_vm2, %v9822_v63, %v750_v27  ;;  %1980 = vmatpush.bf16.msra.mxu1 %v7733_v52  ;;  %v9830_v4 = vpop.permute.xlu0 %759 }
 0x15b   : > { %v819_v6 = vmul.f32 %v7318_v33, %v792_v3  ;;  %v789_v7 = vsel %vm777_vm2, %v752_v24, %v9830_v4  ;;  %v7375_v24 = vld [vmem:[%s14471_s2 + $0x388] sm:$0xff] }
 0x15c   : > { %v824_v12 = vmul.f32 %v7323_v0, %v789_v7  ;;  %v7379_v33 = vld [vmem:[%s14471_s2 + $0x3a8] sm:$0xff] }
 0x15d   : > { %v831_v13 = vpack.c.bf16 %v820_v5, %v819_v6 }
 0x15e   : > { %v833_v14 = vpack.c.bf16 %v824_v12, %v823_v8 }
 0x15f   : > { %839 = vst [vmem:[#allocation7 + $0xa0] sm:$0xff] %v831_v13  ;;  %655 = vrot.lane.b32.xlu2 %v9554_v41, %s9359_s29  ;;  %649 = vrot.lane.b32.xlu1 %v9556_v42, %s9359_s29 }
 0x160   : > { %841 = vst [vmem:[#allocation7 + $0xb0] sm:$0xff] %v833_v14  ;;  %647 = vrot.lane.b32.xlu0 %v9558_v43, %s9359_s29 }
 0x161   : > { %v9841_v15 = vpop.permute.xlu2 %1273  ;;  %v9843_v16 = vpop.permute.xlu1 %1155 }
 0x162   : > { %14549 = vst [vmem:[#allocation10_spill] sm:$0xff] %v9841_v15  ;;  %v9845_v17 = vpop.permute.xlu0 %1153 }
 0x163   : > { %v1194_v23 = vsel %vm1185_vm1, %v9845_v17, %v9770_v9 }
 0x164   : > { %v1219_v57 = vmul.f32 %v7374_v22, %v1194_v23  ;;  %v7399_v22 = vld [vmem:[%s14471_s2 + $0x448] sm:$0xff] }
 0x166   : > { %v7572_v18 = vld [vmem:[#allocation7 + $0xa0] sm:$0xf]  ;;  %v8838_v19 = vld [vmem:[#allocation7 + $0xa4] sm:$0xf] }
 0x167   : > { %673 = vrot.lane.b32.xlu2 %v9566_v44, %s9359_s29  ;;  %671 = vrot.lane.b32.xlu1 %v9568_v45, %s9359_s29  ;;  %v8840_v20 = vld [vmem:[#allocation7 + $0xac] sm:$0xf0]  ;;  %v7574_v21 = vld [vmem:[#allocation7 + $0xb0] sm:$0xf0] }
 0x168   : > { %657 = vrot.lane.b32.xlu0 %v9570_v46, %s9359_s29  ;;  %v7573_v27 = vor.u32 %v8840_v20, %v7572_v18  ;;  %v7577_v28 = vor.u32 %v8838_v19, %v7574_v21  ;;  %v7398_v20 = vld [vmem:[%s14471_s2 + $0x440] sm:$0xff] }
 0x169   : > { %v9863_v30 = vpop.permute.xlu2 %753  ;;  %v9865_v31 = vpop.permute.xlu1 %1169 }
 0x16a   : > { %v1190_v52 = vsel %vm1185_vm1, %v9770_v9, %v9865_v31  ;;  %1938 = vmatpush.bf16.msra.mxu0 %v7573_v27  ;;  %2070 = vmatpush.bf16.msra.mxu3 %v7577_v28  ;;  %v1164_v56 = vpop.permute.xlu0 %1163  ;;  %v7402_v28 = vld [vmem:[%s14471_s2 + $0x460] sm:$0xff] }
 0x16b   : > { %v1220_v0 = vmul.f32 %v7375_v24, %v1190_v52  ;;  %v1191_v3 = vsel %vm1185_vm1, %v1164_v56, %v9796_v1  ;;  %v1195_v5 = vsel %vm1185_vm1, %v9843_v16, %v1164_v56 }
 0x16c   : > { %v1223_v6 = vmul.f32 %v7378_v32, %v1195_v5  ;;  %v1224_v7 = vmul.f32 %v7379_v33, %v1191_v3  ;;  %v7403_v32 = vld [vmem:[%s14471_s2 + $0x468] sm:$0xff] }
 0x16d   : > { %v1235_v8 = vpack.c.bf16 %v1220_v0, %v1219_v57 }
 0x16e   : > { %v1237_v12 = vpack.c.bf16 %v1224_v7, %v1223_v6 }
 0x16f   : > { %1243 = vst [vmem:[#allocation7 + $0x1c0] sm:$0xff] %v1235_v8  ;;  %969 = vrot.lane.b32.xlu2 %v9539_v38, %s9360_s18  ;;  %963 = vrot.lane.b32.xlu1 %v9528_v36, %s9360_s18 }
 0x170   : > { %1245 = vst [vmem:[#allocation7 + $0x1d0] sm:$0xff] %v1237_v12  ;;  %961 = vrot.lane.b32.xlu0 %v9542_v39, %s9360_s18 }
 0x171   : > { %v9889_v9 = vpop.permute.xlu2 %771  ;;  %v9891_v13 = vpop.permute.xlu1 %1257 }
 0x172   : > { %14550 = vst [vmem:[#allocation11_spill] sm:$0xff] %v9889_v9  ;;  %v9893_v14 = vpop.permute.xlu0 %1255 }
 0x173   : > { %14551 = vst [vmem:[#allocation12_spill] sm:$0xff] %v9891_v13  ;;  %v1294_v21 = vsel %vm1283_vm3, %v9893_v14, %v9820_v62 }
 0x174   : > { %14552 = vst [vmem:[#allocation13_spill] sm:$0xff] %v9893_v14  ;;  %v1325_v56 = vmul.f32 %v7398_v20, %v1294_v21 }
 0x176   : > { %v7716_v18 = vld [vmem:[#allocation7 + $0x1c0] sm:$0xf] }
 0x177   : > { %979 = vrot.lane.b32.xlu2 %v9584_v47, %s9360_s18  ;;  %977 = vrot.lane.b32.xlu1 %v9549_v40, %s9360_s18  ;;  %v8876_v19 = vld [vmem:[#allocation7 + $0x1cc] sm:$0xf0] }
 0x178   : > { %971 = vrot.lane.b32.xlu0 %v9526_v35, %s9360_s18  ;;  %v7717_v23 = vor.u32 %v8876_v19, %v7716_v18 }
 0x179   : > { %v9912_v24 = vpop.permute.xlu2 %1067  ;;  %v9914_v27 = vpop.permute.xlu1 %1271 }
 0x17a   : > { %14553 = vst [vmem:[#allocation14_spill] sm:$0xff] %v9914_v27  ;;  %v1290_v33 = vsel %vm1283_vm3, %v9820_v62, %v9914_v27  ;;  %1981 = vmatpush.bf16.msra.mxu1 %v7717_v23  ;;  %v1266_v52 = vpop.permute.xlu0 %1265 }
 0x17b   : > { %v1326_v57 = vmul.f32 %v7399_v22, %v1290_v33  ;;  %v1291_v0 = vsel %vm1283_vm3, %v1266_v52, %v9841_v15  ;;  %v1295_v3 = vsel %vm1283_vm3, %v9891_v13, %v1266_v52  ;;  %v7314_v22 = vld [vmem:[%s14471_s2 + $0x120] sm:$0xff] }
 0x17c   : > { %v1329_v5 = vmul.f32 %v7402_v28, %v1295_v3  ;;  %v1330_v6 = vmul.f32 %v7403_v32, %v1291_v0 }
 0x17d   : > { %v1337_v7 = vpack.c.bf16 %v1326_v57, %v1325_v56 }
 0x17e   : > { %v1339_v8 = vpack.c.bf16 %v1330_v6, %v1329_v5 }
 0x17f   : > { %1345 = vst [vmem:[#allocation7 + $0x220] sm:$0xff] %v1337_v7  ;;  %560 = vrot.lane.b32.xlu2 %v9539_v38, %s9361_s13  ;;  %554 = vrot.lane.b32.xlu1 %v9528_v36, %s9361_s13  ;;  %v7311_v36 = vld [vmem:[%s14471_s2 + $0x108] sm:$0xff] }
 0x180   : > { %1347 = vst [vmem:[#allocation7 + $0x230] sm:$0xff] %v1339_v8  ;;  %552 = vrot.lane.b32.xlu0 %v9542_v39, %s9361_s13  ;;  %v7310_v39 = vld [vmem:[%s14471_s2 + $0x100] sm:$0xff] }
 0x181   : > { %v9938_v62 = vpop.permute.xlu2 %1077  ;;  %v748_v12 = vpop.permute.xlu1 %747 }
 0x182   : > { %v746_v18 = vpop.permute.xlu0 %745  ;;  %v791_v23 = vsel %vm777_vm2, %v9889_v9, %v748_v12 }
 0x183   : > { %v786_v38 = vsel %vm777_vm2, %v746_v18, %v9863_v30  ;;  %v815_v3 = vmul.f32 %v7314_v22, %v791_v23  ;;  %v7367_v22 = vld [vmem:[%s14471_s2 + $0x348] sm:$0xff] }
 0x184   : > { %v812_v56 = vmul.f32 %v7311_v36, %v786_v38 }
 0x186   : > { %v7764_v19 = vld [vmem:[#allocation7 + $0x220] sm:$0xf] }
 0x187   : > { %578 = vrot.lane.b32.xlu2 %v9524_v34, %s9361_s13  ;;  %576 = vrot.lane.b32.xlu1 %v9534_v37, %s9361_s13  ;;  %v8888_v20 = vld [vmem:[#allocation7 + $0x22c] sm:$0xf0] }
 0x188   : > { %562 = vrot.lane.b32.xlu0 %v9526_v35, %s9361_s13  ;;  %v7765_v21 = vor.u32 %v8888_v20, %v7764_v19  ;;  %v7315_v35 = vld [vmem:[%s14471_s2 + $0x128] sm:$0xff] }
 0x189   : > { %v9961_v28 = vpop.permute.xlu2 %1259  ;;  %v9963_v32 = vpop.permute.xlu1 %769 }
 0x18a   : > { %v790_v33 = vsel %vm777_vm2, %v9963_v32, %v746_v18  ;;  %2030 = vmatpush.bf16.msra.mxu2 %v7765_v21  ;;  %v9971_v52 = vpop.permute.xlu0 %755 }
 0x18b   : > { %14554 = vst [vmem:[#allocation15_spill] sm:$0xff] %v9971_v52  ;;  %v811_v57 = vmul.f32 %v7310_v39, %v790_v33  ;;  %v787_v0 = vsel %vm777_vm2, %v748_v12, %v9971_v52  ;;  %v7366_v39 = vld [vmem:[%s14471_s2 + $0x340] sm:$0xff] }
 0x18c   : > { %v816_v5 = vmul.f32 %v7315_v35, %v787_v0  ;;  %v7371_v0 = vld [vmem:[%s14471_s2 + $0x368] sm:$0xff] }
 0x18d   : > { %v827_v6 = vpack.c.bf16 %v812_v56, %v811_v57  ;;  %v7370_v57 = vld [vmem:[%s14471_s2 + $0x360] sm:$0xff] }
 0x18e   : > { %v829_v7 = vpack.c.bf16 %v816_v5, %v815_v3 }
 0x18f   : > { %835 = vst [vmem:[#allocation7 + $0x80] sm:$0xff] %v827_v6  ;;  %965 = vrot.lane.b32.xlu2 %v9554_v41, %s9360_s18  ;;  %959 = vrot.lane.b32.xlu1 %v9556_v42, %s9360_s18 }
 0x190   : > { %837 = vst [vmem:[#allocation7 + $0x90] sm:$0xff] %v829_v7  ;;  %957 = vrot.lane.b32.xlu0 %v9558_v43, %s9360_s18 }
 0x191   : > { %v9982_v8 = vpop.permute.xlu2 %1269  ;;  %v9984_v18 = vpop.permute.xlu1 %1061 }
 0x192   : > { %14555 = vst [vmem:[#allocation16_spill] sm:$0xff] %v9982_v8  ;;  %v9986_v12 = vpop.permute.xlu0 %1059 }
 0x193   : > { %v1098_v21 = vsel %vm1087_vm4, %v9986_v12, %v9912_v24 }
 0x194   : > { %v1129_v6 = vmul.f32 %v7366_v39, %v1098_v21 }
 0x196   : > { %v7556_v19 = vld [vmem:[#allocation7 + $0x80] sm:$0xf]  ;;  %v8834_v20 = vld [vmem:[#allocation7 + $0x84] sm:$0xf] }
 0x197   : > { %975 = vrot.lane.b32.xlu2 %v9610_v48, %s9360_s18  ;;  %973 = vrot.lane.b32.xlu1 %v9612_v49, %s9360_s18  ;;  %v8836_v36 = vld [vmem:[#allocation7 + $0x8c] sm:$0xf0]  ;;  %v7558_v38 = vld [vmem:[#allocation7 + $0x90] sm:$0xf0] }
 0x198   : > { %967 = vrot.lane.b32.xlu0 %v9570_v46, %s9360_s18  ;;  %v7557_v23 = vor.u32 %v8836_v36, %v7556_v19  ;;  %v7561_v35 = vor.u32 %v8834_v20, %v7558_v38 }
 0x199   : > { %v10005_v33 = vpop.permute.xlu2 %659  ;;  %v10007_v56 = vpop.permute.xlu1 %1075 }
 0x19a   : > { %14556 = vst [vmem:[#allocation17_spill] sm:$0xff] %v10005_v33  ;;  %v1094_v3 = vsel %vm1087_vm4, %v9912_v24, %v10007_v56  ;;  %1939 = vmatpush.bf16.msra.mxu0 %v7557_v23  ;;  %2071 = vmatpush.bf16.msra.mxu3 %v7561_v35  ;;  %v1070_v5 = vpop.permute.xlu0 %1069 }
 0x19b   : > { %v1130_v7 = vmul.f32 %v7367_v22, %v1094_v3  ;;  %v1095_v19 = vsel %vm1087_vm4, %v1070_v5, %v9938_v62  ;;  %v1099_v20 = vsel %vm1087_vm4, %v9984_v18, %v1070_v5 }
 0x19c   : > { %v1133_v36 = vmul.f32 %v7370_v57, %v1099_v20  ;;  %v1134_v38 = vmul.f32 %v7371_v0, %v1095_v19  ;;  %v7394_v57 = vld [vmem:[%s14471_s2 + $0x420] sm:$0xff]  ;;  %v7395_v0 = vld [vmem:[%s14471_s2 + $0x428] sm:$0xff] }
 0x19d   : > { %v1141_v14 = vpack.c.bf16 %v1130_v7, %v1129_v6 }
 0x19e   : > { %v1143_v27 = vpack.c.bf16 %v1134_v38, %v1133_v36 }
 0x19f   : > { %1149 = vst [vmem:[#allocation7 + $0x1a0] sm:$0xff] %v1141_v14  ;;  %556 = vrot.lane.b32.xlu2 %v9554_v41, %s9361_s13  ;;  %550 = vrot.lane.b32.xlu1 %v9556_v42, %s9361_s13  ;;  %v7390_v42 = vld [vmem:[%s14471_s2 + $0x400] sm:$0xff]  ;;  %v7391_v14 = vld [vmem:[%s14471_s2 + $0x408] sm:$0xff] }
 0x1a0   : > { %1151 = vst [vmem:[#allocation7 + $0x1b0] sm:$0xff] %v1143_v27  ;;  %548 = vrot.lane.b32.xlu0 %v9558_v43, %s9361_s13 }
 0x1a1   : > { %v10031_v24 = vpop.permute.xlu2 %677  ;;  %v10033_v39 = vpop.permute.xlu1 %1253 }
 0x1a2   : > { %14557 = vst [vmem:[#allocation18_spill] sm:$0xff] %v10031_v24  ;;  %v10035_v21 = vpop.permute.xlu0 %1251 }
 0x1a3   : > { %14558 = vst [vmem:[#allocation19_spill] sm:$0xff] %v10033_v39  ;;  %v1292_v43 = vsel %vm1283_vm3, %v10035_v21, %v9961_v28 }
 0x1a4   : > { %14559 = vst [vmem:[#allocation20_spill] sm:$0xff] %v10035_v21  ;;  %v1317_v5 = vmul.f32 %v7390_v42, %v1292_v43  ;;  %v8878_v43 = vld [vmem:[#allocation7 + $0x1e4] sm:$0xf] }
 0x1a6   : > { %v7700_v22 = vld [vmem:[#allocation7 + $0x1a0] sm:$0xf] }
 0x1a7   : > { %574 = vrot.lane.b32.xlu2 %v9566_v44, %s9361_s13  ;;  %572 = vrot.lane.b32.xlu1 %v9568_v45, %s9361_s13  ;;  %v8872_v41 = vld [vmem:[#allocation7 + $0x1ac] sm:$0xf0] }
 0x1a8   : > { %558 = vrot.lane.b32.xlu0 %v9570_v46, %s9361_s13  ;;  %v7701_v27 = vor.u32 %v8872_v41, %v7700_v22 }
 0x1a9   : > { %v10053_v23 = vpop.permute.xlu2 %1063  ;;  %v10055_v35 = vpop.permute.xlu1 %1267 }
 0x1aa   : > { %14560 = vst [vmem:[#allocation21_spill] sm:$0xff] %v10055_v35  ;;  %v1288_v46 = vsel %vm1283_vm3, %v9961_v28, %v10055_v35  ;;  %1982 = vmatpush.bf16.msra.mxu1 %v7701_v27  ;;  %v1262_v3 = vpop.permute.xlu0 %1261 }
 0x1ab   : > { %v1318_v6 = vmul.f32 %v7391_v14, %v1288_v46  ;;  %v1289_v7 = vsel %vm1283_vm3, %v1262_v3, %v9982_v8  ;;  %v1293_v19 = vsel %vm1283_vm3, %v10033_v39, %v1262_v3  ;;  %v7734_v14 = vld [vmem:[#allocation7 + $0x1f0] sm:$0xf0]  ;;  %v7303_v3 = vld [vmem:[%s14471_s2 + $0xc8] sm:$0xff]  ;;  %v8874_v39 = vld [vmem:[#allocation7 + $0x1c4] sm:$0xf] }
 0x1ac   : > { %v1321_v20 = vmul.f32 %v7394_v57, %v1293_v19  ;;  %v1322_v36 = vmul.f32 %v7395_v0, %v1289_v7  ;;  %v7416_v57 = vld [vmem:[%s14472_s3 + $0x8] sm:$0xf]  ;;  %v8799_v0 = vld [vmem:[%s14472_s3 + $0x10] sm:$0xf0]  ;;  %v7306_v19 = vld [vmem:[%s14471_s2 + $0xe0] sm:$0xff]  ;;  %v7737_v21 = vor.u32 %v8878_v43, %v7734_v14 }
 0x1ad   : > { %v1333_v38 = vpack.c.bf16 %v1318_v6, %v1317_v5  ;;  %v7302_v6 = vld [vmem:[%s14471_s2 + $0xc0] sm:$0xff]  ;;  %v10116_v35 = vor.u32 %v8799_v0, %v7416_v57  ;;  %v7718_v8 = vld [vmem:[#allocation7 + $0x1d0] sm:$0xf0] }
 0x1ae   : > { %v1335_v22 = vpack.c.bf16 %v1322_v36, %v1321_v20 }
 0x1af   : > { %1341 = vst [vmem:[#allocation7 + $0x200] sm:$0xff] %v1333_v38  ;;  %863 = vrot.lane.b32.xlu2 %v9549_v40, %s9354_s22  ;;  %1183 = vrot.lane.b32.xlu1 %v9524_v34, %s9355_s23 }
 0x1b0   : > { %1343 = vst [vmem:[#allocation7 + $0x210] sm:$0xff] %v1335_v22  ;;  %1181 = vrot.lane.b32.xlu0 %v9534_v37, %s9355_s23  ;;  %v7307_v22 = vld [vmem:[%s14471_s2 + $0xe8] sm:$0xff] }
 0x1b1   : > { %v10079_v28 = vpop.permute.xlu2 %1073  ;;  %v654_v41 = vpop.permute.xlu1 %653  ;;  %14563 = vst [vmem:[#allocation24_spill] sm:$0xff] %v10116_v35 }
 0x1b2   : > { %v652_v42 = vpop.permute.xlu0 %651  ;;  %v695_v20 = vsel %vm679_vm5, %v10031_v24, %v654_v41 }
 0x1b3   : > { %v690_v5 = vsel %vm679_vm5, %v652_v42, %v10005_v33  ;;  %v725_v43 = vmul.f32 %v7306_v19, %v695_v20  ;;  %v7358_v19 = vld [vmem:[%s14471_s2 + $0x300] sm:$0xff] }
 0x1b4   : > { %v722_v33 = vmul.f32 %v7303_v3, %v690_v5  ;;  %v8802_v3 = vld [vmem:[%s14472_s3 + $0x28] sm:$0xf0] }
 0x1b6   : > { %v7748_v27 = vld [vmem:[#allocation7 + $0x200] sm:$0xf] }
 0x1b7   : > { %1179 = vrot.lane.b32.xlu2 %v9566_v44, %s9355_s23  ;;  %1177 = vrot.lane.b32.xlu1 %v9568_v45, %s9355_s23  ;;  %v8884_v46 = vld [vmem:[#allocation7 + $0x20c] sm:$0xf0] }
 0x1b8   : > { %865 = vrot.lane.b32.xlu0 %v9584_v47, %s9354_s22  ;;  %v7749_v7 = vor.u32 %v8884_v46, %v7748_v27 }
 0x1b9   : > { %v10109_v36 = vpop.permute.xlu2 %655  ;;  %v10111_v38 = vpop.permute.xlu1 %675 }
 0x1ba   : > { %14561 = vst [vmem:[#allocation22_spill] sm:$0xff] %v10109_v36  ;;  %v694_v27 = vsel %vm679_vm5, %v10111_v38, %v652_v42  ;;  %2031 = vmatpush.bf16.msra.mxu2 %v7749_v7  ;;  %v10121_v46 = vpop.permute.xlu0 %661  ;;  %v7721_v42 = vor.u32 %v8874_v39, %v7718_v8  ;;  %v8870_v7 = vld [vmem:[#allocation7 + $0x1a4] sm:$0xf]  ;;  %v7428_v39 = vld [vmem:[%s14472_s3 + $0x20] sm:$0xf] }
 0x1bb   : > { %14562 = vst [vmem:[#allocation23_spill] sm:$0xff] %v10111_v38  ;;  %v721_v24 = vmul.f32 %v7302_v6, %v694_v27  ;;  %v691_v13 = vsel %vm679_vm5, %v654_v41, %v10121_v46  ;;  %v7702_v38 = vld [vmem:[#allocation7 + $0x1b0] sm:$0xf0] }
 0x1bc   : > { %14564 = vst [vmem:[#allocation25_spill] sm:$0xff] %v10121_v46  ;;  %v726_v14 = vmul.f32 %v7307_v22, %v691_v13  ;;  %v7705_v8 = vor.u32 %v8870_v7, %v7702_v38  ;;  %v7359_v38 = vld [vmem:[%s14471_s2 + $0x308] sm:$0xff] }
 0x1bd   : > { %v733_v57 = vpack.c.bf16 %v722_v33, %v721_v24  ;;  %7778 = vmatmul.msk.bf16.vlgmr.msra.gmra.mxu2 %vm1914_vm6, %v10116_v35 }
 0x1be   : > { %2112 = vmatpush.bf16.msrb.mxu2 %v7737_v21  ;;  %v735_v0 = vpack.c.bf16 %v726_v14, %v725_v43 }
 0x1bf   : > { %741 = vst [vmem:[#allocation7 + $0x60] sm:$0xff] %v733_v57  ;;  %1083 = vrot.lane.b32.xlu2 %v9534_v37, %s9358_s26  ;;  %861 = vrot.lane.b32.xlu1 %v9610_v48, %s9354_s22  ;;  %v7362_v57 = vld [vmem:[%s14471_s2 + $0x320] sm:$0xff] }
 0x1c0   : > { %743 = vst [vmem:[#allocation7 + $0x70] sm:$0xff] %v735_v0  ;;  %859 = vrot.lane.b32.xlu0 %v9612_v49, %s9354_s22  ;;  %v10172_v0 = vor.u32 %v8802_v3, %v7428_v39 }
 0x1c1   : > { %v10134_v13 = vpop.permute.xlu2 %673  ;;  %v10136_v33 = vpop.permute.xlu1 %1057 }
 0x1c2   : > { %2113 = vmatpush.bf16.msrb.mxu2 %v7721_v42  ;;  %v10138_v24 = vpop.permute.xlu0 %1055  ;;  %v7363_v42 = vld [vmem:[%s14471_s2 + $0x328] sm:$0xff]  ;;  %14565 = vst [vmem:[#allocation26_spill] sm:$0xff] %v10172_v0 }
 0x1c3   : > { %v1096_v20 = vsel %vm1087_vm4, %v10138_v24, %v10053_v23 }
 0x1c6   : > { %2114 = vmatpush.bf16.msrb.mxu2 %v7705_v8  ;;  %v7540_v21 = vld [vmem:[#allocation7 + $0x60] sm:$0xf]  ;;  %v8830_v41 = vld [vmem:[#allocation7 + $0x64] sm:$0xf] }
 0x1c7   : > { %767 = vrot.lane.b32.xlu2 %v9584_v47, %s9356_s24  ;;  %v8832_v5 = vld [vmem:[#allocation7 + $0x6c] sm:$0xf0]  ;;  %v7542_v6 = vld [vmem:[#allocation7 + $0x70] sm:$0xf0]  ;;  %765 = vrot.lane.b32.xlu1 %v9549_v40, %s9356_s24 }
 0x1c8   : > { %1085 = vrot.lane.b32.xlu0 %v9524_v34, %s9358_s26  ;;  %v7541_v22 = vor.u32 %v8832_v5, %v7540_v21  ;;  %v7545_v27 = vor.u32 %v8830_v41, %v7542_v6  ;;  %v1121_v21 = vmul.f32 %v7358_v19, %v1096_v20 }
 0x1c9   : > { %v10162_v43 = vpop.permute.xlu2 %969  ;;  %v10164_v14 = vpop.permute.xlu1 %1071 }
 0x1ca   : > { %v1092_v7 = vsel %vm1087_vm4, %v10053_v23, %v10164_v14  ;;  %1940 = vmatpush.bf16.msra.mxu0 %v7541_v22  ;;  %2072 = vmatpush.bf16.msra.mxu3 %v7545_v27  ;;  %v1066_v8 = vpop.permute.xlu0 %1065  ;;  %v7440_v22 = vld [vmem:[%s14472_s3 + $0x38] sm:$0xf] }
 0x1cb   : > { %v1122_v41 = vmul.f32 %v7359_v38, %v1092_v7  ;;  %v1093_v5 = vsel %vm1087_vm4, %v1066_v8, %v10079_v28  ;;  %v1097_v6 = vsel %vm1087_vm4, %v10136_v33, %v1066_v8  ;;  %v7295_v8 = vld [vmem:[%s14471_s2 + $0x88] sm:$0xff] }
 0x1cc   : > { %v1125_v39 = vmul.f32 %v7362_v57, %v1097_v6  ;;  %v1126_v3 = vmul.f32 %v7363_v42, %v1093_v5  ;;  %v8805_v57 = vld [vmem:[%s14472_s3 + $0x40] sm:$0xf0] }
 0x1cd   : > { %v1137_v35 = vpack.c.bf16 %v1122_v41, %v1121_v21  ;;  %7779 = vmatmul.msk.bf16.gmra.mxu2 %vm1914_vm6, %v10172_v0  ;;  %v7298_v6 = vld [vmem:[%s14471_s2 + $0xa0] sm:$0xff]  ;;  %v10228_v0 = vor.u32 %v8805_v57, %v7440_v22 }
 0x1ce   : > { %v1139_v23 = vpack.c.bf16 %v1126_v3, %v1125_v39  ;;  %v7350_v57 = vld [vmem:[%s14471_s2 + $0x2c0] sm:$0xff] }
 0x1cf   : > { %1145 = vst [vmem:[#allocation7 + $0x180] sm:$0xff] %v1137_v35  ;;  %761 = vrot.lane.b32.xlu2 %v9612_v49, %s9356_s24  ;;  %1081 = vrot.lane.b32.xlu1 %v9566_v44, %s9358_s26 }
 0x1d0   : > { %1147 = vst [vmem:[#allocation7 + $0x190] sm:$0xff] %v1139_v23  ;;  %1079 = vrot.lane.b32.xlu0 %v9568_v45, %s9358_s26  ;;  %v7299_v23 = vld [vmem:[%s14471_s2 + $0xa8] sm:$0xff] }
 0x1d1   : > { %v10192_v19 = vpop.permute.xlu2 %979  ;;  %v650_v20 = vpop.permute.xlu1 %649  ;;  %14568 = vst [vmem:[#allocation29_spill] sm:$0xff] %v10228_v0 }
 0x1d2   : > { %v648_v38 = vpop.permute.xlu0 %647  ;;  %v693_v39 = vsel %vm679_vm5, %v10134_v13, %v650_v20 }
 0x1d3   : > { %v688_v21 = vsel %vm679_vm5, %v648_v38, %v10109_v36  ;;  %v717_v46 = vmul.f32 %v7298_v6, %v693_v39  ;;  %v7354_v6 = vld [vmem:[%s14471_s2 + $0x2e0] sm:$0xff]  ;;  %v7355_v39 = vld [vmem:[%s14471_s2 + $0x2e8] sm:$0xff] }
 0x1d6   : > { %v7684_v27 = vld [vmem:[#allocation7 + $0x180] sm:$0xf]  ;;  %v8866_v35 = vld [vmem:[#allocation7 + $0x184] sm:$0xf] }
 0x1d7   : > { %987 = vrot.lane.b32.xlu2 %v9524_v34, %s9360_s18  ;;  %v8868_v42 = vld [vmem:[#allocation7 + $0x18c] sm:$0xf0]  ;;  %v7686_v7 = vld [vmem:[#allocation7 + $0x190] sm:$0xf0]  ;;  %985 = vrot.lane.b32.xlu1 %v9534_v37, %s9360_s18  ;;  %v7294_v34 = vld [vmem:[%s14471_s2 + $0x80] sm:$0xff] }
 0x1d8   : > { %763 = vrot.lane.b32.xlu0 %v9610_v48, %s9356_s24  ;;  %v7685_v41 = vor.u32 %v8868_v42, %v7684_v27  ;;  %v7689_v5 = vor.u32 %v8866_v35, %v7686_v7  ;;  %v714_v42 = vmul.f32 %v7295_v8, %v688_v21 }
 0x1d9   : > { %v10221_v3 = vpop.permute.xlu2 %560  ;;  %v10223_v37 = vpop.permute.xlu1 %671 }
 0x1da   : > { %14566 = vst [vmem:[#allocation27_spill] sm:$0xff] %v10221_v3  ;;  %v692_v27 = vsel %vm679_vm5, %v10223_v37, %v648_v38  ;;  %1983 = vmatpush.bf16.msra.mxu1 %v7685_v41  ;;  %2115 = vmatpush.bf16.msrb.mxu2 %v7689_v5  ;;  %v10233_v35 = vpop.permute.xlu0 %657 }
 0x1db   : > { %14567 = vst [vmem:[#allocation28_spill] sm:$0xff] %v10223_v37  ;;  %v713_v7 = vmul.f32 %v7294_v34, %v692_v27  ;;  %v689_v36 = vsel %vm679_vm5, %v650_v20, %v10233_v35 }
 0x1dc   : > { %v718_v15 = vmul.f32 %v7299_v23, %v689_v36 }
 0x1dd   : > { %v729_v52 = vpack.c.bf16 %v714_v42, %v713_v7  ;;  %7780 = vmatmul.msk.bf16.gmra.mxu2 %vm1914_vm6, %v10228_v0  ;;  %v10332_v0 = vld [vmem:[#allocation2 + $0x8] sm:$0xff] }
 0x1de   : > { %v731_v22 = vpack.c.bf16 %v718_v15, %v717_v46  ;;  %v7452_v15 = vld [vmem:[%s14472_s3 + $0x50] sm:$0xf]  ;;  %14576 = vst [vmem:[#allocation37_spill] sm:$0xff] %v10332_v0 }
 0x1df   : > { %737 = vst [vmem:[#allocation7 + $0x40] sm:$0xff] %v729_v52  ;;  %981 = vrot.lane.b32.xlu2 %v9568_v45, %s9360_s18  ;;  %669 = vrot.lane.b32.xlu1 %v9584_v47, %s9359_s29  ;;  %v8808_v47 = vld [vmem:[%s14472_s3 + $0x58] sm:$0xf0] }
 0x1e0   : > { %739 = vst [vmem:[#allocation7 + $0x50] sm:$0xff] %v731_v22  ;;  %667 = vrot.lane.b32.xlu0 %v9549_v40, %s9359_s29  ;;  %v10285_v23 = vor.u32 %v8808_v47, %v7452_v15 }
 0x1e1   : > { %v10246_v38 = vpop.permute.xlu2 %578  ;;  %v10248_v20 = vpop.permute.xlu1 %963 }
 0x1e2   : > { %14569 = vst [vmem:[#allocation30_spill] sm:$0xff] %v10246_v38  ;;  %v10250_v36 = vpop.permute.xlu0 %961 }
 0x1e3   : > { %14570 = vst [vmem:[#allocation31_spill] sm:$0xff] %v10250_v36  ;;  %v1000_v8 = vsel %vm989_vm7, %v10250_v36, %v10162_v43 }
 0x1e4   : > { %14571 = vst [vmem:[#allocation32_spill] sm:$0xff] %v10285_v23  ;;  %v1031_v42 = vmul.f32 %v7350_v57, %v1000_v8 }
 0x1e6   : > { %v7524_v45 = vld [vmem:[#allocation7 + $0x40] sm:$0xf]  ;;  %v8826_v52 = vld [vmem:[#allocation7 + $0x44] sm:$0xf] }
 0x1e7   : > { %665 = vrot.lane.b32.xlu2 %v9610_v48, %s9359_s29  ;;  %v8828_v40 = vld [vmem:[#allocation7 + $0x4c] sm:$0xf0]  ;;  %v7526_v46 = vld [vmem:[#allocation7 + $0x50] sm:$0xf0]  ;;  %663 = vrot.lane.b32.xlu1 %v9612_v49, %s9359_s29  ;;  %v7351_v48 = vld [vmem:[%s14471_s2 + $0x2c8] sm:$0xff] }
 0x1e8   : > { %983 = vrot.lane.b32.xlu0 %v9566_v44, %s9360_s18  ;;  %v7525_v21 = vor.u32 %v8828_v40, %v7524_v45  ;;  %v7529_v34 = vor.u32 %v8826_v52, %v7526_v46  ;;  %v10301_v40 = vld [vmem:[#allocation2 + $0x78] sm:$0xff]  ;;  %v10305_v46 = vld [vmem:[#allocation2 + $0x10] sm:$0xff] }
 0x1e9   : > { %v10275_v41 = vpop.permute.xlu2 %965  ;;  %v10277_v5 = vpop.permute.xlu1 %977  ;;  %14572 = vst [vmem:[#allocation33_spill] sm:$0xff] %v10301_v40 }
 0x1ea   : > { %v996_v44 = vsel %vm989_vm7, %v10162_v43, %v10277_v5  ;;  %1941 = vmatpush.bf16.msra.mxu0 %v7525_v21  ;;  %2073 = vmatpush.bf16.msra.mxu3 %v7529_v34  ;;  %v972_v27 = vpop.permute.xlu0 %971  ;;  %14573 = vst [vmem:[#allocation34_spill] sm:$0xff] %v10305_v46 }
 0x1eb   : > { %v1032_v7 = vmul.f32 %v7351_v48, %v996_v44  ;;  %v997_v22 = vsel %vm989_vm7, %v972_v27, %v10192_v19  ;;  %v1001_v45 = vsel %vm989_vm7, %v10248_v20, %v972_v27  ;;  %v10324_v27 = vld [vmem:[#allocation2 + $0x28] sm:$0xff] }
 0x1ec   : > { %v1035_v15 = vmul.f32 %v7354_v6, %v1001_v45  ;;  %v1036_v52 = vmul.f32 %v7355_v39, %v997_v22  ;;  %v8811_v6 = vld [vmem:[%s14472_s3 + $0x70] sm:$0xf0]  ;;  %v608_v39 = vld [vmem:[%s14471_s2 + $0x48] sm:$0xff]  ;;  %14574 = vst [vmem:[#allocation35_spill] sm:$0xff] %v10324_v27  ;;  %v9304_v22 = vld [vmem:[#allocation2 + $0x20] sm:$0xff] }
 0x1ed   : > { %v1043_v47 = vpack.c.bf16 %v1032_v7, %v1031_v42  ;;  %7781 = vmatmul.msk.bf16.gmra.mxu2 %vm1914_vm6, %v10285_v23  ;;  %v9305_v45 = vld [vmem:[#allocation2 + $0x40] sm:$0xff]  ;;  %v10328_v23 = vld [vmem:[#allocation2 + $0x38] sm:$0xff] }
 0x1ee   : > { %v1045_v43 = vpack.c.bf16 %v1036_v52, %v1035_v15  ;;  %v945_v15 = vpack.c.bf16 %v9304_v22, %v9305_v45  ;;  %v9306_v52 = vld [vmem:[#allocation2 + $0x70] sm:$0xff]  ;;  %14575 = vst [vmem:[#allocation36_spill] sm:$0xff] %v10328_v23  ;;  %v611_v22 = vld [vmem:[%s14471_s2 + $0x60] sm:$0xff] }
 0x1ef   : > { %1051 = vst [vmem:[#allocation7 + $0x160] sm:$0xff] %v1043_v47  ;;  %564 = vrot.lane.b32.xlu2 %v9612_v49, %s9361_s13  ;;  %570 = vrot.lane.b32.xlu1 %v10301_v40, %s9361_s13  ;;  %v7464_v49 = vld [vmem:[%s14472_s3 + $0x68] sm:$0xf]  ;;  %v9307_v47 = vld [vmem:[#allocation2 + $0x60] sm:$0xff] }
 0x1f0   : > { %1053 = vst [vmem:[#allocation7 + $0x170] sm:$0xff] %v1045_v43  ;;  %568 = vrot.lane.b32.xlu0 %v10305_v46, %s9361_s13  ;;  %v947_v43 = vpack.c.bf16 %v9306_v52, %v9307_v47  ;;  %v10352_v40 = vor.u32 %v8811_v6, %v7464_v49  ;;  %v9311_v46 = vld [vmem:[#allocation2 + $0x30] sm:$0xff] }
 0x1f1   : > { %v10309_v57 = vpop.permute.xlu2 %975  ;;  %v555_v8 = vpop.permute.xlu1 %554  ;;  %953 = vst [vmem:[#allocation7 + $0x120] sm:$0xff] %v945_v15  ;;  %v9312_v6 = vld [vmem:[#allocation2 + $0x50] sm:$0xff]  ;;  %v9313_v15 = vld [vmem:[#allocation2 + $0x68] sm:$0xff] }
 0x1f2   : > { %v553_v48 = vpop.permute.xlu0 %552  ;;  %v598_v45 = vsel %vm582_vm8, %v10246_v38, %v555_v8  ;;  %14578 = vst [vmem:[#allocation39_spill] sm:$0xff] %v10352_v40 }
 0x1f3   : > { %v593_v44 = vsel %vm582_vm8, %v553_v48, %v10221_v3  ;;  %v607_v3 = vld [vmem:[%s14471_s2 + $0x40] sm:$0xff]  ;;  %955 = vst [vmem:[#allocation7 + $0x130] sm:$0xff] %v947_v43  ;;  %v8814_v43 = vld [vmem:[%s14472_s3 + $0x88] sm:$0xf0] }
 0x1f6   : > { %v7668_v21 = vld [vmem:[#allocation7 + $0x160] sm:$0xf]  ;;  %v8862_v34 = vld [vmem:[#allocation7 + $0x164] sm:$0xf] }
 0x1f7   : > { %1281 = vrot.lane.b32.xlu2 %v10324_v27, %s9357_s25  ;;  %v8864_v42 = vld [vmem:[#allocation7 + $0x16c] sm:$0xf0]  ;;  %v7670_v7 = vld [vmem:[#allocation7 + $0x170] sm:$0xf0]  ;;  %1279 = vrot.lane.b32.xlu1 %v10328_v23, %s9357_s25  ;;  %v9310_v23 = vld [vmem:[#allocation2] sm:$0xff] }
 0x1f8   : > { %566 = vrot.lane.b32.xlu0 %v10332_v0, %s9361_s13  ;;  %v7669_v37 = vor.u32 %v8864_v42, %v7668_v21  ;;  %v7673_v27 = vor.u32 %v8862_v34, %v7670_v7  ;;  %v612_v0 = vld [vmem:[%s14471_s2 + $0x68] sm:$0xff]  ;;  %v624_v21 = vmul.f32 %v608_v39, %v593_v44  ;;  %v941_v49 = vpack.c.bf16 %v9310_v23, %v9311_v46  ;;  %v10368_v23 = vld [vmem:[#allocation2 + $0x18] sm:$0xff] }
 0x1f9   : > { %v10345_v52 = vpop.permute.xlu2 %556  ;;  %v10347_v47 = vpop.permute.xlu1 %576  ;;  %v943_v39 = vpack.c.bf16 %v9313_v15, %v9312_v6  ;;  %v627_v44 = vmul.f32 %v611_v22, %v598_v45  ;;  %14581 = vst [vmem:[#allocation42_spill] sm:$0xff] %v10368_v23 }
 0x1fa   : > { %14577 = vst [vmem:[#allocation38_spill] sm:$0xff] %v10347_v47  ;;  %v597_v34 = vsel %vm582_vm8, %v10347_v47, %v553_v48  ;;  %1984 = vmatpush.bf16.msra.mxu1 %v7669_v37  ;;  %2116 = vmatpush.bf16.msrb.mxu2 %v7673_v27  ;;  %v10357_v42 = vpop.permute.xlu0 %562  ;;  %v3815_v47 = vld [vmem:[#allocation3] sm:$0xff] }
 0x1fb   : > { %14579 = vst [vmem:[#allocation40_spill] sm:$0xff] %v10357_v42  ;;  %v623_v7 = vmul.f32 %v607_v3, %v597_v34  ;;  %v594_v38 = vsel %vm582_vm8, %v555_v8, %v10357_v42  ;;  %v10364_v3 = vld [vmem:[#allocation2 + $0x48] sm:$0xff]  ;;  %v7337_v34 = vld [vmem:[%s14471_s2 + $0x1d8] sm:$0xff] }
 0x1fc   : > { %v628_v9 = vmul.f32 %v612_v0, %v594_v38  ;;  %949 = vst [vmem:[#allocation7 + $0x100] sm:$0xff] %v941_v49  ;;  %v3816_v42 = vld [vmem:[#allocation3 + $0x8] sm:$0xff] }
 0x1fd   : > { %v635_v36 = vpack.c.bf16 %v624_v21, %v623_v7  ;;  %7782 = vmatmul.msk.bf16.gmra.mxu2 %vm1914_vm6, %v10352_v40  ;;  %951 = vst [vmem:[#allocation7 + $0x110] sm:$0xff] %v943_v39  ;;  %v7336_v21 = vld [vmem:[%s14471_s2 + $0x1d0] sm:$0xff]  ;;  %v7343_v7 = vld [vmem:[%s14471_s2 + $0x288] sm:$0xff] }
 0x1fe   : > { %v637_v37 = vpack.c.bf16 %v628_v9, %v627_v44  ;;  %14580 = vst [vmem:[#allocation41_spill] sm:$0xff] %v10364_v3  ;;  %v7342_v9 = vld [vmem:[%s14471_s2 + $0x280] sm:$0xff] }
 0x1ff   : > { %643 = vst [vmem:[#allocation7 + $0x20] sm:$0xff] %v635_v36  ;;  %1277 = vrot.lane.b32.xlu1 %v10364_v3, %s9357_s25  ;;  %v7476_v36 = vld [vmem:[%s14472_s3 + $0x80] sm:$0xf] }
 0x200   : > { %645 = vst [vmem:[#allocation7 + $0x30] sm:$0xff] %v637_v37  ;;  %1275 = vrot.lane.b32.xlu0 %v10368_v23, %s9357_s25  ;;  %v7347_v37 = vld [vmem:[%s14471_s2 + $0x2a8] sm:$0xff]  ;;  %v10405_v40 = vor.u32 %v8814_v43, %v7476_v36  ;;  %v7346_v36 = vld [vmem:[%s14471_s2 + $0x2a0] sm:$0xff]  ;;  %v10428_v23 = vld [vmem:[#allocation7 + $0x12c] sm:$0xf0] }
 0x201   : > { %v10372_v0 = vpop.permute.xlu2 %574  ;;  %v10374_v38 = vpop.permute.xlu1 %959 }
 0x202   : > { %14582 = vst [vmem:[#allocation43_spill] sm:$0xff] %v10372_v0  ;;  %v10376_v46 = vpop.permute.xlu0 %957 }
 0x203   : > { %14583 = vst [vmem:[#allocation44_spill] sm:$0xff] %v10374_v38  ;;  %v998_v8 = vsel %vm989_vm7, %v10376_v46, %v10275_v41 }
 0x204   : > { %v1023_v15 = vmul.f32 %v7342_v9, %v998_v8  ;;  %14584 = vst [vmem:[#allocation45_spill] sm:$0xff] %v10405_v40 }
 0x206   : > { %v7508_v48 = vld [vmem:[#allocation7 + $0x20] sm:$0xf]  ;;  %v8822_v27 = vld [vmem:[#allocation7 + $0x24] sm:$0xf] }
 0x207   : > { %v8824_v22 = vld [vmem:[#allocation7 + $0x2c] sm:$0xf0]  ;;  %v7510_v45 = vld [vmem:[#allocation7 + $0x30] sm:$0xf0] }
 0x208   : > { %v7509_v49 = vor.u32 %v8824_v22, %v7508_v48  ;;  %v7513_v6 = vor.u32 %v8822_v27, %v7510_v45 }
 0x209   : > { %v864_v39 = vpop.permute.xlu2 %863  ;;  %v10400_v44 = vpop.permute.xlu1 %973 }
 0x20a   : > { %v878_v3 = vsel %vm875_vm0, %v864_v39, %v9640_v51  ;;  %v882_v48 = vsel %vm875_vm0, %v9683_v2, %v864_v39  ;;  %v994_v9 = vsel %vm989_vm7, %v10275_v41, %v10400_v44  ;;  %1942 = vmatpush.bf16.msra.mxu0 %v7509_v49  ;;  %2074 = vmatpush.bf16.msra.mxu3 %v7513_v6  ;;  %v968_v8 = vpop.permute.xlu0 %967 }
 0x20b   : > { %v919_v27 = vmul.f32 %v7336_v21, %v882_v48  ;;  %v920_v43 = vmul.f32 %v7337_v34, %v878_v3  ;;  %v1024_v22 = vmul.f32 %v7343_v7, %v994_v9  ;;  %v995_v51 = vsel %vm989_vm7, %v968_v8, %v10309_v57  ;;  %v10430_v3 = vld [vmem:[#allocation7 + $0x130] sm:$0xf0] }
 0x20c   : > { %v999_v2 = vsel %vm989_vm7, %v10374_v38, %v968_v8  ;;  %v1028_v45 = vmul.f32 %v7347_v37, %v995_v51  ;;  %v4209_v41 = vpack.c.bf16 %v3816_v42, %v3815_v47  ;;  %v7380_v34 = vld [vmem:[%s14471_s2 + $0x3b0] sm:$0xff]  ;;  %v7381_v47 = vld [vmem:[%s14471_s2 + $0x3b8] sm:$0xff]  ;;  %v8854_v51 = vld [vmem:[#allocation7 + $0x124] sm:$0xf] }
 0x20d   : > { %v930_v49 = vpack.c.bf16 %v920_v43, %v919_v27  ;;  %v1039_v6 = vpack.c.bf16 %v1024_v22, %v1023_v15  ;;  %v1027_v39 = vmul.f32 %v7346_v36, %v999_v2  ;;  %7783 = vmatmul.msk.bf16.gmra.mxu2 %vm1914_vm6, %v10405_v40  ;;  %v7488_v27 = vld [vmem:[%s14472_s3 + $0x98] sm:$0xf]  ;;  %v8817_v43 = vld [vmem:[%s14472_s3 + $0xa0] sm:$0xf0]  ;;  %v7636_v22 = vld [vmem:[#allocation7 + $0x120] sm:$0xf] }
 0x20e   : > { %4217 = vst [vmem:[#allocation7 + $0x130] sm:$0xff] %v4209_v41  ;;  %v603_v40 = vld [vmem:[%s14471_s2 + $0x20] sm:$0xff] }
 0x20f   : > { %938 = vst [vmem:[#allocation7 + $0xe8] sm:$0xff] %v930_v49  ;;  %v1041_v21 = vpack.c.bf16 %v1028_v45, %v1027_v39  ;;  %v7369_v45 = vld [vmem:[%s14471_s2 + $0x358] sm:$0xff] }
 0x210   : > { %1047 = vst [vmem:[#allocation7 + $0x140] sm:$0xff] %v1039_v6  ;;  %v599_v6 = vld [vmem:[%s14471_s2] sm:$0xff] }
 0x211   : > { %1049 = vst [vmem:[#allocation7 + $0x150] sm:$0xff] %v1041_v21  ;;  %v1180_v42 = vpop.permute.xlu2 %1179  ;;  %v551_v7 = vpop.permute.xlu1 %550 }
 0x212   : > { %v1187_v15 = vsel %vm1185_vm1, %v9796_v1, %v1180_v42  ;;  %v1199_v37 = vsel %vm1185_vm1, %v1180_v42, %v9843_v16  ;;  %v549_v48 = vpop.permute.xlu0 %548  ;;  %v600_v1 = vld [vmem:[%s14471_s2 + $0x8] sm:$0xff]  ;;  %v7368_v16 = vld [vmem:[%s14471_s2 + $0x350] sm:$0xff]  ;;  %v596_v42 = vsel %vm582_vm8, %v10372_v0, %v551_v7 }
 0x213   : > { %v1225_v9 = vmul.f32 %v7380_v34, %v1187_v15  ;;  %v1226_v36 = vmul.f32 %v7381_v47, %v1199_v37  ;;  %v591_v2 = vsel %vm582_vm8, %v549_v48, %v10345_v52  ;;  %v10465_v34 = vor.u32 %v8817_v43, %v7488_v27  ;;  %v7622_v0 = vld [vmem:[#allocation7 + $0x110] sm:$0xf0] }
 0x214   : > { %v7637_v47 = vor.u32 %v10428_v23, %v7636_v22  ;;  %v616_v38 = vmul.f32 %v600_v1, %v591_v2 }
 0x215   : > { %v1238_v8 = vpack.c.bf16 %v1226_v36, %v1225_v9  ;;  %14585 = vst [vmem:[#allocation46_spill] sm:$0xff] %v10465_v34 }
 0x217   : > { %1246 = vst [vmem:[#allocation7 + $0x1d8] sm:$0xff] %v1238_v8  ;;  %v7652_v41 = vld [vmem:[#allocation7 + $0x140] sm:$0xf]  ;;  %v8858_v49 = vld [vmem:[#allocation7 + $0x144] sm:$0xf]  ;;  %v7641_v8 = vor.u32 %v8854_v51, %v10430_v3  ;;  %v604_v3 = vld [vmem:[%s14471_s2 + $0x28] sm:$0xff] }
 0x218   : > { %v8860_v39 = vld [vmem:[#allocation7 + $0x14c] sm:$0xf0]  ;;  %v7654_v21 = vld [vmem:[#allocation7 + $0x150] sm:$0xf0] }
 0x219   : > { %v1084_v15 = vpop.permute.xlu2 %1083  ;;  %v10471_v37 = vpop.permute.xlu1 %572  ;;  %v7653_v9 = vor.u32 %v8860_v39, %v7652_v41  ;;  %v7657_v36 = vor.u32 %v8858_v49, %v7654_v21  ;;  %v8852_v41 = vld [vmem:[#allocation7 + $0x10c] sm:$0xf0]  ;;  %v619_v49 = vmul.f32 %v603_v40, %v596_v42 }
 0x21a   : > { %v1090_v23 = vsel %vm1087_vm4, %v10007_v56, %v1084_v15  ;;  %v1102_v27 = vsel %vm1087_vm4, %v1084_v15, %v9986_v12  ;;  %v595_v43 = vsel %vm582_vm8, %v10471_v37, %v549_v48  ;;  %v10489_v22 = vpop.permute.xlu0 %558  ;;  %v7620_v12 = vld [vmem:[#allocation7 + $0x100] sm:$0xf]  ;;  %v8850_v15 = vld [vmem:[#allocation7 + $0x104] sm:$0xf]  ;;  %v7324_v40 = vld [vmem:[%s14471_s2 + $0x170] sm:$0xff] }
 0x21b   : > { %v1131_v51 = vmul.f32 %v7368_v16, %v1090_v23  ;;  %v1132_v1 = vmul.f32 %v7369_v45, %v1102_v27  ;;  %v615_v2 = vmul.f32 %v599_v6, %v595_v43  ;;  %1985 = vmatpush.bf16.msra.mxu1 %v7653_v9  ;;  %2117 = vmatpush.bf16.msrb.mxu2 %v7657_v36  ;;  %v8797_v16 = vld [vmem:[%s14472_s3 + $0x4] sm:$0xf]  ;;  %v7410_v45 = vld [vmem:[%s14472_s3 + $0xc] sm:$0xf0]  ;;  %v7325_v6 = vld [vmem:[%s14471_s2 + $0x178] sm:$0xff] }
 0x21c   : > { %v592_v56 = vsel %vm582_vm8, %v551_v7, %v10489_v22  ;;  %v7388_v42 = vld [vmem:[%s14471_s2 + $0x3f0] sm:$0xff]  ;;  %v7389_v9 = vld [vmem:[%s14471_s2 + $0x3f8] sm:$0xff]  ;;  %v7625_v36 = vor.u32 %v8850_v15, %v7622_v0 }
 0x21d   : > { %v1142_v39 = vpack.c.bf16 %v1132_v1, %v1131_v51  ;;  %v631_v48 = vpack.c.bf16 %v616_v38, %v615_v2  ;;  %v620_v21 = vmul.f32 %v604_v3, %v592_v56  ;;  %7784 = vmatmul.msk.bf16.gmra.mxu2 %vm1914_vm6, %v10465_v34  ;;  %v7621_v38 = vor.u32 %v8852_v41, %v7620_v12  ;;  %v7384_v51 = vld [vmem:[%s14471_s2 + $0x3d0] sm:$0xff] }
 0x21e   : > { %v7766_v15 = vld [vmem:[#allocation7 + $0x230] sm:$0xf0] }
 0x21f   : > { %1150 = vst [vmem:[#allocation7 + $0x1a8] sm:$0xff] %v1142_v39  ;;  %v633_v7 = vpack.c.bf16 %v620_v21, %v619_v49  ;;  %1986 = vmatpush.bf16.msra.mxu1 %v7637_v47  ;;  %2118 = vmatpush.bf16.msrb.mxu2 %v7641_v8  ;;  %v10514_v47 = vor.u32 %v8797_v16, %v7410_v45  ;;  %v8886_v21 = vld [vmem:[#allocation7 + $0x224] sm:$0xf]  ;;  %v7312_v16 = vld [vmem:[%s14471_s2 + $0x110] sm:$0xff]  ;;  %v8798_v45 = vld [vmem:[%s14472_s3 + $0x8] sm:$0xf0] }
 0x220   : > { %639 = vst [vmem:[#allocation7] sm:$0xff] %v631_v48 }
 0x221   : > { %641 = vst [vmem:[#allocation7 + $0x10] sm:$0xff] %v633_v7  ;;  %v768_v23 = vpop.permute.xlu2 %767  ;;  %v1184_v27 = vpop.permute.xlu1 %1183 }
 0x222   : > { %v781_v8 = vsel %vm777_vm2, %v768_v23, %v9747_v59  ;;  %v785_v43 = vsel %vm777_vm2, %v9830_v4, %v768_v23  ;;  %v1189_v3 = vsel %vm1185_vm1, %v9703_v11, %v1184_v27  ;;  %v1201_v0 = vsel %vm1185_vm1, %v1184_v27, %v9749_v60  ;;  %v7385_v59 = vld [vmem:[%s14471_s2 + $0x3d8] sm:$0xff]  ;;  %v1182_v1 = vpop.permute.xlu0 %1181 }
 0x223   : > { %v825_v2 = vmul.f32 %v7324_v40, %v785_v43  ;;  %v826_v56 = vmul.f32 %v7325_v6, %v781_v8  ;;  %v1233_v4 = vmul.f32 %v7388_v42, %v1189_v3  ;;  %v1234_v12 = vmul.f32 %v7389_v9, %v1201_v0  ;;  %1987 = vmatpush.bf16.msra.mxu1 %v7621_v38  ;;  %v7376_v40 = vld [vmem:[%s14471_s2 + $0x390] sm:$0xff]  ;;  %v7377_v42 = vld [vmem:[%s14471_s2 + $0x398] sm:$0xff] }
 0x224   : > { %v1188_v11 = vsel %vm1185_vm1, %v9772_v10, %v1182_v1  ;;  %v1200_v60 = vsel %vm1185_vm1, %v1182_v1, %v9751_v61  ;;  %2119 = vmatpush.bf16.msrb.mxu2 %v7625_v36  ;;  %v7313_v10 = vld [vmem:[%s14471_s2 + $0x118] sm:$0xff]  ;;  %v7408_v61 = vld [vmem:[%s14472_s3] sm:$0xf]  ;;  %v7769_v3 = vor.u32 %v8886_v21, %v7766_v15 }
 0x225   : > { %v834_v41 = vpack.c.bf16 %v826_v56, %v825_v2  ;;  %v1242_v49 = vpack.c.bf16 %v1234_v12, %v1233_v4  ;;  %v1229_v39 = vmul.f32 %v7384_v51, %v1188_v11  ;;  %v1230_v48 = vmul.f32 %v7385_v59, %v1200_v60  ;;  %v7340_v56 = vld [vmem:[%s14471_s2 + $0x1f0] sm:$0xff] }
 0x226   : > { %1988 = vmatmul.bf16.vlgmr.msra.gmra.mxu1 %v10514_v47  ;;  %v10559_v0 = vor.u32 %v8798_v45, %v7408_v61  ;;  %v7356_v45 = vld [vmem:[%s14471_s2 + $0x2f0] sm:$0xff] }
 0x227   : > { %842 = vst [vmem:[#allocation7 + $0xb8] sm:$0xff] %v834_v41  ;;  %v1240_v7 = vpack.c.bf16 %v1230_v48, %v1229_v39  ;;  %v7492_v38 = vld [vmem:[#allocation7] sm:$0xf]  ;;  %v8818_v6 = vld [vmem:[#allocation7 + $0x4] sm:$0xf] }
 0x228   : > { %1250 = vst [vmem:[#allocation7 + $0x1f8] sm:$0xff] %v1242_v49  ;;  %v8820_v9 = vld [vmem:[#allocation7 + $0xc] sm:$0xf0]  ;;  %v7494_v36 = vld [vmem:[#allocation7 + $0x10] sm:$0xf0] }
 0x229   : > { %1248 = vst [vmem:[#allocation7 + $0x1e8] sm:$0xff] %v1240_v7  ;;  %v762_v23 = vpop.permute.xlu2 %761  ;;  %v1178_v27 = vpop.permute.xlu1 %1177  ;;  %v7493_v8 = vor.u32 %v8820_v9, %v7492_v38  ;;  %v7497_v43 = vor.u32 %v8818_v6, %v7494_v36  ;;  %v8882_v41 = vld [vmem:[#allocation7 + $0x204] sm:$0xf]  ;;  %v7357_v7 = vld [vmem:[%s14471_s2 + $0x2f8] sm:$0xff]  ;;  %v7332_v6 = vld [vmem:[%s14471_s2 + $0x1b0] sm:$0xff] }
 0x22a   : > { %v778_v51 = vsel %vm777_vm2, %v762_v23, %v9963_v32  ;;  %v782_v59 = vsel %vm777_vm2, %v9863_v30, %v762_v23  ;;  %v1186_v1 = vsel %vm1185_vm1, %v9865_v31, %v1178_v27  ;;  %v1198_v2 = vsel %vm1185_vm1, %v1178_v27, %v9845_v17  ;;  %v7341_v32 = vld [vmem:[%s14471_s2 + $0x1f8] sm:$0xff]  ;;  %v866_v4 = vpop.permute.xlu0 %865  ;;  %v7750_v31 = vld [vmem:[#allocation7 + $0x210] sm:$0xf0] }
 0x22b   : > { %v813_v12 = vmul.f32 %v7312_v16, %v782_v59  ;;  %v814_v11 = vmul.f32 %v7313_v10, %v778_v51  ;;  %v1221_v30 = vmul.f32 %v7376_v40, %v1186_v1  ;;  %v1222_v60 = vmul.f32 %v7377_v42, %v1198_v2  ;;  %1943 = vmatpush.bf16.msra.mxu0 %v7493_v8  ;;  %v8800_v10 = vld [vmem:[%s14472_s3 + $0x1c] sm:$0xf]  ;;  %v7328_v8 = vld [vmem:[%s14471_s2 + $0x190] sm:$0xff] }
 0x22c   : > { %2075 = vmatpush.bf16.msra.mxu3 %v7497_v43  ;;  %v879_v17 = vsel %vm875_vm0, %v866_v4, %v9632_v50  ;;  %v883_v49 = vsel %vm875_vm0, %v9659_v55, %v866_v4  ;;  %v7753_v16 = vor.u32 %v8882_v41, %v7750_v31  ;;  %v7422_v55 = vld [vmem:[%s14472_s3 + $0x24] sm:$0xf0]  ;;  %v7333_v42 = vld [vmem:[%s14471_s2 + $0x1b8] sm:$0xff] }
 0x22d   : > { %v828_v39 = vpack.c.bf16 %v814_v11, %v813_v12  ;;  %v1236_v48 = vpack.c.bf16 %v1222_v60, %v1221_v30  ;;  %v923_v21 = vmul.f32 %v7340_v56, %v883_v49  ;;  %v924_v15 = vmul.f32 %v7341_v32, %v879_v17  ;;  %2120 = vmatmul.bf16.vlgmr.msrb.gmra.mxu2 %v10514_v47  ;;  %v7329_v43 = vld [vmem:[%s14471_s2 + $0x198] sm:$0xff]  ;;  %v7612_v41 = vld [vmem:[#allocation7 + $0xe8] sm:$0xf] }
 0x22e   : > { %1944 = vmatmul.bf16.vlgmr.msra.gmra.mxu0 %v10559_v0  ;;  %v10618_v51 = vor.u32 %v8800_v10, %v7422_v55  ;;  %v8877_v49 = vld [vmem:[#allocation7 + $0x1d4] sm:$0xf0]  ;;  %v7320_v10 = vld [vmem:[%s14471_s2 + $0x150] sm:$0xff] }
 0x22f   : > { %2162 = vmatpush.bf16.msrb.mxu0 %v7769_v3  ;;  %836 = vst [vmem:[#allocation7 + $0x88] sm:$0xff] %v828_v39  ;;  %v932_v50 = vpack.c.bf16 %v924_v15, %v923_v21  ;;  %2076 = vmatmul.bf16.vlgmr.msra.gmra.mxu3 %v10559_v0  ;;  %v8881_v61 = vld [vmem:[#allocation7 + $0x1f4] sm:$0xf0] }
 0x230   : > { %1244 = vst [vmem:[#allocation7 + $0x1c8] sm:$0xff] %v1236_v48  ;;  %v7740_v40 = vld [vmem:[#allocation7 + $0x1e8] sm:$0xf]  ;;  %v7345_v39 = vld [vmem:[%s14471_s2 + $0x298] sm:$0xff] }
 0x231   : > { %940 = vst [vmem:[#allocation7 + $0xf8] sm:$0xff] %v932_v50  ;;  %v988_v38 = vpop.permute.xlu2 %987  ;;  %v7741_v9 = vor.u32 %v8881_v61, %v7740_v40  ;;  %v862_v27 = vpop.permute.xlu1 %861  ;;  %v7321_v50 = vld [vmem:[%s14471_s2 + $0x158] sm:$0xff] }
 0x232   : > { %v993_v36 = vsel %vm989_vm7, %v10192_v19, %v988_v38  ;;  %v1005_v23 = vsel %vm989_vm7, %v988_v38, %v10248_v20  ;;  %v860_v3 = vpop.permute.xlu0 %859  ;;  %v877_v19 = vsel %vm875_vm0, %v862_v27, %v9667_v58  ;;  %v881_v20 = vsel %vm875_vm0, %v9736_v29, %v862_v27  ;;  %v8847_v58 = vld [vmem:[#allocation7 + $0xec] sm:$0xf]  ;;  %v7420_v29 = vld [vmem:[%s14472_s3 + $0x18] sm:$0xf]  ;;  %v7372_v38 = vld [vmem:[%s14471_s2 + $0x370] sm:$0xff] }
 0x233   : > { %2163 = vmatpush.bf16.msrb.mxu0 %v7753_v16  ;;  %v1037_v59 = vmul.f32 %v7356_v45, %v993_v36  ;;  %v1038_v1 = vmul.f32 %v7357_v7, %v1005_v23  ;;  %2244 = vmatpush.bf16.msrb.mxu3 %v7741_v9  ;;  %v915_v2 = vmul.f32 %v7332_v6, %v881_v20  ;;  %v7373_v6 = vld [vmem:[%s14471_s2 + $0x378] sm:$0xff] }
 0x234   : > { %v916_v56 = vmul.f32 %v7333_v42, %v877_v19  ;;  %v876_v32 = vsel %vm875_vm0, %v860_v3, %v9728_v26  ;;  %v880_v4 = vsel %vm875_vm0, %v9648_v53, %v860_v3  ;;  %v8801_v26 = vld [vmem:[%s14472_s3 + $0x20] sm:$0xf0]  ;;  %v7344_v53 = vld [vmem:[%s14471_s2 + $0x290] sm:$0xff] }
 0x235   : > { %v1046_v12 = vpack.c.bf16 %v1038_v1, %v1037_v59  ;;  %v911_v11 = vmul.f32 %v7328_v8, %v880_v4  ;;  %v912_v30 = vmul.f32 %v7329_v43, %v876_v32  ;;  %v10663_v9 = vor.u32 %v8801_v26, %v7420_v29  ;;  %v7301_v4 = vld [vmem:[%s14471_s2 + $0xb8] sm:$0xff] }
 0x236   : > { %v928_v60 = vpack.c.bf16 %v916_v56, %v915_v2  ;;  %1993 = vmatmul.bf16.gmra.mxu1 %v10618_v51 }
 0x237   : > { %1054 = vst [vmem:[#allocation7 + $0x178] sm:$0xff] %v1046_v12  ;;  %v926_v31 = vpack.c.bf16 %v912_v30, %v911_v11  ;;  %v7724_v17 = vld [vmem:[#allocation7 + $0x1c8] sm:$0xf] }
 0x238   : > { %936 = vst [vmem:[#allocation7 + $0xd8] sm:$0xff] %v928_v60  ;;  %v7725_v48 = vor.u32 %v8877_v49, %v7724_v17  ;;  %v7614_v21 = vld [vmem:[#allocation7 + $0xf8] sm:$0xf0]  ;;  %v8849_v15 = vld [vmem:[#allocation7 + $0xf4] sm:$0xf0]  ;;  %v7364_v60 = vld [vmem:[%s14471_s2 + $0x330] sm:$0xff] }
 0x239   : > { %934 = vst [vmem:[#allocation7 + $0xc8] sm:$0xff] %v926_v31  ;;  %v982_v16 = vpop.permute.xlu2 %981  ;;  %v7617_v61 = vor.u32 %v8847_v58, %v7614_v21  ;;  %v7613_v55 = vor.u32 %v8849_v15, %v7612_v41  ;;  %v766_v40 = vpop.permute.xlu1 %765  ;;  %v7365_v58 = vld [vmem:[%s14471_s2 + $0x338] sm:$0xff]  ;;  %v7360_v17 = vld [vmem:[%s14471_s2 + $0x310] sm:$0xff] }
 0x23a   : > { %v990_v45 = vsel %vm989_vm7, %v10400_v44, %v982_v16  ;;  %v1002_v7 = vsel %vm989_vm7, %v982_v16, %v10376_v46  ;;  %2245 = vmatpush.bf16.msrb.mxu3 %v7725_v48  ;;  %v1086_v42 = vpop.permute.xlu0 %1085  ;;  %v780_v44 = vsel %vm777_vm2, %v766_v40, %v9822_v63  ;;  %v784_v46 = vsel %vm777_vm2, %v9726_v25, %v766_v40  ;;  %v8803_v25 = vld [vmem:[%s14472_s3 + $0x34] sm:$0xf]  ;;  %v7361_v49 = vld [vmem:[%s14471_s2 + $0x318] sm:$0xff]  ;;  %v7708_v40 = vld [vmem:[#allocation7 + $0x1a8] sm:$0xf] }
 0x23b   : > { %v1025_v36 = vmul.f32 %v7344_v53, %v990_v45  ;;  %v1026_v23 = vmul.f32 %v7345_v39, %v1002_v7  ;;  %2332 = vmatpush.bf16.msra.mxu0 %v7617_v61  ;;  %v821_v27 = vmul.f32 %v7320_v10, %v784_v46  ;;  %v822_v8 = vmul.f32 %v7321_v50, %v780_v44  ;;  %v601_v44 = vld [vmem:[%s14471_s2 + $0x10] sm:$0xff]  ;;  %v602_v46 = vld [vmem:[%s14471_s2 + $0x18] sm:$0xff] }
 0x23c   : > { %v1091_v43 = vsel %vm1087_vm4, %v9938_v62, %v1086_v42  ;;  %v1103_v3 = vsel %vm1087_vm4, %v1086_v42, %v9984_v18  ;;  %2200 = vmatpush.bf16.msrb.mxu1 %v7613_v55  ;;  %v7434_v62 = vld [vmem:[%s14472_s3 + $0x3c] sm:$0xf0]  ;;  %v7300_v18 = vld [vmem:[%s14471_s2 + $0xb0] sm:$0xff] }
 0x23d   : > { %v1040_v59 = vpack.c.bf16 %v1026_v23, %v1025_v36  ;;  %v1135_v1 = vmul.f32 %v7372_v38, %v1091_v43  ;;  %v1136_v19 = vmul.f32 %v7373_v6, %v1103_v3  ;;  %2125 = vmatmul.bf16.gmra.mxu2 %v10618_v51  ;;  %v832_v63 = vpack.c.bf16 %v822_v8, %v821_v27  ;;  %v7582_v38 = vld [vmem:[#allocation7 + $0xb8] sm:$0xf0]  ;;  %v8841_v6 = vld [vmem:[#allocation7 + $0xb4] sm:$0xf0] }
 0x23e   : > { %1949 = vmatmul.bf16.gmra.mxu0 %v10663_v9  ;;  %v10712_v48 = vor.u32 %v8803_v25, %v7434_v62 }
 0x23f   : > { %1048 = vst [vmem:[#allocation7 + $0x148] sm:$0xff] %v1040_v59  ;;  %v1144_v20 = vpack.c.bf16 %v1136_v19, %v1135_v1  ;;  %2081 = vmatmul.bf16.gmra.mxu3 %v10663_v9  ;;  %v7598_v2 = vld [vmem:[#allocation7 + $0xd8] sm:$0xf0]  ;;  %v8845_v56 = vld [vmem:[#allocation7 + $0xd4] sm:$0xf0]  ;;  %v7352_v59 = vld [vmem:[%s14471_s2 + $0x2d0] sm:$0xff] }
 0x240   : > { %840 = vst [vmem:[#allocation7 + $0xa8] sm:$0xff] %v832_v63  ;;  %v10689_v32 = vpop.f32.mrf.mxu2  ;;  %v8843_v12 = vld [vmem:[#allocation7 + $0xcc] sm:$0xf]  ;;  %v7596_v11 = vld [vmem:[#allocation7 + $0xc8] sm:$0xf]  ;;  %v7353_v1 = vld [vmem:[%s14471_s2 + $0x2d8] sm:$0xff] }
 0x241   : > { %1152 = vst [vmem:[#allocation7 + $0x1b8] sm:$0xff] %v1144_v20  ;;  %v666_v30 = vpop.permute.xlu2 %665  ;;  %v7601_v41 = vor.u32 %v8843_v12, %v7598_v2  ;;  %v7597_v29 = vor.u32 %v8845_v56, %v7596_v11  ;;  %v1082_v53 = vpop.permute.xlu1 %1081  ;;  %v7316_v20 = vld [vmem:[%s14471_s2 + $0x130] sm:$0xff] }
 0x242   : > { %v681_v26 = vsel %vm679_vm5, %v666_v30, %v10134_v13  ;;  %v685_v31 = vsel %vm679_vm5, %v10233_v35, %v666_v30  ;;  %v1080_v39 = vpop.permute.xlu0 %1079  ;;  %v1089_v13 = vsel %vm1087_vm4, %v10079_v28, %v1082_v53  ;;  %v1101_v35 = vsel %vm1087_vm4, %v1082_v53, %v10136_v33  ;;  %v7432_v28 = vld [vmem:[%s14472_s3 + $0x30] sm:$0xf] }
 0x243   : > { %v719_v21 = vmul.f32 %v7300_v18, %v685_v31  ;;  %v720_v15 = vmul.f32 %v7301_v4, %v681_v26  ;;  %2333 = vmatpush.bf16.msra.mxu0 %v7601_v41  ;;  %v1127_v16 = vmul.f32 %v7364_v60, %v1089_v13  ;;  %v1128_v10 = vmul.f32 %v7365_v58, %v1101_v35  ;;  %v7317_v18 = vld [vmem:[%s14471_s2 + $0x138] sm:$0xff]  ;;  %v14586_v12 = vld [vmem:[#allocation31_spill] sm:$0xff] }
 0x244   : > { %v1088_v50 = vsel %vm1087_vm4, %v10164_v14, %v1080_v39  ;;  %v1100_v61 = vsel %vm1087_vm4, %v1080_v39, %v10138_v24  ;;  %2201 = vmatpush.bf16.msrb.mxu1 %v7597_v29  ;;  %v8804_v14 = vld [vmem:[%s14472_s3 + $0x38] sm:$0xf0]  ;;  %v14587_v58 = vld [vmem:[#allocation11_spill] sm:$0xff]  ;;  %v14589_v39 = vld [vmem:[#allocation34_spill] sm:$0xff] }
 0x245   : > { %v732_v55 = vpack.c.bf16 %v720_v15, %v719_v21  ;;  %v1123_v45 = vmul.f32 %v7360_v17, %v1088_v50  ;;  %v1124_v7 = vmul.f32 %v7361_v49, %v1100_v61  ;;  %v1140_v33 = vpack.c.bf16 %v1128_v10, %v1127_v16  ;;  %v14588_v29 = vld [vmem:[#allocation15_spill] sm:$0xff]  ;;  %v8806_v49 = vld [vmem:[%s14472_s3 + $0x4c] sm:$0xf]  ;;  %v14590_v21 = vld [vmem:[#allocation36_spill] sm:$0xff] }
 0x246   : > { %1998 = vmatmul.bf16.gmra.mxu1 %v10712_v48  ;;  %v10759_v56 = vor.u32 %v8804_v14, %v7432_v28  ;;  %v946_v15 = vpack.c.bf16 %v14590_v21, %v14589_v39  ;;  %v7446_v16 = vld [vmem:[%s14472_s3 + $0x54] sm:$0xf0]  ;;  %v7404_v50 = vld [vmem:[%s14471_s2 + $0x470] sm:$0xff] }
 0x247   : > { %740 = vst [vmem:[#allocation7 + $0x58] sm:$0xff] %v732_v55  ;;  %v1138_v24 = vpack.c.bf16 %v1124_v7, %v1123_v45  ;;  %v8839_v42 = vld [vmem:[#allocation7 + $0xac] sm:$0xf]  ;;  %v7580_v36 = vld [vmem:[#allocation7 + $0xa8] sm:$0xf]  ;;  %v7405_v61 = vld [vmem:[%s14471_s2 + $0x478] sm:$0xff] }
 0x248   : > { %1148 = vst [vmem:[#allocation7 + $0x198] sm:$0xff] %v1140_v33  ;;  %v10733_v23 = vpop.f32.mrf.mxu2  ;;  %v8873_v27 = vld [vmem:[#allocation7 + $0x1b4] sm:$0xf0]  ;;  %v7585_v8 = vor.u32 %v8839_v42, %v7582_v38  ;;  %v7581_v43 = vor.u32 %v8841_v6, %v7580_v36  ;;  %v14591_v45 = vld [vmem:[#allocation33_spill] sm:$0xff]  ;;  %v14592_v7 = vld [vmem:[#allocation35_spill] sm:$0xff] }
 0x249   : > { %1146 = vst [vmem:[#allocation7 + $0x188] sm:$0xff] %v1138_v24  ;;  %v565_v3 = vpop.permute.xlu2 %564  ;;  %v7709_v19 = vor.u32 %v8873_v27, %v7708_v40  ;;  %v986_v62 = vpop.permute.xlu1 %985  ;;  %v948_v28 = vpack.c.bf16 %v14592_v7, %v14591_v45  ;;  %v7308_v40 = vld [vmem:[%s14471_s2 + $0xf0] sm:$0xff]  ;;  %v7309_v38 = vld [vmem:[%s14471_s2 + $0xf8] sm:$0xff]  ;;  %v14593_v24 = vld [vmem:[#allocation42_spill] sm:$0xff] }
 0x24a   : > { %v583_v63 = vsel %vm582_vm8, %v565_v3, %v10471_v37  ;;  %v587_v25 = vsel %vm582_vm8, %v10345_v52, %v565_v3  ;;  %2334 = vmatpush.bf16.msra.mxu0 %v7585_v8  ;;  %v764_v2 = vpop.permute.xlu0 %763  ;;  %2202 = vmatpush.bf16.msrb.mxu1 %v7581_v43  ;;  %v992_v52 = vsel %vm989_vm7, %v10277_v5, %v986_v62  ;;  %v9316_v14 = vld [vmem:[#allocation2 + $0x58] sm:$0xff]  ;;  %v14594_v36 = vld [vmem:[#allocation10_spill] sm:$0xff]  ;;  %v7304_v43 = vld [vmem:[%s14471_s2 + $0xd0] sm:$0xff] }
 0x24b   : > { %v617_v4 = vmul.f32 %v601_v44, %v587_v25  ;;  %v618_v37 = vmul.f32 %v602_v46, %v583_v63  ;;  %v1004_v11 = vsel %vm989_vm7, %v986_v62, %v14586_v12  ;;  %2246 = vmatpush.bf16.msrb.mxu3 %v7709_v19  ;;  %v1033_v30 = vmul.f32 %v7352_v59, %v992_v52  ;;  %v14595_v46 = vld [vmem:[#allocation12_spill] sm:$0xff]  ;;  %v14596_v19 = vld [vmem:[#allocation37_spill] sm:$0xff]  ;;  %v7348_v7 = vld [vmem:[%s14471_s2 + $0x2b0] sm:$0xff] }
 0x24c   : > { %v1034_v60 = vmul.f32 %v7353_v1, %v1004_v11  ;;  %v779_v41 = vsel %vm777_vm2, %v764_v2, %v14587_v58  ;;  %v783_v26 = vsel %vm777_vm2, %v14588_v29, %v764_v2  ;;  %v942_v42 = vpack.c.bf16 %v14593_v24, %v9316_v14  ;;  %v7305_v3 = vld [vmem:[%s14471_s2 + $0xd8] sm:$0xff]  ;;  %954 = vst [vmem:[#allocation7 + $0x128] sm:$0xff] %v946_v15  ;;  %v14597_v63 = vld [vmem:[#allocation41_spill] sm:$0xff]  ;;  %v14600_v11 = vld [vmem:[#allocation23_spill] sm:$0xff] }
 0x24d   : > { %v632_v31 = vpack.c.bf16 %v618_v37, %v617_v4  ;;  %v817_v53 = vmul.f32 %v7316_v20, %v783_v26  ;;  %v818_v17 = vmul.f32 %v7317_v18, %v779_v41  ;;  %2130 = vmatmul.bf16.gmra.mxu2 %v10712_v48  ;;  %v10813_v1 = vor.u32 %v8806_v49, %v7446_v16  ;;  %v14598_v18 = vld [vmem:[#allocation18_spill] sm:$0xff]  ;;  %v14599_v4 = vld [vmem:[#allocation25_spill] sm:$0xff]  ;;  %v8807_v49 = vld [vmem:[%s14472_s3 + $0x50] sm:$0xf0] }
 0x24e   : > { %v1044_v5 = vpack.c.bf16 %v1034_v60, %v1033_v30  ;;  %1954 = vmatmul.bf16.gmra.mxu0 %v10759_v56  ;;  %v944_v25 = vpack.c.bf16 %v14597_v63, %v14596_v19  ;;  %v14601_v60 = vld [vmem:[#allocation17_spill] sm:$0xff]  ;;  %956 = vst [vmem:[#allocation7 + $0x138] sm:$0xff] %v948_v28  ;;  %v8865_v15 = vld [vmem:[#allocation7 + $0x174] sm:$0xf0] }
 0x24f   : > { %640 = vst [vmem:[#allocation7 + $0x8] sm:$0xff] %v632_v31  ;;  %v830_v13 = vpack.c.bf16 %v818_v17, %v817_v53  ;;  %2086 = vmatmul.bf16.gmra.mxu3 %v10759_v56  ;;  %v8869_v35 = vld [vmem:[#allocation7 + $0x194] sm:$0xf0]  ;;  %v8835_v53 = vld [vmem:[#allocation7 + $0x8c] sm:$0xf] }
 0x250   : > { %1052 = vst [vmem:[#allocation7 + $0x168] sm:$0xff] %v1044_v5  ;;  %v10784_v10 = vpop.f32.mrf.mxu2  ;;  %v7692_v55 = vld [vmem:[#allocation7 + $0x188] sm:$0xf]  ;;  %v7349_v28 = vld [vmem:[%s14471_s2 + $0x2b8] sm:$0xff] }
 0x251   : > { %838 = vst [vmem:[#allocation7 + $0x98] sm:$0xff] %v830_v13  ;;  %v1282_v33 = vpop.permute.xlu2 %1281  ;;  %v7693_v6 = vor.u32 %v8869_v35, %v7692_v55  ;;  %v670_v8 = vpop.permute.xlu1 %669  ;;  %v7564_v17 = vld [vmem:[#allocation7 + $0x88] sm:$0xf]  ;;  %v7296_v35 = vld [vmem:[%s14471_s2 + $0x90] sm:$0xff]  ;;  %v7297_v55 = vld [vmem:[%s14471_s2 + $0x98] sm:$0xff] }
 0x252   : > { %v1287_v44 = vsel %vm1283_vm3, %v14594_v36, %v1282_v33  ;;  %v1299_v27 = vsel %vm1283_vm3, %v1282_v33, %v14595_v46  ;;  %v668_v59 = vpop.permute.xlu0 %667  ;;  %v683_v2 = vsel %vm679_vm5, %v670_v8, %v14598_v18  ;;  %v687_v37 = vsel %vm679_vm5, %v14599_v4, %v670_v8  ;;  %950 = vst [vmem:[#allocation7 + $0x108] sm:$0xff] %v942_v42  ;;  %v7444_v5 = vld [vmem:[%s14472_s3 + $0x48] sm:$0xf]  ;;  %v14602_v14 = vld [vmem:[#allocation28_spill] sm:$0xff] }
 0x253   : > { %v1331_v62 = vmul.f32 %v7404_v50, %v1287_v44  ;;  %v1332_v20 = vmul.f32 %v7405_v61, %v1299_v27  ;;  %2247 = vmatpush.bf16.msrb.mxu3 %v7693_v6  ;;  %v727_v52 = vmul.f32 %v7308_v40, %v687_v37  ;;  %v728_v12 = vmul.f32 %v7309_v38, %v683_v2  ;;  %v14603_v42 = vld [vmem:[#allocation22_spill] sm:$0xff]  ;;  %v14604_v46 = vld [vmem:[#allocation44_spill] sm:$0xff]  ;;  %v613_v2 = vld [vmem:[%s14471_s2 + $0x70] sm:$0xff] }
 0x254   : > { %v682_v30 = vsel %vm679_vm5, %v668_v59, %v14600_v11  ;;  %v686_v58 = vsel %vm679_vm5, %v14601_v60, %v668_v59  ;;  %952 = vst [vmem:[#allocation7 + $0x118] sm:$0xff] %v944_v25  ;;  %v10850_v6 = vor.u32 %v8807_v49, %v7444_v5  ;;  %v8809_v25 = vld [vmem:[%s14472_s3 + $0x64] sm:$0xf]  ;;  %v609_v11 = vld [vmem:[%s14471_s2 + $0x50] sm:$0xff]  ;;  %v14607_v5 = vld [vmem:[#allocation38_spill] sm:$0xff] }
 0x255   : > { %v1340_v41 = vpack.c.bf16 %v1332_v20, %v1331_v62  ;;  %v723_v29 = vmul.f32 %v7304_v43, %v686_v58  ;;  %v724_v26 = vmul.f32 %v7305_v3, %v682_v30  ;;  %v736_v31 = vpack.c.bf16 %v728_v12, %v727_v52  ;;  %v7458_v20 = vld [vmem:[%s14472_s3 + $0x6c] sm:$0xf0]  ;;  %v614_v52 = vld [vmem:[%s14471_s2 + $0x78] sm:$0xff] }
 0x256   : > { %2003 = vmatmul.bf16.gmra.mxu1 %v10813_v1  ;;  %v610_v30 = vld [vmem:[%s14471_s2 + $0x58] sm:$0xff] }
 0x257   : > { %1348 = vst [vmem:[#allocation7 + $0x238] sm:$0xff] %v1340_v41  ;;  %v734_v39 = vpack.c.bf16 %v724_v26, %v723_v29  ;;  %v7676_v21 = vld [vmem:[#allocation7 + $0x168] sm:$0xf]  ;;  %v10887_v29 = vor.u32 %v8809_v25, %v7458_v20 }
 0x258   : > { %744 = vst [vmem:[#allocation7 + $0x78] sm:$0xff] %v736_v31  ;;  %v10836_v13 = vpop.f32.mrf.mxu2  ;;  %v7677_v16 = vor.u32 %v8865_v15, %v7676_v21  ;;  %v7566_v50 = vld [vmem:[#allocation7 + $0x98] sm:$0xf0]  ;;  %v8837_v61 = vld [vmem:[#allocation7 + $0x94] sm:$0xf0]  ;;  %v14605_v26 = vld [vmem:[#allocation30_spill] sm:$0xff] }
 0x259   : > { %742 = vst [vmem:[#allocation7 + $0x68] sm:$0xff] %v734_v39  ;;  %v7569_v45 = vor.u32 %v8835_v53, %v7566_v50  ;;  %v7565_v33 = vor.u32 %v8837_v61, %v7564_v17  ;;  %v664_v40 = vpop.permute.xlu1 %663  ;;  %v14606_v53 = vld [vmem:[#allocation40_spill] sm:$0xff]  ;;  %v14608_v39 = vld [vmem:[#allocation27_spill] sm:$0xff]  ;;  %v7456_v61 = vld [vmem:[%s14472_s3 + $0x60] sm:$0xf] }
 0x25a   : > { %2248 = vmatpush.bf16.msrb.mxu3 %v7677_v16  ;;  %v984_v38 = vpop.permute.xlu0 %983  ;;  %v680_v24 = vsel %vm679_vm5, %v664_v40, %v14602_v14  ;;  %v684_v36 = vsel %vm679_vm5, %v14603_v42, %v664_v40  ;;  %v7644_v40 = vld [vmem:[#allocation7 + $0x128] sm:$0xf]  ;;  %v8851_v54 = vld [vmem:[#allocation7 + $0x10c] sm:$0xf] }
 0x25b   : > { %2335 = vmatpush.bf16.msra.mxu0 %v7569_v45  ;;  %v991_v44 = vsel %vm989_vm7, %v10309_v57, %v984_v38  ;;  %v1003_v27 = vsel %vm989_vm7, %v984_v38, %v14604_v46  ;;  %v715_v8 = vmul.f32 %v7296_v35, %v684_v36  ;;  %v716_v43 = vmul.f32 %v7297_v55, %v680_v24  ;;  %v8810_v55 = vld [vmem:[%s14472_s3 + $0x68] sm:$0xf0]  ;;  %v8857_v24 = vld [vmem:[#allocation7 + $0x134] sm:$0xf0]  ;;  %v7400_v36 = vld [vmem:[%s14471_s2 + $0x450] sm:$0xff] }
 0x25c   : > { %v1029_v3 = vmul.f32 %v7348_v7, %v991_v44  ;;  %v1030_v59 = vmul.f32 %v7349_v28, %v1003_v27  ;;  %2203 = vmatpush.bf16.msrb.mxu1 %v7565_v33  ;;  %v7534_v28 = vld [vmem:[#allocation7 + $0x58] sm:$0xf0]  ;;  %v8829_v33 = vld [vmem:[#allocation7 + $0x54] sm:$0xf0]  ;;  %v7660_v44 = vld [vmem:[#allocation7 + $0x148] sm:$0xf] }
 0x25d   : > { %2135 = vmatmul.bf16.gmra.mxu2 %v10813_v1  ;;  %v730_v19 = vpack.c.bf16 %v716_v43, %v715_v8  ;;  %v7401_v43 = vld [vmem:[%s14471_s2 + $0x458] sm:$0xff]  ;;  %v14609_v20 = vld [vmem:[#allocation14_spill] sm:$0xff] }
 0x25e   : > { %v1042_v63 = vpack.c.bf16 %v1030_v59, %v1029_v3  ;;  %1959 = vmatmul.bf16.gmra.mxu0 %v10850_v6  ;;  %v605_v59 = vld [vmem:[%s14471_s2 + $0x30] sm:$0xff] }
 0x25f   : > { %2091 = vmatmul.bf16.gmra.mxu3 %v10850_v6  ;;  %v7550_v57 = vld [vmem:[#allocation7 + $0x78] sm:$0xf0]  ;;  %v8833_v62 = vld [vmem:[#allocation7 + $0x74] sm:$0xf0]  ;;  %738 = vst [vmem:[#allocation7 + $0x48] sm:$0xff] %v730_v19 }
 0x260   : > { %v10873_v18 = vpop.f32.mrf.mxu2  ;;  %v8831_v4 = vld [vmem:[#allocation7 + $0x6c] sm:$0xf]  ;;  %v7548_v37 = vld [vmem:[#allocation7 + $0x68] sm:$0xf]  ;;  %1050 = vst [vmem:[#allocation7 + $0x158] sm:$0xff] %v1042_v63  ;;  %v606_v19 = vld [vmem:[%s14471_s2 + $0x38] sm:$0xff] }
 0x261   : > { %v7553_v12 = vor.u32 %v8831_v4, %v7550_v57  ;;  %v7549_v60 = vor.u32 %v8833_v62, %v7548_v37  ;;  %v571_v58 = vpop.permute.xlu1 %570  ;;  %v10922_v57 = vor.u32 %v8810_v55, %v7456_v61  ;;  %v7645_v62 = vor.u32 %v8857_v24, %v7644_v40  ;;  %v14610_v4 = vld [vmem:[#allocation13_spill] sm:$0xff]  ;;  %v7392_v55 = vld [vmem:[%s14471_s2 + $0x410] sm:$0xff] }
 0x262   : > { %v569_v41 = vpop.permute.xlu0 %568  ;;  %v586_v31 = vsel %vm582_vm8, %v571_v58, %v14605_v26  ;;  %v590_v17 = vsel %vm582_vm8, %v14606_v53, %v571_v58  ;;  %v8812_v53 = vld [vmem:[%s14472_s3 + $0x7c] sm:$0xf] }
 0x263   : > { %2336 = vmatpush.bf16.msra.mxu0 %v7553_v12  ;;  %v585_v49 = vsel %vm582_vm8, %v569_v41, %v14607_v5  ;;  %v589_v21 = vsel %vm582_vm8, %v14608_v39, %v569_v41  ;;  %v629_v15 = vmul.f32 %v613_v2, %v590_v17  ;;  %v630_v35 = vmul.f32 %v614_v52, %v586_v31  ;;  %v14611_v52 = vld [vmem:[#allocation43_spill] sm:$0xff]  ;;  %v7628_v17 = vld [vmem:[#allocation7 + $0x108] sm:$0xf]  ;;  %v8853_v5 = vld [vmem:[#allocation7 + $0x114] sm:$0xf0] }
 0x264   : > { %v625_v16 = vmul.f32 %v609_v11, %v589_v21  ;;  %v626_v50 = vmul.f32 %v610_v30, %v585_v49  ;;  %2204 = vmatpush.bf16.msrb.mxu1 %v7549_v60  ;;  %v7470_v39 = vld [vmem:[%s14472_s3 + $0x84] sm:$0xf0] }
 0x265   : > { %v638_v45 = vpack.c.bf16 %v630_v35, %v629_v15  ;;  %v7396_v15 = vld [vmem:[%s14471_s2 + $0x430] sm:$0xff] }
 0x266   : > { %v636_v7 = vpack.c.bf16 %v626_v50, %v625_v16  ;;  %2008 = vmatmul.bf16.gmra.mxu1 %v10887_v29  ;;  %v8827_v38 = vld [vmem:[#allocation7 + $0x4c] sm:$0xf]  ;;  %v7532_v14 = vld [vmem:[#allocation7 + $0x48] sm:$0xf]  ;;  %v7397_v50 = vld [vmem:[%s14471_s2 + $0x438] sm:$0xff] }
 0x267   : > { %646 = vst [vmem:[#allocation7 + $0x38] sm:$0xff] %v638_v45  ;;  %v8861_v46 = vld [vmem:[#allocation7 + $0x154] sm:$0xf0]  ;;  %v7537_v27 = vor.u32 %v8827_v38, %v7534_v28  ;;  %v7533_v8 = vor.u32 %v8829_v33, %v7532_v14  ;;  %v7629_v28 = vor.u32 %v8853_v5, %v7628_v17  ;;  %v10959_v38 = vor.u32 %v8812_v53, %v7470_v39 }
 0x268   : > { %v10908_v42 = vpop.f32.mrf.mxu2  ;;  %644 = vst [vmem:[#allocation7 + $0x28] sm:$0xff] %v636_v7  ;;  %v7661_v3 = vor.u32 %v8861_v46, %v7660_v44  ;;  %v7393_v45 = vld [vmem:[%s14471_s2 + $0x418] sm:$0xff]  ;;  %v14614_v46 = vld [vmem:[#allocation21_spill] sm:$0xff] }
 0x269   : > { %v1280_v63 = vpop.permute.xlu1 %1279  ;;  %2337 = vmatpush.bf16.msra.mxu0 %v7537_v27  ;;  %2205 = vmatpush.bf16.msrb.mxu1 %v7533_v8  ;;  %v14612_v14 = vld [vmem:[#allocation16_spill] sm:$0xff] }
 0x26a   : > { %v567_v25 = vpop.permute.xlu0 %566  ;;  %v1286_v2 = vsel %vm1283_vm3, %v14609_v20, %v1280_v63  ;;  %v1298_v37 = vsel %vm1283_vm3, %v1280_v63, %v14610_v4  ;;  %2249 = vmatpush.bf16.msrb.mxu3 %v7661_v3  ;;  %v14615_v8 = vld [vmem:[#allocation20_spill] sm:$0xff]  ;;  %v7500_v4 = vld [vmem:[#allocation7 + $0x8] sm:$0xf] }
 0x26b   : > { %v584_v12 = vsel %vm582_vm8, %v567_v25, %v14611_v52  ;;  %v588_v11 = vsel %vm582_vm8, %v10489_v22, %v567_v25  ;;  %v1327_v30 = vmul.f32 %v7400_v36, %v1286_v2  ;;  %v1328_v60 = vmul.f32 %v7401_v43, %v1298_v37  ;;  %v14613_v36 = vld [vmem:[#allocation19_spill] sm:$0xff]  ;;  %v8879_v25 = vld [vmem:[#allocation7 + $0x1ec] sm:$0xf]  ;;  %v8889_v37 = vld [vmem:[#allocation7 + $0x234] sm:$0xf0] }
 0x26c   : > { %v621_v58 = vmul.f32 %v605_v59, %v588_v11  ;;  %v622_v41 = vmul.f32 %v606_v19, %v584_v12  ;;  %v8819_v52 = vld [vmem:[#allocation7 + $0xc] sm:$0xf]  ;;  %v7468_v12 = vld [vmem:[%s14472_s3 + $0x78] sm:$0xf]  ;;  %v8813_v11 = vld [vmem:[%s14472_s3 + $0x80] sm:$0xf0] }
 0x26d   : > { %2140 = vmatmul.bf16.gmra.mxu2 %v10887_v29  ;;  %v1338_v26 = vpack.c.bf16 %v1328_v60, %v1327_v30  ;;  %v10982_v39 = vor.u32 %v8813_v11, %v7468_v12  ;;  %v14616_v11 = vld [vmem:[#allocation24_spill] sm:$0xff] }
 0x26e   : > { %v634_v31 = vpack.c.bf16 %v622_v41, %v621_v58  ;;  %1964 = vmatmul.bf16.gmra.mxu0 %v10922_v57  ;;  %v7518_v49 = vld [vmem:[#allocation7 + $0x38] sm:$0xf0]  ;;  %v8825_v22 = vld [vmem:[#allocation7 + $0x34] sm:$0xf0]  ;;  %2250 = vmatpush.bf16.msrb.mxu3 %v7645_v62 }
 0x26f   : > { %2096 = vmatmul.bf16.gmra.mxu3 %v10922_v57  ;;  %1346 = vst [vmem:[#allocation7 + $0x228] sm:$0xff] %v1338_v26  ;;  %v8823_v35 = vld [vmem:[#allocation7 + $0x2c] sm:$0xf]  ;;  %v7516_v16 = vld [vmem:[#allocation7 + $0x28] sm:$0xf] }
 0x270   : > { %v10945_v21 = vpop.f32.mrf.mxu2  ;;  %642 = vst [vmem:[#allocation7 + $0x18] sm:$0xff] %v634_v31  ;;  %v7521_v61 = vor.u32 %v8823_v35, %v7518_v49  ;;  %v7517_v7 = vor.u32 %v8825_v22, %v7516_v16  ;;  %v7742_v62 = vld [vmem:[#allocation7 + $0x1f8] sm:$0xf0] }
 0x271   : > { %v1278_v33 = vpop.permute.xlu1 %1277  ;;  %v7774_v58 = vld [vmem:[#allocation7 + $0x238] sm:$0xf0]  ;;  %v7745_v22 = vor.u32 %v8879_v25, %v7742_v62 }
 0x272   : > { %v1276_v40 = vpop.permute.xlu0 %1275  ;;  %v1285_v24 = vsel %vm1283_vm3, %v14612_v14, %v1278_v33  ;;  %v1297_v44 = vsel %vm1283_vm3, %v1278_v33, %v14613_v36  ;;  %2338 = vmatpush.bf16.msra.mxu0 %v7521_v61  ;;  %2206 = vmatpush.bf16.msrb.mxu1 %v7517_v7  ;;  %v7726_v35 = vld [vmem:[#allocation7 + $0x1d8] sm:$0xf0]  ;;  %v8815_v61 = vld [vmem:[%s14472_s3 + $0x94] sm:$0xf]  ;;  %v7482_v7 = vld [vmem:[%s14472_s3 + $0x9c] sm:$0xf0] }
 0x273   : > { %v1284_v27 = vsel %vm1283_vm3, %v14614_v46, %v1276_v40  ;;  %v1296_v43 = vsel %vm1283_vm3, %v1276_v40, %v14615_v8  ;;  %v1323_v3 = vmul.f32 %v7396_v15, %v1285_v24  ;;  %v1324_v59 = vmul.f32 %v7397_v50, %v1297_v44  ;;  %2251 = vmatpush.bf16.msrb.mxu3 %v7629_v28  ;;  %v8875_v15 = vld [vmem:[#allocation7 + $0x1cc] sm:$0xf]  ;;  %v7710_v50 = vld [vmem:[#allocation7 + $0x1b8] sm:$0xf0] }
 0x274   : > { %v1319_v19 = vmul.f32 %v7392_v55, %v1284_v27  ;;  %v1320_v63 = vmul.f32 %v7393_v45, %v1296_v43  ;;  %v7729_v16 = vor.u32 %v8875_v15, %v7726_v35  ;;  %v8871_v36 = vld [vmem:[#allocation7 + $0x1ac] sm:$0xf]  ;;  %v10995_v46 = vor.u32 %v8815_v61, %v7482_v7  ;;  %v7694_v8 = vld [vmem:[#allocation7 + $0x198] sm:$0xf0] }
 0x275   : > { %v1336_v20 = vpack.c.bf16 %v1324_v59, %v1323_v3  ;;  %v7713_v44 = vor.u32 %v8871_v36, %v7710_v50  ;;  %v8867_v27 = vld [vmem:[#allocation7 + $0x18c] sm:$0xf]  ;;  %v7480_v59 = vld [vmem:[%s14472_s3 + $0x90] sm:$0xf]  ;;  %v7678_v25 = vld [vmem:[#allocation7 + $0x178] sm:$0xf0] }
 0x276   : > { %v1334_v2 = vpack.c.bf16 %v1320_v63, %v1319_v19  ;;  %2013 = vmatmul.bf16.gmra.mxu1 %v10959_v38  ;;  %v7772_v30 = vld [vmem:[#allocation7 + $0x228] sm:$0xf]  ;;  %v8887_v60 = vld [vmem:[#allocation7 + $0x22c] sm:$0xf]  ;;  %v7697_v43 = vor.u32 %v8867_v27, %v7694_v8  ;;  %v8816_v19 = vld [vmem:[%s14472_s3 + $0x98] sm:$0xf0] }
 0x277   : > { %1344 = vst [vmem:[#allocation7 + $0x218] sm:$0xff] %v1336_v20  ;;  %v8821_v26 = vld [vmem:[#allocation7 + $0x14] sm:$0xf0]  ;;  %v7773_v31 = vor.u32 %v8889_v37, %v7772_v30  ;;  %v7502_v53 = vld [vmem:[#allocation7 + $0x18] sm:$0xf0]  ;;  %v7777_v17 = vor.u32 %v8887_v60, %v7774_v58  ;;  %v11006_v20 = vor.u32 %v8816_v19, %v7480_v59 }
 0x278   : > { %v10980_v41 = vpop.f32.mrf.mxu2  ;;  %1342 = vst [vmem:[#allocation7 + $0x208] sm:$0xff] %v1334_v2  ;;  %v7501_v5 = vor.u32 %v8821_v26, %v7500_v4  ;;  %v7505_v49 = vor.u32 %v8819_v52, %v7502_v53  ;;  %v8863_v3 = vld [vmem:[#allocation7 + $0x16c] sm:$0xf]  ;;  %v7662_v2 = vld [vmem:[#allocation7 + $0x158] sm:$0xf0] }
 0x279   : > { %2294 = vmatpush.bf16.msra.mxu2 %v7773_v31  ;;  %2426 = vmatpush.bf16.msra.mxu3 %v7777_v17  ;;  %v7681_v62 = vor.u32 %v8863_v3, %v7678_v25  ;;  %v8859_v4 = vld [vmem:[#allocation7 + $0x14c] sm:$0xf] }
 0x27a   : > { %2207 = vmatpush.bf16.msrb.mxu1 %v7501_v5  ;;  %2339 = vmatpush.bf16.msra.mxu0 %v7505_v49  ;;  %v7665_v37 = vor.u32 %v8859_v4, %v7662_v2  ;;  %v14617_v17 = vld [vmem:[#allocation26_spill] sm:$0xff] }
 0x27d   : > { %2145 = vmatmul.bf16.gmra.mxu2 %v10959_v38 }
 0x27e   : > { %2376 = vmatpush.bf16.msra.mxu1 %v7745_v22  ;;  %1969 = vmatmul.bf16.gmra.mxu0 %v10982_v39  ;;  %v8885_v55 = vld [vmem:[#allocation7 + $0x214] sm:$0xf0]  ;;  %v7758_v45 = vld [vmem:[#allocation7 + $0x218] sm:$0xf0] }
 0x27f   : > { %2101 = vmatmul.bf16.gmra.mxu3 %v10982_v39  ;;  %v7756_v33 = vld [vmem:[#allocation7 + $0x208] sm:$0xf]  ;;  %v8883_v40 = vld [vmem:[#allocation7 + $0x20c] sm:$0xf] }
 0x280   : > { %v10993_v28 = vpop.f32.mrf.mxu2  ;;  %v7757_v14 = vor.u32 %v8885_v55, %v7756_v33  ;;  %v7761_v24 = vor.u32 %v8883_v40, %v7758_v45  ;;  %v14619_v33 = vld [vmem:[#allocation29_spill] sm:$0xff] }
 0x282   : > { %2377 = vmatpush.bf16.msra.mxu1 %v7729_v16  ;;  %2295 = vmatpush.bf16.msra.mxu2 %v7757_v14 }
 0x283   : > { %2427 = vmatpush.bf16.msra.mxu3 %v7761_v24 }
 0x286   : > { %2378 = vmatpush.bf16.msra.mxu1 %v7713_v44 }
 0x287   : > { %2018 = vmatmul.bf16.gmra.mxu1 %v10995_v46 }
 0x288   : > { %v11004_v63 = vpop.f32.mrf.mxu2 }
 0x28a   : > { %2379 = vmatpush.bf16.msra.mxu1 %v7697_v43 }
 0x28d   : > { %2150 = vmatmul.bf16.gmra.mxu2 %v10995_v46 }
 0x28e   : > { %2380 = vmatpush.bf16.msra.mxu1 %v7681_v62  ;;  %1974 = vmatmul.bf16.gmra.mxu0 %v11006_v20  ;;  %v14620_v62 = vld [vmem:[#allocation32_spill] sm:$0xff] }
 0x28f   : > { %2106 = vmatmul.bf16.gmra.mxu3 %v11006_v20 }
 0x290   : > { %v11011_v52 = vpop.f32.mrf.mxu2 }
 0x292   : > { %2381 = vmatpush.bf16.msra.mxu1 %v7665_v37 }
 0x297   : > { %2208 = vmatmul.bf16.vlgmr.msrb.gmra.mxu1 %v10559_v0 }
 0x298   : > { %v11014_v12 = vpop.f32.mrf.mxu2 }
 0x29d   : > { %7792 = vmatmul.msk.bf16.vlgmr.msra.gmra.mxu2 %vm1914_vm6, %v14616_v11 }
 0x29e   : > { %7785 = vmatmul.msk.bf16.vlgmr.msrb.gmra.mxu0 %vm1914_vm6, %v14616_v11 }
 0x29f   : > { %2252 = vmatmul.bf16.vlgmr.msrb.gmra.mxu3 %v10514_v47 }
 0x2a0   : > { %v11021_v30 = vpop.f32.mrf.mxu2 }
 0x2a3   : > { %v1989_v60 = vpop.f32.mrf.mxu1 }
 0x2a7   : > { %2213 = vmatmul.bf16.gmra.mxu1 %v10663_v9 }
 0x2a8   : > { %v11024_v58 = vpop.f32.mrf.mxu2 }
 0x2ab   : > { %v1945_v26 = vpop.f32.mrf.mxu0  ;;  %v11026_v31 = vpop.f32.mrf.mxu1 }
 0x2ac   : > { %v1990_v53 = vadd.f32 %v1989_v60, %v1945_v26 }
 0x2ad   : > { %7793 = vmatmul.msk.bf16.gmra.mxu2 %vm1914_vm6, %v14617_v17 }
 0x2ae   : > { %7786 = vmatmul.msk.bf16.gmra.mxu0 %vm1914_vm6, %v14617_v17 }
 0x2af   : > { %2257 = vmatmul.bf16.gmra.mxu3 %v10618_v51 }
 0x2b0   : > { %v2121_v5 = vpop.f32.mrf.mxu2 }
 0x2b2   : > { %v2077_v49 = vpop.f32.mrf.mxu3 }
 0x2b3   : > { %v11033_v22 = vadd.f32 %v2121_v5, %v2077_v49  ;;  %v1947_v15 = vpop.f32.mrf.mxu0  ;;  %v1994_v35 = vpop.f32.mrf.mxu1 }
 0x2b7   : > { %2218 = vmatmul.bf16.gmra.mxu1 %v10759_v56 }
 0x2b8   : > { %v2123_v16 = vpop.f32.mrf.mxu2 }
 0x2ba   : > { %v2079_v50 = vpop.f32.mrf.mxu3 }
 0x2bb   : > { %v11036_v61 = vadd.f32 %v2123_v16, %v2079_v50  ;;  %v1950_v55 = vpop.f32.mrf.mxu0  ;;  %v1996_v45 = vpop.f32.mrf.mxu1 }
 0x2bc   : > { %v11038_v7 = vadd.f32 %v1994_v35, %v1950_v55 }
 0x2bd   : > { %14618 = vst [vmem:[#allocation31_spill] sm:$0xff] %v11036_v61  ;;  %7794 = vmatmul.msk.bf16.gmra.mxu2 %vm1914_vm6, %v14619_v33 }
 0x2be   : > { %7787 = vmatmul.msk.bf16.gmra.mxu0 %vm1914_vm6, %v14619_v33 }
 0x2bf   : > { %2262 = vmatmul.bf16.gmra.mxu3 %v10712_v48 }
 0x2c0   : > { %v2126_v40 = vpop.f32.mrf.mxu2 }
 0x2c2   : > { %v2082_v14 = vpop.f32.mrf.mxu3 }
 0x2c3   : > { %v11045_v24 = vadd.f32 %v2126_v40, %v2082_v14  ;;  %v1952_v36 = vpop.f32.mrf.mxu0  ;;  %v1999_v44 = vpop.f32.mrf.mxu1 }
 0x2c4   : > { %v11047_v27 = vadd.f32 %v1996_v45, %v1952_v36  ;;  %v14623_v45 = vld [vmem:[#allocation39_spill] sm:$0xff] }
 0x2c7   : > { %2223 = vmatmul.bf16.gmra.mxu1 %v10850_v6 }
 0x2c8   : > { %v2128_v8 = vpop.f32.mrf.mxu2 }
 0x2ca   : > { %v2084_v43 = vpop.f32.mrf.mxu3 }
 0x2cb   : > { %v11050_v3 = vadd.f32 %v2128_v8, %v2084_v43  ;;  %v1955_v59 = vpop.f32.mrf.mxu0  ;;  %v2001_v19 = vpop.f32.mrf.mxu1 }
 0x2cc   : > { %v11052_v25 = vadd.f32 %v1999_v44, %v1955_v59  ;;  %v8855_v59 = vld [vmem:[#allocation7 + $0x12c] sm:$0xf] }
 0x2cd   : > { %7795 = vmatmul.msk.bf16.gmra.mxu2 %vm1914_vm6, %v14620_v62 }
 0x2ce   : > { %7788 = vmatmul.msk.bf16.gmra.mxu0 %vm1914_vm6, %v14620_v62 }
 0x2cf   : > { %2267 = vmatmul.bf16.gmra.mxu3 %v10813_v1 }
 0x2d0   : > { %v2131_v2 = vpop.f32.mrf.mxu2 }
 0x2d2   : > { %v2087_v4 = vpop.f32.mrf.mxu3 }
 0x2d3   : > { %v11059_v37 = vadd.f32 %v2131_v2, %v2087_v4  ;;  %v1957_v60 = vpop.f32.mrf.mxu0  ;;  %v2004_v26 = vpop.f32.mrf.mxu1  ;;  %v2034_v2 = vadd.f32 %v10689_v32, %v1990_v53 }
 0x2d4   : > { %v11061_v5 = vadd.f32 %v2001_v19, %v1957_v60  ;;  %v7646_v19 = vld [vmem:[#allocation7 + $0x138] sm:$0xf0] }
 0x2d5   : > { %v7649_v60 = vor.u32 %v8855_v59, %v7646_v19 }
 0x2d7   : > { %2228 = vmatmul.bf16.gmra.mxu1 %v10922_v57 }
 0x2d8   : > { %v11064_v49 = vpop.f32.mrf.mxu2  ;;  %2382 = vmatpush.bf16.msra.mxu1 %v7649_v60 }
 0x2d9   : > { %14621 = vst [vmem:[#allocation11_spill] sm:$0xff] %v11064_v49  ;;  %v7630_v49 = vld [vmem:[#allocation7 + $0x118] sm:$0xf0] }
 0x2da   : > { %v11066_v35 = vpop.f32.mrf.mxu3 }
 0x2db   : > { %14622 = vst [vmem:[#allocation15_spill] sm:$0xff] %v11066_v35  ;;  %v1960_v16 = vpop.f32.mrf.mxu0  ;;  %v2006_v50 = vpop.f32.mrf.mxu1 }
 0x2dc   : > { %v2005_v55 = vadd.f32 %v2004_v26, %v1960_v16 }
 0x2dd   : > { %7796 = vmatmul.msk.bf16.gmra.mxu2 %vm1914_vm6, %v14623_v45 }
 0x2de   : > { %7789 = vmatmul.msk.bf16.gmra.mxu0 %vm1914_vm6, %v14623_v45 }
 0x2df   : > { %2272 = vmatmul.bf16.gmra.mxu3 %v10887_v29 }
 0x2e0   : > { %v2136_v40 = vpop.f32.mrf.mxu2 }
 0x2e2   : > { %v2092_v14 = vpop.f32.mrf.mxu3 }
 0x2e3   : > { %v11073_v36 = vadd.f32 %v2136_v40, %v2092_v14  ;;  %v1962_v44 = vpop.f32.mrf.mxu0  ;;  %v2009_v8 = vpop.f32.mrf.mxu1  ;;  %v1992_v40 = vadd.f32 %v11026_v31, %v1947_v15 }
 0x2e4   : > { %v2007_v43 = vadd.f32 %v2006_v50, %v1962_v44  ;;  %v7633_v50 = vor.u32 %v8851_v54, %v7630_v49 }
 0x2e5   : > { %v2036_v53 = vadd.f32 %v10733_v23, %v1992_v40 }
 0x2e6   : > { %v2051_v4 = vadd.f32 %v10980_v41, %v2007_v43  ;;  %2383 = vmatpush.bf16.msra.mxu1 %v7633_v50  ;;  %v14624_v41 = vld [vmem:[#allocation45_spill] sm:$0xff] }
 0x2e7   : > { %2233 = vmatmul.bf16.gmra.mxu1 %v10982_v39 }
 0x2e8   : > { %v2532_v26 = vadd.f32 %v2051_v4, %v2034_v2  ;;  %v11078_v16 = vpop.f32.mrf.mxu2 }
 0x2ea   : > { %v7806_v14 = vmul.f32 -1.442695, %v2532_v26  ;;  %v11081_v35 = vpop.f32.mrf.mxu3 }
 0x2eb   : > { %v1965_v44 = vpop.f32.mrf.mxu0  ;;  %v2011_v61 = vpop.f32.mrf.mxu1 }
 0x2ec   : > { %9077 = vpow2.f32 %v7806_v14  ;;  %v2010_v32 = vadd.f32 %v2009_v8, %v1965_v44 }
 0x2ed   : > { %7797 = vmatmul.msk.bf16.gmra.mxu2 %vm1914_vm6, %v14624_v41 }
 0x2ee   : > { %v2054_v43 = vadd.f32 %v10993_v28, %v2010_v32  ;;  %7790 = vmatmul.msk.bf16.gmra.mxu0 %vm1914_vm6, %v14624_v41  ;;  %v2039_v28 = vadd.f32 %v10784_v10, %v11038_v7  ;;  %v3817_v7 = vld [vmem:[#allocation3 + $0x60] sm:$0xff] }
 0x2ef   : > { %2277 = vmatmul.bf16.gmra.mxu3 %v10959_v38 }
 0x2f0   : > { %v2620_v31 = vadd.f32 %v2054_v43, %v2036_v53  ;;  %v2141_v15 = vpop.f32.mrf.mxu2 }
 0x2f2   : > { %v9078_v54 = vpop.eup %9077  ;;  %v2624_v49 = vadd.f32 1.0, %v2620_v31  ;;  %v2097_v59 = vpop.f32.mrf.mxu3 }
 0x2f3   : > { %v2548_v19 = vadd.f32 1.0, %v9078_v54  ;;  %v11090_v8 = vadd.f32 %v2141_v15, %v2097_v59  ;;  %v1967_v2 = vpop.f32.mrf.mxu0  ;;  %v2014_v4 = vpop.f32.mrf.mxu1 }
 0x2f4   : > { %v7810_v60 = vmul.f32 -1.442695, %v2624_v49  ;;  %v2012_v26 = vadd.f32 %v2011_v61, %v1967_v2  ;;  %v3818_v49 = vld [vmem:[#allocation3 + $0x50] sm:$0xff] }
 0x2f5   : > { %9079 = vrcp.f32 %v2548_v19  ;;  %v2561_v59 = vand.u32 2147483647, %v2548_v19  ;;  %v2563_v2 = vand.u32 2147483648, %v2548_v19  ;;  %vm2557_vm10 = vweird.f32 %v2548_v19 }
 0x2f6   : > { %9081 = vpow2.f32 %v7810_v60  ;;  %v2056_v23 = vadd.f32 %v11004_v63, %v2012_v26  ;;  %v2049_v63 = vadd.f32 %v10945_v21, %v2005_v55  ;;  %v4210_v26 = vpack.c.bf16 %v3818_v49, %v3817_v7 }
 0x2f7   : > { %2238 = vmatmul.bf16.gmra.mxu1 %v11006_v20  ;;  %vm2562_vm12 = vcmp.eq.f32.partialorder %v2561_v59, 8.507059e+37 }
 0x2f8   : > { %v11096_v40 = vpop.f32.mrf.mxu2  ;;  %v2712_v14 = vadd.f32 %v2056_v23, %v2039_v28  ;;  %4218 = vst [vmem:[#allocation7 + $0x138] sm:$0xff] %v4210_v26 }
 0x2fa   : > { %v11098_v50 = vpop.f32.mrf.mxu3  ;;  %9083 = vtanh.f32 %v2712_v14 }
 0x2fb   : > { %v9080_v44 = vpop.eup %9079  ;;  %v1970_v32 = vpop.f32.mrf.mxu0 }
 0x2fc   : > { %v2016_v53 = vpop.f32.mrf.mxu1  ;;  %v9082_v43 = vpop.eup %9081  ;;  %v2553_v31 = vmul.f32 %v9080_v44, %v2548_v19  ;;  %v2015_v61 = vadd.f32 %v2014_v4, %v1970_v32  ;;  %vm2558_vm9 = vweird.f32 %v9080_v44 }
 0x2fd   : > { %v2640_v15 = vadd.f32 1.0, %v9082_v43  ;;  %7798 = vmatmul.msk.bf16.gmra.mxu2 %vm1914_vm6, %v10465_v34  ;;  %vm2559_vm11 = vmor %vm2557_vm10, %vm2558_vm9 }
 0x2fe   : > { %v2554_v54 = vsub.f32 1.0, %v2553_v31  ;;  %v2059_v10 = vadd.f32 %v11011_v52, %v2015_v61  ;;  %7791 = vmatmul.msk.bf16.gmra.mxu0 %vm1914_vm6, %v10465_v34  ;;  %v2564_v52 = vor.u32 1.1754944e-38, %v2563_v2 }
 0x2ff   : > { %9085 = vrcp.f32 %v2640_v15  ;;  %2282 = vmatmul.bf16.gmra.mxu3 %v10995_v46  ;;  %vm2649_vm14 = vweird.f32 %v2640_v15 }
 0x300   : > { %v2555_v4 = vmul.f32 %v9080_v44, %v2554_v54  ;;  %v2146_v60 = vpop.f32.mrf.mxu2  ;;  %v11107_v23 = vadd.f32 %v2059_v10, %v2049_v63  ;;  %v9084_v43 = vpop.eup %9083  ;;  %v2041_v63 = vadd.f32 %v10836_v13, %v11047_v27  ;;  %v2044_v27 = vadd.f32 %v10873_v18, %v11052_v25 }
 0x302   : > { %v2556_v21 = vadd.f32 %v9080_v44, %v2555_v4  ;;  %v2102_v55 = vpop.f32.mrf.mxu3 }
 0x303   : > { %v11109_v28 = vadd.f32 %v2146_v60, %v2102_v55  ;;  %v1972_v14 = vpop.f32.mrf.mxu0  ;;  %v2655_v60 = vand.u32 2147483648, %v2640_v15 }
 0x304   : > { %v2019_v32 = vpop.f32.mrf.mxu1  ;;  %v2560_v31 = vsel %vm2559_vm11, %v9080_v44, %v2556_v21  ;;  %v2017_v61 = vadd.f32 %v2016_v53, %v1972_v14  ;;  %v2653_v44 = vand.u32 2147483647, %v2640_v15 }
 0x305   : > { %v9086_v54 = vpop.eup %9085  ;;  %v2565_v34 = vsel %vm2562_vm12, %v2564_v52, %v2560_v31 }
 0x306   : > { %v2645_v10 = vmul.f32 %v9086_v54, %v2640_v15  ;;  %v2724_v7 = vmul.f32 %v9084_v43, %v2565_v34  ;;  %v2061_v19 = vadd.f32 %v11014_v12, %v2017_v61  ;;  %vm2650_vm13 = vweird.f32 %v9086_v54 }
 0x307   : > { %2384 = vmatmul.bf16.vlgmr.msra.gmra.mxu1 %v10514_v47  ;;  %vm2651_vm15 = vmor %vm2649_vm14, %vm2650_vm13  ;;  %v2656_v12 = vor.u32 1.1754944e-38, %v2655_v60  ;;  %v2520_v47 = vld [vmem:[#allocation4 + $0x8] sm:$0xff]  ;;  %vm2654_vm9 = vcmp.eq.f32.partialorder %v2653_v44, 8.507059e+37 }
 0x308   : > { %v2646_v49 = vsub.f32 1.0, %v2645_v10  ;;  %v2744_v2 = vadd.f32 %v2061_v19, %v2041_v63  ;;  %v11115_v4 = vpop.f32.mrf.mxu2 }
 0x30a   : > { %v2647_v26 = vmul.f32 %v9086_v54, %v2646_v49  ;;  %v7814_v53 = vmul.f32 -1.442695, %v2744_v2  ;;  %v11117_v59 = vpop.f32.mrf.mxu3 }
 0x30b   : > { %v1975_v21 = vpop.f32.mrf.mxu0 }
 0x30c   : > { %v2021_v55 = vpop.f32.mrf.mxu1  ;;  %v2648_v13 = vadd.f32 %v9086_v54, %v2647_v26  ;;  %9087 = vpow2.f32 %v7814_v53  ;;  %v2020_v34 = vadd.f32 %v2019_v32, %v1975_v21 }
 0x30e   : > { %v2652_v52 = vsel %vm2651_vm15, %v9086_v54, %v2648_v13  ;;  %v2064_v14 = vadd.f32 %v11021_v30, %v2020_v34  ;;  %2340 = vmatmul.bf16.vlgmr.msra.gmra.mxu0 %v10559_v0 }
 0x30f   : > { %v2657_v43 = vsel %vm2654_vm9, %v2656_v12, %v2652_v52  ;;  %7799 = vmatmul.msk.bf16.vlgmr.msra.gmra.mxu3 %vm1914_vm6, %v14616_v11 }
 0x310   : > { %v2720_v31 = vmul.f32 %v2657_v43, %v2520_v47  ;;  %v2832_v15 = vadd.f32 %v2064_v14, %v2044_v27  ;;  %v2151_v61 = vpop.f32.mrf.mxu2 }
 0x312   : > { %v9088_v32 = vpop.eup %9087  ;;  %v11125_v63 = vadd.f32 %v2724_v7, %v2720_v31  ;;  %v2836_v10 = vadd.f32 1.0, %v2832_v15  ;;  %v2107_v19 = vpop.f32.mrf.mxu3  ;;  %v2046_v7 = vadd.f32 %v10908_v42, %v11061_v5 }
 0x313   : > { %v2760_v49 = vadd.f32 1.0, %v9088_v32  ;;  %v11127_v18 = vadd.f32 %v2151_v61, %v2107_v19  ;;  %v1977_v25 = vpop.f32.mrf.mxu0 }
 0x314   : > { %v2209_v54 = vpop.f32.mrf.mxu1  ;;  %2732 = vst [vmem:[#allocation4 + $0x8] sm:$0xff] %v11125_v63  ;;  %v7818_v0 = vmul.f32 -1.442695, %v2836_v10  ;;  %v2022_v30 = vadd.f32 %v2021_v55, %v1977_v25  ;;  %3252 = vrot.lane.b32.xlu2 %v11125_v63, %s9355_s23 }
 0x315   : > { %9089 = vrcp.f32 %v2760_v49  ;;  %v2775_v42 = vand.u32 2147483648, %v2760_v49  ;;  %v2773_v12 = vand.u32 2147483647, %v2760_v49  ;;  %vm2769_vm11 = vweird.f32 %v2760_v49 }
 0x316   : > { %9091 = vpow2.f32 %v7818_v0  ;;  %v2066_v11 = vadd.f32 %v11024_v58, %v2022_v30 }
 0x317   : > { %2389 = vmatmul.bf16.gmra.mxu1 %v10618_v51  ;;  %v2776_v52 = vor.u32 1.1754944e-38, %v2775_v42  ;;  %vm2774_vm13 = vcmp.eq.f32.partialorder %v2773_v12, 8.507059e+37 }
 0x318   : > { %v11136_v2 = vpop.f32.mrf.mxu2  ;;  %v2924_v60 = vadd.f32 %v2066_v11, %v2046_v7 }
 0x31a   : > { %v11138_v26 = vpop.f32.mrf.mxu3  ;;  %9093 = vtanh.f32 %v2924_v60 }
 0x31b   : > { %v9090_v44 = vpop.eup %9089  ;;  %v2165_v53 = vpop.f32.mrf.mxu0 }
 0x31c   : > { %v11140_v21 = vpop.f32.mrf.mxu1  ;;  %v9092_v55 = vpop.eup %9091  ;;  %v2765_v13 = vmul.f32 %v9090_v44, %v2760_v49  ;;  %v11143_v34 = vadd.f32 %v2165_v53, %v11033_v22  ;;  %3204 = vrot.lane.b32.xlu2 %v11125_v63, %s9358_s26  ;;  %vm2770_vm10 = vweird.f32 %v9090_v44 }
 0x31d   : > { %v2852_v51 = vadd.f32 1.0, %v9092_v55  ;;  %vm2771_vm12 = vmor %vm2769_vm11, %vm2770_vm10 }
 0x31e   : > { %v2766_v58 = vsub.f32 1.0, %v2765_v13  ;;  %2345 = vmatmul.bf16.gmra.mxu0 %v10663_v9 }
 0x31f   : > { %9095 = vrcp.f32 %v2852_v51  ;;  %7800 = vmatmul.msk.bf16.gmra.mxu3 %vm1914_vm6, %v14617_v17  ;;  %v2865_v30 = vand.u32 2147483647, %v2852_v51  ;;  %vm2861_vm15 = vweird.f32 %v2852_v51 }
 0x320   : > { %v2767_v5 = vmul.f32 %v9090_v44, %v2766_v58  ;;  %v2297_v47 = vpop.f32.mrf.mxu2  ;;  %v9094_v15 = vpop.eup %9093  ;;  %v9317_v58 = vld [vmem:[#allocation2 + $0x40] sm:$0xff] }
 0x321   : > { %vm2866_vm10 = vcmp.eq.f32.partialorder %v2865_v30, 8.507059e+37 }
 0x322   : > { %v2768_v27 = vadd.f32 %v9090_v44, %v2767_v5  ;;  %v2253_v22 = vpop.f32.mrf.mxu3 }
 0x323   : > { %v2254_v14 = vadd.f32 %v2253_v22, %v2209_v54  ;;  %v11150_v43 = vpop.f32.mrf.mxu0  ;;  %v2867_v54 = vand.u32 2147483648, %v2852_v51 }
 0x324   : > { %v2214_v31 = vpop.f32.mrf.mxu1  ;;  %v2772_v9 = vsel %vm2771_vm12, %v9090_v44, %v2768_v27  ;;  %3156 = vrot.lane.b32.xlu2 %v11125_v63, %s9360_s18 }
 0x325   : > { %v9096_v17 = vpop.eup %9095  ;;  %v2777_v61 = vsel %vm2774_vm13, %v2776_v52, %v2772_v9  ;;  %v11154_v32 = vadd.f32 %v2297_v47, %v2254_v14 }
 0x326   : > { %v2857_v10 = vmul.f32 %v9096_v17, %v2852_v51  ;;  %v2936_v19 = vmul.f32 %v9094_v15, %v2777_v61  ;;  %vm2862_vm14 = vweird.f32 %v9096_v17 }
 0x327   : > { %2394 = vmatmul.bf16.gmra.mxu1 %v10712_v48  ;;  %vm2863_vm9 = vmor %vm2861_vm15, %vm2862_vm14  ;;  %v2868_v48 = vor.u32 1.1754944e-38, %v2867_v54 }
 0x328   : > { %v2858_v49 = vsub.f32 1.0, %v2857_v10  ;;  %v11157_v25 = vpop.f32.mrf.mxu2 }
 0x32a   : > { %v2859_v0 = vmul.f32 %v9096_v17, %v2858_v49  ;;  %v11159_v11 = vpop.f32.mrf.mxu3 }
 0x32b   : > { %v2170_v7 = vpop.f32.mrf.mxu0 }
 0x32c   : > { %v2216_v60 = vpop.f32.mrf.mxu1  ;;  %v2860_v44 = vadd.f32 %v9096_v17, %v2859_v0  ;;  %v11162_v53 = vadd.f32 %v2170_v7, %v11045_v24  ;;  %3100 = vrot.lane.b32.xlu2 %v11125_v63, %s9354_s22  ;;  %v2139_v0 = vadd.f32 %v11078_v16, %v11081_v35 }
 0x32e   : > { %v2864_v55 = vsel %vm2863_vm9, %v9096_v17, %v2860_v44  ;;  %2350 = vmatmul.bf16.gmra.mxu0 %v10759_v56 }
 0x32f   : > { %v2869_v13 = vsel %vm2866_vm10, %v2868_v48, %v2864_v55  ;;  %7801 = vmatmul.msk.bf16.gmra.mxu3 %vm1914_vm6, %v14619_v33 }
 0x330   : > { %v2932_v42 = vmul.f32 %v9317_v58, %v2869_v13  ;;  %v2302_v5 = vpop.f32.mrf.mxu2 }
 0x332   : > { %v11169_v51 = vadd.f32 %v2936_v19, %v2932_v42  ;;  %v2258_v24 = vpop.f32.mrf.mxu3  ;;  %v14625_v42 = vld [vmem:[#allocation31_spill] sm:$0xff] }
 0x333   : > { %v2259_v12 = vadd.f32 %v2258_v24, %v2214_v31  ;;  %v2172_v47 = vpop.f32.mrf.mxu0 }
 0x334   : > { %v2219_v27 = vpop.f32.mrf.mxu1  ;;  %2944 = vst [vmem:[#allocation4 + $0x38] sm:$0xff] %v11169_v51  ;;  %v11173_v22 = vadd.f32 %v2172_v47, %v11050_v3  ;;  %3254 = vrot.lane.b32.xlu0 %v11169_v51, %s9355_s23  ;;  %3052 = vrot.lane.b32.xlu2 %v11125_v63, %s9356_s24 }
 0x335   : > { %3799 = vst [vmem:[#allocation3 + $0x20] sm:$0xff] %v11169_v51  ;;  %v11180_v56 = vadd.f32 %v2302_v5, %v2259_v12  ;;  %v2168_v5 = vadd.f32 %v11150_v43, %v14625_v42  ;;  %v2256_v43 = vadd.f32 %v11159_v11, %v11140_v21 }
 0x337   : > { %2399 = vmatmul.bf16.gmra.mxu1 %v10813_v1 }
 0x338   : > { %v11183_v33 = vpop.f32.mrf.mxu2 }
 0x33a   : > { %v2260_v52 = vpop.f32.mrf.mxu3 }
 0x33b   : > { %v11185_v14 = vadd.f32 %v2260_v52, %v2216_v60  ;;  %v2175_v31 = vpop.f32.mrf.mxu0 }
 0x33c   : > { %v11187_v3 = vpop.f32.mrf.mxu1  ;;  %v11190_v15 = vadd.f32 %v2175_v31, %v11059_v37  ;;  %3206 = vrot.lane.b32.xlu0 %v11169_v51, %s9358_s26  ;;  %3004 = vrot.lane.b32.xlu2 %v11125_v63, %s9359_s29 }
 0x33e   : > { %2355 = vmatmul.bf16.gmra.mxu0 %v10850_v6 }
 0x33f   : > { %7802 = vmatmul.msk.bf16.gmra.mxu3 %vm1914_vm6, %v14620_v62 }
 0x340   : > { %v2307_v1 = vpop.f32.mrf.mxu2 }
 0x342   : > { %v2263_v9 = vpop.f32.mrf.mxu3 }
 0x343   : > { %v2264_v17 = vadd.f32 %v2263_v9, %v2219_v27  ;;  %v11199_v61 = vpop.f32.mrf.mxu0 }
 0x344   : > { %v2224_v10 = vpop.f32.mrf.mxu1  ;;  %3158 = vrot.lane.b32.xlu0 %v11169_v51, %s9360_s18  ;;  %2956 = vrot.lane.b32.xlu2 %v11125_v63, %s9361_s13 }
 0x345   : > { %v11205_v37 = vadd.f32 %v2307_v1, %v2264_v17  ;;  %v2144_v1 = vadd.f32 %v11096_v40, %v11098_v50 }
 0x347   : > { %2404 = vmatmul.bf16.gmra.mxu1 %v10887_v29 }
 0x348   : > { %v11208_v6 = vpop.f32.mrf.mxu2 }
 0x34a   : > { %v11210_v19 = vpop.f32.mrf.mxu3 }
 0x34b   : > { %v2180_v62 = vpop.f32.mrf.mxu0 }
 0x34c   : > { %v2226_v49 = vpop.f32.mrf.mxu1  ;;  %v11213_v54 = vadd.f32 %v2180_v62, %v11073_v36  ;;  %3102 = vrot.lane.b32.xlu0 %v11169_v51, %s9354_s22  ;;  %3300 = vrot.lane.b32.xlu2 %v11125_v63, %s9357_s25 }
 0x34e   : > { %2360 = vmatmul.bf16.gmra.mxu0 %v10922_v57 }
 0x34f   : > { %7803 = vmatmul.msk.bf16.gmra.mxu3 %vm1914_vm6, %v14623_v45 }
 0x350   : > { %v2312_v29 = vpop.f32.mrf.mxu2 }
 0x352   : > { %v2268_v30 = vpop.f32.mrf.mxu3 }
 0x353   : > { %v2269_v7 = vadd.f32 %v2268_v30, %v2224_v10  ;;  %v2182_v60 = vpop.f32.mrf.mxu0 }
 0x354   : > { %v2229_v36 = vpop.f32.mrf.mxu1  ;;  %v2183_v44 = vadd.f32 %v2182_v60, %v2139_v0  ;;  %3054 = vrot.lane.b32.xlu0 %v11169_v51, %s9356_s24 }
 0x355   : > { %v11226_v48 = vadd.f32 %v2312_v29, %v2269_v7 }
 0x356   : > { %v2533_v55 = vadd.f32 %v2183_v44, %v11143_v34 }
 0x357   : > { %2409 = vmatmul.bf16.gmra.mxu1 %v10959_v38 }
 0x358   : > { %v7807_v57 = vmul.f32 -1.442695, %v2533_v55  ;;  %v2314_v45 = vpop.f32.mrf.mxu2 }
 0x35a   : > { %9097 = vpow2.f32 %v7807_v57  ;;  %v2270_v13 = vpop.f32.mrf.mxu3 }
 0x35b   : > { %v2271_v58 = vadd.f32 %v2270_v13, %v2226_v49  ;;  %v2185_v35 = vpop.f32.mrf.mxu0 }
 0x35c   : > { %v2231_v16 = vpop.f32.mrf.mxu1  ;;  %v2186_v24 = vadd.f32 %v2185_v35, %v11090_v8  ;;  %3006 = vrot.lane.b32.xlu0 %v11169_v51, %s9359_s29 }
 0x35d   : > { %v2315_v12 = vadd.f32 %v2314_v45, %v2271_v58 }
 0x35e   : > { %v2621_v47 = vadd.f32 %v2186_v24, %v2168_v5  ;;  %2365 = vmatmul.bf16.gmra.mxu0 %v10982_v39  ;;  %v14626_v5 = vld [vmem:[#allocation46_spill] sm:$0xff] }
 0x35f   : > { %v2534_v38 = vadd.f32 %v2315_v12, %v11154_v32  ;;  %7804 = vmatmul.msk.bf16.gmra.mxu3 %vm1914_vm6, %v14624_v41  ;;  %v2300_v41 = vadd.f32 %v11157_v25, %v2256_v43 }
 0x360   : > { %v9098_v34 = vpop.eup %9097  ;;  %v2625_v27 = vadd.f32 1.0, %v2621_v47  ;;  %v2317_v52 = vpop.f32.mrf.mxu2 }
 0x361   : > { %v2549_v31 = vadd.f32 1.0, %v9098_v34  ;;  %v7808_v8 = vmul.f32 -1.442695, %v2534_v38  ;;  %v2149_v38 = vadd.f32 %v11115_v4, %v11117_v59 }
 0x362   : > { %v7811_v9 = vmul.f32 -1.442695, %v2625_v27  ;;  %v2273_v17 = vpop.f32.mrf.mxu3 }
 0x363   : > { %9099 = vrcp.f32 %v2549_v31  ;;  %v2274_v39 = vadd.f32 %v2273_v17, %v2229_v36  ;;  %v2187_v10 = vpop.f32.mrf.mxu0  ;;  %v2578_v58 = vand.u32 2147483648, %v2549_v31  ;;  %vm2572_vm12 = vweird.f32 %v2549_v31 }
 0x364   : > { %v2234_v32 = vpop.f32.mrf.mxu1  ;;  %9101 = vpow2.f32 %v7811_v9  ;;  %v2188_v62 = vadd.f32 %v2187_v10, %v2144_v1  ;;  %2958 = vrot.lane.b32.xlu0 %v11169_v51, %s9361_s13 }
 0x365   : > { %9103 = vpow2.f32 %v7808_v8  ;;  %v2318_v21 = vadd.f32 %v2317_v52, %v2274_v39  ;;  %v2579_v12 = vor.u32 1.1754944e-38, %v2578_v58 }
 0x366   : > { %v2713_v11 = vadd.f32 %v2188_v62, %v11162_v53  ;;  %v2576_v53 = vand.u32 2147483647, %v2549_v31 }
 0x367   : > { %2414 = vmatmul.bf16.gmra.mxu1 %v10995_v46  ;;  %v2622_v40 = vadd.f32 %v2318_v21, %v2300_v41 }
 0x368   : > { %v2319_v50 = vpop.f32.mrf.mxu2  ;;  %9105 = vtanh.f32 %v2713_v11  ;;  %vm2577_vm14 = vcmp.eq.f32.partialorder %v2576_v53, 8.507059e+37 }
 0x369   : > { %v9100_v49 = vpop.eup %9099  ;;  %v2626_v29 = vadd.f32 1.0, %v2622_v40 }
 0x36a   : > { %v9102_v0 = vpop.eup %9101  ;;  %v2568_v30 = vmul.f32 %v9100_v49, %v2549_v31  ;;  %v2275_v7 = vpop.f32.mrf.mxu3  ;;  %vm2573_vm11 = vweird.f32 %v9100_v49 }
 0x36b   : > { %v9104_v60 = vpop.eup %9103  ;;  %v11248_v36 = vadd.f32 1.0, %v9102_v0  ;;  %v7812_v44 = vmul.f32 -1.442695, %v2626_v29  ;;  %v2276_v55 = vadd.f32 %v2275_v7, %v2231_v16  ;;  %v2190_v57 = vpop.f32.mrf.mxu0  ;;  %vm2574_vm13 = vmor %vm2572_vm12, %vm2573_vm11 }
 0x36c   : > { %v11250_v25 = vpop.f32.mrf.mxu1  ;;  %v2569_v45 = vsub.f32 1.0, %v2568_v30  ;;  %v11252_v13 = vadd.f32 1.0, %v9104_v60  ;;  %v2191_v46 = vadd.f32 %v2190_v57, %v11109_v28  ;;  %3302 = vrot.lane.b32.xlu0 %v11169_v51, %s9357_s25 }
 0x36d   : > { %9107 = vrcp.f32 %v11248_v36  ;;  %v2320_v42 = vadd.f32 %v2319_v50, %v2276_v55  ;;  %v2670_v41 = vand.u32 2147483648, %v11248_v36  ;;  %vm2664_vm10 = vweird.f32 %v11248_v36  ;;  %v2521_v55 = vld [vmem:[#allocation4] sm:$0xff] }
 0x36e   : > { %9109 = vrcp.f32 %v11252_v13  ;;  %v2570_v35 = vmul.f32 %v9100_v49, %v2569_v45  ;;  %v11260_v16 = vadd.f32 %v2191_v46, %v11213_v54  ;;  %2370 = vmatmul.bf16.gmra.mxu0 %v11006_v20  ;;  %v9106_v47 = vpop.eup %9105  ;;  %v2591_v30 = vand.u32 2147483647, %v11252_v13 }
 0x36f   : > { %9111 = vpow2.f32 %v7812_v44  ;;  %7805 = vmatmul.msk.bf16.gmra.mxu3 %vm1914_vm6, %v14626_v5  ;;  %v2714_v20 = vadd.f32 %v2320_v42, %v11180_v56  ;;  %vm2587_vm12 = vweird.f32 %v11252_v13 }
 0x370   : > { %v2571_v28 = vadd.f32 %v9100_v49, %v2570_v35  ;;  %v2322_v24 = vpop.f32.mrf.mxu2 }
 0x371   : > { %9113 = vtanh.f32 %v2714_v20 }
 0x372   : > { %v2575_v34 = vsel %vm2574_vm13, %v9100_v49, %v2571_v28  ;;  %v2278_v54 = vpop.f32.mrf.mxu3  ;;  %v2593_v49 = vand.u32 2147483648, %v11252_v13 }
 0x373   : > { %v9108_v27 = vpop.eup %9107  ;;  %v2580_v52 = vsel %vm2577_vm14, %v2579_v12, %v2575_v34  ;;  %v2279_v43 = vadd.f32 %v2278_v54, %v2234_v32  ;;  %v2192_v8 = vpop.f32.mrf.mxu0  ;;  %v2668_v32 = vand.u32 2147483647, %v11248_v36  ;;  %v14628_v34 = vld [vmem:[#allocation15_spill] sm:$0xff] }
 0x374   : > { %v11268_v1 = vpop.f32.mrf.mxu1  ;;  %v9110_v9 = vpop.eup %9109  ;;  %v2660_v31 = vmul.f32 %v9108_v27, %v11248_v36  ;;  %v2725_v17 = vmul.f32 %v9106_v47, %v2580_v52  ;;  %v2193_v39 = vadd.f32 %v2192_v8, %v2149_v38  ;;  %vm2665_vm15 = vweird.f32 %v9108_v27  ;;  %v14629_v54 = vld [vmem:[#allocation11_spill] sm:$0xff] }
 0x375   : > { %v9112_v10 = vpop.eup %9111  ;;  %v2583_v62 = vmul.f32 %v9110_v9, %v11252_v13  ;;  %v2323_v4 = vadd.f32 %v2322_v24, %v2279_v43  ;;  %vm2588_vm9 = vweird.f32 %v9110_v9  ;;  %vm2666_vm11 = vmor %vm2664_vm10, %vm2665_vm15  ;;  %vm2669_vm13 = vcmp.eq.f32.partialorder %v2668_v32, 8.507059e+37 }
 0x376   : > { %v2661_v59 = vsub.f32 1.0, %v2660_v31  ;;  %v11273_v21 = vadd.f32 1.0, %v9112_v10  ;;  %v2745_v56 = vadd.f32 %v2193_v39, %v11173_v22  ;;  %v2305_v22 = vadd.f32 %v11183_v33, %v11185_v14  ;;  %vm2589_vm14 = vmor %vm2587_vm12, %vm2588_vm9 }
 0x377   : > { %v2584_v11 = vsub.f32 1.0, %v2583_v62  ;;  %v11278_v40 = vadd.f32 %v2323_v4, %v11226_v48  ;;  %v2671_v48 = vor.u32 1.1754944e-38, %v2670_v41  ;;  %v2594_v33 = vor.u32 1.1754944e-38, %v2593_v49  ;;  %v9114_v36 = vpop.eup %9113  ;;  %v2522_v49 = vld [vmem:[#allocation4 + $0x18] sm:$0xff] }
 0x378   : > { %v2662_v50 = vmul.f32 %v9108_v27, %v2661_v59  ;;  %9115 = vrcp.f32 %v11273_v21  ;;  %v2324_v29 = vpop.f32.mrf.mxu2  ;;  %v7815_v7 = vmul.f32 -1.442695, %v2745_v56  ;;  %vm2592_vm15 = vcmp.eq.f32.partialorder %v2591_v30, 8.507059e+37 }
 0x379   : > { %14627 = vst [vmem:[#allocation34_spill] sm:$0xff] %v11278_v40  ;;  %v2585_v0 = vmul.f32 %v9110_v9, %v2584_v11  ;;  %v2154_v43 = vadd.f32 %v11136_v2, %v11138_v26  ;;  %vm2679_vm10 = vweird.f32 %v11273_v21 }
 0x37a   : > { %v2663_v60 = vadd.f32 %v9108_v27, %v2662_v50  ;;  %v2280_v44 = vpop.f32.mrf.mxu3  ;;  %9117 = vpow2.f32 %v7815_v7 }
 0x37b   : > { %v2586_v57 = vadd.f32 %v9110_v9, %v2585_v0  ;;  %v2281_v45 = vadd.f32 %v2280_v44, %v11250_v25  ;;  %v2195_v46 = vpop.f32.mrf.mxu0 }
 0x37c   : > { %v11288_v53 = vpop.f32.mrf.mxu1  ;;  %v2667_v58 = vsel %vm2666_vm11, %v9108_v27, %v2663_v60  ;;  %v2196_v14 = vadd.f32 %v2195_v46, %v11127_v18  ;;  %v2134_v27 = vadd.f32 %v14629_v54, %v14628_v34 }
 0x37d   : > { %v2672_v35 = vsel %vm2669_vm13, %v2671_v48, %v2667_v58  ;;  %v2590_v42 = vsel %vm2589_vm14, %v9110_v9, %v2586_v57  ;;  %v2325_v5 = vadd.f32 %v2324_v29, %v2281_v45  ;;  %v2683_v9 = vand.u32 2147483647, %v11273_v21 }
 0x37e   : > { %v9116_v28 = vpop.eup %9115  ;;  %v2721_v13 = vmul.f32 %v2672_v35, %v2521_v55  ;;  %v2595_v24 = vsel %vm2592_vm15, %v2594_v33, %v2590_v42  ;;  %v2833_v25 = vadd.f32 %v2196_v14, %v11190_v15  ;;  %v2685_v15 = vand.u32 2147483648, %v11273_v21 }
 0x37f   : > { %v2675_v12 = vmul.f32 %v9116_v28, %v11273_v21  ;;  %v2726_v47 = vmul.f32 %v9114_v36, %v2595_v24  ;;  %v2746_v38 = vadd.f32 %v2325_v5, %v2305_v22  ;;  %vm2680_vm9 = vweird.f32 %v9116_v28 }
 0x380   : > { %v11296_v52 = vadd.f32 %v2725_v17, %v2721_v13  ;;  %v2837_v18 = vadd.f32 1.0, %v2833_v25  ;;  %v9118_v20 = vpop.eup %9117  ;;  %v2327_v4 = vpop.f32.mrf.mxu2  ;;  %v2178_v56 = vadd.f32 %v11199_v61, %v2134_v27  ;;  %vm2681_vm11 = vmor %vm2679_vm10, %vm2680_vm9  ;;  %vm2684_vm12 = vcmp.eq.f32.partialorder %v2683_v9, 8.507059e+37 }
 0x381   : > { %v2676_v8 = vsub.f32 1.0, %v2675_v12  ;;  %v7816_v31 = vmul.f32 -1.442695, %v2746_v38  ;;  %v11303_v39 = vadd.f32 1.0, %v9118_v20 }
 0x382   : > { %2733 = vst [vmem:[#allocation4] sm:$0xff] %v11296_v52  ;;  %v7819_v10 = vmul.f32 -1.442695, %v2837_v18  ;;  %v2283_v62 = vpop.f32.mrf.mxu3  ;;  %3256 = vrot.lane.b32.xlu1 %v11296_v52, %s9355_s23  ;;  %v3148_v17 = vpack.c.bf16 %v11296_v52, %v11125_v63  ;;  %v2686_v63 = vor.u32 1.1754944e-38, %v2685_v15 }
 0x383   : > { %v2677_v2 = vmul.f32 %v9116_v28, %v2676_v8  ;;  %9119 = vpow2.f32 %v7816_v31  ;;  %v2284_v26 = vadd.f32 %v2283_v62, %v11268_v1  ;;  %v2197_v59 = vpop.f32.mrf.mxu0  ;;  %v2790_v14 = vand.u32 2147483648, %v11303_v39 }
 0x384   : > { %v2385_v41 = vpop.f32.mrf.mxu1  ;;  %9121 = vrcp.f32 %v11303_v39  ;;  %v2198_v32 = vadd.f32 %v2197_v59, %v2154_v43  ;;  %3152 = vst [vmem:[#allocation7 + $0x80] sm:$0xff] %v3148_v17  ;;  %v2788_v35 = vand.u32 2147483647, %v11303_v39  ;;  %vm2784_vm14 = vweird.f32 %v11303_v39 }
 0x385   : > { %v2678_v11 = vadd.f32 %v9116_v28, %v2677_v2  ;;  %9123 = vpow2.f32 %v7819_v10  ;;  %v2328_v50 = vadd.f32 %v2327_v4, %v2284_v26  ;;  %v2791_v24 = vor.u32 1.1754944e-38, %v2790_v14 }
 0x386   : > { %v2925_v29 = vadd.f32 %v2198_v32, %v2178_v56  ;;  %vm2789_vm9 = vcmp.eq.f32.partialorder %v2788_v35, 8.507059e+37  ;;  %v2266_v10 = vadd.f32 %v11210_v19, %v11187_v3 }
 0x387   : > { %v2682_v0 = vsel %vm2681_vm11, %v9116_v28, %v2678_v11  ;;  %v2834_v1 = vadd.f32 %v2328_v50, %v11205_v37 }
 0x388   : > { %v2687_v30 = vsel %vm2684_vm12, %v2686_v63, %v2682_v0  ;;  %9125 = vtanh.f32 %v2925_v29  ;;  %v2310_v59 = vadd.f32 %v11208_v6, %v2266_v10 }
 0x389   : > { %v9120_v7 = vpop.eup %9119  ;;  %v2722_v61 = vmul.f32 %v2687_v30, %v2522_v49  ;;  %v2838_v22 = vadd.f32 1.0, %v2834_v1 }
 0x38a   : > { %v9122_v60 = vpop.eup %9121  ;;  %v11314_v48 = vadd.f32 1.0, %v9120_v7  ;;  %v2285_v44 = vpop.f32.mrf.mxu3  ;;  %3208 = vrot.lane.b32.xlu1 %v11296_v52, %s9358_s26  ;;  %v9318_v7 = vld [vmem:[#allocation2 + $0x20] sm:$0xff] }
 0x38b   : > { %v9124_v21 = vpop.eup %9123  ;;  %v11318_v55 = vadd.f32 %v2726_v47, %v2722_v61  ;;  %v2780_v57 = vmul.f32 %v9122_v60, %v11303_v39  ;;  %v7820_v45 = vmul.f32 -1.442695, %v2838_v22  ;;  %v2341_v46 = vpop.f32.mrf.mxu0  ;;  %vm2785_vm13 = vweird.f32 %v9122_v60 }
 0x38c   : > { %v11321_v37 = vpop.f32.mrf.mxu1  ;;  %v2853_v58 = vadd.f32 1.0, %v9124_v21  ;;  %9127 = vrcp.f32 %v11314_v48  ;;  %v2386_v42 = vadd.f32 %v2385_v41, %v2341_v46  ;;  %vm2786_vm15 = vmor %vm2784_vm14, %vm2785_vm13  ;;  %v2286_v43 = vadd.f32 %v2285_v44, %v11288_v53  ;;  %v2329_v39 = vpop.f32.mrf.mxu2 }
 0x38d   : > { %2734 = vst [vmem:[#allocation4 + $0x18] sm:$0xff] %v11318_v55  ;;  %v2781_v33 = vsub.f32 1.0, %v2780_v57  ;;  %9129 = vpow2.f32 %v7820_v45  ;;  %3260 = vrot.lane.b32.xlu0 %v11318_v55, %s9355_s23  ;;  %v2803_v1 = vand.u32 2147483647, %v11314_v48  ;;  %v2805_v30 = vand.u32 2147483648, %v11314_v48 }
 0x38e   : > { %9131 = vrcp.f32 %v2853_v58  ;;  %v9126_v5 = vpop.eup %9125  ;;  %v2880_v4 = vand.u32 2147483647, %v2853_v58  ;;  %v2882_v17 = vand.u32 2147483648, %v2853_v58  ;;  %v2330_v2 = vadd.f32 %v2329_v39, %v2286_v43 }
 0x38f   : > { %v2782_v36 = vmul.f32 %v9122_v60, %v2781_v33  ;;  %vm2876_vm11 = vweird.f32 %v2853_v58 }
 0x390   : > { %v2883_v11 = vor.u32 1.1754944e-38, %v2882_v17  ;;  %vm2881_vm13 = vcmp.eq.f32.partialorder %v2880_v4, 8.507059e+37  ;;  %v2926_v50 = vadd.f32 %v2330_v2, %v2310_v59  ;;  %v11413_v4 = vpop.permute.xlu2 %3252 }
 0x391   : > { %v2783_v28 = vadd.f32 %v9122_v60, %v2782_v36 }
 0x392   : > { %v11330_v13 = vpop.eup %9127  ;;  %v2429_v25 = vpop.f32.mrf.mxu3  ;;  %3160 = vrot.lane.b32.xlu1 %v11296_v52, %s9360_s18 }
 0x393   : > { %v9130_v12 = vpop.eup %9129  ;;  %v2795_v47 = vmul.f32 %v11330_v13, %v11314_v48  ;;  %v2787_v38 = vsel %vm2786_vm15, %v9122_v60, %v2783_v28  ;;  %v11336_v34 = vpop.f32.mrf.mxu0  ;;  %v11341_v8 = vadd.f32 %v2429_v25, %v2386_v42  ;;  %vm2800_vm14 = vweird.f32 %v11330_v13 }
 0x394   : > { %v2390_v54 = vpop.f32.mrf.mxu1  ;;  %v9132_v27 = vpop.eup %9131  ;;  %v2792_v18 = vsel %vm2789_vm9, %v2791_v24, %v2787_v38  ;;  %v11338_v20 = vadd.f32 1.0, %v9130_v12  ;;  %vm2799_vm15 = vweird.f32 %v11314_v48  ;;  %v9319_v38 = vld [vmem:[#allocation2 + $0x10] sm:$0xff] }
 0x395   : > { %v2872_v9 = vmul.f32 %v9132_v27, %v2853_v58  ;;  %v2796_v31 = vsub.f32 1.0, %v2795_v47  ;;  %v2937_v15 = vmul.f32 %v9126_v5, %v2792_v18  ;;  %3212 = vrot.lane.b32.xlu0 %v11318_v55, %s9358_s26  ;;  %vm2877_vm10 = vweird.f32 %v9132_v27  ;;  %vm11366_vm9 = vmor %vm2799_vm15, %vm2800_vm14  ;;  %v11387_v5 = vld [vmem:[#allocation3 + $0x20] sm:$0xff] }
 0x396   : > { %9133 = vrcp.f32 %v11338_v20  ;;  %vm2878_vm12 = vmor %vm2876_vm11, %vm2877_vm10  ;;  %v2895_v60 = vand.u32 2147483647, %v11338_v20  ;;  %v2897_v44 = vand.u32 2147483648, %v11338_v20  ;;  %vm2804_vm11 = vcmp.eq.f32.partialorder %v2803_v1, 8.507059e+37 }
 0x397   : > { %v2873_v62 = vsub.f32 1.0, %v2872_v9  ;;  %v2797_v53 = vmul.f32 %v11330_v13, %v2796_v31  ;;  %9135 = vtanh.f32 %v2926_v50  ;;  %v2806_v58 = vor.u32 1.1754944e-38, %v2805_v30 }
 0x398   : > { %v2898_v28 = vor.u32 1.1754944e-38, %v2897_v44  ;;  %vm2896_vm14 = vcmp.eq.f32.partialorder %v2895_v60, 8.507059e+37  ;;  %v2388_v60 = vadd.f32 %v11321_v37, %v11336_v34 }
 0x399   : > { %v2874_v26 = vmul.f32 %v9132_v27, %v2873_v62  ;;  %v2798_v6 = vadd.f32 %v11330_v13, %v2797_v53 }
 0x39a   : > { %v11350_v41 = vpop.f32.mrf.mxu3  ;;  %3104 = vrot.lane.b32.xlu1 %v11296_v52, %s9354_s22 }
 0x39b   : > { %v2875_v56 = vadd.f32 %v9132_v27, %v2874_v26  ;;  %v2346_v3 = vpop.f32.mrf.mxu0  ;;  %v2802_v46 = vsel %vm11366_vm9, %v11330_v13, %v2798_v6  ;;  %v2432_v21 = vadd.f32 %v11350_v41, %v2388_v60 }
 0x39c   : > { %v11354_v19 = vpop.f32.mrf.mxu1  ;;  %v9134_v32 = vpop.eup %9133  ;;  %v2391_v63 = vadd.f32 %v2390_v54, %v2346_v3  ;;  %v2807_v13 = vsel %vm2804_vm11, %v2806_v58, %v2802_v46 }
 0x39d   : > { %v2879_v49 = vsel %vm2878_vm12, %v9132_v27, %v2875_v56  ;;  %v2887_v29 = vmul.f32 %v9134_v32, %v11338_v20  ;;  %3164 = vrot.lane.b32.xlu0 %v11318_v55, %s9360_s18  ;;  %vm2892_vm10 = vweird.f32 %v9134_v32  ;;  %vm2891_vm12 = vweird.f32 %v11338_v20  ;;  %v9136_v12 = vpop.eup %9135  ;;  %v11423_v56 = vpop.permute.xlu2 %3204 }
 0x39e   : > { %v2884_v0 = vsel %vm2881_vm13, %v2883_v11, %v2879_v49  ;;  %vm2893_vm13 = vmor %vm2891_vm12, %vm2892_vm10  ;;  %v2938_v27 = vmul.f32 %v9136_v12, %v2807_v13 }
 0x39f   : > { %v2933_v61 = vmul.f32 %v9318_v7, %v2884_v0  ;;  %v2888_v22 = vsub.f32 1.0, %v2887_v29 }
 0x3a1   : > { %v11370_v57 = vadd.f32 %v2937_v15, %v2933_v61  ;;  %v2889_v45 = vmul.f32 %v9134_v32, %v2888_v22 }
 0x3a2   : > { %v2434_v48 = vpop.f32.mrf.mxu3  ;;  %3056 = vrot.lane.b32.xlu1 %v11296_v52, %s9356_s24 }
 0x3a3   : > { %2945 = vst [vmem:[#allocation4 + $0x28] sm:$0xff] %v11370_v57  ;;  %v2890_v33 = vadd.f32 %v9134_v32, %v2889_v45  ;;  %v11379_v14 = vadd.f32 %v2434_v48, %v2391_v63  ;;  %v11381_v36 = vpop.f32.mrf.mxu0  ;;  %3258 = vrot.lane.b32.xlu2 %v11370_v57, %s9355_s23  ;;  %v3150_v42 = vpack.c.bf16 %v11370_v57, %v11169_v51 }
 0x3a4   : > { %v2395_v35 = vpop.f32.mrf.mxu1  ;;  %v4207_v24 = vpack.c.bf16 %v11370_v57, %v11387_v5 }
 0x3a5   : > { %v2894_v25 = vsel %vm2893_vm13, %v9134_v32, %v2890_v33  ;;  %3154 = vst [vmem:[#allocation7 + $0x90] sm:$0xff] %v3150_v42  ;;  %v11429_v29 = vpop.permute.xlu2 %3156 }
 0x3a6   : > { %v2899_v47 = vsel %vm2896_vm14, %v2898_v28, %v2894_v25  ;;  %4215 = vst [vmem:[#allocation7 + $0x120] sm:$0xff] %v4207_v24  ;;  %v11403_v31 = vpop.permute.xlu0 %3254 }
 0x3a7   : > { %v2934_v54 = vmul.f32 %v9319_v38, %v2899_v47 }
 0x3a9   : > { %v11392_v18 = vadd.f32 %v2938_v27, %v2934_v54 }
 0x3aa   : > { %v11394_v51 = vpop.f32.mrf.mxu3  ;;  %3008 = vrot.lane.b32.xlu1 %v11296_v52, %s9359_s29 }
 0x3ab   : > { %2946 = vst [vmem:[#allocation4 + $0x30] sm:$0xff] %v11392_v18  ;;  %v2351_v20 = vpop.f32.mrf.mxu0  ;;  %3210 = vrot.lane.b32.xlu2 %v11370_v57, %s9358_s26 }
 0x3ac   : > { %v11399_v43 = vpop.f32.mrf.mxu1  ;;  %v2396_v9 = vadd.f32 %v2395_v35, %v2351_v20 }
 0x3ad   : > { %v11441_v58 = vpop.permute.xlu2 %3100 }
 0x3ae   : > { %v11419_v2 = vpop.permute.xlu0 %3206 }
 0x3b2   : > { %v2439_v15 = vpop.f32.mrf.mxu3  ;;  %2960 = vrot.lane.b32.xlu1 %v11296_v52, %s9361_s13 }
 0x3b3   : > { %v11407_v39 = vadd.f32 %v2439_v15, %v2396_v9  ;;  %v11409_v10 = vpop.f32.mrf.mxu0  ;;  %3162 = vrot.lane.b32.xlu2 %v11370_v57, %s9360_s18 }
 0x3b4   : > { %v2400_v62 = vpop.f32.mrf.mxu1 }
 0x3b5   : > { %v11447_v12 = vpop.permute.xlu2 %3052 }
 0x3b6   : > { %v11427_v50 = vpop.permute.xlu0 %3158 }
 0x3ba   : > { %v11415_v17 = vpop.f32.mrf.mxu3  ;;  %3304 = vrot.lane.b32.xlu1 %v11296_v52, %s9357_s25 }
 0x3bb   : > { %v2356_v26 = vpop.f32.mrf.mxu0  ;;  %3106 = vrot.lane.b32.xlu2 %v11370_v57, %s9354_s22 }
 0x3bc   : > { %v2401_v53 = vadd.f32 %v2400_v62, %v2356_v26  ;;  %v2402_v59 = vpop.f32.mrf.mxu1 }
 0x3be   : > { %v11434_v30 = vpop.permute.xlu0 %3102 }
 0x3c2   : > { %v2444_v3 = vpop.f32.mrf.mxu3 }
 0x3c3   : > { %v2445_v32 = vadd.f32 %v2444_v3, %v2401_v53  ;;  %v2358_v11 = vpop.f32.mrf.mxu0  ;;  %3058 = vrot.lane.b32.xlu2 %v11370_v57, %s9356_s24 }
 0x3c4   : > { %v2405_v63 = vpop.f32.mrf.mxu1  ;;  %v2403_v52 = vadd.f32 %v2402_v59, %v2358_v11 }
 0x3c6   : > { %v11443_v42 = vpop.permute.xlu0 %3054 }
 0x3ca   : > { %v2446_v49 = vpop.f32.mrf.mxu3 }
 0x3cb   : > { %v2447_v6 = vadd.f32 %v2446_v49, %v2403_v52  ;;  %v2361_v0 = vpop.f32.mrf.mxu0  ;;  %3010 = vrot.lane.b32.xlu2 %v11370_v57, %s9359_s29 }
 0x3cc   : > { %v2406_v61 = vadd.f32 %v2405_v63, %v2361_v0  ;;  %v2407_v22 = vpop.f32.mrf.mxu1  ;;  %v11454_v0 = vpop.permute.xlu2 %3004 }
 0x3cd   : > { %v2535_v1 = vadd.f32 %v2447_v6, %v11341_v8 }
 0x3ce   : > { %v11450_v62 = vpop.permute.xlu0 %3006 }
 0x3cf   : > { %v7809_v7 = vmul.f32 -1.442695, %v2535_v1  ;;  %v2393_v1 = vadd.f32 %v11354_v19, %v11381_v36 }
 0x3d1   : > { %9137 = vpow2.f32 %v7809_v7 }
 0x3d2   : > { %v2449_v44 = vpop.f32.mrf.mxu3 }
 0x3d3   : > { %v2450_v45 = vadd.f32 %v2449_v44, %v2406_v61  ;;  %v2363_v46 = vpop.f32.mrf.mxu0  ;;  %2962 = vrot.lane.b32.xlu2 %v11370_v57, %s9361_s13 }
 0x3d4   : > { %v2408_v13 = vadd.f32 %v2407_v22, %v2363_v46  ;;  %v2410_v37 = vpop.f32.mrf.mxu1 }
 0x3d5   : > { %v2623_v8 = vadd.f32 %v2450_v45, %v2432_v21  ;;  %v2437_v21 = vadd.f32 %v11394_v51, %v2393_v1 }
 0x3d7   : > { %v9138_v48 = vpop.eup %9137  ;;  %v2627_v33 = vadd.f32 1.0, %v2623_v8 }
 0x3d8   : > { %v2551_v35 = vadd.f32 1.0, %v9138_v48  ;;  %v11459_v48 = vpop.permute.xlu0 %2958 }
 0x3d9   : > { %v7813_v28 = vmul.f32 -1.442695, %v2627_v33 }
 0x3da   : > { %9139 = vrcp.f32 %v2551_v35  ;;  %v2451_v34 = vpop.f32.mrf.mxu3  ;;  %v2608_v53 = vand.u32 2147483648, %v2551_v35  ;;  %v2606_v63 = vand.u32 2147483647, %v2551_v35  ;;  %vm2602_vm9 = vweird.f32 %v2551_v35 }
 0x3db   : > { %9141 = vpow2.f32 %v7813_v28  ;;  %v2452_v41 = vadd.f32 %v2451_v34, %v2408_v13  ;;  %v2366_v24 = vpop.f32.mrf.mxu0  ;;  %3306 = vrot.lane.b32.xlu2 %v11370_v57, %s9357_s25 }
 0x3dc   : > { %v2411_v25 = vadd.f32 %v2410_v37, %v2366_v24  ;;  %v2412_v59 = vpop.f32.mrf.mxu1  ;;  %v2609_v49 = vor.u32 1.1754944e-38, %v2608_v53  ;;  %vm2607_vm11 = vcmp.eq.f32.partialorder %v2606_v63, 8.507059e+37  ;;  %v2523_v24 = vld [vmem:[#allocation4 + $0x20] sm:$0xff] }
 0x3dd   : > { %v2715_v47 = vadd.f32 %v2452_v41, %v11379_v14 }
 0x3df   : > { %9143 = vtanh.f32 %v2715_v47  ;;  %v11461_v47 = vpop.permute.xlu2 %2956 }
 0x3e0   : > { %v9140_v38 = vpop.eup %9139 }
 0x3e1   : > { %v9142_v54 = vpop.eup %9141  ;;  %v2598_v27 = vmul.f32 %v9140_v38, %v2551_v35  ;;  %vm2603_vm15 = vweird.f32 %v9140_v38 }
 0x3e2   : > { %v2643_v20 = vadd.f32 1.0, %v9142_v54  ;;  %v2454_v9 = vpop.f32.mrf.mxu3  ;;  %vm2604_vm10 = vmor %vm2602_vm9, %vm2603_vm15 }
 0x3e3   : > { %v2599_v15 = vsub.f32 1.0, %v2598_v27  ;;  %v2455_v26 = vadd.f32 %v2454_v9, %v2411_v25  ;;  %v2368_v3 = vpop.f32.mrf.mxu0 }
 0x3e4   : > { %9145 = vrcp.f32 %v2643_v20  ;;  %v2413_v61 = vadd.f32 %v2412_v59, %v2368_v3  ;;  %v2698_v35 = vand.u32 2147483647, %v2643_v20  ;;  %v2700_v28 = vand.u32 2147483648, %v2643_v20  ;;  %v2415_v13 = vpop.f32.mrf.mxu1  ;;  %v11466_v59 = vpop.permute.xlu0 %3302 }
 0x3e5   : > { %v2600_v11 = vmul.f32 %v9140_v38, %v2599_v15  ;;  %v11452_v52 = vadd.f32 %v2455_v26, %v2445_v32  ;;  %v9144_v6 = vpop.eup %9143  ;;  %vm2694_vm13 = vweird.f32 %v2643_v20 }
 0x3e6   : > { %v2701_v51 = vor.u32 1.1754944e-38, %v2700_v28  ;;  %vm2699_vm15 = vcmp.eq.f32.partialorder %v2698_v35, 8.507059e+37 }
 0x3e7   : > { %14632 = vst [vmem:[#allocation36_spill] sm:$0xff] %v11452_v52  ;;  %v2601_v14 = vadd.f32 %v9140_v38, %v2600_v11  ;;  %v2981_v52 = vld [vmem:[%s14471_s2 + $0x8] sm:$0xff] }
 0x3e9   : > { %v2605_v7 = vsel %vm2604_vm10, %v9140_v38, %v2601_v14 }
 0x3ea   : > { %v9146_v22 = vpop.eup %9145  ;;  %v2610_v60 = vsel %vm2607_vm11, %v2609_v49, %v2605_v7  ;;  %v2456_v44 = vpop.f32.mrf.mxu3  ;;  %v7862_v49 = vld [vmem:[%s14471_s2 + $0x380] sm:$0xff]  ;;  %v7863_v7 = vld [vmem:[%s14471_s2 + $0x388] sm:$0xff] }
 0x3eb   : > { %v2690_v32 = vmul.f32 %v9146_v22, %v2643_v20  ;;  %v2727_v45 = vmul.f32 %v9144_v6, %v2610_v60  ;;  %v2457_v46 = vadd.f32 %v2456_v44, %v2413_v61  ;;  %v2371_v37 = vpop.f32.mrf.mxu0  ;;  %vm2695_vm12 = vweird.f32 %v9146_v22 }
 0x3ec   : > { %v2416_v34 = vadd.f32 %v2415_v13, %v2371_v37  ;;  %vm2696_vm14 = vmor %vm2694_vm13, %vm2695_vm12  ;;  %v2417_v28 = vpop.f32.mrf.mxu1 }
 0x3ed   : > { %v2691_v8 = vsub.f32 1.0, %v2690_v32  ;;  %v2747_v33 = vadd.f32 %v2457_v46, %v2437_v21 }
 0x3ef   : > { %v2692_v19 = vmul.f32 %v9146_v22, %v2691_v8  ;;  %v7817_v36 = vmul.f32 -1.442695, %v2747_v33 }
 0x3f1   : > { %v2693_v41 = vadd.f32 %v9146_v22, %v2692_v19  ;;  %9147 = vpow2.f32 %v7817_v36 }
 0x3f2   : > { %v2459_v25 = vpop.f32.mrf.mxu3 }
 0x3f3   : > { %v2697_v38 = vsel %vm2696_vm14, %v9146_v22, %v2693_v41  ;;  %v2460_v54 = vadd.f32 %v2459_v25, %v2416_v34  ;;  %v2373_v32 = vpop.f32.mrf.mxu0  ;;  %v2398_v34 = vadd.f32 %v11399_v43, %v11409_v10  ;;  %v7855_v25 = vld [vmem:[%s14471_s2 + $0x308] sm:$0xff] }
 0x3f4   : > { %v2702_v27 = vsel %vm2699_vm15, %v2701_v51, %v2697_v38  ;;  %v3257_v3 = vpop.permute.xlu1 %3256  ;;  %v2418_v19 = vadd.f32 %v2417_v28, %v2373_v32  ;;  %v7854_v51 = vld [vmem:[%s14471_s2 + $0x300] sm:$0xff]  ;;  %v7847_v32 = vld [vmem:[%s14471_s2 + $0x288] sm:$0xff] }
 0x3f5   : > { %v2723_v9 = vmul.f32 %v2702_v27, %v2523_v24  ;;  %v2835_v15 = vadd.f32 %v2460_v54, %v11407_v39  ;;  %v11480_v39 = vpop.permute.xlu2 %3300  ;;  %v3272_v1 = vsel %vm1185_vm1, %v11413_v4, %v3257_v3  ;;  %v2442_v27 = vadd.f32 %v11415_v17, %v2398_v34 }
 0x3f7   : > { %v9148_v26 = vpop.eup %9147  ;;  %v11464_v53 = vadd.f32 %v2727_v45, %v2723_v9  ;;  %v2839_v20 = vadd.f32 1.0, %v2835_v15  ;;  %v3284_v45 = vmul.f32 %v7862_v49, %v3272_v1 }
 0x3f8   : > { %v11468_v11 = vadd.f32 1.0, %v9148_v26 }
 0x3f9   : > { %2735 = vst [vmem:[#allocation4 + $0x20] sm:$0xff] %v11464_v53  ;;  %v7821_v63 = vmul.f32 -1.442695, %v2839_v20  ;;  %3112 = vrot.lane.b32.xlu0 %v11464_v53, %s9354_s22  ;;  %v3149_v14 = vpack.c.bf16 %v11464_v53, %v11318_v55  ;;  %3264 = vrot.lane.b32.xlu2 %v11464_v53, %s9355_s23 }
 0x3fa   : > { %9149 = vrcp.f32 %v11468_v11  ;;  %3216 = vrot.lane.b32.xlu1 %v11464_v53, %s9358_s26  ;;  %v2461_v13 = vpop.f32.mrf.mxu3  ;;  %v2820_v49 = vand.u32 2147483648, %v11468_v11  ;;  %vm2814_vm10 = vweird.f32 %v11468_v11 }
 0x3fb   : > { %9151 = vpow2.f32 %v7821_v63  ;;  %3153 = vst [vmem:[#allocation7 + $0x88] sm:$0xff] %v3149_v14  ;;  %v2462_v41 = vadd.f32 %v2461_v13, %v2418_v19  ;;  %v2818_v14 = vand.u32 2147483647, %v11468_v11 }
 0x3fc   : > { %v3209_v8 = vpop.permute.xlu1 %3208  ;;  %v2821_v28 = vor.u32 1.1754944e-38, %v2820_v49 }
 0x3fd   : > { %v11506_v36 = vpop.permute.xlu2 %3258  ;;  %v3224_v24 = vsel %vm1087_vm4, %v11423_v56, %v3209_v8  ;;  %v2927_v26 = vadd.f32 %v2462_v41, %v2442_v27  ;;  %vm2819_vm13 = vcmp.eq.f32.partialorder %v2818_v14, 8.507059e+37  ;;  %v9320_v27 = vld [vmem:[#allocation2 + $0x38] sm:$0xff] }
 0x3fe   : > { %v3236_v10 = vmul.f32 %v7854_v51, %v3224_v24 }
 0x3ff   : > { %v11491_v61 = vpop.permute.xlu0 %3260 }
 0x400   : > { %v11493_v22 = vpop.eup %9149  ;;  %v3270_v60 = vsel %vm1185_vm1, %v3257_v3, %v11491_v61 }
 0x401   : > { %v9152_v44 = vpop.eup %9151  ;;  %v2810_v21 = vmul.f32 %v11493_v22, %v11468_v11  ;;  %v3285_v46 = vmul.f32 %v7863_v7, %v3270_v60  ;;  %3064 = vrot.lane.b32.xlu0 %v11464_v53, %s9356_s24  ;;  %3108 = vrot.lane.b32.xlu2 %v11318_v55, %s9354_s22  ;;  %vm2815_vm9 = vweird.f32 %v11493_v22 }
 0x402   : > { %v2855_v33 = vadd.f32 1.0, %v9152_v44  ;;  %3262 = vrot.lane.b32.xlu1 %v11392_v18, %s9355_s23  ;;  %vm11535_vm11 = vmor %vm2814_vm10, %vm2815_vm9  ;;  %v7846_v44 = vld [vmem:[%s14471_s2 + $0x280] sm:$0xff]  ;;  %vm14547_vm10 = vcmask 130048  }
 0x403   : > { %v2811_v35 = vsub.f32 1.0, %v2810_v21  ;;  %v3292_v37 = vpack.c.bf16 %v3285_v46, %v3284_v45 }
 0x404   : > { %9153 = vrcp.f32 %v2855_v33  ;;  %v3161_v63 = vpop.permute.xlu1 %3160  ;;  %v2912_v7 = vand.u32 2147483648, %v2855_v33  ;;  %v2910_v45 = vand.u32 2147483647, %v2855_v33  ;;  %vm2906_vm14 = vweird.f32 %v2855_v33 }
 0x405   : > { %3296 = vst [vmem:[#allocation7 + $0xe0] sm:$0xff] %v3292_v37  ;;  %v2812_v38 = vmul.f32 %v11493_v22, %v2811_v35  ;;  %9155 = vtanh.f32 %v2927_v26  ;;  %v3176_v21 = vsel %vm989_vm7, %v11429_v29, %v3161_v63 }
 0x406   : > { %v3188_v19 = vmul.f32 %v7846_v44, %v3176_v21  ;;  %v2913_v41 = vor.u32 1.1754944e-38, %v2912_v7  ;;  %vm2911_vm9 = vcmp.eq.f32.partialorder %v2910_v45, 8.507059e+37  ;;  %v11616_v21 = vld [vmem:[#allocation3 + $0x8] sm:$0xff] }
 0x407   : > { %v11520_v54 = vpop.permute.xlu0 %3212  ;;  %v2813_v3 = vadd.f32 %v11493_v22, %v2812_v38 }
 0x408   : > { %v3222_v43 = vsel %vm1087_vm4, %v3209_v8, %v11520_v54  ;;  %v11551_v8 = vpop.permute.xlu2 %3210 }
 0x409   : > { %v3237_v9 = vmul.f32 %v7855_v25, %v3222_v43  ;;  %3016 = vrot.lane.b32.xlu0 %v11464_v53, %s9359_s29  ;;  %v2817_v46 = vsel %vm11535_vm11, %v11493_v22, %v2813_v3 }
 0x40a   : > { %v9154_v15 = vpop.eup %9153  ;;  %3214 = vrot.lane.b32.xlu1 %v11392_v18, %s9358_s26  ;;  %v2822_v22 = vsel %vm2819_vm13, %v2821_v28, %v2817_v46 }
 0x40b   : > { %v2902_v20 = vmul.f32 %v9154_v15, %v2855_v33  ;;  %v3244_v17 = vpack.c.bf16 %v3237_v9, %v3236_v10  ;;  %vm2907_vm12 = vweird.f32 %v9154_v15  ;;  %v9156_v25 = vpop.eup %9155 }
 0x40c   : > { %vm2908_vm15 = vmor %vm2906_vm14, %vm2907_vm12  ;;  %v2939_v10 = vmul.f32 %v9156_v25, %v2822_v22  ;;  %v3105_v14 = vpop.permute.xlu1 %3104 }
 0x40d   : > { %v2903_v1 = vsub.f32 1.0, %v2902_v20  ;;  %3248 = vst [vmem:[#allocation7 + $0xc0] sm:$0xff] %v3244_v17  ;;  %v3120_v25 = vsel %vm875_vm0, %v11441_v58, %v3105_v14 }
 0x40f   : > { %v2904_v11 = vmul.f32 %v9154_v15, %v2903_v1  ;;  %v11553_v35 = vpop.permute.xlu0 %3164  ;;  %v11599_v1 = vld [vmem:[#allocation3 + $0x50] sm:$0xff] }
 0x410   : > { %v3174_v13 = vsel %vm989_vm7, %v3161_v63, %v11553_v35  ;;  %v11562_v9 = vpop.permute.xlu2 %3162 }
 0x411   : > { %v2905_v37 = vadd.f32 %v9154_v15, %v2904_v11  ;;  %v3189_v34 = vmul.f32 %v7847_v32, %v3174_v13  ;;  %2968 = vrot.lane.b32.xlu0 %v11464_v53, %s9361_s13  ;;  %v11620_v32 = vld [vmem:[#allocation3 + $0x60] sm:$0xff]  ;;  %v7865_v11 = vld [vmem:[%s14471_s2 + $0x398] sm:$0xff] }
 0x412   : > { %3166 = vrot.lane.b32.xlu1 %v11392_v18, %s9360_s18 }
 0x413   : > { %v2909_v51 = vsel %vm2908_vm15, %v9154_v15, %v2905_v37  ;;  %v3196_v24 = vpack.c.bf16 %v3189_v34, %v3188_v19  ;;  %v11638_v19 = vld [vmem:[#allocation3 + $0x38] sm:$0xff] }
 0x414   : > { %v2914_v38 = vsel %vm2911_vm9, %v2913_v41, %v2909_v51  ;;  %v11604_v7 = vpop.permute.xlu1 %3056 }
 0x415   : > { %v2935_v43 = vmul.f32 %v9320_v27, %v2914_v38  ;;  %3200 = vst [vmem:[#allocation7 + $0xa0] sm:$0xff] %v3196_v24  ;;  %v11660_v24 = vld [vmem:[#allocation3 + $0x30] sm:$0xff] }
 0x416   : > { %v7840_v38 = vld [vmem:[%s14471_s2 + $0x190] sm:$0xff] }
 0x417   : > { %v2943_v33 = vadd.f32 %v2939_v10, %v2935_v43  ;;  %v7838_v43 = vld [vmem:[%s14471_s2 + $0x180] sm:$0xff]  ;;  %v7841_v10 = vld [vmem:[%s14471_s2 + $0x198] sm:$0xff] }
 0x418   : > { %v11574_v3 = vpop.permute.xlu2 %3106 }
 0x419   : > { %2947 = vst [vmem:[#allocation4 + $0x10] sm:$0xff] %v2943_v33  ;;  %3168 = vrot.lane.b32.xlu0 %v11464_v53, %s9360_s18  ;;  %v3151_v26 = vpack.c.bf16 %v2943_v33, %v11392_v18  ;;  %3218 = vrot.lane.b32.xlu2 %v2943_v33, %s9358_s26 }
 0x41a   : > { %3802 = vst [vmem:[#allocation3 + $0x58] sm:$0xff] %v2943_v33  ;;  %3114 = vrot.lane.b32.xlu1 %v2943_v33, %s9354_s22 }
 0x41b   : > { %3155 = vst [vmem:[#allocation7 + $0x98] sm:$0xff] %v3151_v26  ;;  %v7856_v26 = vld [vmem:[%s14471_s2 + $0x310] sm:$0xff] }
 0x41c   : > { %v11614_v44 = vpop.permute.xlu1 %3008 }
 0x420   : > { %v11581_v17 = vpop.permute.xlu2 %3058 }
 0x421   : > { %3266 = vrot.lane.b32.xlu0 %v2943_v33, %s9355_s23  ;;  %3062 = vrot.lane.b32.xlu2 %v11392_v18, %s9356_s24  ;;  %v3814_v15 = vld [vmem:[#allocation3 + $0x58] sm:$0xff] }
 0x422   : > { %3066 = vrot.lane.b32.xlu1 %v2943_v33, %s9356_s24  ;;  %v4208_v20 = vpack.c.bf16 %v3814_v15, %v11392_v18  ;;  %v7857_v15 = vld [vmem:[%s14471_s2 + $0x318] sm:$0xff] }
 0x424   : > { %4216 = vst [vmem:[#allocation7 + $0x128] sm:$0xff] %v4208_v20  ;;  %v11644_v41 = vpop.permute.xlu1 %2960 }
 0x428   : > { %v11587_v63 = vpop.permute.xlu2 %3010 }
 0x429   : > { %3308 = vrot.lane.b32.xlu0 %v11318_v55, %s9357_s25  ;;  %2964 = vrot.lane.b32.xlu2 %v11318_v55, %s9361_s13 }
 0x42a   : > { %3018 = vrot.lane.b32.xlu1 %v2943_v33, %s9359_s29 }
 0x42c   : > { %v11658_v22 = vpop.permute.xlu1 %3304 }
 0x430   : > { %v11595_v49 = vpop.permute.xlu2 %2962 }
 0x431   : > { %3110 = vrot.lane.b32.xlu0 %v11392_v18, %s9354_s22  ;;  %3314 = vrot.lane.b32.xlu2 %v2943_v33, %s9357_s25 }
 0x432   : > { %2970 = vrot.lane.b32.xlu1 %v2943_v33, %s9361_s13 }
 0x438   : > { %v11612_v60 = vpop.permute.xlu2 %3306 }
 0x439   : > { %3012 = vrot.lane.b32.xlu0 %v11318_v55, %s9359_s29  ;;  %4119 = vrot.lane.b32.xlu2 %v11370_v57, %s9354_s22 }
 0x43a   : > { %3310 = vrot.lane.b32.xlu1 %v11392_v18, %s9357_s25 }
 0x441   : > { %2966 = vrot.lane.b32.xlu0 %v11392_v18, %s9361_s13  ;;  %4137 = vrot.lane.b32.xlu2 %v11599_v1, %s9354_s22 }
 0x442   : > { %3170 = vrot.lane.b32.xlu1 %v2943_v33, %s9360_s18 }
 0x449   : > { %4111 = vrot.lane.b32.xlu0 %v11387_v5, %s9354_s22  ;;  %4423 = vrot.lane.b32.xlu2 %v11370_v57, %s9355_s23 }
 0x44a   : > { %3060 = vrot.lane.b32.xlu1 %v11318_v55, %s9356_s24  ;;  %v7864_v55 = vld [vmem:[%s14471_s2 + $0x390] sm:$0xff] }
 0x451   : > { %4121 = vrot.lane.b32.xlu0 %v11616_v21, %s9354_s22  ;;  %4433 = vrot.lane.b32.xlu2 %v11620_v32, %s9355_s23 }
 0x452   : > { %3014 = vrot.lane.b32.xlu1 %v11392_v18, %s9359_s29 }
 0x453   : > { %v3265_v45 = vpop.permute.xlu2 %3264 }
 0x454   : > { %v3268_v46 = vsel %vm1185_vm1, %v11491_v61, %v3265_v45  ;;  %v3274_v28 = vsel %vm1185_vm1, %v3265_v45, %v11413_v4  ;;  %v11648_v61 = vld [vmem:[#allocation3 + $0x70] sm:$0xff]  ;;  %v11654_v4 = vld [vmem:[#allocation3] sm:$0xff] }
 0x455   : > { %v3286_v13 = vmul.f32 %v7864_v55, %v3268_v46  ;;  %v3287_v37 = vmul.f32 %v7865_v11, %v3274_v28 }
 0x457   : > { %v3293_v34 = vpack.c.bf16 %v3287_v37, %v3286_v13 }
 0x459   : > { %3297 = vst [vmem:[#allocation7 + $0xe8] sm:$0xff] %v3293_v34  ;;  %4415 = vrot.lane.b32.xlu0 %v11387_v5, %s9355_s23  ;;  %4133 = vrot.lane.b32.xlu2 %v11638_v19, %s9354_s22 }
 0x45a   : > { %3312 = vrot.lane.b32.xlu1 %v11464_v53, %s9357_s25  ;;  %v7839_v53 = vld [vmem:[%s14471_s2 + $0x188] sm:$0xff] }
 0x45b   : > { %v3109_v51 = vpop.permute.xlu2 %3108  ;;  %v3133_v20 = vmul.f32 %v7839_v53, %v3120_v25 }
 0x45c   : > { %v3118_v27 = vsel %vm875_vm0, %v3105_v14, %v3109_v51 }
 0x45d   : > { %v3134_v14 = vmul.f32 %v7840_v38, %v3118_v27  ;;  %v7866_v27 = vld [vmem:[%s14471_s2 + $0x3a0] sm:$0xff] }
 0x461   : > { %4425 = vrot.lane.b32.xlu0 %v11616_v21, %s9355_s23  ;;  %4429 = vrot.lane.b32.xlu2 %v11648_v61, %s9355_s23 }
 0x462   : > { %4113 = vrot.lane.b32.xlu1 %v11654_v4, %s9354_s22 }
 0x469   : > { %4117 = vrot.lane.b32.xlu0 %v11660_v24, %s9354_s22  ;;  %4023 = vrot.lane.b32.xlu2 %v11370_v57, %s9356_s24 }
 0x46a   : > { %4417 = vrot.lane.b32.xlu1 %v11654_v4, %s9355_s23 }
 0x46b   : > { %v3113_v33 = vpop.permute.xlu0 %3112 }
 0x46c   : > { %v3116_v55 = vsel %vm875_vm0, %v3109_v51, %v3113_v33  ;;  %v3122_v11 = vsel %vm875_vm0, %v3113_v33, %v11441_v58  ;;  %v3217_v45 = vpop.permute.xlu1 %3216  ;;  %v7831_v58 = vld [vmem:[%s14471_s2 + $0x108] sm:$0xff] }
 0x46d   : > { %v3132_v46 = vmul.f32 %v7838_v43, %v3122_v11  ;;  %v3135_v28 = vmul.f32 %v7841_v10, %v3116_v55  ;;  %v3220_v13 = vsel %vm1087_vm4, %v11520_v54, %v3217_v45  ;;  %v3226_v37 = vsel %vm1087_vm4, %v3217_v45, %v11423_v56  ;;  %v7830_v54 = vld [vmem:[%s14471_s2 + $0x100] sm:$0xff] }
 0x46e   : > { %v3238_v34 = vmul.f32 %v7856_v26, %v3220_v13  ;;  %v3239_v53 = vmul.f32 %v7857_v15, %v3226_v37  ;;  %v3072_v56 = vsel %vm777_vm2, %v11447_v12, %v11604_v7  ;;  %v3273_v43 = vsel %vm1185_vm1, %v11403_v31, %v11506_v36  ;;  %v11730_v26 = vld [vmem:[%s14471_s2 + $0x3a8] sm:$0xff] }
 0x46f   : > { %v3140_v25 = vpack.c.bf16 %v3133_v20, %v3132_v46  ;;  %v3141_v38 = vpack.c.bf16 %v3135_v28, %v3134_v14  ;;  %v3085_v14 = vmul.f32 %v7831_v58, %v3072_v56  ;;  %v3288_v45 = vmul.f32 %v7866_v27, %v3273_v43  ;;  %v11743_v13 = vld [vmem:[#allocation3 + $0x48] sm:$0xff]  ;;  %v7860_v27 = vld [vmem:[%s14471_s2 + $0x330] sm:$0xff] }
 0x470   : > { %v3245_v51 = vpack.c.bf16 %v3239_v53, %v3238_v34  ;;  %v3024_v34 = vsel %vm679_vm5, %v11454_v0, %v11614_v44  ;;  %v7822_v53 = vld [vmem:[%s14471_s2 + $0x80] sm:$0xff] }
 0x471   : > { %3144 = vst [vmem:[#allocation7 + $0x60] sm:$0xff] %v3140_v25  ;;  %4421 = vrot.lane.b32.xlu0 %v11660_v24, %s9355_s23  ;;  %4041 = vrot.lane.b32.xlu2 %v11599_v1, %s9356_s24  ;;  %v3225_v25 = vsel %vm1087_vm4, %v11419_v2, %v11551_v8 }
 0x472   : > { %3145 = vst [vmem:[#allocation7 + $0x68] sm:$0xff] %v3141_v38  ;;  %4431 = vrot.lane.b32.xlu1 %v11392_v18, %s9355_s23  ;;  %v7861_v38 = vld [vmem:[%s14471_s2 + $0x338] sm:$0xff] }
 0x473   : > { %3249 = vst [vmem:[#allocation7 + $0xc8] sm:$0xff] %v3245_v51  ;;  %v11725_v10 = vpop.permute.xlu0 %3064  ;;  %v3219_v33 = vpop.permute.xlu2 %3218 }
 0x474   : > { %v3074_v15 = vsel %vm777_vm2, %v11725_v10, %v11447_v12  ;;  %v11736_v20 = vpop.permute.xlu1 %3262  ;;  %v7858_v12 = vld [vmem:[%s14471_s2 + $0x320] sm:$0xff]  ;;  %v3227_v51 = vsel %vm1087_vm4, %v3219_v33, %v11419_v2 }
 0x475   : > { %v3084_v55 = vmul.f32 %v7830_v54, %v3074_v15  ;;  %v3271_v11 = vsel %vm1185_vm1, %v11506_v36, %v11736_v20  ;;  %v7823_v36 = vld [vmem:[%s14471_s2 + $0x88] sm:$0xff] }
 0x476   : > { %v3289_v46 = vmul.f32 %v11730_v26, %v3271_v11  ;;  %v7859_v54 = vld [vmem:[%s14471_s2 + $0x328] sm:$0xff] }
 0x477   : > { %v3092_v28 = vpack.c.bf16 %v3085_v14, %v3084_v55  ;;  %v3037_v14 = vmul.f32 %v7823_v36, %v3024_v34  ;;  %v8000_v34 = vld [vmem:[#allocation7 + $0xe0] sm:$0xf] }
 0x478   : > { %v3294_v37 = vpack.c.bf16 %v3289_v46, %v3288_v45  ;;  %v3240_v45 = vmul.f32 %v7858_v12, %v3225_v25  ;;  %v3243_v46 = vmul.f32 %v7861_v38, %v3227_v51  ;;  %v2980_v25 = vld [vmem:[%s14471_s2] sm:$0xff]  ;;  %v2983_v38 = vld [vmem:[%s14471_s2 + $0x18] sm:$0xff] }
 0x479   : > { %3096 = vst [vmem:[#allocation7 + $0x40] sm:$0xff] %v3092_v28  ;;  %4015 = vrot.lane.b32.xlu0 %v11387_v5, %s9356_s24  ;;  %4327 = vrot.lane.b32.xlu2 %v11370_v57, %s9358_s26 }
 0x47a   : > { %3298 = vst [vmem:[#allocation7 + $0xf0] sm:$0xff] %v3294_v37  ;;  %4109 = vrot.lane.b32.xlu1 %v11743_v13, %s9354_s22 }
 0x47b   : > { %v11774_v58 = vpop.permute.xlu0 %3016  ;;  %v11776_v56 = vpop.permute.xlu2 %3062 }
 0x47c   : > { %v3026_v43 = vsel %vm679_vm5, %v11774_v58, %v11454_v0  ;;  %v3215_v15 = vpop.permute.xlu1 %3214  ;;  %v2976_v0 = vsel %vm582_vm8, %v11461_v47, %v11644_v41 }
 0x47d   : > { %v3036_v2 = vmul.f32 %v7822_v53, %v3026_v43  ;;  %v3221_v55 = vsel %vm1087_vm4, %v3215_v15, %v3219_v33  ;;  %v3223_v11 = vsel %vm1087_vm4, %v11551_v8, %v3215_v15  ;;  %v8920_v53 = vld [vmem:[#allocation7 + $0xe4] sm:$0xf]  ;;  %v3177_v43 = vsel %vm989_vm7, %v11427_v50, %v11562_v9 }
 0x47e   : > { %v3241_v28 = vmul.f32 %v7859_v54, %v3223_v11  ;;  %v3242_v37 = vmul.f32 %v7860_v27, %v3221_v55  ;;  %v7850_v27 = vld [vmem:[%s14471_s2 + $0x2a0] sm:$0xff]  ;;  %v2989_v15 = vmul.f32 %v2981_v52, %v2976_v0  ;;  %v7851_v55 = vld [vmem:[%s14471_s2 + $0x2a8] sm:$0xff] }
 0x47f   : > { %v3044_v40 = vpack.c.bf16 %v3037_v14, %v3036_v2 }
 0x480   : > { %v3246_v36 = vpack.c.bf16 %v3241_v28, %v3240_v45  ;;  %v3247_v33 = vpack.c.bf16 %v3243_v46, %v3242_v37 }
 0x481   : > { %3048 = vst [vmem:[#allocation7 + $0x20] sm:$0xff] %v3044_v40  ;;  %4025 = vrot.lane.b32.xlu0 %v11616_v21, %s9356_s24  ;;  %4337 = vrot.lane.b32.xlu2 %v11620_v32, %s9358_s26  ;;  %v8922_v8 = vld [vmem:[#allocation7 + $0xec] sm:$0xf0]  ;;  %v8002_v12 = vld [vmem:[#allocation7 + $0xf0] sm:$0xf0] }
 0x482   : > { %3250 = vst [vmem:[#allocation7 + $0xd0] sm:$0xff] %v3246_v36  ;;  %4413 = vrot.lane.b32.xlu1 %v11743_v13, %s9355_s23  ;;  %v2982_v40 = vld [vmem:[%s14471_s2 + $0x10] sm:$0xff]  ;;  %v8001_v51 = vor.u32 %v8922_v8, %v8000_v34  ;;  %v8005_v54 = vor.u32 %v8920_v53, %v8002_v12  ;;  %v7984_v12 = vld [vmem:[#allocation7 + $0xc0] sm:$0xf] }
 0x483   : > { %3251 = vst [vmem:[#allocation7 + $0xd8] sm:$0xff] %v3247_v33  ;;  %v2969_v14 = vpop.permute.xlu0 %2968  ;;  %v2965_v2 = vpop.permute.xlu2 %2964 }
 0x484   : > { %v2978_v11 = vsel %vm582_vm8, %v2969_v14, %v11461_v47  ;;  %v2972_v45 = vsel %vm582_vm8, %v2965_v2, %v2969_v14  ;;  %v2974_v46 = vsel %vm582_vm8, %v11644_v41, %v2965_v2  ;;  %3579 = vmatpush.bf16.msrb.mxu2 %v8001_v51  ;;  %3607 = vmatpush.bf16.msrb.mxu0 %v8005_v54  ;;  %v11833_v52 = vpop.permute.xlu1 %3166  ;;  %v8916_v14 = vld [vmem:[#allocation7 + $0xc4] sm:$0xf] }
 0x485   : > { %v2988_v28 = vmul.f32 %v2980_v25, %v2978_v11  ;;  %v2990_v37 = vmul.f32 %v2982_v40, %v2974_v46  ;;  %v2991_v0 = vmul.f32 %v2983_v38, %v2972_v45  ;;  %v3175_v36 = vsel %vm989_vm7, %v11562_v9, %v11833_v52  ;;  %v7848_v9 = vld [vmem:[%s14471_s2 + $0x290] sm:$0xff]  ;;  %v7849_v40 = vld [vmem:[%s14471_s2 + $0x298] sm:$0xff] }
 0x486   : > { %v3192_v47 = vmul.f32 %v7850_v27, %v3177_v43  ;;  %v3193_v33 = vmul.f32 %v7851_v55, %v3175_v36  ;;  %v3121_v54 = vsel %vm875_vm0, %v11434_v30, %v11574_v3  ;;  %v11861_v43 = vld [vmem:[%s14471_s2 + $0x1a0] sm:$0xff] }
 0x487   : > { %v2996_v34 = vpack.c.bf16 %v2989_v15, %v2988_v28  ;;  %v2997_v53 = vpack.c.bf16 %v2991_v0, %v2990_v37 }
 0x488   : > { %v3198_v8 = vpack.c.bf16 %v3193_v33, %v3192_v47  ;;  %v7968_v47 = vld [vmem:[#allocation7 + $0xa0] sm:$0xf]  ;;  %v8912_v33 = vld [vmem:[#allocation7 + $0xa4] sm:$0xf] }
 0x489   : > { %3000 = vst [vmem:[#allocation7] sm:$0xff] %v2996_v34  ;;  %4319 = vrot.lane.b32.xlu0 %v11387_v5, %s9358_s26  ;;  %4037 = vrot.lane.b32.xlu2 %v11638_v19, %s9356_s24  ;;  %v8918_v41 = vld [vmem:[#allocation7 + $0xcc] sm:$0xf0]  ;;  %v7986_v25 = vld [vmem:[#allocation7 + $0xd0] sm:$0xf0]  ;;  %v7843_v5 = vld [vmem:[%s14471_s2 + $0x1a8] sm:$0xff] }
 0x48a   : > { %3001 = vst [vmem:[#allocation7 + $0x8] sm:$0xff] %v2997_v53  ;;  %4017 = vrot.lane.b32.xlu1 %v11654_v4, %s9356_s24  ;;  %v7985_v38 = vor.u32 %v8918_v41, %v7984_v12  ;;  %v7989_v51 = vor.u32 %v8916_v14, %v7986_v25  ;;  %v3137_v37 = vmul.f32 %v7843_v5, %v3121_v54 }
 0x48b   : > { %3202 = vst [vmem:[#allocation7 + $0xb0] sm:$0xff] %v3198_v8  ;;  %v3169_v27 = vpop.permute.xlu0 %3168  ;;  %v11869_v55 = vpop.permute.xlu2 %3314  ;;  %v7836_v8 = vld [vmem:[%s14471_s2 + $0x130] sm:$0xff]  ;;  %v3071_v12 = vsel %vm777_vm2, %v11581_v17, %v11776_v56 }
 0x48c   : > { %v3172_v15 = vsel %vm989_vm7, %v11553_v35, %v3169_v27  ;;  %v3178_v2 = vsel %vm989_vm7, %v3169_v27, %v11429_v29  ;;  %3580 = vmatpush.bf16.msrb.mxu2 %v7985_v38  ;;  %3608 = vmatpush.bf16.msrb.mxu0 %v7989_v51  ;;  %v11871_v11 = vpop.permute.xlu1 %3114  ;;  %v7868_v29 = vld [vmem:[%s14471_s2 + $0x3b0] sm:$0xff]  ;;  %v7835_v38 = vld [vmem:[%s14471_s2 + $0x128] sm:$0xff]  ;;  %v3073_v51 = vsel %vm777_vm2, %v11443_v42, %v11581_v17  ;;  %v11916_v27 = vld [vmem:[%s14471_s2 + $0x120] sm:$0xff] }
 0x48d   : > { %v3190_v45 = vmul.f32 %v7848_v9, %v3172_v15  ;;  %v3191_v46 = vmul.f32 %v7849_v40, %v3178_v2  ;;  %v3123_v28 = vsel %vm875_vm0, %v11871_v11, %v11434_v30  ;;  %v7869_v30 = vld [vmem:[%s14471_s2 + $0x3b8] sm:$0xff]  ;;  %v8910_v40 = vld [vmem:[#allocation7 + $0x8c] sm:$0xf0]  ;;  %v7954_v2 = vld [vmem:[#allocation7 + $0x90] sm:$0xf0] }
 0x48e   : > { %v3136_v35 = vmul.f32 %v11861_v43, %v3123_v28  ;;  %v7837_v9 = vld [vmem:[%s14471_s2 + $0x138] sm:$0xff]  ;;  %v3090_v28 = vmul.f32 %v7836_v8, %v3071_v12 }
 0x48f   : > { %v3197_v0 = vpack.c.bf16 %v3191_v46, %v3190_v45 }
 0x490   : > { %v3142_v36 = vpack.c.bf16 %v3137_v37, %v3136_v35 }
 0x491   : > { %3201 = vst [vmem:[#allocation7 + $0xa8] sm:$0xff] %v3197_v0  ;;  %4329 = vrot.lane.b32.xlu0 %v11616_v21, %s9358_s26  ;;  %4333 = vrot.lane.b32.xlu2 %v11648_v61, %s9358_s26 }
 0x492   : > { %3146 = vst [vmem:[#allocation7 + $0x70] sm:$0xff] %v3142_v36  ;;  %4321 = vrot.lane.b32.xlu1 %v11654_v4, %s9358_s26  ;;  %v8914_v34 = vld [vmem:[#allocation7 + $0xac] sm:$0xf0]  ;;  %v7970_v53 = vld [vmem:[#allocation7 + $0xb0] sm:$0xf0] }
 0x493   : > { %v3267_v14 = vpop.permute.xlu0 %3266  ;;  %v7969_v41 = vor.u32 %v8914_v34, %v7968_v47  ;;  %v7973_v25 = vor.u32 %v8912_v33, %v7970_v53  ;;  %v11921_v37 = vpop.permute.xlu2 %4119  ;;  %v8908_v36 = vld [vmem:[#allocation7 + $0x84] sm:$0xf]  ;;  %v3089_v47 = vmul.f32 %v7835_v38, %v3073_v51  ;;  %v7936_v53 = vld [vmem:[#allocation7 + $0x60] sm:$0xf]  ;;  %v7827_v38 = vld [vmem:[%s14471_s2 + $0xa8] sm:$0xff]  ;;  %v3025_v51 = vsel %vm679_vm5, %v11450_v62, %v11587_v63 }
 0x494   : > { %v3269_v5 = vsel %vm1185_vm1, %v11736_v20, %v3267_v14  ;;  %v3275_v54 = vsel %vm1185_vm1, %v3267_v14, %v11403_v31  ;;  %v3067_v15 = vpop.permute.xlu1 %3066  ;;  %v7952_v20 = vld [vmem:[#allocation7 + $0x80] sm:$0xf]  ;;  %v8904_v14 = vld [vmem:[#allocation7 + $0x64] sm:$0xf] }
 0x495   : > { %v3290_v45 = vmul.f32 %v7868_v29, %v3269_v5  ;;  %v3291_v46 = vmul.f32 %v7869_v30, %v3275_v54  ;;  %3581 = vmatpush.bf16.msrb.mxu2 %v7969_v41  ;;  %3609 = vmatpush.bf16.msrb.mxu0 %v7973_v25  ;;  %v3069_v17 = vsel %vm777_vm2, %v11776_v56, %v3067_v15  ;;  %v7871_v25 = vld [vmem:[%s14471_s2 + $0x408] sm:$0xff]  ;;  %v11955_v5 = vld [vmem:[%s14471_s2 + $0xa0] sm:$0xff] }
 0x496   : > { %v3075_v31 = vsel %vm777_vm2, %v3067_v15, %v11443_v42  ;;  %v3091_v35 = vmul.f32 %v7837_v9, %v3069_v17  ;;  %v7953_v0 = vor.u32 %v8910_v40, %v7952_v20  ;;  %v7957_v30 = vor.u32 %v8908_v36, %v7954_v2  ;;  %v7870_v42 = vld [vmem:[%s14471_s2 + $0x400] sm:$0xff]  ;;  %v7844_v36 = vld [vmem:[%s14471_s2 + $0x1b0] sm:$0xff] }
 0x497   : > { %v3295_v29 = vpack.c.bf16 %v3291_v46, %v3290_v45  ;;  %v3088_v33 = vmul.f32 %v11916_v27, %v3075_v31  ;;  %v3320_v41 = vsel %vm1283_vm3, %v11480_v39, %v11658_v22  ;;  %v3041_v46 = vmul.f32 %v7827_v38, %v3025_v51 }
 0x498   : > { %v3095_v34 = vpack.c.bf16 %v3091_v35, %v3090_v28  ;;  %v3332_v2 = vmul.f32 %v7870_v42, %v3320_v41  ;;  %v8008_v35 = vld [vmem:[#allocation7 + $0xe8] sm:$0xf] }
 0x499   : > { %3299 = vst [vmem:[#allocation7 + $0xf8] sm:$0xff] %v3295_v29  ;;  %v3094_v56 = vpack.c.bf16 %v3089_v47, %v3088_v33  ;;  %3582 = vmatpush.bf16.msrb.mxu2 %v7953_v0  ;;  %3610 = vmatpush.bf16.msrb.mxu0 %v7957_v30  ;;  %v8906_v8 = vld [vmem:[#allocation7 + $0x6c] sm:$0xf0]  ;;  %v7938_v12 = vld [vmem:[#allocation7 + $0x70] sm:$0xf0]  ;;  %v7845_v33 = vld [vmem:[%s14471_s2 + $0x1b8] sm:$0xff] }
 0x49a   : > { %3099 = vst [vmem:[#allocation7 + $0x58] sm:$0xff] %v3095_v34  ;;  %4021 = vrot.lane.b32.xlu0 %v11660_v24, %s9356_s24  ;;  %3927 = vrot.lane.b32.xlu2 %v11370_v57, %s9359_s29  ;;  %v7937_v9 = vor.u32 %v8906_v8, %v7936_v53  ;;  %v7941_v40 = vor.u32 %v8904_v14, %v7938_v12  ;;  %v7920_v0 = vld [vmem:[#allocation7 + $0x40] sm:$0xf]  ;;  %v8900_v29 = vld [vmem:[#allocation7 + $0x44] sm:$0xf]  ;;  %v2985_v53 = vld [vmem:[%s14471_s2 + $0x28] sm:$0xff] }
 0x49b   : > { %3098 = vst [vmem:[#allocation7 + $0x50] sm:$0xff] %v3094_v56  ;;  %4335 = vrot.lane.b32.xlu1 %v11392_v18, %s9358_s26  ;;  %v11950_v57 = vpop.permute.xlu0 %3308  ;;  %v11968_v28 = vpop.permute.xlu2 %4137  ;;  %v2977_v14 = vsel %vm582_vm8, %v11459_v48, %v11595_v49  ;;  %v7992_v42 = vld [vmem:[#allocation7 + $0xc8] sm:$0xf] }
 0x49c   : > { %v3318_v54 = vsel %vm1283_vm3, %v11658_v22, %v11950_v57  ;;  %v11961_v15 = vpop.permute.xlu1 %3018 }
 0x49d   : > { %v3333_v45 = vmul.f32 %v7871_v25, %v3318_v54  ;;  %v3027_v18 = vsel %vm679_vm5, %v11961_v15, %v11450_v62  ;;  %3583 = vmatpush.bf16.msrb.mxu2 %v7937_v9  ;;  %3611 = vmatpush.bf16.msrb.mxu0 %v7941_v40  ;;  %v8919_v62 = vld [vmem:[#allocation7 + $0xd4] sm:$0xf0] }
 0x49e   : > { %v3040_v17 = vmul.f32 %v11955_v5, %v3027_v18  ;;  %v7993_v40 = vor.u32 %v8919_v62, %v7992_v42  ;;  %v3321_v62 = vsel %vm1283_vm3, %v11466_v59, %v11612_v60 }
 0x49f   : > { %v3340_v20 = vpack.c.bf16 %v3333_v45, %v3332_v2  ;;  %v2993_v2 = vmul.f32 %v2985_v53, %v2977_v14  ;;  %v7875_v53 = vld [vmem:[%s14471_s2 + $0x428] sm:$0xff]  ;;  %v7876_v14 = vld [vmem:[%s14471_s2 + $0x430] sm:$0xff] }
 0x4a0   : > { %v3046_v31 = vpack.c.bf16 %v3041_v46, %v3040_v17  ;;  %v8923_v22 = vld [vmem:[#allocation7 + $0xf4] sm:$0xf0]  ;;  %v7904_v46 = vld [vmem:[#allocation7 + $0x20] sm:$0xf]  ;;  %v8896_v17 = vld [vmem:[#allocation7 + $0x24] sm:$0xf] }
 0x4a1   : > { %3344 = vst [vmem:[#allocation7 + $0x100] sm:$0xff] %v3340_v20  ;;  %v8009_v47 = vor.u32 %v8923_v22, %v8008_v35  ;;  %v12013_v22 = vld [vmem:[#allocation4 + $0x28] sm:$0xff] }
 0x4a2   : > { %3050 = vst [vmem:[#allocation7 + $0x30] sm:$0xff] %v3046_v31  ;;  %4325 = vrot.lane.b32.xlu0 %v11660_v24, %s9358_s26  ;;  %3945 = vrot.lane.b32.xlu2 %v11599_v1, %s9359_s29  ;;  %v8902_v30 = vld [vmem:[#allocation7 + $0x4c] sm:$0xf0]  ;;  %v7922_v34 = vld [vmem:[#allocation7 + $0x50] sm:$0xf0]  ;;  %v2984_v1 = vld [vmem:[%s14471_s2 + $0x20] sm:$0xff] }
 0x4a3   : > { %4013 = vrot.lane.b32.xlu1 %v11743_v13, %s9356_s24  ;;  %v3111_v56 = vpop.permute.xlu0 %3110  ;;  %3635 = vmatpush.bf16.msrb.mxu3 %v8009_v47  ;;  %v7921_v8 = vor.u32 %v8902_v30, %v7920_v0  ;;  %v7925_v12 = vor.u32 %v8900_v29, %v7922_v34  ;;  %v12007_v35 = vpop.permute.xlu2 %4423  ;;  %v7824_v0 = vld [vmem:[%s14471_s2 + $0x90] sm:$0xff]  ;;  %v3323_v30 = vsel %vm1283_vm3, %v11869_v55, %v11466_v59 }
 0x4a4   : > { %v3117_v41 = vsel %vm875_vm0, %v3111_v56, %v11871_v11  ;;  %v3119_v25 = vsel %vm875_vm0, %v11574_v3, %v3111_v56  ;;  %v11998_v9 = vpop.permute.xlu1 %2970  ;;  %v7874_v3 = vld [vmem:[%s14471_s2 + $0x420] sm:$0xff] }
 0x4a5   : > { %v3138_v38 = vmul.f32 %v7844_v36, %v3119_v25  ;;  %v3139_v51 = vmul.f32 %v7845_v33, %v3117_v41  ;;  %v2979_v54 = vsel %vm582_vm8, %v11998_v9, %v11459_v48  ;;  %3584 = vmatpush.bf16.msrb.mxu2 %v7921_v8  ;;  %3612 = vmatpush.bf16.msrb.mxu0 %v7925_v12  ;;  %v12009_v48 = vld [vmem:[#allocation3 + $0x20] sm:$0xff]  ;;  %v7825_v36 = vld [vmem:[%s14471_s2 + $0x98] sm:$0xff] }
 0x4a6   : > { %v2992_v45 = vmul.f32 %v2984_v1, %v2979_v54  ;;  %v7877_v33 = vld [vmem:[%s14471_s2 + $0x438] sm:$0xff]  ;;  %v3336_v25 = vmul.f32 %v7874_v3, %v3321_v62  ;;  %v7888_v54 = vld [vmem:[#allocation7] sm:$0xf] }
 0x4a7   : > { %v3143_v18 = vpack.c.bf16 %v3139_v51, %v3138_v38  ;;  %3636 = vmatpush.bf16.msrb.mxu3 %v7993_v40  ;;  %v3339_v40 = vmul.f32 %v7877_v33, %v3323_v30  ;;  %v2987_v3 = vld [vmem:[%s14471_s2 + $0x38] sm:$0xff] }
 0x4a8   : > { %v2998_v11 = vpack.c.bf16 %v2993_v2, %v2992_v45 }
 0x4a9   : > { %3147 = vst [vmem:[#allocation7 + $0x78] sm:$0xff] %v3143_v18  ;;  %v8898_v20 = vld [vmem:[#allocation7 + $0x2c] sm:$0xf0]  ;;  %v7906_v31 = vld [vmem:[#allocation7 + $0x30] sm:$0xf0] }
 0x4aa   : > { %3002 = vst [vmem:[#allocation7 + $0x10] sm:$0xff] %v2998_v11  ;;  %3919 = vrot.lane.b32.xlu0 %v12009_v48, %s9359_s29  ;;  %4231 = vrot.lane.b32.xlu2 %v12013_v22, %s9360_s18  ;;  %v7905_v47 = vor.u32 %v8898_v20, %v7904_v46  ;;  %v7909_v29 = vor.u32 %v8896_v17, %v7906_v31  ;;  %v8010_v18 = vld [vmem:[#allocation7 + $0xf8] sm:$0xf0]  ;;  %v7880_v11 = vld [vmem:[%s14473_s4] sm:$0xf]  ;;  %v2986_v17 = vld [vmem:[%s14471_s2 + $0x30] sm:$0xff] }
 0x4ab   : > { %4317 = vrot.lane.b32.xlu1 %v11743_v13, %s9358_s26  ;;  %v3013_v34 = vpop.permute.xlu0 %3012  ;;  %v12080_v30 = vpop.permute.xlu2 %4433 }
 0x4ac   : > { %v3020_v56 = vsel %vm679_vm5, %v3013_v34, %v11774_v58  ;;  %v3022_v59 = vsel %vm679_vm5, %v11614_v44, %v3013_v34  ;;  %v3311_v1 = vpop.permute.xlu1 %3310  ;;  %3585 = vmatpush.bf16.msrb.mxu2 %v7905_v47  ;;  %3613 = vmatpush.bf16.msrb.mxu0 %v7909_v29  ;;  %v8892_v44 = vld [vmem:[#allocation7 + $0x4] sm:$0xf]  ;;  %v7852_v47 = vld [vmem:[%s14471_s2 + $0x2b0] sm:$0xff]  ;;  %v7853_v29 = vld [vmem:[%s14471_s2 + $0x2b8] sm:$0xff]  ;;  %14636 = vst [vmem:[#allocation33_spill] sm:$0xff] %v12080_v30 }
 0x4ad   : > { %v3038_v8 = vmul.f32 %v7824_v0, %v3022_v59  ;;  %v3039_v12 = vmul.f32 %v7825_v36, %v3020_v56  ;;  %v3317_v42 = vsel %vm1283_vm3, %v3311_v1, %v11869_v55  ;;  %v3319_v41 = vsel %vm1283_vm3, %v11612_v60, %v3311_v1  ;;  %v8891_v55 = vld [vmem:[%s14473_s4 + $0x4] sm:$0xf0]  ;;  %v8921_v0 = vld [vmem:[#allocation7 + $0xec] sm:$0xf]  ;;  %v7994_v56 = vld [vmem:[#allocation7 + $0xd8] sm:$0xf0] }
 0x4ae   : > { %v3337_v58 = vmul.f32 %v7875_v53, %v3319_v41  ;;  %v3338_v38 = vmul.f32 %v7876_v14, %v3317_v42  ;;  %v8013_v62 = vor.u32 %v8921_v0, %v8010_v18  ;;  %v12078_v33 = vor.u32 %v8891_v55, %v7880_v11  ;;  %v8917_v41 = vld [vmem:[#allocation7 + $0xcc] sm:$0xf]  ;;  %v7832_v11 = vld [vmem:[%s14471_s2 + $0x110] sm:$0xff]  ;;  %v7833_v55 = vld [vmem:[%s14471_s2 + $0x118] sm:$0xff] }
 0x4af   : > { %v3045_v51 = vpack.c.bf16 %v3039_v12, %v3038_v8 }
 0x4b0   : > { %v3342_v2 = vpack.c.bf16 %v3337_v58, %v3336_v25  ;;  %v3343_v45 = vpack.c.bf16 %v3339_v40, %v3338_v38  ;;  %v4205_v40 = vpack.c.bf16 %v11660_v24, %v11743_v13  ;;  %v8924_v38 = vld [vmem:[#allocation7 + $0x104] sm:$0xf] }
 0x4b1   : > { %3049 = vst [vmem:[#allocation7 + $0x28] sm:$0xff] %v3045_v51  ;;  %v8894_v60 = vld [vmem:[#allocation7 + $0xc] sm:$0xf0]  ;;  %v7890_v46 = vld [vmem:[#allocation7 + $0x10] sm:$0xf0] }
 0x4b2   : > { %3346 = vst [vmem:[#allocation7 + $0x110] sm:$0xff] %v3342_v2  ;;  %3929 = vrot.lane.b32.xlu0 %v11616_v21, %s9359_s29  ;;  %4241 = vrot.lane.b32.xlu2 %v11620_v32, %s9360_s18  ;;  %v7889_v20 = vor.u32 %v8894_v60, %v7888_v54  ;;  %v7893_v31 = vor.u32 %v8892_v44, %v7890_v46  ;;  %v7882_v51 = vld [vmem:[%s14473_s4 + $0x8] sm:$0xf0] }
 0x4b3   : > { %3347 = vst [vmem:[#allocation7 + $0x118] sm:$0xff] %v3343_v45  ;;  %3921 = vrot.lane.b32.xlu1 %v11654_v4, %s9359_s29  ;;  %v2967_v36 = vpop.permute.xlu0 %2966 }
 0x4b4   : > { %v2973_v34 = vsel %vm582_vm8, %v2967_v36, %v11998_v9  ;;  %v2975_v53 = vsel %vm582_vm8, %v11595_v49, %v2967_v36  ;;  %v3171_v14 = vpop.permute.xlu1 %3170  ;;  %3586 = vmatpush.bf16.msrb.mxu2 %v7889_v20  ;;  %3614 = vmatpush.bf16.msrb.mxu0 %v7893_v31  ;;  %v7997_v49 = vor.u32 %v8917_v41, %v7994_v56  ;;  %v12126_v20 = vpop.permute.xlu2 %4133  ;;  %v7962_v56 = vld [vmem:[#allocation7 + $0x98] sm:$0xf0] }
 0x4b5   : > { %v2994_v59 = vmul.f32 %v2986_v17, %v2975_v53  ;;  %v2995_v1 = vmul.f32 %v2987_v3, %v2973_v34  ;;  %v3173_v8 = vsel %vm989_vm7, %v11833_v52, %v3171_v14  ;;  %v3179_v12 = vsel %vm989_vm7, %v3171_v14, %v11427_v50  ;;  %v8890_v52 = vld [vmem:[%s14473_s4 + $0x4] sm:$0xf]  ;;  %v8016_v50 = vld [vmem:[#allocation7 + $0x100] sm:$0xf]  ;;  %v8911_v14 = vld [vmem:[#allocation7 + $0x94] sm:$0xf0] }
 0x4b6   : > { %v3194_v9 = vmul.f32 %v7852_v47, %v3173_v8  ;;  %v3195_v42 = vmul.f32 %v7853_v29, %v3179_v12  ;;  %v12118_v60 = vor.u32 %v8890_v52, %v7882_v51  ;;  %v7976_v47 = vld [vmem:[#allocation7 + $0xa8] sm:$0xf]  ;;  %v8907_v51 = vld [vmem:[#allocation7 + $0x74] sm:$0xf0] }
 0x4b7   : > { %v2999_v25 = vpack.c.bf16 %v2995_v1, %v2994_v59  ;;  %3587 = vmatmul.bf16.vlgmr.msrb.gmra.mxu2 %v12078_v33  ;;  %3615 = vmatmul.bf16.vlgmr.msrb.gmra.mxu0 %v12078_v33  ;;  %v4206_v59 = vpack.c.bf16 %v11638_v19, %v11648_v61  ;;  %v12139_v1 = vld [vmem:[#allocation4 + $0x30] sm:$0xff] }
 0x4b8   : > { %3663 = vmatpush.bf16.msra.mxu0 %v8013_v62  ;;  %v3199_v58 = vpack.c.bf16 %v3195_v42, %v3194_v9  ;;  %v8913_v62 = vld [vmem:[#allocation7 + $0xac] sm:$0xf] }
 0x4b9   : > { %3003 = vst [vmem:[#allocation7 + $0x18] sm:$0xff] %v2999_v25  ;;  %v8018_v54 = vld [vmem:[#allocation7 + $0x110] sm:$0xf0]  ;;  %v8926_v44 = vld [vmem:[#allocation7 + $0x10c] sm:$0xf0] }
 0x4ba   : > { %3203 = vst [vmem:[#allocation7 + $0xb8] sm:$0xff] %v3199_v58  ;;  %4223 = vrot.lane.b32.xlu0 %v12009_v48, %s9360_s18  ;;  %4519 = vrot.lane.b32.xlu2 %v12013_v22, %s9357_s25  ;;  %v8021_v2 = vor.u32 %v8924_v38, %v8018_v54  ;;  %v8017_v45 = vor.u32 %v8926_v44, %v8016_v50  ;;  %v12148_v12 = vld [vmem:[#allocation7 + $0x118] sm:$0xf0]  ;;  %v12150_v9 = vld [vmem:[#allocation7 + $0x114] sm:$0xf0] }
 0x4bb   : > { %4225 = vrot.lane.b32.xlu1 %v11654_v4, %s9360_s18  ;;  %v12110_v18 = vpop.permute.xlu0 %4111  ;;  %4213 = vst [vmem:[#allocation7 + $0x110] sm:$0xff] %v4205_v40  ;;  %v8909_v40 = vld [vmem:[#allocation7 + $0x8c] sm:$0xf]  ;;  %v7946_v54 = vld [vmem:[#allocation7 + $0x78] sm:$0xf0] }
 0x4bc   : > { %3664 = vmatpush.bf16.msra.mxu0 %v7997_v49  ;;  %3628 = vmatpush.bf16.msrb.mxu1 %v8021_v2  ;;  %v3061_v46 = vpop.permute.xlu1 %3060  ;;  %4214 = vst [vmem:[#allocation7 + $0x118] sm:$0xff] %v4206_v59  ;;  %v7960_v49 = vld [vmem:[#allocation7 + $0x88] sm:$0xf]  ;;  %v7965_v50 = vor.u32 %v8909_v40, %v7962_v56  ;;  %v12160_v44 = vpop.permute.xlu2 %4429  ;;  %v8897_v56 = vld [vmem:[#allocation7 + $0x2c] sm:$0xf] }
 0x4bd   : > { %3600 = vmatpush.bf16.msra.mxu2 %v8017_v45  ;;  %v3068_v17 = vsel %vm777_vm2, %v3061_v46, %v11725_v10  ;;  %v3070_v3 = vsel %vm777_vm2, %v11604_v7, %v3061_v46  ;;  %v7828_v10 = vld [vmem:[%s14471_s2 + $0xb0] sm:$0xff]  ;;  %v7961_v38 = vor.u32 %v8911_v14, %v7960_v49  ;;  %v8905_v45 = vld [vmem:[#allocation7 + $0x6c] sm:$0xf] }
 0x4be   : > { %v3086_v31 = vmul.f32 %v7832_v11, %v3070_v3  ;;  %v3087_v0 = vmul.f32 %v7833_v55, %v3068_v17  ;;  %v7872_v11 = vld [vmem:[%s14471_s2 + $0x410] sm:$0xff]  ;;  %v7949_v55 = vor.u32 %v8905_v45, %v7946_v54  ;;  %v7873_v17 = vld [vmem:[%s14471_s2 + $0x418] sm:$0xff] }
 0x4bf   : > { %8031 = vmatmul.msk.bf16.vlgmr.msrb.gmra.mxu1 %vm14547_vm10, %v12118_v60 }
 0x4c0   : > { %v3093_v36 = vpack.c.bf16 %v3087_v0, %v3086_v31  ;;  %v8895_v49 = vld [vmem:[#allocation7 + $0x14] sm:$0xf0]  ;;  %v7898_v40 = vld [vmem:[#allocation7 + $0x18] sm:$0xf0] }
 0x4c1   : > { %v8915_v29 = vld [vmem:[#allocation7 + $0xb4] sm:$0xf0]  ;;  %v7978_v34 = vld [vmem:[#allocation7 + $0xb8] sm:$0xf0] }
 0x4c2   : > { %3097 = vst [vmem:[#allocation7 + $0x48] sm:$0xff] %v3093_v36  ;;  %4233 = vrot.lane.b32.xlu0 %v11616_v21, %s9360_s18  ;;  %4529 = vrot.lane.b32.xlu2 %v11620_v32, %s9357_s25  ;;  %v7977_v7 = vor.u32 %v8915_v29, %v7976_v47  ;;  %v7981_v53 = vor.u32 %v8913_v62, %v7978_v34  ;;  %v7829_v32 = vld [vmem:[%s14471_s2 + $0xb8] sm:$0xff] }
 0x4c3   : > { %4239 = vrot.lane.b32.xlu1 %v12139_v1, %s9360_s18  ;;  %v12143_v8 = vpop.permute.xlu0 %4121  ;;  %v7930_v47 = vld [vmem:[#allocation7 + $0x58] sm:$0xf0] }
 0x4c4   : > { %3637 = vmatpush.bf16.msrb.mxu3 %v7977_v7  ;;  %v3015_v42 = vpop.permute.xlu1 %3014  ;;  %3665 = vmatpush.bf16.msra.mxu0 %v7981_v53  ;;  %v7912_v53 = vld [vmem:[#allocation7 + $0x28] sm:$0xf] }
 0x4c5   : > { %v3021_v41 = vsel %vm679_vm5, %v3015_v42, %v11961_v15  ;;  %v3023_v25 = vsel %vm679_vm5, %v11587_v63, %v3015_v42  ;;  %v7944_v15 = vld [vmem:[#allocation7 + $0x68] sm:$0xf] }
 0x4c6   : > { %v3042_v52 = vmul.f32 %v7828_v10, %v3023_v25  ;;  %v3043_v58 = vmul.f32 %v7829_v32, %v3021_v41  ;;  %v7945_v63 = vor.u32 %v8907_v51, %v7944_v15  ;;  %v12182_v32 = vpop.permute.xlu2 %4023  ;;  %v8083_v25 = vld [vmem:[%s14471_s2 + $0x1e8] sm:$0xff] }
 0x4c7   : > { %8030 = vmatmul.msk.bf16.vlgmr.msra.gmra.mxu2 %vm14547_vm10, %v12118_v60 }
 0x4c8   : > { %v3047_v2 = vpack.c.bf16 %v3043_v58, %v3042_v52  ;;  %3638 = vmatpush.bf16.msrb.mxu3 %v7961_v38  ;;  %3666 = vmatpush.bf16.msra.mxu0 %v7965_v50  ;;  %v7896_v38 = vld [vmem:[#allocation7 + $0x8] sm:$0xf]  ;;  %v8893_v50 = vld [vmem:[#allocation7 + $0xc] sm:$0xf] }
 0x4c9   : > { %v7928_v3 = vld [vmem:[#allocation7 + $0x48] sm:$0xf]  ;;  %v8901_v31 = vld [vmem:[#allocation7 + $0x4c] sm:$0xf]  ;;  %v7901_v15 = vor.u32 %v8893_v50, %v7898_v40 }
 0x4ca   : > { %3051 = vst [vmem:[#allocation7 + $0x38] sm:$0xff] %v3047_v2  ;;  %4511 = vrot.lane.b32.xlu0 %v12009_v48, %s9357_s25  ;;  %3941 = vrot.lane.b32.xlu2 %v11638_v19, %s9359_s29  ;;  %v7933_v7 = vor.u32 %v8901_v31, %v7930_v47  ;;  %v7897_v2 = vor.u32 %v8895_v49, %v7896_v38 }
 0x4cb   : > { %4513 = vrot.lane.b32.xlu1 %v11654_v4, %s9357_s25  ;;  %v12171_v46 = vpop.permute.xlu0 %4415  ;;  %v8903_v4 = vld [vmem:[#allocation7 + $0x54] sm:$0xf0] }
 0x4cc   : > { %3639 = vmatpush.bf16.msrb.mxu3 %v7945_v63  ;;  %v3313_v0 = vpop.permute.xlu1 %3312  ;;  %3667 = vmatpush.bf16.msra.mxu0 %v7949_v55  ;;  %v7929_v34 = vor.u32 %v8903_v4, %v7928_v3  ;;  %v8131_v63 = vld [vmem:[%s14471_s2 + $0x3e8] sm:$0xff] }
 0x4cd   : > { %v3316_v19 = vsel %vm1283_vm3, %v11950_v57, %v3313_v0  ;;  %v3322_v36 = vsel %vm1283_vm3, %v3313_v0, %v11480_v39  ;;  %v8082_v57 = vld [vmem:[%s14471_s2 + $0x1e0] sm:$0xff] }
 0x4ce   : > { %v3334_v29 = vmul.f32 %v7872_v11, %v3316_v19  ;;  %v3335_v62 = vmul.f32 %v7873_v17, %v3322_v36  ;;  %v8130_v19 = vld [vmem:[%s14471_s2 + $0x3e0] sm:$0xff]  ;;  %v12222_v36 = vpop.permute.xlu2 %4041 }
 0x4d0   : > { %v3341_v10 = vpack.c.bf16 %v3335_v62, %v3334_v29  ;;  %3640 = vmatpush.bf16.msrb.mxu3 %v7929_v34  ;;  %3668 = vmatpush.bf16.msra.mxu0 %v7933_v7  ;;  %v8126_v29 = vld [vmem:[%s14471_s2 + $0x3c0] sm:$0xff]  ;;  %v8127_v62 = vld [vmem:[%s14471_s2 + $0x3c8] sm:$0xff] }
 0x4d1   : > { %v8899_v14 = vld [vmem:[#allocation7 + $0x34] sm:$0xf0]  ;;  %v7914_v59 = vld [vmem:[#allocation7 + $0x38] sm:$0xf0] }
 0x4d2   : > { %3345 = vst [vmem:[#allocation7 + $0x108] sm:$0xff] %v3341_v10  ;;  %4521 = vrot.lane.b32.xlu0 %v11616_v21, %s9357_s25  ;;  %4237 = vrot.lane.b32.xlu2 %v11648_v61, %s9360_s18  ;;  %v7913_v39 = vor.u32 %v8899_v14, %v7912_v53  ;;  %v7917_v42 = vor.u32 %v8897_v56, %v7914_v59  ;;  %v12260_v56 = vld [vmem:[#allocation3 + $0x50] sm:$0xff]  ;;  %v12264_v59 = vld [vmem:[#allocation3 + $0x58] sm:$0xff] }
 0x4d3   : > { %4527 = vrot.lane.b32.xlu1 %v12139_v1, %s9357_s25  ;;  %v4426_v41 = vpop.permute.xlu0 %4425 }
 0x4d4   : > { %3641 = vmatpush.bf16.msrb.mxu3 %v7913_v39  ;;  %v4114_v21 = vpop.permute.xlu1 %4113  ;;  %3669 = vmatpush.bf16.msra.mxu0 %v7917_v42  ;;  %v4450_v11 = vsel %vm1185_vm1, %v4426_v41, %v12080_v30  ;;  %v8075_v39 = vld [vmem:[%s14471_s2 + $0x1a8] sm:$0xff] }
 0x4d5   : > { %v4150_v52 = vsel %vm875_vm0, %v4114_v21, %v12143_v8  ;;  %v4154_v58 = vsel %vm875_vm0, %v11968_v28, %v4114_v21  ;;  %v4488_v4 = vmul.f32 %v8131_v63, %v4450_v11  ;;  %v9330_v63 = vld [vmem:[#allocation3 + $0x8] sm:$0xff] }
 0x4d6   : > { %v4183_v51 = vmul.f32 %v8082_v57, %v4154_v58  ;;  %v4184_v54 = vmul.f32 %v8083_v25, %v4150_v52  ;;  %v12256_v10 = vpop.permute.xlu2 %4327 }
 0x4d8   : > { %v4193_v45 = vpack.c.bf16 %v4184_v54, %v4183_v51  ;;  %3642 = vmatpush.bf16.msrb.mxu3 %v7897_v2  ;;  %3670 = vmatpush.bf16.msra.mxu0 %v7901_v15 }
 0x4d9   : > { %v8925_v55 = vld [vmem:[#allocation7 + $0x10c] sm:$0xf]  ;;  %v8024_v17 = vld [vmem:[#allocation7 + $0x108] sm:$0xf] }
 0x4da   : > { %4201 = vst [vmem:[#allocation7 + $0xf0] sm:$0xff] %v4193_v45  ;;  %3925 = vrot.lane.b32.xlu0 %v11660_v24, %s9359_s29  ;;  %4525 = vrot.lane.b32.xlu2 %v11648_v61, %s9357_s25  ;;  %v8029_v3 = vor.u32 %v8925_v55, %v12148_v12  ;;  %v8025_v31 = vor.u32 %v12150_v9, %v8024_v17  ;;  %v8067_v55 = vld [vmem:[%s14471_s2 + $0x168] sm:$0xff] }
 0x4db   : > { %3917 = vrot.lane.b32.xlu1 %v11743_v13, %s9359_s29  ;;  %3671 = vmatmul.bf16.vlgmr.msra.gmra.mxu0 %v12078_v33  ;;  %v12217_v0 = vpop.permute.xlu0 %4117 }
 0x4dc   : > { %3684 = vmatpush.bf16.msra.mxu1 %v8029_v3  ;;  %v12224_v61 = vpop.permute.xlu1 %4417  ;;  %3656 = vmatpush.bf16.msrb.mxu2 %v8025_v31 }
 0x4dd   : > { %14637 = vst [vmem:[#allocation35_spill] sm:$0xff] %v12224_v61  ;;  %v4454_v12 = vsel %vm1185_vm1, %v12224_v61, %v4426_v41  ;;  %3643 = vmatmul.bf16.vlgmr.msrb.gmra.mxu3 %v12078_v33  ;;  %v4453_v33 = vsel %vm1185_vm1, %v12171_v46, %v12007_v35 }
 0x4de   : > { %v4487_v9 = vmul.f32 %v8130_v19, %v4454_v12  ;;  %v4483_v7 = vmul.f32 %v8126_v29, %v4453_v33  ;;  %v12280_v40 = vpop.permute.xlu2 %4337  ;;  %v8114_v29 = vld [vmem:[%s14471_s2 + $0x360] sm:$0xff] }
 0x4df   : > { %8032 = vmatmul.msk.bf16.vlgmr.msrb.gmra.mxu2 %vm14547_vm10, %v12118_v60  ;;  %8033 = vmatmul.msk.bf16.vlgmr.msra.gmra.mxu1 %vm14547_vm10, %v12118_v60  ;;  %14638 = vst [vmem:[#allocation42_spill] sm:$0xff] %v12280_v40 }
 0x4e0   : > { %v4497_v47 = vpack.c.bf16 %v4488_v4, %v4487_v9  ;;  %v8115_v9 = vld [vmem:[%s14471_s2 + $0x368] sm:$0xff] }
 0x4e2   : > { %4505 = vst [vmem:[#allocation7 + $0x1f0] sm:$0xff] %v4497_v47  ;;  %4229 = vrot.lane.b32.xlu0 %v11660_v24, %s9360_s18  ;;  %3831 = vrot.lane.b32.xlu2 %v12013_v22, %s9361_s13 }
 0x4e3   : > { %4221 = vrot.lane.b32.xlu1 %v11743_v13, %s9360_s18  ;;  %v4422_v60 = vpop.permute.xlu0 %4421 }
 0x4e4   : > { %v12250_v34 = vpop.permute.xlu1 %4431  ;;  %v4448_v52 = vsel %vm1185_vm1, %v4422_v60, %v12160_v44 }
 0x4e5   : > { %v4449_v22 = vsel %vm1185_vm1, %v12007_v35, %v12250_v34  ;;  %v4480_v51 = vmul.f32 %v11730_v26, %v4448_v52  ;;  %v8066_v26 = vld [vmem:[%s14471_s2 + $0x160] sm:$0xff] }
 0x4e6   : > { %v4484_v53 = vmul.f32 %v8127_v62, %v4449_v22  ;;  %v12300_v45 = vpop.permute.xlu2 %4037 }
 0x4e8   : > { %v4495_v14 = vpack.c.bf16 %v4484_v53, %v4483_v7 }
 0x4e9   : > { %v9011_v49 = vld [vmem:[#allocation7 + $0x1ec] sm:$0xf0] }
 0x4ea   : > { %4503 = vst [vmem:[#allocation7 + $0x1e0] sm:$0xff] %v4495_v14  ;;  %4517 = vrot.lane.b32.xlu0 %v11660_v24, %s9357_s25  ;;  %3849 = vrot.lane.b32.xlu2 %v12260_v56, %s9361_s13  ;;  %v9331_v14 = vld [vmem:[#allocation3] sm:$0xff] }
 0x4eb   : > { %4135 = vrot.lane.b32.xlu1 %v12264_v59, %s9354_s22  ;;  %v12268_v35 = vpop.permute.xlu0 %4015 }
 0x4ec   : > { %v4110_v57 = vpop.permute.xlu1 %4109 }
 0x4ed   : > { %v4148_v24 = vsel %vm875_vm0, %v4110_v57, %v12217_v0  ;;  %v4152_v42 = vsel %vm875_vm0, %v12126_v20, %v4110_v57 }
 0x4ee   : > { %v4175_v41 = vmul.f32 %v11861_v43, %v4152_v42  ;;  %v4176_v25 = vmul.f32 %v8075_v39, %v4148_v24  ;;  %v8122_v43 = vld [vmem:[%s14471_s2 + $0x3a0] sm:$0xff]  ;;  %v12327_v33 = vpop.permute.xlu2 %4333  ;;  %v8111_v42 = vld [vmem:[%s14471_s2 + $0x348] sm:$0xff] }
 0x4ef   : > { %14639 = vst [vmem:[#allocation10_spill] sm:$0xff] %v12327_v33  ;;  %v8110_v39 = vld [vmem:[%s14471_s2 + $0x340] sm:$0xff] }
 0x4f0   : > { %v4189_v21 = vpack.c.bf16 %v4176_v25, %v4175_v41 }
 0x4f1   : > { %v8476_v58 = vld [vmem:[#allocation7 + $0x1e0] sm:$0xf] }
 0x4f2   : > { %4197 = vst [vmem:[#allocation7 + $0xd0] sm:$0xff] %v4189_v21  ;;  %3823 = vrot.lane.b32.xlu0 %v12009_v48, %s9361_s13  ;;  %v8477_v38 = vor.u32 %v9011_v49, %v8476_v58 }
 0x4f3   : > { %4039 = vrot.lane.b32.xlu1 %v12264_v59, %s9356_s24  ;;  %v12289_v50 = vpop.permute.xlu0 %4025 }
 0x4f4   : > { %v12295_v54 = vpop.permute.xlu1 %4413  ;;  %5233 = vmatpush.bf16.msra.mxu2 %v8477_v38 }
 0x4f5   : > { %v4452_v2 = vsel %vm1185_vm1, %v12295_v54, %v4422_v60 }
 0x4f6   : > { %v4479_v48 = vmul.f32 %v8122_v43, %v4452_v2  ;;  %v12352_v25 = vpop.permute.xlu2 %3927  ;;  %v8059_v43 = vld [vmem:[%s14471_s2 + $0x128] sm:$0xff] }
 0x4f7   : > { %14641 = vst [vmem:[#allocation37_spill] sm:$0xff] %v12352_v25 }
 0x4f8   : > { %v4493_v15 = vpack.c.bf16 %v4480_v51, %v4479_v48 }
 0x4fa   : > { %4501 = vst [vmem:[#allocation7 + $0x1d0] sm:$0xff] %v4493_v15  ;;  %3833 = vrot.lane.b32.xlu0 %v9330_v63, %s9361_s13 }
 0x4fb   : > { %3943 = vrot.lane.b32.xlu1 %v12264_v59, %s9359_s29  ;;  %v12305_v11 = vpop.permute.xlu0 %4319 }
 0x4fc   : > { %v4018_v17 = vpop.permute.xlu1 %4017  ;;  %v4357_v57 = vsel %vm1087_vm4, %v12305_v11, %v12256_v10 }
 0x4fd   : > { %v4054_v3 = vsel %vm777_vm2, %v4018_v17, %v12289_v50  ;;  %v4058_v31 = vsel %vm777_vm2, %v12222_v36, %v4018_v17  ;;  %v4387_v21 = vmul.f32 %v8110_v39, %v4357_v57  ;;  %v9332_v17 = vld [vmem:[#allocation3 + $0x48] sm:$0xff] }
 0x4fe   : > { %v4087_v19 = vmul.f32 %v8066_v26, %v4058_v31  ;;  %v4088_v4 = vmul.f32 %v8067_v55, %v4054_v3  ;;  %v12370_v63 = vpop.permute.xlu2 %3945  ;;  %v8106_v31 = vld [vmem:[%s14471_s2 + $0x320] sm:$0xff] }
 0x4ff   : > { %14642 = vst [vmem:[#allocation41_spill] sm:$0xff] %v12370_v63 }
 0x500   : > { %v4097_v12 = vpack.c.bf16 %v4088_v4, %v4087_v19 }
 0x502   : > { %4105 = vst [vmem:[#allocation7 + $0xb0] sm:$0xff] %v4097_v12 }
 0x503   : > { %4509 = vrot.lane.b32.xlu1 %v11743_v13, %s9357_s25  ;;  %v4330_v47 = vpop.permute.xlu0 %4329 }
 0x504   : > { %v4354_v60 = vsel %vm1087_vm4, %v4330_v47, %v12280_v40  ;;  %v12332_v62 = vpop.permute.xlu1 %4321 }
 0x505   : > { %14640 = vst [vmem:[#allocation12_spill] sm:$0xff] %v12332_v62  ;;  %v4392_v22 = vmul.f32 %v8115_v9, %v4354_v60  ;;  %v4358_v7 = vsel %vm1087_vm4, %v12332_v62, %v4330_v47 }
 0x506   : > { %v4391_v53 = vmul.f32 %v8114_v29, %v4358_v7  ;;  %v4232_v29 = vpop.permute.xlu2 %4231  ;;  %v8051_v7 = vld [vmem:[%s14471_s2 + $0xe8] sm:$0xff] }
 0x508   : > { %v4401_v13 = vpack.c.bf16 %v4392_v22, %v4391_v53  ;;  %v8050_v22 = vld [vmem:[%s14471_s2 + $0xe0] sm:$0xff] }
 0x50a   : > { %4409 = vst [vmem:[#allocation7 + $0x1b0] sm:$0xff] %v4401_v13 }
 0x50b   : > { %3825 = vrot.lane.b32.xlu1 %v9331_v14, %s9361_s13 }
 0x50c   : > { %v12345_v24 = vpop.permute.xlu0 %4021 }
 0x50d   : > { %v12350_v41 = vpop.permute.xlu1 %4335 }
 0x50e   : > { %v4353_v49 = vsel %vm1087_vm4, %v12256_v10, %v12350_v41 }
 0x50f   : > { %v4388_v52 = vmul.f32 %v8111_v42, %v4353_v49  ;;  %v12403_v49 = vpop.permute.xlu2 %4241 }
 0x511   : > { %v4399_v58 = vpack.c.bf16 %v4388_v52, %v4387_v21 }
 0x513   : > { %4407 = vst [vmem:[#allocation7 + $0x1a0] sm:$0xff] %v4399_v58  ;;  %3847 = vrot.lane.b32.xlu1 %v12264_v59, %s9361_s13  ;;  %v8098_v58 = vld [vmem:[%s14471_s2 + $0x2e0] sm:$0xff] }
 0x514   : > { %v4326_v38 = vpop.permute.xlu0 %4325 }
 0x515   : > { %v4014_v51 = vpop.permute.xlu1 %4013  ;;  %v4352_v55 = vsel %vm1087_vm4, %v4326_v38, %v12327_v33 }
 0x516   : > { %v4052_v2 = vsel %vm777_vm2, %v4014_v51, %v12345_v24  ;;  %v4056_v10 = vsel %vm777_vm2, %v12300_v45, %v4014_v51 }
 0x517   : > { %v4079_v48 = vmul.f32 %v11916_v27, %v4056_v10  ;;  %v4080_v15 = vmul.f32 %v8059_v43, %v4052_v2  ;;  %v9333_v27 = vld [vmem:[%s14471_s2 + $0x328] sm:$0xff]  ;;  %v8094_v43 = vld [vmem:[%s14471_s2 + $0x2c0] sm:$0xff] }
 0x518   : > { %v4384_v19 = vmul.f32 %v9333_v27, %v4352_v55  ;;  %v8095_v10 = vld [vmem:[%s14471_s2 + $0x2c8] sm:$0xff]  ;;  %v4520_v55 = vpop.permute.xlu2 %4519 }
 0x519   : > { %v4093_v26 = vpack.c.bf16 %v4080_v15, %v4079_v48 }
 0x51b   : > { %4101 = vst [vmem:[#allocation7 + $0x90] sm:$0xff] %v4093_v26  ;;  %3821 = vrot.lane.b32.xlu1 %v9332_v17, %s9361_s13 }
 0x51c   : > { %v12376_v3 = vpop.permute.xlu0 %3919 }
 0x51d   : > { %v12384_v4 = vpop.permute.xlu1 %4317 }
 0x51e   : > { %14643 = vst [vmem:[#allocation18_spill] sm:$0xff] %v12384_v4  ;;  %v4356_v12 = vsel %vm1087_vm4, %v12384_v4, %v4326_v38  ;;  %v8099_v38 = vld [vmem:[%s14471_s2 + $0x2e8] sm:$0xff] }
 0x51f   : > { %v4383_v9 = vmul.f32 %v8106_v31, %v4356_v12 }
 0x521   : > { %v4397_v47 = vpack.c.bf16 %v4384_v19, %v4383_v9 }
 0x522   : > { %v8967_v30 = vld [vmem:[#allocation7 + $0x8c] sm:$0xf0] }
 0x523   : > { %4405 = vst [vmem:[#allocation7 + $0x190] sm:$0xff] %v4397_v47 }
 0x524   : > { %v12389_v60 = vpop.permute.xlu0 %3929 }
 0x525   : > { %14644 = vst [vmem:[#allocation25_spill] sm:$0xff] %v12389_v60  ;;  %v3922_v53 = vpop.permute.xlu1 %3921 }
 0x526   : > { %v3958_v13 = vsel %vm679_vm5, %v3922_v53, %v12389_v60  ;;  %v3962_v14 = vsel %vm679_vm5, %v12370_v63, %v3922_v53  ;;  %v8334_v60 = vld [vmem:[#allocation7 + $0xd0] sm:$0xf0] }
 0x527   : > { %v3991_v39 = vmul.f32 %v8050_v22, %v3962_v14  ;;  %v3992_v57 = vmul.f32 %v8051_v7, %v3958_v13 }
 0x529   : > { %v4001_v42 = vpack.c.bf16 %v3992_v57, %v3991_v39  ;;  %v12439_v57 = vpop.permute.xlu2 %4529 }
 0x52a   : > { %14649 = vst [vmem:[#allocation44_spill] sm:$0xff] %v12439_v57 }
 0x52b   : > { %4009 = vst [vmem:[#allocation7 + $0x70] sm:$0xff] %v4001_v42 }
 0x52c   : > { %v12405_v21 = vpop.permute.xlu0 %4223 }
 0x52d   : > { %14645 = vst [vmem:[#allocation23_spill] sm:$0xff] %v12405_v21  ;;  %v12407_v52 = vpop.permute.xlu1 %4225  ;;  %v4261_v51 = vsel %vm989_vm7, %v12405_v21, %v4232_v29 }
 0x52e   : > { %v4291_v19 = vmul.f32 %v8094_v43, %v4261_v51  ;;  %v8147_v43 = vld [vmem:[%s14471_s2 + $0x468] sm:$0xff]  ;;  %v8142_v51 = vld [vmem:[%s14471_s2 + $0x440] sm:$0xff] }
 0x534   : > { %v4234_v2 = vpop.permute.xlu0 %4233  ;;  %v3616_v7 = vpop.f32.mrf.mxu0 }
 0x535   : > { %v4258_v48 = vsel %vm989_vm7, %v4234_v2, %v12403_v49  ;;  %v4262_v15 = vsel %vm989_vm7, %v12407_v52, %v4234_v2  ;;  %v12430_v26 = vpop.permute.xlu1 %4239 }
 0x536   : > { %14646 = vst [vmem:[#allocation17_spill] sm:$0xff] %v12430_v26  ;;  %v4295_v17 = vmul.f32 %v8098_v58, %v4262_v15  ;;  %v4296_v31 = vmul.f32 %v8099_v38, %v4258_v48  ;;  %v4257_v27 = vsel %vm989_vm7, %v4232_v29, %v12430_v26  ;;  %v8146_v38 = vld [vmem:[%s14471_s2 + $0x460] sm:$0xff] }
 0x537   : > { %v4292_v12 = vmul.f32 %v8095_v10, %v4257_v27  ;;  %v8143_v10 = vld [vmem:[%s14471_s2 + $0x448] sm:$0xff] }
 0x538   : > { %v4305_v9 = vpack.c.bf16 %v4296_v31, %v4295_v17 }
 0x539   : > { %v4303_v47 = vpack.c.bf16 %v4292_v12, %v4291_v19 }
 0x53a   : > { %4313 = vst [vmem:[#allocation7 + $0x170] sm:$0xff] %v4305_v9  ;;  %v3588_v22 = vpop.f32.mrf.mxu2 }
 0x53b   : > { %4311 = vst [vmem:[#allocation7 + $0x160] sm:$0xff] %v4303_v47 }
 0x53c   : > { %v12435_v53 = vpop.permute.xlu0 %4511  ;;  %v3630_v13 = vpop.f32.mrf.mxu1 }
 0x53d   : > { %14647 = vst [vmem:[#allocation28_spill] sm:$0xff] %v12435_v53  ;;  %v12437_v14 = vpop.permute.xlu1 %4513  ;;  %v3631_v39 = vadd.f32 %v3630_v13, %v3616_v7  ;;  %v4549_v2 = vsel %vm1283_vm3, %v12435_v53, %v4520_v55 }
 0x53e   : > { %14648 = vst [vmem:[#allocation22_spill] sm:$0xff] %v12437_v14  ;;  %v4579_v12 = vmul.f32 %v8142_v51, %v4549_v2 }
 0x53f   : > { %v3704_v42 = vadd.f32 %v11260_v16, %v3631_v39  ;;  %v12470_v39 = vpop.permute.xlu2 %3941 }
 0x541   : > { %v8035_v58 = vmul.f32 -1.442695, %v3704_v42 }
 0x542   : > { %v12442_v29 = vpop.f32.mrf.mxu2 }
 0x543   : > { %9157 = vpow2.f32 %v8035_v58 }
 0x544   : > { %v4522_v16 = vpop.permute.xlu0 %4521 }
 0x545   : > { %v4546_v48 = vsel %vm1283_vm3, %v4522_v16, %v12439_v57  ;;  %v4550_v15 = vsel %vm1283_vm3, %v12437_v14, %v4522_v16  ;;  %v12465_v17 = vpop.permute.xlu1 %4527 }
 0x546   : > { %14650 = vst [vmem:[#allocation30_spill] sm:$0xff] %v12465_v17  ;;  %v4583_v31 = vmul.f32 %v8146_v38, %v4550_v15  ;;  %v4584_v27 = vmul.f32 %v8147_v43, %v4546_v48  ;;  %v4545_v19 = vsel %vm1283_vm3, %v4520_v55, %v12465_v17  ;;  %v8043_v38 = vld [vmem:[%s14471_s2 + $0xa8] sm:$0xff]  ;;  %v3632_v15 = vpop.f32.mrf.mxu1 }
 0x547   : > { %v4580_v9 = vmul.f32 %v8143_v10, %v4545_v19 }
 0x548   : > { %v4593_v47 = vpack.c.bf16 %v4584_v27, %v4583_v31  ;;  %v3618_v31 = vpop.f32.mrf.mxu0 }
 0x549   : > { %v4591_v7 = vpack.c.bf16 %v4580_v9, %v4579_v12  ;;  %v9158_v13 = vpop.eup %9157  ;;  %v3633_v9 = vadd.f32 %v3632_v15, %v3618_v31 }
 0x54a   : > { %4601 = vst [vmem:[#allocation7 + $0x230] sm:$0xff] %v4593_v47  ;;  %v3602_v42 = vpop.f32.mrf.mxu2  ;;  %v3720_v58 = vadd.f32 1.0, %v9158_v13  ;;  %v8091_v47 = vld [vmem:[%s14471_s2 + $0x2a8] sm:$0xff]  ;;  %v12488_v13 = vpop.permute.xlu2 %4237 }
 0x54b   : > { %4599 = vst [vmem:[#allocation7 + $0x220] sm:$0xff] %v4591_v7  ;;  %v3603_v16 = vadd.f32 %v3602_v42, %v3588_v22 }
 0x54c   : > { %v12472_v53 = vpop.permute.xlu0 %3925  ;;  %9159 = vrcp.f32 %v3720_v58  ;;  %14651 = vst [vmem:[#allocation40_spill] sm:$0xff] %v12488_v13  ;;  %vm3743_vm12 = vweird.f32 %v3720_v58 }
 0x54d   : > { %v3703_v55 = vadd.f32 %v11107_v23, %v3603_v16  ;;  %v3918_v43 = vpop.permute.xlu1 %3917 }
 0x54e   : > { %v3956_v51 = vsel %vm679_vm5, %v3918_v43, %v12472_v53  ;;  %v3960_v2 = vsel %vm679_vm5, %v12470_v39, %v3918_v43 }
 0x54f   : > { %v8034_v10 = vmul.f32 -1.442695, %v3703_v55  ;;  %v3983_v22 = vmul.f32 %v11955_v5, %v3960_v2  ;;  %v3984_v48 = vmul.f32 %v8043_v38, %v3956_v51  ;;  %v8090_v5 = vld [vmem:[%s14471_s2 + $0x2a0] sm:$0xff] }
 0x551   : > { %9161 = vpow2.f32 %v8034_v10  ;;  %v3997_v27 = vpack.c.bf16 %v3984_v48, %v3983_v22  ;;  %v9019_v19 = vld [vmem:[#allocation7 + $0x22c] sm:$0xf0]  ;;  %v3749_v22 = vand.u32 2147483648, %v3720_v58 }
 0x552   : > { %v8508_v12 = vld [vmem:[#allocation7 + $0x220] sm:$0xf]  ;;  %v9160_v23 = vpop.eup %9159  ;;  %9163 = vtanh.f32 %v3633_v9  ;;  %v4149_v9 = vsel %vm875_vm0, %v12110_v18, %v11921_v37 }
 0x553   : > { %4005 = vst [vmem:[#allocation7 + $0x50] sm:$0xff] %v3997_v27  ;;  %v8509_v7 = vor.u32 %v9019_v19, %v8508_v12  ;;  %v3739_v42 = vmul.f32 %v9160_v23, %v3720_v58  ;;  %vm3744_vm11 = vweird.f32 %v9160_v23  ;;  %v3747_v27 = vand.u32 2147483647, %v3720_v58  ;;  %v8078_v58 = vld [vmem:[%s14471_s2 + $0x1c0] sm:$0xff] }
 0x554   : > { %v4230_v16 = vpop.permute.xlu0 %4229  ;;  %vm3745_vm13 = vmor %vm3743_vm12, %vm3744_vm11 }
 0x555   : > { %v4256_v38 = vsel %vm989_vm7, %v4230_v16, %v12488_v13  ;;  %5283 = vmatpush.bf16.msrb.mxu1 %v8509_v7  ;;  %v12496_v55 = vpop.permute.xlu1 %4221  ;;  %v3740_v43 = vsub.f32 1.0, %v3739_v42  ;;  %v3604_v7 = vpop.f32.mrf.mxu2  ;;  %v8079_v42 = vld [vmem:[%s14471_s2 + $0x1c8] sm:$0xff]  ;;  %vm3748_vm14 = vcmp.eq.f32.partialorder %v3747_v27, 8.507059e+37 }
 0x556   : > { %14652 = vst [vmem:[#allocation38_spill] sm:$0xff] %v12496_v55  ;;  %v4288_v51 = vmul.f32 %v8091_v47, %v4256_v38  ;;  %v4260_v2 = vsel %vm989_vm7, %v12496_v55, %v4230_v16  ;;  %v3750_v47 = vor.u32 1.1754944e-38, %v3749_v22  ;;  %v3605_v17 = vadd.f32 %v3604_v7, %v12442_v29 }
 0x557   : > { %v9162_v10 = vpop.eup %9161  ;;  %v4287_v48 = vmul.f32 %v8090_v5, %v4260_v2  ;;  %v3741_v31 = vmul.f32 %v9160_v23, %v3740_v43 }
 0x558   : > { %v12501_v15 = vadd.f32 1.0, %v9162_v10  ;;  %v3672_v5 = vpop.f32.mrf.mxu0  ;;  %v9164_v43 = vpop.eup %9163 }
 0x559   : > { %v4301_v19 = vpack.c.bf16 %v4288_v51, %v4287_v48  ;;  %v3742_v12 = vadd.f32 %v9160_v23, %v3741_v31  ;;  %v14653_v31 = vld [vmem:[#allocation36_spill] sm:$0xff] }
 0x55a   : > { %9165 = vrcp.f32 %v12501_v15  ;;  %v3734_v7 = vand.u32 2147483648, %v12501_v15  ;;  %vm3728_vm9 = vweird.f32 %v12501_v15 }
 0x55b   : > { %4309 = vst [vmem:[#allocation7 + $0x150] sm:$0xff] %v4301_v19  ;;  %v3746_v16 = vsel %vm3745_vm13, %v9160_v23, %v3742_v12  ;;  %v4180_v23 = vmul.f32 %v8079_v42, %v4149_v9  ;;  %v4053_v42 = vsel %vm777_vm2, %v12268_v35, %v12182_v32 }
 0x55c   : > { %v3686_v38 = vpop.f32.mrf.mxu1  ;;  %v3751_v51 = vsel %vm3748_vm14, %v3750_v47, %v3746_v16 }
 0x55d   : > { %v3687_v2 = vadd.f32 %v3686_v38, %v3672_v5  ;;  %v12514_v10 = vpop.permute.xlu1 %4135  ;;  %v12516_v22 = vmul.f32 %v9164_v43, %v3751_v51 }
 0x55e   : > { %v4153_v48 = vsel %vm875_vm0, %v12514_v10, %v12110_v18  ;;  %v8063_v18 = vld [vmem:[%s14471_s2 + $0x148] sm:$0xff] }
 0x55f   : > { %v3706_v27 = vadd.f32 %v14653_v31, %v3687_v2  ;;  %v4179_v19 = vmul.f32 %v8078_v58, %v4153_v48  ;;  %3792 = vst [vmem:[#allocation2 + $0x68] sm:$0xff] %v12516_v22  ;;  %4115 = vrot.lane.b32.xlu2 %v12516_v22, %s9354_s22  ;;  %v8062_v58 = vld [vmem:[%s14471_s2 + $0x140] sm:$0xff]  ;;  %v3732_v2 = vand.u32 2147483647, %v12501_v15  ;;  %v14654_v48 = vld [vmem:[#allocation34_spill] sm:$0xff] }
 0x560   : > { %v9166_v12 = vpop.eup %9165  ;;  %v3644_v47 = vpop.f32.mrf.mxu3 }
 0x561   : > { %v3724_v16 = vmul.f32 %v9166_v12, %v12501_v15  ;;  %v8037_v5 = vmul.f32 -1.442695, %v3706_v27  ;;  %v4191_v38 = vpack.c.bf16 %v4180_v23, %v4179_v19  ;;  %vm3729_vm15 = vweird.f32 %v9166_v12 }
 0x562   : > { %v3658_v43 = vpop.f32.mrf.mxu2  ;;  %v4084_v27 = vmul.f32 %v8063_v18, %v4053_v42  ;;  %vm3730_vm11 = vmor %vm3728_vm9, %vm3729_vm15  ;;  %vm3733_vm12 = vcmp.eq.f32.partialorder %v3732_v2, 8.507059e+37  ;;  %v4518_v18 = vpop.permute.xlu0 %4517  ;;  %v3957_v2 = vsel %vm679_vm5, %v12376_v3, %v12352_v25 }
 0x563   : > { %v3725_v9 = vsub.f32 1.0, %v3724_v16  ;;  %9167 = vpow2.f32 %v8037_v5  ;;  %4199 = vst [vmem:[#allocation7 + $0xe0] sm:$0xff] %v4191_v38  ;;  %v3659_v29 = vadd.f32 %v3658_v43, %v3644_v47  ;;  %v3735_v5 = vor.u32 1.1754944e-38, %v3734_v7  ;;  %v12550_v43 = vpop.permute.xlu2 %4525 }
 0x564   : > { %9169 = vtanh.f32 %v3605_v17  ;;  %14655 = vst [vmem:[#allocation27_spill] sm:$0xff] %v12550_v43 }
 0x565   : > { %v3726_v51 = vmul.f32 %v9166_v12, %v3725_v9  ;;  %v3705_v23 = vadd.f32 %v14654_v48, %v3659_v29  ;;  %v12541_v31 = vpop.permute.xlu1 %4039  ;;  %v8979_v29 = vld [vmem:[#allocation7 + $0xec] sm:$0xf0] }
 0x566   : > { %v4057_v19 = vsel %vm777_vm2, %v12541_v31, %v12268_v35  ;;  %v8350_v35 = vld [vmem:[#allocation7 + $0xf0] sm:$0xf0] }
 0x567   : > { %v3727_v47 = vadd.f32 %v9166_v12, %v3726_v51  ;;  %v8036_v17 = vmul.f32 -1.442695, %v3705_v23  ;;  %v4083_v16 = vmul.f32 %v8062_v58, %v4057_v19  ;;  %4419 = vrot.lane.b32.xlu2 %v12516_v22, %s9355_s23 }
 0x569   : > { %v9168_v38 = vpop.eup %9167  ;;  %v3731_v9 = vsel %vm3730_vm11, %v9166_v12, %v3727_v47  ;;  %9171 = vpow2.f32 %v8036_v17  ;;  %v4095_v42 = vpack.c.bf16 %v4084_v27, %v4083_v16  ;;  %v8047_v12 = vld [vmem:[%s14471_s2 + $0xc8] sm:$0xff]  ;;  %v8046_v27 = vld [vmem:[%s14471_s2 + $0xc0] sm:$0xff] }
 0x56a   : > { %v9170_v51 = vpop.eup %9169  ;;  %v3736_v48 = vsel %vm3733_vm12, %v3735_v5, %v3731_v9  ;;  %v3722_v15 = vadd.f32 1.0, %v9168_v38  ;;  %v8348_v23 = vld [vmem:[#allocation7 + $0xe0] sm:$0xf]  ;;  %v8977_v58 = vld [vmem:[#allocation7 + $0xe4] sm:$0xf]  ;;  %v3988_v38 = vmul.f32 %v8047_v12, %v3957_v2  ;;  %v3688_v9 = vpop.f32.mrf.mxu1 }
 0x56b   : > { %v12552_v19 = vmul.f32 %v9170_v51, %v3736_v48  ;;  %4103 = vst [vmem:[#allocation7 + $0xa0] sm:$0xff] %v4095_v42  ;;  %v8349_v7 = vor.u32 %v8979_v29, %v8348_v23  ;;  %v8353_v55 = vor.u32 %v8977_v58, %v8350_v35  ;;  %v12583_v23 = vpop.permute.xlu2 %3831  ;;  %v3646_v12 = vpop.f32.mrf.mxu3  ;;  %v8138_v2 = vld [vmem:[%s14471_s2 + $0x420] sm:$0xff] }
 0x56c   : > { %9173 = vrcp.f32 %v3722_v15  ;;  %vm3773_vm14 = vweird.f32 %v3722_v15 }
 0x56d   : > { %3791 = vst [vmem:[#allocation2 + $0x50] sm:$0xff] %v12552_v19  ;;  %5189 = vmatpush.bf16.msra.mxu3 %v8349_v7  ;;  %v12565_v47 = vpop.permute.xlu1 %3943  ;;  %5321 = vmatpush.bf16.msrb.mxu0 %v8353_v55  ;;  %v4203_v17 = vpack.c.bf16 %v12516_v22, %v12552_v19  ;;  %v3674_v55 = vpop.f32.mrf.mxu0 }
 0x56e   : > { %14656 = vst [vmem:[#allocation14_spill] sm:$0xff] %v12565_v47  ;;  %v3961_v16 = vsel %vm679_vm5, %v12565_v47, %v12376_v3  ;;  %4107 = vrot.lane.b32.xlu0 %v12552_v19, %s9354_s22  ;;  %v4544_v3 = vsel %vm1283_vm3, %v4518_v18, %v12550_v43  ;;  %v3689_v48 = vadd.f32 %v3688_v9, %v3674_v55  ;;  %v12585_v7 = vpop.permute.xlu0 %3823  ;;  %v3779_v9 = vand.u32 2147483648, %v3722_v15 }
 0x56f   : > { %v9172_v5 = vpop.eup %9171  ;;  %v3987_v42 = vmul.f32 %v8046_v27, %v3961_v16  ;;  %4211 = vst [vmem:[#allocation7 + $0x100] sm:$0xff] %v4203_v17  ;;  %4019 = vrot.lane.b32.xlu2 %v12516_v22, %s9356_s24  ;;  %v9334_v27 = vld [vmem:[%s14471_s2 + $0x428] sm:$0xff] }
 0x570   : > { %v12575_v29 = vadd.f32 1.0, %v9172_v5  ;;  %v4576_v17 = vmul.f32 %v9334_v27, %v4544_v3  ;;  %v3780_v27 = vor.u32 1.1754944e-38, %v3779_v9 }
 0x571   : > { %v3999_v35 = vpack.c.bf16 %v3988_v38, %v3987_v42  ;;  %v3660_v38 = vpop.f32.mrf.mxu2 }
 0x572   : > { %v9174_v51 = vpop.eup %9173  ;;  %9175 = vrcp.f32 %v12575_v29  ;;  %v3661_v21 = vadd.f32 %v3660_v38, %v3646_v12  ;;  %v3764_v38 = vand.u32 2147483648, %v12575_v29  ;;  %v3762_v9 = vand.u32 2147483647, %v12575_v29  ;;  %v8316_v40 = vld [vmem:[#allocation7 + $0xa0] sm:$0xf] }
 0x573   : > { %v3769_v58 = vmul.f32 %v9174_v51, %v3722_v15  ;;  %4007 = vst [vmem:[#allocation7 + $0x60] sm:$0xff] %v3999_v35  ;;  %9177 = vtanh.f32 %v3689_v48  ;;  %vm3774_vm13 = vweird.f32 %v9174_v51  ;;  %v3777_v35 = vand.u32 2147483647, %v3722_v15  ;;  %v12605_v26 = vpop.permute.xlu2 %3849  ;;  %v3880_v15 = vld [vmem:[%s14471_s2 + $0x68] sm:$0xff]  ;;  %v8969_v14 = vld [vmem:[#allocation7 + $0xa4] sm:$0xf] }
 0x574   : > { %vm3775_vm15 = vmor %vm3773_vm14, %vm3774_vm13  ;;  %14659 = vst [vmem:[#allocation16_spill] sm:$0xff] %v12605_v26  ;;  %9179 = vtanh.f32 %v3661_v21  ;;  %vm3758_vm12 = vweird.f32 %v12575_v29  ;;  %vm3763_vm14 = vcmp.eq.f32.partialorder %v3762_v9, 8.507059e+37 }
 0x575   : > { %v3770_v16 = vsub.f32 1.0, %v3769_v58  ;;  %v12593_v5 = vpop.permute.xlu1 %4509  ;;  %vm3778_vm9 = vcmp.eq.f32.partialorder %v3777_v35, 8.507059e+37 }
 0x576   : > { %14657 = vst [vmem:[#allocation13_spill] sm:$0xff] %v12593_v5  ;;  %v4548_v42 = vsel %vm1283_vm3, %v12593_v5, %v4518_v18  ;;  %4411 = vrot.lane.b32.xlu0 %v12552_v19, %s9355_s23 }
 0x577   : > { %v3771_v55 = vmul.f32 %v9174_v51, %v3770_v16  ;;  %v4575_v43 = vmul.f32 %v8138_v2, %v4548_v42  ;;  %4323 = vrot.lane.b32.xlu2 %v12516_v22, %s9358_s26  ;;  %v12603_v16 = vpop.permute.xlu0 %3833 }
 0x578   : > { %v9176_v13 = vpop.eup %9175  ;;  %14658 = vst [vmem:[#allocation43_spill] sm:$0xff] %v12603_v16 }
 0x579   : > { %v3754_v3 = vmul.f32 %v9176_v13, %v12575_v29  ;;  %v3772_v58 = vadd.f32 %v9174_v51, %v3771_v55  ;;  %v4589_v48 = vpack.c.bf16 %v4576_v17, %v4575_v43  ;;  %v9178_v2 = vpop.eup %9177  ;;  %v3879_v43 = vld [vmem:[%s14471_s2 + $0x60] sm:$0xff]  ;;  %vm3759_vm11 = vweird.f32 %v9176_v13  ;;  %v3876_v29 = vld [vmem:[%s14471_s2 + $0x48] sm:$0xff] }
 0x57a   : > { %vm3760_vm13 = vmor %vm3758_vm12, %vm3759_vm11 }
 0x57b   : > { %v3755_v18 = vsub.f32 1.0, %v3754_v3  ;;  %v3776_v5 = vsel %vm3775_vm15, %v9174_v51, %v3772_v58  ;;  %4597 = vst [vmem:[#allocation7 + $0x210] sm:$0xff] %v4589_v48  ;;  %v3765_v58 = vor.u32 1.1754944e-38, %v3764_v38  ;;  %v3861_v38 = vsel %vm582_vm8, %v12585_v7, %v12583_v23 }
 0x57c   : > { %v3781_v12 = vsel %vm3778_vm9, %v3780_v27, %v3776_v5  ;;  %v3892_v9 = vmul.f32 %v3876_v29, %v3861_v38 }
 0x57d   : > { %v12614_v51 = vmul.f32 %v9178_v2, %v3781_v12  ;;  %v3756_v17 = vmul.f32 %v9176_v13, %v3755_v18  ;;  %v3826_v42 = vpop.permute.xlu1 %3825  ;;  %v9180_v18 = vpop.eup %9179 }
 0x57e   : > { %v3862_v5 = vsel %vm582_vm8, %v3826_v42, %v12603_v16  ;;  %v3866_v21 = vsel %vm582_vm8, %v12605_v26, %v3826_v42  ;;  %4011 = vrot.lane.b32.xlu0 %v12552_v19, %s9356_s24 }
 0x57f   : > { %3794 = vst [vmem:[#allocation2 + $0x48] sm:$0xff] %v12614_v51  ;;  %v3757_v55 = vadd.f32 %v9176_v13, %v3756_v17  ;;  %v3896_v35 = vmul.f32 %v3880_v15, %v3862_v5  ;;  %v3895_v3 = vmul.f32 %v3879_v43, %v3866_v21  ;;  %4131 = vrot.lane.b32.xlu1 %v12614_v51, %s9354_s22  ;;  %v9336_v21 = vld [vmem:[#allocation3 + $0x60] sm:$0xff] }
 0x580   : > { %3923 = vrot.lane.b32.xlu2 %v12516_v22, %s9359_s29 }
 0x581   : > { %v3761_v48 = vsel %vm3760_vm13, %v9176_v13, %v3757_v55  ;;  %v3905_v27 = vpack.c.bf16 %v3896_v35, %v3895_v3  ;;  %v3875_v13 = vld [vmem:[%s14471_s2 + $0x40] sm:$0xff]  ;;  %v9338_v55 = vld [vmem:[#allocation3 + $0x70] sm:$0xff] }
 0x582   : > { %v3766_v2 = vsel %vm3763_vm14, %v3765_v58, %v3761_v48 }
 0x583   : > { %v12631_v12 = vmul.f32 %v9180_v18, %v3766_v2  ;;  %3913 = vst [vmem:[#allocation7 + $0x30] sm:$0xff] %v3905_v27 }
 0x585   : > { %3793 = vst [vmem:[#allocation2 + $0x8] sm:$0xff] %v12631_v12  ;;  %v12644_v15 = vpop.permute.xlu1 %3847  ;;  %v4204_v43 = vpack.c.bf16 %v12614_v51, %v12631_v12 }
 0x586   : > { %v3865_v17 = vsel %vm582_vm8, %v12644_v15, %v12585_v7  ;;  %4315 = vrot.lane.b32.xlu0 %v12552_v19, %s9358_s26  ;;  %v12674_v7 = vld [vmem:[#allocation3 + $0x38] sm:$0xff] }
 0x587   : > { %v3891_v42 = vmul.f32 %v3875_v13, %v3865_v17  ;;  %4035 = vrot.lane.b32.xlu1 %v12614_v51, %s9356_s24  ;;  %4212 = vst [vmem:[#allocation7 + $0x108] sm:$0xff] %v4204_v43  ;;  %v8071_v13 = vld [vmem:[%s14471_s2 + $0x188] sm:$0xff] }
 0x588   : > { %4227 = vrot.lane.b32.xlu2 %v12516_v22, %s9360_s18 }
 0x589   : > { %v3903_v5 = vpack.c.bf16 %v3892_v9, %v3891_v42  ;;  %v8070_v9 = vld [vmem:[%s14471_s2 + $0x180] sm:$0xff] }
 0x58b   : > { %3911 = vst [vmem:[#allocation7 + $0x20] sm:$0xff] %v3903_v5 }
 0x58d   : > { %v12732_v2 = vpop.permute.xlu1 %3821 }
 0x58e   : > { %3915 = vrot.lane.b32.xlu0 %v12552_v19, %s9359_s29 }
 0x58f   : > { %3939 = vrot.lane.b32.xlu1 %v12614_v51, %s9359_s29 }
 0x590   : > { %4515 = vrot.lane.b32.xlu2 %v12516_v22, %s9357_s25 }
 0x596   : > { %4219 = vrot.lane.b32.xlu0 %v12552_v19, %s9360_s18 }
 0x597   : > { %4427 = vrot.lane.b32.xlu1 %v12631_v12, %s9355_s23 }
 0x598   : > { %3827 = vrot.lane.b32.xlu2 %v12516_v22, %s9361_s13  ;;  %v9337_v22 = vld [vmem:[#allocation3 + $0x30] sm:$0xff] }
 0x59e   : > { %4507 = vrot.lane.b32.xlu0 %v12552_v19, %s9357_s25 }
 0x59f   : > { %4331 = vrot.lane.b32.xlu1 %v12631_v12, %s9358_s26 }
 0x5a0   : > { %3845 = vrot.lane.b32.xlu2 %v12674_v7, %s9361_s13 }
 0x5a6   : > { %3819 = vrot.lane.b32.xlu0 %v12552_v19, %s9361_s13 }
 0x5a7   : > { %4235 = vrot.lane.b32.xlu1 %v12631_v12, %s9360_s18 }
 0x5a8   : > { %4033 = vrot.lane.b32.xlu2 %v9336_v21, %s9356_s24 }
 0x5ae   : > { %3829 = vrot.lane.b32.xlu0 %v9337_v22, %s9361_s13 }
 0x5af   : > { %4523 = vrot.lane.b32.xlu1 %v12631_v12, %s9357_s25 }
 0x5b0   : > { %4437 = vrot.lane.b32.xlu2 %v12674_v7, %s9355_s23 }
 0x5b6   : > { %4127 = vrot.lane.b32.xlu0 %v12139_v1, %s9354_s22  ;;  %v9339_v1 = vld [vmem:[#allocation4 + $0x30] sm:$0xff] }
 0x5b7   : > { %3843 = vrot.lane.b32.xlu1 %v12614_v51, %s9361_s13 }
 0x5b8   : > { %4343 = vrot.lane.b32.xlu2 %v12264_v59, %s9358_s26 }
 0x5b9   : > { %v12694_v19 = vpop.permute.xlu2 %4115 }
 0x5be   : > { %4125 = vrot.lane.b32.xlu0 %v9338_v55, %s9354_s22 }
 0x5bf   : > { %4129 = vrot.lane.b32.xlu1 %v9336_v21, %s9354_s22 }
 0x5c0   : > { %3933 = vrot.lane.b32.xlu2 %v9338_v55, %s9359_s29 }
 0x5c1   : > { %v12699_v35 = vpop.permute.xlu2 %4419 }
 0x5c6   : > { %4439 = vrot.lane.b32.xlu0 %v12264_v59, %s9355_s23 }
 0x5c7   : > { %4031 = vrot.lane.b32.xlu1 %v9339_v1, %s9356_s24 }
 0x5c8   : > { %3839 = vrot.lane.b32.xlu2 %v9339_v1, %s9361_s13 }
 0x5c9   : > { %v12705_v3 = vpop.permute.xlu2 %4019 }
 0x5ce   : > { %4029 = vrot.lane.b32.xlu0 %v9338_v55, %s9356_s24 }
 0x5cf   : > { %4441 = vrot.lane.b32.xlu1 %v12260_v56, %s9355_s23 }
 0x5d0   : > { %4123 = vrot.lane.b32.xlu2 %v12631_v12, %s9354_s22 }
 0x5d1   : > { %v12712_v58 = vpop.permute.xlu2 %4323 }
 0x5d6   : > { %3935 = vrot.lane.b32.xlu0 %v9339_v1, %s9359_s29 }
 0x5d7   : > { %4435 = vrot.lane.b32.xlu1 %v12614_v51, %s9355_s23 }
 0x5d8   : > { %4027 = vrot.lane.b32.xlu2 %v12631_v12, %s9356_s24 }
 0x5da   : > { %v12719_v48 = vpop.permute.xlu2 %3923 }
 0x5db   : > { %14660 = vst [vmem:[#allocation19_spill] sm:$0xff] %v12719_v48 }
 0x5de   : > { %4345 = vrot.lane.b32.xlu0 %v12260_v56, %s9358_s26 }
 0x5df   : > { %3937 = vrot.lane.b32.xlu1 %v9336_v21, %s9359_s29 }
 0x5e0   : > { %v4108_v27 = vpop.permute.xlu0 %4107  ;;  %4249 = vrot.lane.b32.xlu2 %v12260_v56, %s9360_s18 }
 0x5e1   : > { %v4147_v43 = vsel %vm875_vm0, %v4108_v27, %v12694_v19 }
 0x5e2   : > { %v12726_v18 = vpop.permute.xlu2 %4227  ;;  %v4172_v22 = vmul.f32 %v8071_v13, %v4147_v43  ;;  %v8054_v13 = vld [vmem:[%s14471_s2 + $0x100] sm:$0xff] }
 0x5e6   : > { %4339 = vrot.lane.b32.xlu0 %v12614_v51, %s9358_s26 }
 0x5e7   : > { %4341 = vrot.lane.b32.xlu1 %v12674_v7, %s9358_s26 }
 0x5e8   : > { %v12734_v29 = vpop.permute.xlu0 %4411  ;;  %4243 = vrot.lane.b32.xlu2 %v12614_v51, %s9360_s18 }
 0x5ea   : > { %v12738_v38 = vpop.permute.xlu2 %4515 }
 0x5ee   : > { %3841 = vrot.lane.b32.xlu0 %v9336_v21, %s9361_s13 }
 0x5ef   : > { %4247 = vrot.lane.b32.xlu1 %v12264_v59, %s9360_s18 }
 0x5f0   : > { %v4012_v17 = vpop.permute.xlu0 %4011  ;;  %4537 = vrot.lane.b32.xlu2 %v12260_v56, %s9357_s25  ;;  %v8055_v56 = vld [vmem:[%s14471_s2 + $0x108] sm:$0xff] }
 0x5f1   : > { %v12754_v42 = vpop.permute.xlu1 %4131 }
 0x5f2   : > { %v4151_v5 = vsel %vm875_vm0, %v12754_v42, %v4108_v27  ;;  %v12759_v21 = vpop.permute.xlu2 %3827  ;;  %v4051_v27 = vsel %vm777_vm2, %v4012_v17, %v12705_v3 }
 0x5f3   : > { %v4171_v1 = vmul.f32 %v8070_v9, %v4151_v5  ;;  %v4076_v9 = vmul.f32 %v8055_v56, %v4051_v27  ;;  %v8038_v27 = vld [vmem:[%s14471_s2 + $0x80] sm:$0xff] }
 0x5f5   : > { %v4187_v16 = vpack.c.bf16 %v4172_v22, %v4171_v1  ;;  %v8975_v1 = vld [vmem:[#allocation7 + $0xcc] sm:$0xf0] }
 0x5f6   : > { %3835 = vrot.lane.b32.xlu0 %v12631_v12, %s9361_s13 }
 0x5f7   : > { %4195 = vst [vmem:[#allocation7 + $0xc0] sm:$0xff] %v4187_v16  ;;  %3931 = vrot.lane.b32.xlu1 %v12631_v12, %s9359_s29 }
 0x5f8   : > { %v12771_v26 = vpop.permute.xlu0 %4315 }
 0x5f9   : > { %v12776_v43 = vpop.permute.xlu1 %4035 }
 0x5fa   : > { %v4055_v16 = vsel %vm777_vm2, %v12776_v43, %v4012_v17  ;;  %v12781_v12 = vpop.permute.xlu2 %3845  ;;  %v8039_v17 = vld [vmem:[%s14471_s2 + $0x88] sm:$0xff] }
 0x5fb   : > { %v4075_v5 = vmul.f32 %v8054_v13, %v4055_v16  ;;  %v8971_v13 = vld [vmem:[#allocation7 + $0xac] sm:$0xf0] }
 0x5fd   : > { %v4091_v22 = vpack.c.bf16 %v4076_v9, %v4075_v5 }
 0x5fe   : > { %4245 = vrot.lane.b32.xlu0 %v12674_v7, %s9360_s18  ;;  %v8332_v4 = vld [vmem:[#allocation7 + $0xc0] sm:$0xf]  ;;  %v8973_v33 = vld [vmem:[#allocation7 + $0xc4] sm:$0xf] }
 0x5ff   : > { %4099 = vst [vmem:[#allocation7 + $0x80] sm:$0xff] %v4091_v22  ;;  %3837 = vrot.lane.b32.xlu1 %v9338_v55, %s9361_s13  ;;  %v8333_v63 = vor.u32 %v8975_v1, %v8332_v4  ;;  %v8337_v62 = vor.u32 %v8973_v33, %v8334_v60  ;;  %v8068_v33 = vld [vmem:[%s14471_s2 + $0x170] sm:$0xff]  ;;  %v8069_v4 = vld [vmem:[%s14471_s2 + $0x178] sm:$0xff]  ;;  %v8317_v22 = vor.u32 %v8971_v13, %v8316_v40  ;;  %v8284_v13 = vld [vmem:[#allocation7 + $0x60] sm:$0xf] }
 0x600   : > { %v3916_v56 = vpop.permute.xlu0 %3915  ;;  %v8318_v60 = vld [vmem:[#allocation7 + $0xb0] sm:$0xf0] }
 0x601   : > { %v3955_v16 = vsel %vm679_vm5, %v3916_v56, %v12719_v48  ;;  %v12795_v9 = vpop.permute.xlu1 %3939  ;;  %5190 = vmatpush.bf16.msra.mxu3 %v8333_v63  ;;  %5322 = vmatpush.bf16.msrb.mxu0 %v8337_v62  ;;  %v8321_v1 = vor.u32 %v8969_v14, %v8318_v60 }
 0x602   : > { %14661 = vst [vmem:[#allocation21_spill] sm:$0xff] %v12795_v9  ;;  %v3959_v55 = vsel %vm679_vm5, %v12795_v9, %v3916_v56  ;;  %v4034_v5 = vpop.permute.xlu2 %4033  ;;  %v3980_v48 = vmul.f32 %v8039_v17, %v3955_v16  ;;  %v8963_v56 = vld [vmem:[#allocation7 + $0x6c] sm:$0xf0]  ;;  %v8286_v9 = vld [vmem:[#allocation7 + $0x70] sm:$0xf0] }
 0x603   : > { %v3979_v57 = vmul.f32 %v8038_v27, %v3959_v55  ;;  %v4046_v62 = vsel %vm777_vm2, %v4034_v5, %v12222_v36  ;;  %v4050_v63 = vsel %vm777_vm2, %v12289_v50, %v4034_v5  ;;  %v8302_v27 = vld [vmem:[#allocation7 + $0x90] sm:$0xf0] }
 0x604   : > { %v4089_v25 = vmul.f32 %v8068_v33, %v4050_v63  ;;  %v4090_v47 = vmul.f32 %v8069_v4, %v4046_v62  ;;  %v8285_v4 = vor.u32 %v8963_v56, %v8284_v13  ;;  %v8252_v13 = vld [vmem:[#allocation7 + $0x20] sm:$0xf] }
 0x605   : > { %v3995_v61 = vpack.c.bf16 %v3980_v48, %v3979_v57  ;;  %5191 = vmatpush.bf16.msra.mxu3 %v8317_v22  ;;  %5323 = vmatpush.bf16.msrb.mxu0 %v8321_v1  ;;  %v8961_v57 = vld [vmem:[#allocation7 + $0x64] sm:$0xf] }
 0x606   : > { %v4098_v40 = vpack.c.bf16 %v4090_v47, %v4089_v25  ;;  %4531 = vrot.lane.b32.xlu0 %v12614_v51, %s9357_s25  ;;  %v8300_v14 = vld [vmem:[#allocation7 + $0x80] sm:$0xf]  ;;  %v8965_v17 = vld [vmem:[#allocation7 + $0x84] sm:$0xf]  ;;  %v4451_v25 = vsel %vm1185_vm1, %v12734_v29, %v12699_v35  ;;  %v8125_v51 = vld [vmem:[%s14471_s2 + $0x3b8] sm:$0xff]  ;;  %v8289_v60 = vor.u32 %v8961_v57, %v8286_v9 }
 0x607   : > { %4003 = vst [vmem:[#allocation7 + $0x40] sm:$0xff] %v3995_v61  ;;  %4535 = vrot.lane.b32.xlu1 %v12264_v59, %s9357_s25  ;;  %v8301_v36 = vor.u32 %v8967_v30, %v8300_v14  ;;  %v8305_v50 = vor.u32 %v8965_v17, %v8302_v27  ;;  %v8118_v48 = vld [vmem:[%s14471_s2 + $0x380] sm:$0xff]  ;;  %v8119_v61 = vld [vmem:[%s14471_s2 + $0x388] sm:$0xff]  ;;  %v8124_v59 = vld [vmem:[%s14471_s2 + $0x3b0] sm:$0xff] }
 0x608   : > { %4106 = vst [vmem:[#allocation7 + $0xb8] sm:$0xff] %v4098_v40  ;;  %v12823_v47 = vpop.permute.xlu0 %4219  ;;  %v4475_v55 = vmul.f32 %v8118_v48, %v4451_v25  ;;  %v8959_v14 = vld [vmem:[#allocation7 + $0x4c] sm:$0xf0]  ;;  %v8254_v17 = vld [vmem:[#allocation7 + $0x30] sm:$0xf0]  ;;  %v8102_v57 = vld [vmem:[%s14471_s2 + $0x300] sm:$0xff]  ;;  %v4355_v48 = vsel %vm1087_vm4, %v12771_v26, %v12712_v58 }
 0x609   : > { %v12828_v30 = vpop.permute.xlu1 %4427  ;;  %5192 = vmatpush.bf16.msra.mxu3 %v8301_v36  ;;  %5324 = vmatpush.bf16.msrb.mxu0 %v8305_v50  ;;  %v8270_v36 = vld [vmem:[#allocation7 + $0x50] sm:$0xf0] }
 0x60a   : > { %v4447_v16 = vsel %vm1185_vm1, %v12699_v35, %v12828_v30  ;;  %v4438_v33 = vpop.permute.xlu2 %4437  ;;  %v8955_v35 = vld [vmem:[#allocation7 + $0x2c] sm:$0xf0] }
 0x60b   : > { %v4476_v5 = vmul.f32 %v8119_v61, %v4447_v16  ;;  %v4444_v22 = vsel %vm1185_vm1, %v12160_v44, %v4438_v33  ;;  %v4456_v1 = vsel %vm1185_vm1, %v4438_v33, %v12295_v54  ;;  %v8953_v54 = vld [vmem:[#allocation7 + $0x24] sm:$0xf] }
 0x60c   : > { %v4481_v62 = vmul.f32 %v8124_v59, %v4444_v22  ;;  %v4482_v63 = vmul.f32 %v8125_v51, %v4456_v1  ;;  %v8112_v59 = vld [vmem:[%s14471_s2 + $0x350] sm:$0xff]  ;;  %v8113_v51 = vld [vmem:[%s14471_s2 + $0x358] sm:$0xff] }
 0x60d   : > { %v4491_v40 = vpack.c.bf16 %v4476_v5, %v4475_v55  ;;  %5193 = vmatpush.bf16.msra.mxu3 %v8285_v4  ;;  %5325 = vmatpush.bf16.msrb.mxu0 %v8289_v60  ;;  %v8253_v4 = vor.u32 %v8955_v35, %v8252_v13  ;;  %v8257_v60 = vor.u32 %v8953_v54, %v8254_v17  ;;  %v8444_v17 = vld [vmem:[#allocation7 + $0x1a0] sm:$0xf]  ;;  %v8045_v13 = vld [vmem:[%s14471_s2 + $0xb8] sm:$0xff] }
 0x60e   : > { %v4494_v56 = vpack.c.bf16 %v4482_v63, %v4481_v62  ;;  %v8268_v9 = vld [vmem:[#allocation7 + $0x40] sm:$0xf]  ;;  %v8957_v27 = vld [vmem:[#allocation7 + $0x44] sm:$0xf]  ;;  %v4379_v55 = vmul.f32 %v8102_v57, %v4355_v48 }
 0x60f   : > { %4499 = vst [vmem:[#allocation7 + $0x1c0] sm:$0xff] %v4491_v40  ;;  %4533 = vrot.lane.b32.xlu1 %v12674_v7, %s9357_s25  ;;  %v8269_v44 = vor.u32 %v8959_v14, %v8268_v9  ;;  %v8273_v50 = vor.u32 %v8957_v27, %v8270_v36  ;;  %v8103_v7 = vld [vmem:[%s14471_s2 + $0x308] sm:$0xff]  ;;  %v9003_v9 = vld [vmem:[#allocation7 + $0x1ac] sm:$0xf0] }
 0x610   : > { %4502 = vst [vmem:[#allocation7 + $0x1d8] sm:$0xff] %v4494_v56  ;;  %v12855_v25 = vpop.permute.xlu0 %4507  ;;  %v9007_v56 = vld [vmem:[#allocation7 + $0x1cc] sm:$0xf0]  ;;  %v8087_v36 = vld [vmem:[%s14471_s2 + $0x288] sm:$0xff]  ;;  %v8445_v48 = vor.u32 %v9003_v9, %v8444_v17 }
 0x611   : > { %v12860_v61 = vpop.permute.xlu1 %4331  ;;  %5194 = vmatpush.bf16.msra.mxu3 %v8269_v44  ;;  %5326 = vmatpush.bf16.msrb.mxu0 %v8273_v50  ;;  %v8044_v50 = vld [vmem:[%s14471_s2 + $0xb0] sm:$0xff] }
 0x612   : > { %v4351_v16 = vsel %vm1087_vm4, %v12712_v58, %v12860_v61  ;;  %v4344_v33 = vpop.permute.xlu2 %4343  ;;  %v3877_v9 = vld [vmem:[%s14471_s2 + $0x50] sm:$0xff] }
 0x613   : > { %v4380_v5 = vmul.f32 %v8103_v7, %v4351_v16  ;;  %v4349_v22 = vsel %vm1087_vm4, %v12350_v41, %v4344_v33  ;;  %v4361_v1 = vsel %vm1087_vm4, %v4344_v33, %v12305_v11  ;;  %v8086_v41 = vld [vmem:[%s14471_s2 + $0x280] sm:$0xff]  ;;  %v4259_v11 = vsel %vm989_vm7, %v12823_v47, %v12726_v18 }
 0x614   : > { %v4389_v62 = vmul.f32 %v8112_v59, %v4349_v22  ;;  %v4390_v63 = vmul.f32 %v8113_v51, %v4361_v1  ;;  %v4283_v7 = vmul.f32 %v8086_v41, %v4259_v11  ;;  %v8999_v22 = vld [vmem:[#allocation7 + $0x18c] sm:$0xf0]  ;;  %v3871_v1 = vld [vmem:[%s14471_s2 + $0x20] sm:$0xff]  ;;  %v3878_v41 = vld [vmem:[%s14471_s2 + $0x58] sm:$0xff] }
 0x615   : > { %v4395_v40 = vpack.c.bf16 %v4380_v5, %v4379_v55  ;;  %5195 = vmatpush.bf16.msra.mxu3 %v8253_v4  ;;  %5327 = vmatpush.bf16.msrb.mxu0 %v8257_v60 }
 0x616   : > { %v4400_v14 = vpack.c.bf16 %v4390_v63, %v4389_v62  ;;  %v8460_v58 = vld [vmem:[#allocation7 + $0x1c0] sm:$0xf] }
 0x617   : > { %4403 = vst [vmem:[#allocation7 + $0x180] sm:$0xff] %v4395_v40  ;;  %v8461_v35 = vor.u32 %v9007_v56, %v8460_v58  ;;  %v8412_v63 = vld [vmem:[#allocation7 + $0x160] sm:$0xf]  ;;  %v8135_v56 = vld [vmem:[%s14471_s2 + $0x408] sm:$0xff] }
 0x618   : > { %4408 = vst [vmem:[#allocation7 + $0x1a8] sm:$0xff] %v4400_v14  ;;  %v12885_v27 = vpop.permute.xlu0 %3819  ;;  %v8134_v40 = vld [vmem:[%s14471_s2 + $0x400] sm:$0xff]  ;;  %v4547_v14 = vsel %vm1283_vm3, %v12855_v25, %v12738_v38 }
 0x619   : > { %v12890_v44 = vpop.permute.xlu1 %4235  ;;  %5234 = vmatpush.bf16.msra.mxu2 %v8461_v35 }
 0x61a   : > { %v4255_v54 = vsel %vm989_vm7, %v12726_v18, %v12890_v44  ;;  %v3934_v57 = vpop.permute.xlu2 %3933  ;;  %v8995_v18 = vld [vmem:[#allocation7 + $0x16c] sm:$0xf0] }
 0x61b   : > { %v4284_v59 = vmul.f32 %v8087_v36, %v4255_v54  ;;  %v3948_v51 = vsel %vm679_vm5, %v3934_v57, %v12470_v39  ;;  %v3952_v16 = vsel %vm679_vm5, %v12472_v53, %v3934_v57  ;;  %v3864_v39 = vsel %vm582_vm8, %v12781_v12, %v12732_v2  ;;  %v3872_v53 = vld [vmem:[%s14471_s2 + $0x28] sm:$0xff] }
 0x61c   : > { %v3985_v33 = vmul.f32 %v8044_v50, %v3952_v16  ;;  %v3986_v4 = vmul.f32 %v8045_v13, %v3948_v51  ;;  %v3887_v11 = vmul.f32 %v3871_v1, %v3864_v39  ;;  %v4571_v54 = vmul.f32 %v8134_v40, %v4547_v14  ;;  %v8072_v14 = vld [vmem:[%s14471_s2 + $0x190] sm:$0xff] }
 0x61d   : > { %v4299_v60 = vpack.c.bf16 %v4284_v59, %v4283_v7  ;;  %5235 = vmatpush.bf16.msra.mxu2 %v8445_v48  ;;  %v3859_v1 = vsel %vm582_vm8, %v12885_v27, %v12759_v21 }
 0x61e   : > { %v3998_v55 = vpack.c.bf16 %v3986_v4, %v3985_v33  ;;  %v8428_v5 = vld [vmem:[#allocation7 + $0x180] sm:$0xf]  ;;  %v8987_v4 = vld [vmem:[#allocation7 + $0x12c] sm:$0xf0] }
 0x61f   : > { %4307 = vst [vmem:[#allocation7 + $0x140] sm:$0xff] %v4299_v60  ;;  %v8429_v62 = vor.u32 %v8999_v22, %v8428_v5  ;;  %v8080_v5 = vld [vmem:[%s14471_s2 + $0x1d0] sm:$0xff]  ;;  %v8380_v22 = vld [vmem:[#allocation7 + $0x120] sm:$0xf] }
 0x620   : > { %4006 = vst [vmem:[#allocation7 + $0x58] sm:$0xff] %v3998_v55  ;;  %v12925_v58 = vpop.permute.xlu0 %3829  ;;  %v8991_v55 = vld [vmem:[#allocation7 + $0x14c] sm:$0xf0] }
 0x621   : > { %v3860_v35 = vsel %vm582_vm8, %v12732_v2, %v12925_v58  ;;  %v12934_v17 = vpop.permute.xlu1 %4523  ;;  %5236 = vmatpush.bf16.msra.mxu2 %v8429_v62  ;;  %v8413_v2 = vor.u32 %v8995_v18, %v8412_v63  ;;  %v3868_v18 = vld [vmem:[%s14471_s2 + $0x8] sm:$0xff] }
 0x622   : > { %v3888_v36 = vmul.f32 %v3872_v53, %v3860_v35  ;;  %v4543_v50 = vsel %vm1283_vm3, %v12738_v38, %v12934_v17  ;;  %v3840_v13 = vpop.permute.xlu2 %3839  ;;  %v3867_v53 = vld [vmem:[%s14471_s2] sm:$0xff] }
 0x623   : > { %v4572_v57 = vmul.f32 %v8135_v56, %v4543_v50  ;;  %v3853_v48 = vsel %vm582_vm8, %v3840_v13, %v12644_v15  ;;  %v3857_v7 = vsel %vm582_vm8, %v12583_v23, %v3840_v13  ;;  %v8081_v15 = vld [vmem:[%s14471_s2 + $0x1d8] sm:$0xff] }
 0x624   : > { %v3901_v59 = vpack.c.bf16 %v3888_v36, %v3887_v11  ;;  %v3893_v51 = vmul.f32 %v3877_v9, %v3857_v7  ;;  %v3894_v16 = vmul.f32 %v3878_v41, %v3853_v48  ;;  %v8073_v56 = vld [vmem:[%s14471_s2 + $0x198] sm:$0xff]  ;;  %v3884_v11 = vmul.f32 %v3868_v18, %v3859_v1  ;;  %v8084_v1 = vld [vmem:[%s14471_s2 + $0x1f0] sm:$0xff] }
 0x625   : > { %v4587_v33 = vpack.c.bf16 %v4572_v57, %v4571_v54  ;;  %5237 = vmatpush.bf16.msra.mxu2 %v8413_v2  ;;  %v8983_v2 = vld [vmem:[#allocation7 + $0x10c] sm:$0xf0]  ;;  %v9009_v54 = vld [vmem:[#allocation7 + $0x1e4] sm:$0xf]  ;;  %v8478_v57 = vld [vmem:[#allocation7 + $0x1f0] sm:$0xf0] }
 0x626   : > { %3909 = vst [vmem:[#allocation7 + $0x10] sm:$0xff] %v3901_v59  ;;  %v3904_v38 = vpack.c.bf16 %v3894_v16, %v3893_v51  ;;  %v8396_v60 = vld [vmem:[#allocation7 + $0x140] sm:$0xf]  ;;  %v9015_v51 = vld [vmem:[#allocation7 + $0x20c] sm:$0xf0] }
 0x627   : > { %4595 = vst [vmem:[#allocation7 + $0x200] sm:$0xff] %v4587_v33  ;;  %v8397_v23 = vor.u32 %v8991_v55, %v8396_v60  ;;  %v8160_v16 = vld [vmem:[%s14474_s5 + $0x8] sm:$0xf]  ;;  %v9005_v55 = vld [vmem:[#allocation7 + $0x1c4] sm:$0xf] }
 0x628   : > { %3912 = vst [vmem:[#allocation7 + $0x28] sm:$0xff] %v3904_v38  ;;  %v4128_v39 = vpop.permute.xlu0 %4127 }
 0x629   : > { %v4141_v62 = vsel %vm875_vm0, %v4128_v39, %v12514_v10  ;;  %v4145_v63 = vsel %vm875_vm0, %v11921_v37, %v4128_v39  ;;  %v12974_v40 = vpop.permute.xlu1 %3843  ;;  %5238 = vmatpush.bf16.msra.mxu2 %v8397_v23  ;;  %v8381_v37 = vor.u32 %v8987_v4, %v8380_v22  ;;  %v8154_v4 = vld [vmem:[%s14474_s5 + $0xc] sm:$0xf0]  ;;  %v8085_v39 = vld [vmem:[%s14471_s2 + $0x1f8] sm:$0xff] }
 0x62a   : > { %v4181_v35 = vmul.f32 %v8080_v5, %v4145_v63  ;;  %v4182_v9 = vmul.f32 %v8081_v15, %v4141_v62  ;;  %v3863_v10 = vsel %vm582_vm8, %v12974_v40, %v12885_v27  ;;  %v4124_v41 = vpop.permute.xlu2 %4123  ;;  %v8364_v27 = vld [vmem:[#allocation7 + $0x100] sm:$0xf]  ;;  %v8076_v5 = vld [vmem:[%s14471_s2 + $0x1b0] sm:$0xff]  ;;  %v8077_v15 = vld [vmem:[%s14471_s2 + $0x1b8] sm:$0xff] }
 0x62b   : > { %v3883_v36 = vmul.f32 %v3867_v53, %v3863_v10  ;;  %v4139_v50 = vsel %vm875_vm0, %v4124_v41, %v12754_v42  ;;  %v4143_v13 = vsel %vm875_vm0, %v12694_v19, %v4124_v41  ;;  %v8930_v42 = vld [vmem:[%s14474_s5 + $0x10] sm:$0xf0]  ;;  %v8928_v19 = vld [vmem:[%s14474_s5 + $0x4] sm:$0xf]  ;;  %v8365_v22 = vor.u32 %v8983_v2, %v8364_v27  ;;  %v8057_v41 = vld [vmem:[%s14471_s2 + $0x118] sm:$0xff] }
 0x62c   : > { %v4192_v48 = vpack.c.bf16 %v4182_v9, %v4181_v35  ;;  %v4173_v7 = vmul.f32 %v8072_v14, %v4143_v13  ;;  %v4174_v59 = vmul.f32 %v8073_v56, %v4139_v50  ;;  %v8481_v53 = vor.u32 %v9009_v54, %v8478_v57  ;;  %v8462_v63 = vld [vmem:[#allocation7 + $0x1d0] sm:$0xf0] }
 0x62d   : > { %v3899_v33 = vpack.c.bf16 %v3884_v11, %v3883_v36  ;;  %5239 = vmatpush.bf16.msra.mxu2 %v8381_v37  ;;  %v13016_v62 = vor.u32 %v8930_v42, %v8160_v16  ;;  %v13018_v14 = vor.u32 %v8928_v19, %v8154_v4  ;;  %v8056_v10 = vld [vmem:[%s14471_s2 + $0x110] sm:$0xff]  ;;  %v8465_v37 = vor.u32 %v9005_v55, %v8462_v63  ;;  %v8152_v16 = vld [vmem:[%s14474_s5] sm:$0xf]  ;;  %v8997_v19 = vld [vmem:[#allocation7 + $0x184] sm:$0xf] }
 0x62e   : > { %4200 = vst [vmem:[#allocation7 + $0xe8] sm:$0xff] %v4192_v48  ;;  %v4188_v38 = vpack.c.bf16 %v4174_v59, %v4173_v7  ;;  %v8492_v60 = vld [vmem:[#allocation7 + $0x200] sm:$0xf]  ;;  %v9001_v48 = vld [vmem:[#allocation7 + $0x1a4] sm:$0xf]  ;;  %v8128_v55 = vld [vmem:[%s14471_s2 + $0x3d0] sm:$0xff] }
 0x62f   : > { %3907 = vst [vmem:[#allocation7] sm:$0xff] %v3899_v33  ;;  %v8493_v23 = vor.u32 %v9015_v51, %v8492_v60  ;;  %v8446_v7 = vld [vmem:[#allocation7 + $0x1b0] sm:$0xf0]  ;;  %v8951_v33 = vld [vmem:[#allocation7 + $0xc] sm:$0xf0] }
 0x630   : > { %4196 = vst [vmem:[#allocation7 + $0xc8] sm:$0xff] %v4188_v38  ;;  %v4126_v18 = vpop.permute.xlu0 %4125  ;;  %v8510_v59 = vld [vmem:[#allocation7 + $0x230] sm:$0xf0] }
 0x631   : > { %v4140_v56 = vsel %vm875_vm0, %v4126_v18, %v12126_v20  ;;  %v4144_v35 = vsel %vm875_vm0, %v12217_v0, %v4126_v18  ;;  %v4130_v9 = vpop.permute.xlu1 %4129  ;;  %5284 = vmatpush.bf16.msrb.mxu1 %v8493_v23  ;;  %5240 = vmatpush.bf16.msra.mxu2 %v8365_v22  ;;  %v8238_v42 = vld [vmem:[#allocation7 + $0x10] sm:$0xf0] }
 0x632   : > { %v4177_v11 = vmul.f32 %v8076_v5, %v4144_v35  ;;  %v4178_v36 = vmul.f32 %v8077_v15, %v4140_v56  ;;  %v4142_v20 = vsel %vm875_vm0, %v4130_v9, %v11968_v28  ;;  %v4146_v0 = vsel %vm875_vm0, %v12143_v8, %v4130_v9  ;;  %v4028_v50 = vpop.permute.xlu2 %4027  ;;  %v9017_v8 = vld [vmem:[#allocation7 + $0x224] sm:$0xf]  ;;  %v8129_v5 = vld [vmem:[%s14471_s2 + $0x3d8] sm:$0xff]  ;;  %v8064_v18 = vld [vmem:[%s14471_s2 + $0x150] sm:$0xff] }
 0x633   : > { %v4185_v13 = vmul.f32 %v8084_v1, %v4146_v0  ;;  %v4186_v2 = vmul.f32 %v8085_v39, %v4142_v20  ;;  %v4043_v54 = vsel %vm777_vm2, %v4028_v50, %v12776_v43  ;;  %v4047_v57 = vsel %vm777_vm2, %v12705_v3, %v4028_v50  ;;  %v8929_v43 = vld [vmem:[%s14474_s5 + $0x8] sm:$0xf0]  ;;  %v8065_v1 = vld [vmem:[%s14471_s2 + $0x158] sm:$0xff]  ;;  %v8430_v56 = vld [vmem:[#allocation7 + $0x190] sm:$0xf0] }
 0x634   : > { %v4190_v28 = vpack.c.bf16 %v4178_v36, %v4177_v11  ;;  %v4077_v51 = vmul.f32 %v8056_v10, %v4047_v57  ;;  %v4078_v27 = vmul.f32 %v8057_v41, %v4043_v54  ;;  %8522 = vmatmul.msk.bf16.vlgmr.msrb.gmra.mxu1 %vm1914_vm6, %v13016_v62  ;;  %5241 = vmatmul.bf16.vlgmr.msra.gmra.mxu2 %v13018_v14  ;;  %v8100_v41 = vld [vmem:[%s14471_s2 + $0x2f0] sm:$0xff]  ;;  %v9013_v50 = vld [vmem:[#allocation7 + $0x204] sm:$0xf] }
 0x635   : > { %5365 = vmatpush.bf16.msra.mxu1 %v8481_v53  ;;  %v4194_v3 = vpack.c.bf16 %v4186_v2, %v4185_v13  ;;  %v8449_v39 = vor.u32 %v9001_v48, %v8446_v7  ;;  %v8513_v53 = vor.u32 %v9017_v8, %v8510_v59  ;;  %v13065_v63 = vor.u32 %v8929_v43, %v8152_v16  ;;  %v8494_v13 = vld [vmem:[#allocation7 + $0x210] sm:$0xf0]  ;;  %v8993_v2 = vld [vmem:[#allocation7 + $0x164] sm:$0xf]  ;;  %v8933_v59 = vld [vmem:[%s14474_s5 + $0x28] sm:$0xf0] }
 0x636   : > { %4198 = vst [vmem:[#allocation7 + $0xd8] sm:$0xff] %v4190_v28  ;;  %v4092_v4 = vpack.c.bf16 %v4078_v27, %v4077_v51  ;;  %v8236_v38 = vld [vmem:[#allocation7] sm:$0xf]  ;;  %v8949_v60 = vld [vmem:[#allocation7 + $0x4] sm:$0xf]  ;;  %v8433_v11 = vor.u32 %v8997_v19, %v8430_v56  ;;  %v8133_v56 = vld [vmem:[%s14471_s2 + $0x3f8] sm:$0xff] }
 0x637   : > { %4202 = vst [vmem:[#allocation7 + $0xf8] sm:$0xff] %v4194_v3  ;;  %v8237_v15 = vor.u32 %v8951_v33, %v8236_v38  ;;  %v8241_v23 = vor.u32 %v8949_v60, %v8238_v42  ;;  %v8414_v54 = vld [vmem:[#allocation7 + $0x170] sm:$0xf0]  ;;  %v13097_v28 = vld [vmem:[#allocation7 + $0x144] sm:$0xf]  ;;  %v8497_v3 = vor.u32 %v9013_v50, %v8494_v13 }
 0x638   : > { %4100 = vst [vmem:[#allocation7 + $0x88] sm:$0xff] %v4092_v4  ;;  %v4440_v22 = vpop.permute.xlu0 %4439  ;;  %v8166_v16 = vld [vmem:[%s14474_s5 + $0x24] sm:$0xf0]  ;;  %v8398_v4 = vld [vmem:[#allocation7 + $0x150] sm:$0xf0] }
 0x639   : > { %5366 = vmatpush.bf16.msra.mxu1 %v8465_v37  ;;  %v4445_v35 = vsel %vm1185_vm1, %v12250_v34, %v4440_v22  ;;  %v4457_v9 = vsel %vm1185_vm1, %v4440_v22, %v12171_v46  ;;  %v4032_v10 = vpop.permute.xlu1 %4031  ;;  %5196 = vmatpush.bf16.msra.mxu3 %v8237_v15  ;;  %v8101_v37 = vld [vmem:[%s14471_s2 + $0x2f8] sm:$0xff]  ;;  %v8356_v33 = vld [vmem:[#allocation7 + $0xe8] sm:$0xf] }
 0x63a   : > { %5328 = vmatpush.bf16.msrb.mxu0 %v8241_v23  ;;  %v4485_v36 = vmul.f32 %v8128_v55, %v4445_v35  ;;  %v4486_v20 = vmul.f32 %v8129_v5, %v4457_v9  ;;  %v4045_v34 = vsel %vm777_vm2, %v4032_v10, %v12541_v31  ;;  %v4049_v46 = vsel %vm777_vm2, %v12182_v32, %v4032_v10  ;;  %v4250_v0 = vpop.permute.xlu2 %4249  ;;  %v8172_v32 = vld [vmem:[%s14474_s5 + $0x20] sm:$0xf]  ;;  %v8060_v5 = vld [vmem:[%s14471_s2 + $0x130] sm:$0xff]  ;;  %v8061_v15 = vld [vmem:[%s14471_s2 + $0x138] sm:$0xff] }
 0x63b   : > { %v4085_v57 = vmul.f32 %v8064_v18, %v4049_v46  ;;  %v4086_v48 = vmul.f32 %v8065_v1, %v4045_v34  ;;  %v4254_v7 = vsel %vm989_vm7, %v12403_v49, %v4250_v0  ;;  %v4266_v31 = vsel %vm989_vm7, %v4250_v0, %v12407_v52  ;;  %v8978_v49 = vld [vmem:[#allocation7 + $0xec] sm:$0xf]  ;;  %v8931_v52 = vld [vmem:[%s14474_s5 + $0x1c] sm:$0xf]  ;;  %v8340_v1 = vld [vmem:[#allocation7 + $0xc8] sm:$0xf] }
 0x63c   : > { %v4496_v51 = vpack.c.bf16 %v4486_v20, %v4485_v36  ;;  %v4297_v27 = vmul.f32 %v8100_v41, %v4254_v7  ;;  %v4298_v8 = vmul.f32 %v8101_v37, %v4266_v31  ;;  %5197 = vmatmul.bf16.vlgmr.msra.gmra.mxu3 %v13065_v63  ;;  %v8417_v18 = vor.u32 %v8993_v2, %v8414_v54  ;;  %v8974_v10 = vld [vmem:[#allocation7 + $0xcc] sm:$0xf]  ;;  %v8088_v34 = vld [vmem:[%s14471_s2 + $0x290] sm:$0xff]  ;;  %v8089_v46 = vld [vmem:[%s14471_s2 + $0x298] sm:$0xff] }
 0x63d   : > { %5367 = vmatpush.bf16.msra.mxu1 %v8449_v39  ;;  %5415 = vmatpush.bf16.msrb.mxu3 %v8513_v53  ;;  %v4096_v43 = vpack.c.bf16 %v4086_v48, %v4085_v57  ;;  %v8976_v42 = vld [vmem:[#allocation7 + $0xd4] sm:$0xf0]  ;;  %v8342_v19 = vld [vmem:[#allocation7 + $0xd8] sm:$0xf0]  ;;  %v8132_v53 = vld [vmem:[%s14471_s2 + $0x3f0] sm:$0xff]  ;;  %v13119_v35 = vor.u32 %v8933_v59, %v8172_v32  ;;  %v8401_v41 = vor.u32 %v13097_v28, %v8398_v4 }
 0x63e   : > { %5329 = vmatmul.bf16.vlgmr.msrb.gmra.mxu0 %v13065_v63  ;;  %4504 = vst [vmem:[#allocation7 + $0x1e8] sm:$0xff] %v4496_v51  ;;  %v4306_v38 = vpack.c.bf16 %v4298_v8, %v4297_v27  ;;  %v8358_v60 = vld [vmem:[#allocation7 + $0xf8] sm:$0xf0]  ;;  %v8980_v55 = vld [vmem:[#allocation7 + $0xf4] sm:$0xf0]  ;;  %v8341_v9 = vor.u32 %v8976_v42, %v8340_v1  ;;  %v13122_v37 = vor.u32 %v8931_v52, %v8166_v16  ;;  %v14662_v2 = vld [vmem:[#allocation33_spill] sm:$0xff] }
 0x63f   : > { %4104 = vst [vmem:[#allocation7 + $0xa8] sm:$0xff] %v4096_v43  ;;  %v8361_v23 = vor.u32 %v8978_v49, %v8358_v60  ;;  %v8357_v22 = vor.u32 %v8980_v55, %v8356_v33  ;;  %v8345_v0 = vor.u32 %v8974_v10, %v8342_v19  ;;  %v14663_v54 = vld [vmem:[#allocation35_spill] sm:$0xff]  ;;  %v8985_v59 = vld [vmem:[#allocation7 + $0x124] sm:$0xf]  ;;  %v8326_v49 = vld [vmem:[#allocation7 + $0xb8] sm:$0xf0] }
 0x640   : > { %4314 = vst [vmem:[#allocation7 + $0x178] sm:$0xff] %v4306_v38  ;;  %v4030_v39 = vpop.permute.xlu0 %4029  ;;  %v8382_v28 = vld [vmem:[#allocation7 + $0x130] sm:$0xf0]  ;;  %v8981_v52 = vld [vmem:[#allocation7 + $0x104] sm:$0xf]  ;;  %v8049_v38 = vld [vmem:[%s14471_s2 + $0xd8] sm:$0xff] }
 0x641   : > { %5368 = vmatpush.bf16.msra.mxu1 %v8433_v11  ;;  %5416 = vmatpush.bf16.msrb.mxu3 %v8497_v3  ;;  %v4044_v11 = vsel %vm777_vm2, %v4030_v39, %v12300_v45  ;;  %v4048_v36 = vsel %vm777_vm2, %v12345_v24, %v4030_v39  ;;  %v4442_v20 = vpop.permute.xlu1 %4441  ;;  %v8366_v16 = vld [vmem:[#allocation7 + $0x110] sm:$0xf0]  ;;  %v8932_v3 = vld [vmem:[%s14474_s5 + $0x20] sm:$0xf0]  ;;  %v14664_v1 = vld [vmem:[#allocation14_spill] sm:$0xff] }
 0x642   : > { %5453 = vmatpush.bf16.msrb.mxu2 %v8357_v22  ;;  %v4081_v50 = vmul.f32 %v8060_v5, %v4048_v36  ;;  %v4082_v13 = vmul.f32 %v8061_v15, %v4044_v11  ;;  %v4446_v45 = vsel %vm1185_vm1, %v14662_v2, %v4442_v20  ;;  %v4458_v24 = vsel %vm1185_vm1, %v4442_v20, %v14663_v54  ;;  %v4244_v57 = vpop.permute.xlu2 %4243  ;;  %v8048_v4 = vld [vmem:[%s14471_s2 + $0xd0] sm:$0xff]  ;;  %v14666_v2 = vld [vmem:[#allocation44_spill] sm:$0xff]  ;;  %v14667_v54 = vld [vmem:[#allocation22_spill] sm:$0xff] }
 0x643   : > { %v4489_v48 = vmul.f32 %v8132_v53, %v4446_v45  ;;  %v4490_v7 = vmul.f32 %v8133_v56, %v4458_v24  ;;  %v4251_v31 = vsel %vm989_vm7, %v12890_v44, %v4244_v57  ;;  %v4263_v32 = vsel %vm989_vm7, %v4244_v57, %v12823_v47  ;;  %v8972_v44 = vld [vmem:[#allocation7 + $0xb4] sm:$0xf0]  ;;  %v8120_v15 = vld [vmem:[%s14471_s2 + $0x390] sm:$0xff]  ;;  %v14665_v53 = vld [vmem:[#allocation37_spill] sm:$0xff] }
 0x644   : > { %v4094_v51 = vpack.c.bf16 %v4082_v13, %v4081_v50  ;;  %v4285_v27 = vmul.f32 %v8088_v34, %v4251_v31  ;;  %v4286_v8 = vmul.f32 %v8089_v46, %v4263_v32  ;;  %8523 = vmatmul.msk.bf16.gmra.mxu1 %vm1914_vm6, %v13119_v35  ;;  %5246 = vmatmul.bf16.gmra.mxu2 %v13122_v37  ;;  %v8164_v47 = vld [vmem:[%s14474_s5 + $0x18] sm:$0xf]  ;;  %v8148_v10 = vld [vmem:[%s14471_s2 + $0x470] sm:$0xff]  ;;  %v8308_v31 = vld [vmem:[#allocation7 + $0x88] sm:$0xf] }
 0x645   : > { %5585 = vmatpush.bf16.msra.mxu3 %v8361_v23  ;;  %5369 = vmatpush.bf16.msra.mxu1 %v8417_v18  ;;  %v4498_v43 = vpack.c.bf16 %v4490_v7, %v4489_v48  ;;  %v8121_v23 = vld [vmem:[%s14471_s2 + $0x398] sm:$0xff]  ;;  %v8385_v22 = vor.u32 %v8985_v59, %v8382_v28  ;;  %v13169_v18 = vor.u32 %v8932_v3, %v8164_v47  ;;  %v8966_v32 = vld [vmem:[#allocation7 + $0x8c] sm:$0xf]  ;;  %v8934_v59 = vld [vmem:[%s14474_s5 + $0x34] sm:$0xf] }
 0x646   : > { %5454 = vmatpush.bf16.msrb.mxu2 %v8341_v9  ;;  %4102 = vst [vmem:[#allocation7 + $0x98] sm:$0xff] %v4094_v51  ;;  %v4300_v33 = vpack.c.bf16 %v4286_v8, %v4285_v27  ;;  %v8970_v42 = vld [vmem:[#allocation7 + $0xac] sm:$0xf]  ;;  %v8324_v19 = vld [vmem:[#allocation7 + $0xa8] sm:$0xf]  ;;  %v8369_v11 = vor.u32 %v8981_v52, %v8366_v16  ;;  %v8116_v47 = vld [vmem:[%s14471_s2 + $0x370] sm:$0xff] }
 0x647   : > { %4506 = vst [vmem:[#allocation7 + $0x1f8] sm:$0xff] %v4498_v43  ;;  %v8329_v60 = vor.u32 %v8970_v42, %v8326_v49  ;;  %v8325_v55 = vor.u32 %v8972_v44, %v8324_v19  ;;  %v8178_v8 = vld [vmem:[%s14474_s5 + $0x3c] sm:$0xf0]  ;;  %v8484_v43 = vld [vmem:[#allocation7 + $0x1e8] sm:$0xf]  ;;  %v8117_v3 = vld [vmem:[%s14471_s2 + $0x378] sm:$0xff] }
 0x648   : > { %4308 = vst [vmem:[#allocation7 + $0x148] sm:$0xff] %v4300_v33  ;;  %v3936_v5 = vpop.permute.xlu0 %3935  ;;  %v8052_v19 = vld [vmem:[%s14471_s2 + $0xf0] sm:$0xff] }
 0x649   : > { %5586 = vmatpush.bf16.msra.mxu3 %v8345_v0  ;;  %5370 = vmatpush.bf16.msra.mxu1 %v8401_v41  ;;  %v3949_v39 = vsel %vm679_vm5, %v3936_v5, %v14664_v1  ;;  %v3953_v56 = vsel %vm679_vm5, %v14665_v53, %v3936_v5  ;;  %v4436_v9 = vpop.permute.xlu1 %4435  ;;  %v8149_v41 = vld [vmem:[%s14471_s2 + $0x478] sm:$0xff]  ;;  %v14670_v53 = vld [vmem:[#allocation41_spill] sm:$0xff] }
 0x64a   : > { %5455 = vmatpush.bf16.msrb.mxu2 %v8325_v55  ;;  %v3989_v36 = vmul.f32 %v8048_v4, %v3953_v56  ;;  %v3990_v20 = vmul.f32 %v8049_v38, %v3949_v39  ;;  %v4443_v34 = vsel %vm1185_vm1, %v12828_v30, %v4436_v9  ;;  %v4455_v46 = vsel %vm1185_vm1, %v4436_v9, %v12734_v29  ;;  %v4538_v0 = vpop.permute.xlu2 %4537  ;;  %v8184_v30 = vld [vmem:[%s14474_s5 + $0x38] sm:$0xf]  ;;  %v8936_v29 = vld [vmem:[%s14474_s5 + $0x40] sm:$0xf0]  ;;  %v14668_v55 = vld [vmem:[#allocation42_spill] sm:$0xff] }
 0x64b   : > { %v4477_v50 = vmul.f32 %v8120_v15, %v4443_v34  ;;  %v4478_v13 = vmul.f32 %v8121_v23, %v4455_v46  ;;  %v4542_v45 = vsel %vm1283_vm3, %v14666_v2, %v4538_v0  ;;  %v4554_v24 = vsel %vm1283_vm3, %v4538_v0, %v14667_v54  ;;  %v8053_v4 = vld [vmem:[%s14471_s2 + $0xf8] sm:$0xff]  ;;  %v14671_v9 = vld [vmem:[#allocation25_spill] sm:$0xff]  ;;  %v8176_v34 = vld [vmem:[%s14474_s5 + $0x30] sm:$0xf] }
 0x64c   : > { %v4000_v57 = vpack.c.bf16 %v3990_v20, %v3989_v36  ;;  %v4585_v48 = vmul.f32 %v8148_v10, %v4542_v45  ;;  %v4586_v7 = vmul.f32 %v8149_v41, %v4554_v24  ;;  %5202 = vmatmul.bf16.gmra.mxu3 %v13169_v18  ;;  %v13221_v38 = vor.u32 %v8936_v29, %v8184_v30  ;;  %v14669_v15 = vld [vmem:[#allocation12_spill] sm:$0xff]  ;;  %v8108_v24 = vld [vmem:[%s14471_s2 + $0x330] sm:$0xff] }
 0x64d   : > { %5587 = vmatpush.bf16.msra.mxu3 %v8329_v60  ;;  %5371 = vmatpush.bf16.msra.mxu1 %v8385_v22  ;;  %v4492_v28 = vpack.c.bf16 %v4478_v13, %v4477_v50  ;;  %v8968_v51 = vld [vmem:[#allocation7 + $0x94] sm:$0xf0]  ;;  %v8310_v27 = vld [vmem:[#allocation7 + $0x98] sm:$0xf0]  ;;  %v13223_v60 = vor.u32 %v8934_v59, %v8178_v8  ;;  %v8104_v13 = vld [vmem:[%s14471_s2 + $0x310] sm:$0xff] }
 0x64e   : > { %5334 = vmatmul.bf16.gmra.mxu0 %v13169_v18  ;;  %4008 = vst [vmem:[#allocation7 + $0x68] sm:$0xff] %v4000_v57  ;;  %v4594_v49 = vpack.c.bf16 %v4586_v7, %v4585_v48  ;;  %v8309_v52 = vor.u32 %v8968_v51, %v8308_v31  ;;  %v8313_v16 = vor.u32 %v8966_v32, %v8310_v27  ;;  %v9012_v44 = vld [vmem:[#allocation7 + $0x1f4] sm:$0xf0]  ;;  %v8935_v46 = vld [vmem:[%s14474_s5 + $0x38] sm:$0xf0]  ;;  %v14672_v59 = vld [vmem:[#allocation10_spill] sm:$0xff] }
 0x64f   : > { %4500 = vst [vmem:[#allocation7 + $0x1c8] sm:$0xff] %v4492_v28  ;;  %v8485_v33 = vor.u32 %v9012_v44, %v8484_v43  ;;  %v9008_v50 = vld [vmem:[#allocation7 + $0x1d4] sm:$0xf0]  ;;  %v13258_v29 = vor.u32 %v8935_v46, %v8176_v34  ;;  %v14673_v51 = vld [vmem:[#allocation18_spill] sm:$0xff] }
 0x650   : > { %4602 = vst [vmem:[#allocation7 + $0x238] sm:$0xff] %v4594_v49  ;;  %v4346_v42 = vpop.permute.xlu0 %4345  ;;  %5456 = vmatpush.bf16.msrb.mxu2 %v8309_v52  ;;  %v8105_v2 = vld [vmem:[%s14471_s2 + $0x318] sm:$0xff]  ;;  %v8452_v52 = vld [vmem:[#allocation7 + $0x1a8] sm:$0xf]  ;;  %v8937_v43 = vld [vmem:[%s14474_s5 + $0x4c] sm:$0xf] }
 0x651   : > { %5372 = vmatpush.bf16.msra.mxu1 %v8369_v11  ;;  %5588 = vmatpush.bf16.msra.mxu3 %v8313_v16  ;;  %v4350_v5 = vsel %vm1087_vm4, %v14668_v55, %v4346_v42  ;;  %v4362_v23 = vsel %vm1087_vm4, %v4346_v42, %v14669_v15  ;;  %v3938_v22 = vpop.permute.xlu1 %3937  ;;  %v8109_v30 = vld [vmem:[%s14471_s2 + $0x338] sm:$0xff] }
 0x652   : > { %5497 = vmatpush.bf16.msra.mxu0 %v8485_v33  ;;  %v4393_v1 = vmul.f32 %v8116_v47, %v4350_v5  ;;  %v4394_v39 = vmul.f32 %v8117_v3, %v4362_v23  ;;  %v3950_v56 = vsel %vm679_vm5, %v3938_v22, %v14670_v53  ;;  %v3954_v10 = vsel %vm679_vm5, %v14671_v9, %v3938_v22  ;;  %v8939_v16 = vld [vmem:[%s14474_s5 + $0x58] sm:$0xf0]  ;;  %v8190_v44 = vld [vmem:[%s14474_s5 + $0x54] sm:$0xf0]  ;;  %v3881_v5 = vld [vmem:[%s14471_s2 + $0x70] sm:$0xff] }
 0x653   : > { %v3993_v41 = vmul.f32 %v8052_v19, %v3954_v10  ;;  %v3994_v11 = vmul.f32 %v8053_v4, %v3950_v56  ;;  %v3882_v15 = vld [vmem:[%s14471_s2 + $0x78] sm:$0xff]  ;;  %v13300_v9 = vor.u32 %v8937_v43, %v8190_v44  ;;  %v14678_v44 = vld [vmem:[#allocation21_spill] sm:$0xff] }
 0x654   : > { %v4402_v36 = vpack.c.bf16 %v4394_v39, %v4393_v1  ;;  %8524 = vmatmul.msk.bf16.gmra.mxu1 %vm1914_vm6, %v13221_v38  ;;  %5251 = vmatmul.bf16.gmra.mxu2 %v13223_v60  ;;  %v8096_v39 = vld [vmem:[%s14471_s2 + $0x2d0] sm:$0xff]  ;;  %v8097_v53 = vld [vmem:[%s14471_s2 + $0x2d8] sm:$0xff] }
 0x655   : > { %v4002_v20 = vpack.c.bf16 %v3994_v11, %v3993_v41  ;;  %v8292_v33 = vld [vmem:[#allocation7 + $0x68] sm:$0xf]  ;;  %v8962_v42 = vld [vmem:[#allocation7 + $0x6c] sm:$0xf]  ;;  %v14674_v10 = vld [vmem:[#allocation16_spill] sm:$0xff] }
 0x656   : > { %4410 = vst [vmem:[#allocation7 + $0x1b8] sm:$0xff] %v4402_v36  ;;  %v8468_v0 = vld [vmem:[#allocation7 + $0x1c8] sm:$0xf]  ;;  %v14675_v11 = vld [vmem:[#allocation43_spill] sm:$0xff] }
 0x657   : > { %4010 = vst [vmem:[#allocation7 + $0x78] sm:$0xff] %v4002_v20  ;;  %v8469_v45 = vor.u32 %v9008_v50, %v8468_v0  ;;  %v14676_v0 = vld [vmem:[#allocation17_spill] sm:$0xff] }
 0x658   : > { %v4340_v54 = vpop.permute.xlu0 %4339 }
 0x659   : > { %v4347_v57 = vsel %vm1087_vm4, %v12860_v61, %v4340_v54  ;;  %v4359_v48 = vsel %vm1087_vm4, %v4340_v54, %v12771_v26  ;;  %v4342_v7 = vpop.permute.xlu1 %4341  ;;  %5498 = vmatpush.bf16.msra.mxu0 %v8469_v45  ;;  %v8196_v61 = vld [vmem:[%s14474_s5 + $0x50] sm:$0xf] }
 0x65a   : > { %v4381_v31 = vmul.f32 %v8104_v13, %v4347_v57  ;;  %v4382_v32 = vmul.f32 %v8105_v2, %v4359_v48  ;;  %v4348_v28 = vsel %vm1087_vm4, %v14672_v59, %v4342_v7  ;;  %v4360_v27 = vsel %vm1087_vm4, %v4342_v7, %v14673_v51  ;;  %v14677_v13 = vld [vmem:[#allocation23_spill] sm:$0xff]  ;;  %v8188_v57 = vld [vmem:[%s14474_s5 + $0x48] sm:$0xf]  ;;  %v3870_v59 = vld [vmem:[%s14471_s2 + $0x18] sm:$0xff] }
 0x65b   : > { %v4385_v8 = vmul.f32 %v8108_v24, %v4348_v28  ;;  %v4386_v49 = vmul.f32 %v8109_v30, %v4360_v27  ;;  %v13298_v56 = vor.u32 %v8939_v16, %v8196_v61  ;;  %v8938_v48 = vld [vmem:[%s14474_s5 + $0x50] sm:$0xf0] }
 0x65c   : > { %v4396_v26 = vpack.c.bf16 %v4382_v32, %v4381_v31  ;;  %5207 = vmatmul.bf16.gmra.mxu3 %v13258_v29  ;;  %v3869_v32 = vld [vmem:[%s14471_s2 + $0x10] sm:$0xff] }
 0x65d   : > { %v4398_v47 = vpack.c.bf16 %v4386_v49, %v4385_v8  ;;  %v9004_v3 = vld [vmem:[#allocation7 + $0x1b4] sm:$0xf0]  ;;  %v8040_v27 = vld [vmem:[%s14471_s2 + $0x90] sm:$0xff]  ;;  %v13335_v49 = vor.u32 %v8938_v48, %v8188_v57 }
 0x65e   : > { %5339 = vmatmul.bf16.gmra.mxu0 %v13258_v29  ;;  %4404 = vst [vmem:[#allocation7 + $0x188] sm:$0xff] %v4396_v26  ;;  %v8453_v19 = vor.u32 %v9004_v3, %v8452_v52  ;;  %v8964_v4 = vld [vmem:[#allocation7 + $0x74] sm:$0xf0]  ;;  %v8294_v55 = vld [vmem:[#allocation7 + $0x78] sm:$0xf0]  ;;  %v14679_v3 = vld [vmem:[#allocation19_spill] sm:$0xff] }
 0x65f   : > { %4406 = vst [vmem:[#allocation7 + $0x198] sm:$0xff] %v4398_v47  ;;  %v8293_v23 = vor.u32 %v8964_v4, %v8292_v33  ;;  %v8297_v22 = vor.u32 %v8962_v42, %v8294_v55  ;;  %v8041_v8 = vld [vmem:[%s14471_s2 + $0x98] sm:$0xff]  ;;  %v8942_v55 = vld [vmem:[%s14474_s5 + $0x70] sm:$0xf0] }
 0x660   : > { %v3842_v1 = vpop.permute.xlu0 %3841  ;;  %5499 = vmatpush.bf16.msra.mxu0 %v8453_v19 }
 0x661   : > { %v3854_v41 = vsel %vm582_vm8, %v3842_v1, %v14674_v10  ;;  %v3858_v36 = vsel %vm582_vm8, %v14675_v11, %v3842_v1  ;;  %v4248_v20 = vpop.permute.xlu1 %4247  ;;  %5457 = vmatpush.bf16.msrb.mxu2 %v8293_v23  ;;  %5589 = vmatpush.bf16.msra.mxu3 %v8297_v22  ;;  %v8996_v22 = vld [vmem:[#allocation7 + $0x174] sm:$0xf0]  ;;  %v8092_v1 = vld [vmem:[%s14471_s2 + $0x2b0] sm:$0xff] }
 0x662   : > { %v3897_v34 = vmul.f32 %v3881_v5, %v3858_v36  ;;  %v3898_v46 = vmul.f32 %v3882_v15, %v3854_v41  ;;  %v4253_v50 = vsel %vm989_vm7, %v14676_v0, %v4248_v20  ;;  %v4265_v2 = vsel %vm989_vm7, %v4248_v20, %v14677_v13  ;;  %v8940_v5 = vld [vmem:[%s14474_s5 + $0x64] sm:$0xf]  ;;  %v8202_v15 = vld [vmem:[%s14474_s5 + $0x6c] sm:$0xf0]  ;;  %v3874_v11 = vld [vmem:[%s14471_s2 + $0x38] sm:$0xff] }
 0x663   : > { %v4293_v45 = vmul.f32 %v8096_v39, %v4253_v50  ;;  %v4294_v54 = vmul.f32 %v8097_v53, %v4265_v2  ;;  %v8093_v39 = vld [vmem:[%s14471_s2 + $0x2b8] sm:$0xff]  ;;  %v3873_v41 = vld [vmem:[%s14471_s2 + $0x30] sm:$0xff]  ;;  %v13377_v20 = vor.u32 %v8940_v5, %v8202_v15  ;;  %v14681_v0 = vld [vmem:[#allocation38_spill] sm:$0xff] }
 0x664   : > { %v3906_v24 = vpack.c.bf16 %v3898_v46, %v3897_v34  ;;  %8525 = vmatmul.msk.bf16.gmra.mxu1 %vm1914_vm6, %v13298_v56  ;;  %5256 = vmatmul.bf16.gmra.mxu2 %v13300_v9  ;;  %v14680_v34 = vld [vmem:[#allocation40_spill] sm:$0xff]  ;;  %v8260_v15 = vld [vmem:[#allocation7 + $0x28] sm:$0xf] }
 0x665   : > { %v4304_v30 = vpack.c.bf16 %v4294_v54, %v4293_v45  ;;  %v8436_v7 = vld [vmem:[#allocation7 + $0x188] sm:$0xf] }
 0x666   : > { %3914 = vst [vmem:[#allocation7 + $0x38] sm:$0xff] %v3906_v24  ;;  %v9000_v31 = vld [vmem:[#allocation7 + $0x194] sm:$0xf0] }
 0x667   : > { %4312 = vst [vmem:[#allocation7 + $0x168] sm:$0xff] %v4304_v30  ;;  %v8437_v28 = vor.u32 %v9000_v31, %v8436_v7  ;;  %v8960_v7 = vld [vmem:[#allocation7 + $0x54] sm:$0xf0] }
 0x668   : > { %v3836_v51 = vpop.permute.xlu0 %3835 }
 0x669   : > { %v3851_v52 = vsel %vm582_vm8, %v3836_v51, %v12974_v40  ;;  %v3855_v61 = vsel %vm582_vm8, %v12759_v21, %v3836_v51  ;;  %v3932_v26 = vpop.permute.xlu1 %3931  ;;  %5500 = vmatpush.bf16.msra.mxu0 %v8437_v28  ;;  %v8208_v21 = vld [vmem:[%s14474_s5 + $0x68] sm:$0xf]  ;;  %v8136_v51 = vld [vmem:[%s14471_s2 + $0x410] sm:$0xff] }
 0x66a   : > { %v3885_v16 = vmul.f32 %v3869_v32, %v3855_v61  ;;  %v3886_v43 = vmul.f32 %v3870_v59, %v3851_v52  ;;  %v3947_v47 = vsel %vm679_vm5, %v3932_v26, %v14678_v44  ;;  %v3951_v33 = vsel %vm679_vm5, %v14679_v3, %v3932_v26  ;;  %v8278_v32 = vld [vmem:[#allocation7 + $0x58] sm:$0xf0]  ;;  %v8200_v59 = vld [vmem:[%s14474_s5 + $0x60] sm:$0xf] }
 0x66b   : > { %v3981_v42 = vmul.f32 %v8040_v27, %v3951_v33  ;;  %v3982_v19 = vmul.f32 %v8041_v8, %v3947_v47  ;;  %v13375_v36 = vor.u32 %v8942_v55, %v8208_v21  ;;  %v8137_v27 = vld [vmem:[%s14471_s2 + $0x418] sm:$0xff]  ;;  %v8144_v8 = vld [vmem:[%s14471_s2 + $0x450] sm:$0xff]  ;;  %v14682_v21 = vld [vmem:[#allocation30_spill] sm:$0xff] }
 0x66c   : > { %v3900_v4 = vpack.c.bf16 %v3886_v43, %v3885_v16  ;;  %5212 = vmatmul.bf16.gmra.mxu3 %v13335_v49  ;;  %v8145_v16 = vld [vmem:[%s14471_s2 + $0x458] sm:$0xff] }
 0x66d   : > { %v3996_v40 = vpack.c.bf16 %v3982_v19, %v3981_v42  ;;  %v8956_v44 = vld [vmem:[#allocation7 + $0x34] sm:$0xf0]  ;;  %v8262_v47 = vld [vmem:[#allocation7 + $0x38] sm:$0xf0] }
 0x66e   : > { %5344 = vmatmul.bf16.gmra.mxu0 %v13335_v49  ;;  %3908 = vst [vmem:[#allocation7 + $0x8] sm:$0xff] %v3900_v4  ;;  %v8420_v23 = vld [vmem:[#allocation7 + $0x168] sm:$0xf]  ;;  %v14683_v55 = vld [vmem:[#allocation28_spill] sm:$0xff] }
 0x66f   : > { %4004 = vst [vmem:[#allocation7 + $0x48] sm:$0xff] %v3996_v40  ;;  %v8421_v53 = vor.u32 %v8996_v22, %v8420_v23  ;;  %v8954_v23 = vld [vmem:[#allocation7 + $0x2c] sm:$0xf] }
 0x670   : > { %v4246_v10 = vpop.permute.xlu0 %4245 }
 0x671   : > { %v4252_v46 = vsel %vm989_vm7, %v14680_v34, %v4246_v10  ;;  %v4264_v50 = vsel %vm989_vm7, %v4246_v10, %v14681_v0  ;;  %v3838_v13 = vpop.permute.xlu1 %3837  ;;  %5501 = vmatpush.bf16.msra.mxu0 %v8421_v53  ;;  %v8486_v53 = vld [vmem:[#allocation7 + $0x1f8] sm:$0xf0]  ;;  %v8220_v10 = vld [vmem:[%s14474_s5 + $0x80] sm:$0xf] }
 0x672   : > { %v4289_v2 = vmul.f32 %v8092_v1, %v4252_v46  ;;  %v4290_v45 = vmul.f32 %v8093_v39, %v4264_v50  ;;  %v3852_v54 = vsel %vm582_vm8, %v3838_v13, %v12781_v12  ;;  %v3856_v24 = vsel %vm582_vm8, %v12925_v58, %v3838_v13  ;;  %v8941_v12 = vld [vmem:[%s14474_s5 + $0x68] sm:$0xf0]  ;;  %v8943_v34 = vld [vmem:[%s14474_s5 + $0x7c] sm:$0xf]  ;;  %v8214_v46 = vld [vmem:[%s14474_s5 + $0x84] sm:$0xf0] }
 0x673   : > { %v3889_v30 = vmul.f32 %v3873_v41, %v3856_v24  ;;  %v3890_v57 = vmul.f32 %v3874_v11, %v3852_v54  ;;  %v13412_v43 = vor.u32 %v8941_v12, %v8200_v59  ;;  %v8261_v1 = vor.u32 %v8956_v44, %v8260_v15  ;;  %v8945_v11 = vld [vmem:[%s14474_s5 + $0x88] sm:$0xf0]  ;;  %v8141_v59 = vld [vmem:[%s14471_s2 + $0x438] sm:$0xff] }
 0x674   : > { %v4302_v48 = vpack.c.bf16 %v4290_v45, %v4289_v2  ;;  %8526 = vmatmul.msk.bf16.gmra.mxu1 %vm1914_vm6, %v13375_v36  ;;  %5261 = vmatmul.bf16.gmra.mxu2 %v13377_v20  ;;  %v8265_v39 = vor.u32 %v8954_v23, %v8262_v47  ;;  %v8988_v45 = vld [vmem:[#allocation7 + $0x134] sm:$0xf0] }
 0x675   : > { %v3902_v31 = vpack.c.bf16 %v3890_v57, %v3889_v30  ;;  %v8244_v13 = vld [vmem:[#allocation7 + $0x8] sm:$0xf]  ;;  %v8950_v2 = vld [vmem:[#allocation7 + $0xc] sm:$0xf] }
 0x676   : > { %4310 = vst [vmem:[#allocation7 + $0x158] sm:$0xff] %v4302_v48  ;;  %v8276_v58 = vld [vmem:[#allocation7 + $0x48] sm:$0xf]  ;;  %v8958_v28 = vld [vmem:[#allocation7 + $0x4c] sm:$0xf] }
 0x677   : > { %3910 = vst [vmem:[#allocation7 + $0x18] sm:$0xff] %v3902_v31  ;;  %v8277_v52 = vor.u32 %v8960_v7, %v8276_v58  ;;  %v8281_v61 = vor.u32 %v8958_v28, %v8278_v32  ;;  %v9010_v7 = vld [vmem:[#allocation7 + $0x1ec] sm:$0xf]  ;;  %v8388_v31 = vld [vmem:[#allocation7 + $0x128] sm:$0xf]  ;;  %v8140_v32 = vld [vmem:[%s14471_s2 + $0x430] sm:$0xff]  ;;  %v13446_v58 = vor.u32 %v8945_v11, %v8220_v10 }
 0x678   : > { %v4532_v26 = vpop.permute.xlu0 %4531  ;;  %v8489_v12 = vor.u32 %v9010_v7, %v8486_v53  ;;  %v8998_v11 = vld [vmem:[#allocation7 + $0x18c] sm:$0xf]  ;;  %v8422_v7 = vld [vmem:[#allocation7 + $0x178] sm:$0xf0] }
 0x679   : > { %v4539_v3 = vsel %vm1283_vm3, %v12934_v17, %v4532_v26  ;;  %v4551_v33 = vsel %vm1283_vm3, %v4532_v26, %v12855_v25  ;;  %v4536_v42 = vpop.permute.xlu1 %4535  ;;  %5458 = vmatpush.bf16.msrb.mxu2 %v8277_v52  ;;  %5590 = vmatpush.bf16.msra.mxu3 %v8281_v61  ;;  %v8404_v25 = vld [vmem:[#allocation7 + $0x148] sm:$0xf]  ;;  %v14685_v61 = vld [vmem:[#allocation13_spill] sm:$0xff] }
 0x67a   : > { %v4573_v19 = vmul.f32 %v8136_v51, %v4539_v3  ;;  %v4574_v4 = vmul.f32 %v8137_v27, %v4551_v33  ;;  %v4541_v40 = vsel %vm1283_vm3, %v14682_v21, %v4536_v42  ;;  %v4553_v5 = vsel %vm1283_vm3, %v4536_v42, %v14683_v55  ;;  %v9006_v51 = vld [vmem:[#allocation7 + $0x1cc] sm:$0xf]  ;;  %v8470_v3 = vld [vmem:[#allocation7 + $0x1d8] sm:$0xf0]  ;;  %v8372_v33 = vld [vmem:[#allocation7 + $0x108] sm:$0xf] }
 0x67b   : > { %v4581_v17 = vmul.f32 %v8144_v8, %v4541_v40  ;;  %v4582_v22 = vmul.f32 %v8145_v16, %v4553_v5  ;;  %v13448_v27 = vor.u32 %v8943_v34, %v8214_v46  ;;  %v14684_v8 = vld [vmem:[#allocation27_spill] sm:$0xff]  ;;  %v8389_v16 = vor.u32 %v8988_v45, %v8388_v31  ;;  %v8984_v42 = vld [vmem:[#allocation7 + $0x114] sm:$0xf0]  ;;  %v8454_v40 = vld [vmem:[#allocation7 + $0x1b8] sm:$0xf0] }
 0x67c   : > { %v4588_v41 = vpack.c.bf16 %v4574_v4, %v4573_v19  ;;  %5217 = vmatmul.bf16.gmra.mxu3 %v13412_v43  ;;  %v8473_v19 = vor.u32 %v9006_v51, %v8470_v3  ;;  %v9020_v4 = vld [vmem:[#allocation7 + $0x234] sm:$0xf0]  ;;  %v8944_v5 = vld [vmem:[%s14474_s5 + $0x80] sm:$0xf0]  ;;  %v8373_v15 = vor.u32 %v8984_v42, %v8372_v33  ;;  %v8994_v46 = vld [vmem:[#allocation7 + $0x16c] sm:$0xf] }
 0x67d   : > { %v4592_v0 = vpack.c.bf16 %v4582_v22, %v4581_v17  ;;  %5459 = vmatpush.bf16.msrb.mxu2 %v8261_v1  ;;  %5591 = vmatpush.bf16.msra.mxu3 %v8265_v39  ;;  %v8992_v50 = vld [vmem:[#allocation7 + $0x154] sm:$0xf0]  ;;  %v8518_v22 = vld [vmem:[#allocation7 + $0x238] sm:$0xf0]  ;;  %v8226_v45 = vld [vmem:[%s14474_s5 + $0x9c] sm:$0xf0]  ;;  %v8425_v31 = vor.u32 %v8994_v46, %v8422_v7 }
 0x67e   : > { %5349 = vmatmul.bf16.gmra.mxu0 %v13412_v43  ;;  %4596 = vst [vmem:[#allocation7 + $0x208] sm:$0xff] %v4588_v41  ;;  %v8405_v54 = vor.u32 %v8992_v50, %v8404_v25  ;;  %v8952_v24 = vld [vmem:[#allocation7 + $0x14] sm:$0xf0]  ;;  %v8246_v30 = vld [vmem:[#allocation7 + $0x18] sm:$0xf0] }
 0x67f   : > { %4600 = vst [vmem:[#allocation7 + $0x228] sm:$0xff] %v4592_v0  ;;  %v8245_v57 = vor.u32 %v8952_v24, %v8244_v13  ;;  %v8249_v48 = vor.u32 %v8950_v2, %v8246_v30  ;;  %v8212_v55 = vld [vmem:[%s14474_s5 + $0x78] sm:$0xf]  ;;  %v9002_v25 = vld [vmem:[#allocation7 + $0x1ac] sm:$0xf] }
 0x680   : > { %5502 = vmatpush.bf16.msra.mxu0 %v8405_v54  ;;  %v8457_v53 = vor.u32 %v9002_v25, %v8454_v40  ;;  %v13465_v10 = vor.u32 %v8944_v5, %v8212_v55  ;;  %v8438_v41 = vld [vmem:[#allocation7 + $0x198] sm:$0xf0]  ;;  %v8232_v0 = vld [vmem:[%s14474_s5 + $0x98] sm:$0xf]  ;;  %v8948_v50 = vld [vmem:[%s14474_s5 + $0xa0] sm:$0xf0] }
 0x681   : > { %v4534_v28 = vpop.permute.xlu1 %4533  ;;  %5460 = vmatpush.bf16.msrb.mxu2 %v8245_v57  ;;  %5592 = vmatpush.bf16.msra.mxu3 %v8249_v48  ;;  %v8441_v34 = vor.u32 %v8998_v11, %v8438_v41  ;;  %v8946_v2 = vld [vmem:[%s14474_s5 + $0x94] sm:$0xf]  ;;  %v8374_v3 = vld [vmem:[#allocation7 + $0x118] sm:$0xf0] }
 0x682   : > { %v4540_v52 = vsel %vm1283_vm3, %v14684_v8, %v4534_v28  ;;  %v4552_v26 = vsel %vm1283_vm3, %v4534_v28, %v14685_v61  ;;  %v8990_v28 = vld [vmem:[#allocation7 + $0x14c] sm:$0xf]  ;;  %v8390_v8 = vld [vmem:[#allocation7 + $0x138] sm:$0xf0]  ;;  %v8224_v61 = vld [vmem:[%s14474_s5 + $0x90] sm:$0xf] }
 0x683   : > { %v4577_v44 = vmul.f32 %v8140_v32, %v4540_v52  ;;  %v4578_v47 = vmul.f32 %v8141_v59, %v4552_v26  ;;  %v13481_v32 = vor.u32 %v8948_v50, %v8232_v0  ;;  %v8406_v59 = vld [vmem:[#allocation7 + $0x158] sm:$0xf0]  ;;  %v8986_v52 = vld [vmem:[#allocation7 + $0x12c] sm:$0xf] }
 0x684   : > { %5503 = vmatpush.bf16.msra.mxu0 %v8389_v16  ;;  %8527 = vmatmul.msk.bf16.gmra.mxu1 %vm1914_vm6, %v13446_v58  ;;  %v8409_v51 = vor.u32 %v8990_v28, %v8406_v59  ;;  %v8947_v26 = vld [vmem:[%s14474_s5 + $0x98] sm:$0xf0]  ;;  %v8393_v16 = vor.u32 %v8986_v52, %v8390_v8 }
 0x685   : > { %5629 = vmatpush.bf16.msra.mxu2 %v8489_v12  ;;  %v4590_v21 = vpack.c.bf16 %v4578_v47, %v4577_v44  ;;  %v8500_v13 = vld [vmem:[#allocation7 + $0x208] sm:$0xf]  ;;  %v9014_v24 = vld [vmem:[#allocation7 + $0x20c] sm:$0xf]  ;;  %v13483_v12 = vor.u32 %v8946_v2, %v8226_v45  ;;  %v13494_v44 = vor.u32 %v8947_v26, %v8224_v61 }
 0x686   : > { %5266 = vmatmul.bf16.gmra.mxu2 %v13448_v27  ;;  %v8516_v23 = vld [vmem:[#allocation7 + $0x228] sm:$0xf]  ;;  %v9018_v17 = vld [vmem:[#allocation7 + $0x22c] sm:$0xf] }
 0x687   : > { %4598 = vst [vmem:[#allocation7 + $0x218] sm:$0xff] %v4590_v21  ;;  %v8517_v1 = vor.u32 %v9020_v4, %v8516_v23  ;;  %v8521_v39 = vor.u32 %v9018_v17, %v8518_v22  ;;  %v8982_v47 = vld [vmem:[#allocation7 + $0x10c] sm:$0xf] }
 0x688   : > { %5504 = vmatpush.bf16.msra.mxu0 %v8373_v15  ;;  %v8377_v33 = vor.u32 %v8982_v47, %v8374_v3 }
 0x689   : > { %5630 = vmatpush.bf16.msra.mxu2 %v8473_v19  ;;  %5547 = vmatpush.bf16.msrb.mxu1 %v8517_v1 }
 0x68c   : > { %5679 = vmatpush.bf16.msrb.mxu0 %v8521_v39  ;;  %5222 = vmatmul.bf16.gmra.mxu3 %v13465_v10 }
 0x68d   : > { %5631 = vmatpush.bf16.msra.mxu2 %v8457_v53 }
 0x68e   : > { %5354 = vmatmul.bf16.gmra.mxu0 %v13465_v10  ;;  %v9016_v54 = vld [vmem:[#allocation7 + $0x214] sm:$0xf0]  ;;  %v8502_v30 = vld [vmem:[#allocation7 + $0x218] sm:$0xf0] }
 0x68f   : > { %v8501_v57 = vor.u32 %v9016_v54, %v8500_v13  ;;  %v8505_v48 = vor.u32 %v9014_v24, %v8502_v30 }
 0x691   : > { %5632 = vmatpush.bf16.msra.mxu2 %v8441_v34  ;;  %5548 = vmatpush.bf16.msrb.mxu1 %v8501_v57 }
 0x692   : > { %5680 = vmatpush.bf16.msrb.mxu0 %v8505_v48 }
 0x694   : > { %8528 = vmatmul.msk.bf16.gmra.mxu1 %vm1914_vm6, %v13481_v32 }
 0x695   : > { %5633 = vmatpush.bf16.msra.mxu2 %v8425_v31 }
 0x696   : > { %5271 = vmatmul.bf16.gmra.mxu2 %v13483_v12 }
 0x699   : > { %5634 = vmatpush.bf16.msra.mxu2 %v8409_v51 }
 0x69c   : > { %5227 = vmatmul.bf16.gmra.mxu3 %v13494_v44 }
 0x69d   : > { %5635 = vmatpush.bf16.msra.mxu2 %v8393_v16 }
 0x69e   : > { %5359 = vmatmul.bf16.gmra.mxu0 %v13494_v44 }
 0x6a1   : > { %5636 = vmatpush.bf16.msra.mxu2 %v8377_v33 }
 0x6a4   : > { %5373 = vmatmul.bf16.vlgmr.msra.gmra.mxu1 %v13018_v14 }
 0x6a6   : > { %5461 = vmatmul.bf16.vlgmr.msrb.gmra.mxu2 %v13065_v63 }
 0x6ac   : > { %8529 = vmatmul.msk.bf16.vlgmr.msrb.gmra.mxu3 %vm1914_vm6, %v13016_v62 }
 0x6ae   : > { %5505 = vmatmul.bf16.vlgmr.msra.gmra.mxu0 %v13018_v14 }
 0x6b1   : > { %v5286_v42 = vpop.f32.mrf.mxu1 }
 0x6b4   : > { %5378 = vmatmul.bf16.gmra.mxu1 %v13122_v37 }
 0x6b6   : > { %5466 = vmatmul.bf16.gmra.mxu2 %v13169_v18 }
 0x6b7   : > { %v5242_v19 = vpop.f32.mrf.mxu2 }
 0x6b9   : > { %v13505_v4 = vpop.f32.mrf.mxu1 }
 0x6bb   : > { %v13507_v21 = vpop.f32.mrf.mxu0 }
 0x6bc   : > { %8530 = vmatmul.msk.bf16.gmra.mxu3 %vm1914_vm6, %v13119_v35 }
 0x6be   : > { %5510 = vmatmul.bf16.gmra.mxu0 %v13122_v37 }
 0x6bf   : > { %v5198_v40 = vpop.f32.mrf.mxu3  ;;  %v5244_v55 = vpop.f32.mrf.mxu2 }
 0x6c0   : > { %v5243_v5 = vadd.f32 %v5242_v19, %v5198_v40 }
 0x6c1   : > { %v5291_v15 = vpop.f32.mrf.mxu1 }
 0x6c2   : > { %v5287_v17 = vadd.f32 %v5286_v42, %v5243_v5 }
 0x6c3   : > { %v13512_v23 = vpop.f32.mrf.mxu0 }
 0x6c4   : > { %5383 = vmatmul.bf16.gmra.mxu1 %v13223_v60 }
 0x6c6   : > { %5471 = vmatmul.bf16.gmra.mxu2 %v13258_v29 }
 0x6c7   : > { %v5200_v22 = vpop.f32.mrf.mxu3  ;;  %v5247_v1 = vpop.f32.mrf.mxu2 }
 0x6c9   : > { %v5293_v39 = vpop.f32.mrf.mxu1 }
 0x6cb   : > { %v13516_v25 = vpop.f32.mrf.mxu0 }
 0x6cc   : > { %8531 = vmatmul.msk.bf16.gmra.mxu3 %vm1914_vm6, %v13221_v38 }
 0x6ce   : > { %5515 = vmatmul.bf16.gmra.mxu0 %v13223_v60 }
 0x6cf   : > { %v5203_v53 = vpop.f32.mrf.mxu3  ;;  %v5249_v41 = vpop.f32.mrf.mxu2 }
 0x6d0   : > { %v5248_v11 = vadd.f32 %v5247_v1, %v5203_v53 }
 0x6d1   : > { %v5296_v34 = vpop.f32.mrf.mxu1 }
 0x6d2   : > { %v13523_v0 = vadd.f32 %v5291_v15, %v5248_v11  ;;  %v5245_v11 = vadd.f32 %v5244_v55, %v5200_v22 }
 0x6d3   : > { %v13521_v46 = vpop.f32.mrf.mxu0 }
 0x6d4   : > { %5388 = vmatmul.bf16.gmra.mxu1 %v13300_v9 }
 0x6d6   : > { %5476 = vmatmul.bf16.gmra.mxu2 %v13335_v49 }
 0x6d7   : > { %v5205_v50 = vpop.f32.mrf.mxu3  ;;  %v5252_v13 = vpop.f32.mrf.mxu2 }
 0x6d8   : > { %v5250_v2 = vadd.f32 %v5249_v41, %v5205_v50 }
 0x6d9   : > { %v5298_v45 = vpop.f32.mrf.mxu1 }
 0x6da   : > { %v13529_v24 = vadd.f32 %v5293_v39, %v5250_v2 }
 0x6db   : > { %v13527_v54 = vpop.f32.mrf.mxu0 }
 0x6dc   : > { %8532 = vmatmul.msk.bf16.gmra.mxu3 %vm1914_vm6, %v13298_v56 }
 0x6de   : > { %5520 = vmatmul.bf16.gmra.mxu0 %v13300_v9 }
 0x6df   : > { %v5208_v30 = vpop.f32.mrf.mxu3  ;;  %v5254_v57 = vpop.f32.mrf.mxu2 }
 0x6e0   : > { %v5253_v48 = vadd.f32 %v5252_v13, %v5208_v30 }
 0x6e1   : > { %v5301_v7 = vpop.f32.mrf.mxu1 }
 0x6e2   : > { %v13536_v59 = vadd.f32 %v5296_v34, %v5253_v48 }
 0x6e3   : > { %v13534_v31 = vpop.f32.mrf.mxu0 }
 0x6e4   : > { %5393 = vmatmul.bf16.gmra.mxu1 %v13377_v20 }
 0x6e6   : > { %5481 = vmatmul.bf16.gmra.mxu2 %v13412_v43 }
 0x6e7   : > { %v5210_v28 = vpop.f32.mrf.mxu3  ;;  %v5257_v51 = vpop.f32.mrf.mxu2 }
 0x6e8   : > { %v5255_v8 = vadd.f32 %v5254_v57, %v5210_v28  ;;  %v5289_v57 = vadd.f32 %v13505_v4, %v5245_v11 }
 0x6e9   : > { %v5303_v52 = vpop.f32.mrf.mxu1 }
 0x6ea   : > { %v13542_v26 = vadd.f32 %v5298_v45, %v5255_v8 }
 0x6eb   : > { %v13540_v61 = vpop.f32.mrf.mxu0 }
 0x6ec   : > { %8533 = vmatmul.msk.bf16.gmra.mxu3 %vm1914_vm6, %v13375_v36 }
 0x6ee   : > { %5525 = vmatmul.bf16.gmra.mxu0 %v13377_v20 }
 0x6ef   : > { %v5213_v16 = vpop.f32.mrf.mxu3  ;;  %v5259_v47 = vpop.f32.mrf.mxu2 }
 0x6f0   : > { %v5258_v3 = vadd.f32 %v5257_v51, %v5213_v16 }
 0x6f1   : > { %v5306_v33 = vpop.f32.mrf.mxu1 }
 0x6f2   : > { %v5302_v19 = vadd.f32 %v5301_v7, %v5258_v3 }
 0x6f3   : > { %v13547_v42 = vpop.f32.mrf.mxu0 }
 0x6f4   : > { %5398 = vmatmul.bf16.gmra.mxu1 %v13448_v27 }
 0x6f6   : > { %5486 = vmatmul.bf16.gmra.mxu2 %v13465_v10 }
 0x6f7   : > { %v5215_v40 = vpop.f32.mrf.mxu3  ;;  %v5262_v5 = vpop.f32.mrf.mxu2 }
 0x6f8   : > { %v5260_v15 = vadd.f32 %v5259_v47, %v5215_v40 }
 0x6f9   : > { %v5308_v1 = vpop.f32.mrf.mxu1 }
 0x6fa   : > { %v5304_v53 = vadd.f32 %v5303_v52, %v5260_v15 }
 0x6fb   : > { %v13551_v39 = vpop.f32.mrf.mxu0 }
 0x6fc   : > { %v5785_v41 = vadd.f32 %v5304_v53, %v5287_v17  ;;  %8534 = vmatmul.msk.bf16.gmra.mxu3 %vm1914_vm6, %v13446_v58 }
 0x6fe   : > { %5530 = vmatmul.bf16.gmra.mxu0 %v13448_v27  ;;  %v8550_v34 = vmul.f32 -1.442695, %v5785_v41 }
 0x6ff   : > { %v5218_v50 = vpop.f32.mrf.mxu3  ;;  %v5264_v13 = vpop.f32.mrf.mxu2 }
 0x700   : > { %9181 = vpow2.f32 %v8550_v34  ;;  %v5263_v2 = vadd.f32 %v5262_v5, %v5218_v50 }
 0x701   : > { %v5311_v45 = vpop.f32.mrf.mxu1 }
 0x702   : > { %v5307_v48 = vadd.f32 %v5306_v33, %v5263_v2 }
 0x703   : > { %v13556_v30 = vpop.f32.mrf.mxu0 }
 0x704   : > { %v5873_v7 = vadd.f32 %v5307_v48, %v5289_v57  ;;  %5403 = vmatmul.bf16.gmra.mxu1 %v13483_v12 }
 0x706   : > { %5491 = vmatmul.bf16.gmra.mxu2 %v13494_v44  ;;  %v9182_v17 = vpop.eup %9181  ;;  %v5877_v28 = vadd.f32 1.0, %v5873_v7 }
 0x707   : > { %v5801_v51 = vadd.f32 1.0, %v9182_v17  ;;  %v5220_v55 = vpop.f32.mrf.mxu3 }
 0x708   : > { %v8554_v22 = vmul.f32 -1.442695, %v5877_v28  ;;  %v5265_v8 = vadd.f32 %v5264_v13, %v5220_v55 }
 0x709   : > { %v5267_v52 = vpop.f32.mrf.mxu2  ;;  %9183 = vrcp.f32 %v5801_v51  ;;  %v5313_v16 = vpop.f32.mrf.mxu1  ;;  %v5816_v2 = vand.u32 2147483648, %v5801_v51  ;;  %v5814_v48 = vand.u32 2147483647, %v5801_v51  ;;  %vm5810_vm9 = vweird.f32 %v5801_v51 }
 0x70a   : > { %9185 = vpow2.f32 %v8554_v22  ;;  %v5309_v3 = vadd.f32 %v5308_v1, %v5265_v8 }
 0x70b   : > { %v13561_v47 = vpop.f32.mrf.mxu0  ;;  %v5817_v17 = vor.u32 1.1754944e-38, %v5816_v2  ;;  %vm5815_vm12 = vcmp.eq.f32.partialorder %v5814_v48, 8.507059e+37 }
 0x70c   : > { %8535 = vmatmul.msk.bf16.gmra.mxu3 %vm1914_vm6, %v13481_v32  ;;  %v5965_v4 = vadd.f32 %v5309_v3, %v13523_v0 }
 0x70e   : > { %5535 = vmatmul.bf16.gmra.mxu0 %v13483_v12  ;;  %9187 = vtanh.f32 %v5965_v4 }
 0x70f   : > { %v9184_v33 = vpop.eup %9183  ;;  %v5223_v40 = vpop.f32.mrf.mxu3 }
 0x710   : > { %v9186_v5 = vpop.eup %9185  ;;  %v5806_v15 = vmul.f32 %v9184_v33, %v5801_v51  ;;  %v5268_v53 = vadd.f32 %v5267_v52, %v5223_v40  ;;  %vm5811_vm15 = vweird.f32 %v9184_v33 }
 0x711   : > { %v5269_v41 = vpop.f32.mrf.mxu2  ;;  %v5893_v11 = vadd.f32 1.0, %v9186_v5  ;;  %v5316_v34 = vpop.f32.mrf.mxu1  ;;  %vm5812_vm11 = vmor %vm5810_vm9, %vm5811_vm15 }
 0x712   : > { %v5807_v13 = vsub.f32 1.0, %v5806_v15  ;;  %v5312_v1 = vadd.f32 %v5311_v45, %v5268_v53 }
 0x713   : > { %v13567_v50 = vpop.f32.mrf.mxu0  ;;  %9189 = vrcp.f32 %v5893_v11  ;;  %v5908_v51 = vand.u32 2147483648, %v5893_v11  ;;  %vm5902_vm14 = vweird.f32 %v5893_v11 }
 0x714   : > { %v5808_v57 = vmul.f32 %v9184_v33, %v5807_v13  ;;  %8536 = vmatmul.msk.bf16.vlgmr.msrb.gmra.mxu1 %vm1914_vm6, %v13016_v62  ;;  %v13571_v0 = vadd.f32 %v5312_v1, %v5302_v19  ;;  %v9188_v55 = vpop.eup %9187 }
 0x716   : > { %5637 = vmatmul.bf16.vlgmr.msra.gmra.mxu2 %v13018_v14  ;;  %v5809_v7 = vadd.f32 %v9184_v33, %v5808_v57 }
 0x717   : > { %v5225_v28 = vpop.f32.mrf.mxu3 }
 0x718   : > { %v5813_v22 = vsel %vm5812_vm11, %v9184_v33, %v5809_v7  ;;  %v5270_v45 = vadd.f32 %v5269_v41, %v5225_v28  ;;  %v5906_v41 = vand.u32 2147483647, %v5893_v11  ;;  %v5773_v7 = vld [vmem:[#allocation5 + $0x18] sm:$0xff] }
 0x719   : > { %v5272_v8 = vpop.f32.mrf.mxu2  ;;  %v9190_v52 = vpop.eup %9189  ;;  %v5818_v3 = vsel %vm5815_vm12, %v5817_v17, %v5813_v22 }
 0x71a   : > { %v5318_v4 = vpop.f32.mrf.mxu1  ;;  %v5898_v5 = vmul.f32 %v9190_v52, %v5893_v11  ;;  %v5977_v19 = vmul.f32 %v9188_v55, %v5818_v3  ;;  %v5314_v15 = vadd.f32 %v5313_v16, %v5270_v45  ;;  %vm5903_vm13 = vweird.f32 %v9190_v52 }
 0x71b   : > { %v13574_v40 = vpop.f32.mrf.mxu0  ;;  %vm5904_vm15 = vmor %vm5902_vm14, %vm5903_vm13  ;;  %v5909_v16 = vor.u32 1.1754944e-38, %v5908_v51  ;;  %vm5907_vm9 = vcmp.eq.f32.partialorder %v5906_v41, 8.507059e+37 }
 0x71c   : > { %v5899_v53 = vsub.f32 1.0, %v5898_v5  ;;  %v5997_v14 = vadd.f32 %v5314_v15, %v13529_v24  ;;  %5593 = vmatmul.bf16.vlgmr.msra.gmra.mxu3 %v13065_v63 }
 0x71e   : > { %8543 = vmatmul.msk.bf16.vlgmr.msrb.gmra.mxu0 %vm1914_vm6, %v13016_v62  ;;  %v5900_v33 = vmul.f32 %v9190_v52, %v5899_v53  ;;  %v8558_v13 = vmul.f32 -1.442695, %v5997_v14 }
 0x71f   : > { %v5228_v1 = vpop.f32.mrf.mxu3 }
 0x720   : > { %v5901_v2 = vadd.f32 %v9190_v52, %v5900_v33  ;;  %9191 = vpow2.f32 %v8558_v13  ;;  %v5273_v57 = vadd.f32 %v5272_v8, %v5228_v1 }
 0x721   : > { %v5274_v48 = vpop.f32.mrf.mxu2 }
 0x722   : > { %v5374_v24 = vpop.f32.mrf.mxu1  ;;  %v5905_v63 = vsel %vm5904_vm15, %v9190_v52, %v5901_v2  ;;  %v5317_v62 = vadd.f32 %v5316_v34, %v5273_v57 }
 0x723   : > { %v13580_v17 = vpop.f32.mrf.mxu0  ;;  %v5910_v28 = vsel %vm5907_vm9, %v5909_v16, %v5905_v63  ;;  %v5375_v14 = vadd.f32 %v5374_v24, %v13507_v21 }
 0x724   : > { %v5973_v55 = vmul.f32 %v5910_v28, %v5773_v7  ;;  %v6085_v22 = vadd.f32 %v5317_v62, %v13536_v59  ;;  %8537 = vmatmul.msk.bf16.gmra.mxu1 %vm1914_vm6, %v13119_v35 }
 0x726   : > { %5642 = vmatmul.bf16.gmra.mxu2 %v13122_v37  ;;  %v9192_v11 = vpop.eup %9191  ;;  %v13586_v45 = vadd.f32 %v5977_v19, %v5973_v55  ;;  %v6089_v8 = vadd.f32 1.0, %v6085_v22 }
 0x727   : > { %v6013_v3 = vadd.f32 1.0, %v9192_v11  ;;  %v5230_v5 = vpop.f32.mrf.mxu3 }
 0x728   : > { %5985 = vst [vmem:[#allocation5 + $0x18] sm:$0xff] %v13586_v45  ;;  %v8562_v52 = vmul.f32 -1.442695, %v6089_v8  ;;  %v5275_v15 = vadd.f32 %v5274_v48, %v5230_v5  ;;  %6209 = vrot.lane.b32.xlu1 %v13586_v45, %s9361_s13  ;;  %6505 = vrot.lane.b32.xlu2 %v13586_v45, %s9355_s23 }
 0x729   : > { %v5462_v34 = vpop.f32.mrf.mxu2  ;;  %9193 = vrcp.f32 %v6013_v3  ;;  %v6028_v21 = vand.u32 2147483648, %v6013_v3  ;;  %v6026_v7 = vand.u32 2147483647, %v6013_v3  ;;  %vm6022_vm12 = vweird.f32 %v6013_v3 }
 0x72a   : > { %v13593_v59 = vpop.f32.mrf.mxu1  ;;  %9195 = vpow2.f32 %v8562_v52  ;;  %v5319_v19 = vadd.f32 %v5318_v4, %v5275_v15 }
 0x72b   : > { %v5506_v37 = vpop.f32.mrf.mxu0  ;;  %v6029_v63 = vor.u32 1.1754944e-38, %v6028_v21  ;;  %vm6027_vm14 = vcmp.eq.f32.partialorder %v6026_v7, 8.507059e+37 }
 0x72c   : > { %v13595_v53 = vadd.f32 %v5506_v37, %v5462_v34  ;;  %5598 = vmatmul.bf16.gmra.mxu3 %v13169_v18  ;;  %v6177_v51 = vadd.f32 %v5319_v19, %v13542_v26 }
 0x72e   : > { %8544 = vmatmul.msk.bf16.gmra.mxu0 %vm1914_vm6, %v13119_v35  ;;  %9197 = vtanh.f32 %v6177_v51 }
 0x72f   : > { %v9194_v33 = vpop.eup %9193  ;;  %v5418_v41 = vpop.f32.mrf.mxu3 }
 0x730   : > { %v9196_v13 = vpop.eup %9195  ;;  %v6018_v1 = vmul.f32 %v9194_v33, %v6013_v3  ;;  %v13602_v2 = vadd.f32 %v5418_v41, %v5375_v14  ;;  %6457 = vrot.lane.b32.xlu2 %v13586_v45, %s9358_s26  ;;  %vm6023_vm11 = vweird.f32 %v9194_v33 }
 0x731   : > { %v5464_v57 = vpop.f32.mrf.mxu2  ;;  %v6105_v4 = vadd.f32 1.0, %v9196_v13  ;;  %vm6024_vm13 = vmor %vm6022_vm12, %vm6023_vm11 }
 0x732   : > { %v5379_v48 = vpop.f32.mrf.mxu1  ;;  %v6019_v16 = vsub.f32 1.0, %v6018_v1 }
 0x733   : > { %v5508_v18 = vpop.f32.mrf.mxu0  ;;  %9199 = vrcp.f32 %v6105_v4  ;;  %v6120_v37 = vand.u32 2147483648, %v6105_v4  ;;  %v6118_v14 = vand.u32 2147483647, %v6105_v4  ;;  %v5380_v51 = vadd.f32 %v5379_v48, %v13516_v25 }
 0x734   : > { %v13606_v35 = vadd.f32 %v5508_v18, %v5464_v57  ;;  %v6020_v26 = vmul.f32 %v9194_v33, %v6019_v16  ;;  %8538 = vmatmul.msk.bf16.gmra.mxu1 %vm1914_vm6, %v13221_v38  ;;  %v9198_v28 = vpop.eup %9197  ;;  %vm6114_vm9 = vweird.f32 %v6105_v4 }
 0x735   : > { %vm6119_vm12 = vcmp.eq.f32.partialorder %v6118_v14, 8.507059e+37 }
 0x736   : > { %5647 = vmatmul.bf16.gmra.mxu2 %v13223_v60  ;;  %v6021_v24 = vadd.f32 %v9194_v33, %v6020_v26  ;;  %v9340_v26 = vld [vmem:[#allocation4 + $0x38] sm:$0xff] }
 0x737   : > { %v13611_v62 = vpop.f32.mrf.mxu3 }
 0x738   : > { %v6025_v55 = vsel %vm6024_vm13, %v9194_v33, %v6021_v24  ;;  %6409 = vrot.lane.b32.xlu2 %v13586_v45, %s9360_s18 }
 0x739   : > { %v5467_v22 = vpop.f32.mrf.mxu2  ;;  %v9200_v11 = vpop.eup %9199  ;;  %v6030_v8 = vsel %vm6027_vm14, %v6029_v63, %v6025_v55 }
 0x73a   : > { %v5381_v5 = vpop.f32.mrf.mxu1  ;;  %v6110_v15 = vmul.f32 %v9200_v11, %v6105_v4  ;;  %v6189_v34 = vmul.f32 %v9198_v28, %v6030_v8  ;;  %vm6115_vm15 = vweird.f32 %v9200_v11 }
 0x73b   : > { %v5511_v52 = vpop.f32.mrf.mxu0  ;;  %vm6116_vm11 = vmor %vm6114_vm9, %vm6115_vm15  ;;  %v5382_v48 = vadd.f32 %v5381_v5, %v13521_v46 }
 0x73c   : > { %v13615_v60 = vadd.f32 %v5511_v52, %v5467_v22  ;;  %v6111_v3 = vsub.f32 1.0, %v6110_v15  ;;  %5603 = vmatmul.bf16.gmra.mxu3 %v13258_v29  ;;  %v6121_v29 = vor.u32 1.1754944e-38, %v6120_v37 }
 0x73e   : > { %8545 = vmatmul.msk.bf16.gmra.mxu0 %vm1914_vm6, %v13221_v38  ;;  %v6112_v19 = vmul.f32 %v9200_v11, %v6111_v3 }
 0x73f   : > { %v5423_v33 = vpop.f32.mrf.mxu3 }
 0x740   : > { %v6113_v41 = vadd.f32 %v9200_v11, %v6112_v19  ;;  %v13621_v13 = vadd.f32 %v5423_v33, %v5380_v51  ;;  %6353 = vrot.lane.b32.xlu2 %v13586_v45, %s9354_s22 }
 0x741   : > { %v5469_v1 = vpop.f32.mrf.mxu2 }
 0x742   : > { %v5384_v57 = vpop.f32.mrf.mxu1  ;;  %v6117_v38 = vsel %vm6116_vm11, %v9200_v11, %v6113_v41 }
 0x743   : > { %v5513_v18 = vpop.f32.mrf.mxu0  ;;  %v6122_v21 = vsel %vm6119_vm12, %v6121_v29, %v6117_v38  ;;  %v5385_v46 = vadd.f32 %v5384_v57, %v13527_v54 }
 0x744   : > { %v13625_v16 = vadd.f32 %v5513_v18, %v5469_v1  ;;  %v6185_v25 = vmul.f32 %v9340_v26, %v6122_v21  ;;  %8539 = vmatmul.msk.bf16.gmra.mxu1 %vm1914_vm6, %v13298_v56 }
 0x746   : > { %5652 = vmatmul.bf16.gmra.mxu2 %v13300_v9  ;;  %v13630_v4 = vadd.f32 %v6189_v34, %v6185_v25 }
 0x747   : > { %v5425_v7 = vpop.f32.mrf.mxu3 }
 0x748   : > { %6197 = vst [vmem:[#allocation5 + $0x20] sm:$0xff] %v13630_v4  ;;  %v13634_v24 = vadd.f32 %v5425_v7, %v5382_v48  ;;  %6507 = vrot.lane.b32.xlu0 %v13630_v4, %s9355_s23  ;;  %6305 = vrot.lane.b32.xlu2 %v13586_v45, %s9356_s24 }
 0x749   : > { %v5472_v63 = vpop.f32.mrf.mxu2 }
 0x74a   : > { %v13640_v28 = vpop.f32.mrf.mxu1 }
 0x74b   : > { %v5516_v55 = vpop.f32.mrf.mxu0 }
 0x74c   : > { %v13642_v9 = vadd.f32 %v5516_v55, %v5472_v63  ;;  %5608 = vmatmul.bf16.gmra.mxu3 %v13335_v49 }
 0x74e   : > { %8546 = vmatmul.msk.bf16.gmra.mxu0 %vm1914_vm6, %v13298_v56 }
 0x74f   : > { %v5428_v22 = vpop.f32.mrf.mxu3 }
 0x750   : > { %v13648_v11 = vadd.f32 %v5428_v22, %v5385_v46  ;;  %6459 = vrot.lane.b32.xlu0 %v13630_v4, %s9358_s26  ;;  %6257 = vrot.lane.b32.xlu2 %v13586_v45, %s9359_s29 }
 0x751   : > { %v13650_v8 = vpop.f32.mrf.mxu2 }
 0x752   : > { %v5389_v5 = vpop.f32.mrf.mxu1 }
 0x753   : > { %v13656_v52 = vpop.f32.mrf.mxu0 }
 0x754   : > { %8540 = vmatmul.msk.bf16.gmra.mxu1 %vm1914_vm6, %v13375_v36 }
 0x756   : > { %5657 = vmatmul.bf16.gmra.mxu2 %v13377_v20  ;;  %v5390_v20 = vadd.f32 %v5389_v5, %v13540_v61 }
 0x757   : > { %v13661_v56 = vpop.f32.mrf.mxu3 }
 0x758   : > { %6411 = vrot.lane.b32.xlu0 %v13630_v4, %s9360_s18  ;;  %6553 = vrot.lane.b32.xlu2 %v13586_v45, %s9357_s25 }
 0x759   : > { %v5477_v49 = vpop.f32.mrf.mxu2 }
 0x75a   : > { %v5391_v54 = vpop.f32.mrf.mxu1 }
 0x75b   : > { %v5521_v15 = vpop.f32.mrf.mxu0 }
 0x75c   : > { %v13667_v34 = vadd.f32 %v5521_v15, %v5477_v49  ;;  %5613 = vmatmul.bf16.gmra.mxu3 %v13412_v43 }
 0x75e   : > { %8547 = vmatmul.msk.bf16.gmra.mxu0 %vm1914_vm6, %v13375_v36  ;;  %v5392_v36 = vadd.f32 %v5391_v54, %v13547_v42 }
 0x75f   : > { %v5433_v3 = vpop.f32.mrf.mxu3 }
 0x760   : > { %v13673_v37 = vadd.f32 %v5433_v3, %v5390_v20  ;;  %6355 = vrot.lane.b32.xlu0 %v13630_v4, %s9354_s22  ;;  %6211 = vrot.lane.b32.xlu2 %v13630_v4, %s9361_s13 }
 0x761   : > { %v13675_v19 = vpop.f32.mrf.mxu2 }
 0x762   : > { %v5394_v14 = vpop.f32.mrf.mxu1 }
 0x763   : > { %v13681_v51 = vpop.f32.mrf.mxu0  ;;  %v5395_v42 = vadd.f32 %v5394_v14, %v13551_v39 }
 0x764   : > { %8541 = vmatmul.msk.bf16.gmra.mxu1 %vm1914_vm6, %v13446_v58 }
 0x766   : > { %5662 = vmatmul.bf16.gmra.mxu2 %v13448_v27  ;;  %v5377_v27 = vadd.f32 %v13593_v59, %v13512_v23 }
 0x767   : > { %v5435_v43 = vpop.f32.mrf.mxu3 }
 0x768   : > { %v5436_v61 = vadd.f32 %v5435_v43, %v5392_v36  ;;  %6307 = vrot.lane.b32.xlu0 %v13630_v4, %s9356_s24  ;;  %v5421_v21 = vadd.f32 %v13611_v62, %v5377_v27 }
 0x769   : > { %v5482_v33 = vpop.f32.mrf.mxu2 }
 0x76a   : > { %v5396_v41 = vpop.f32.mrf.mxu1  ;;  %v5786_v29 = vadd.f32 %v5436_v61, %v13602_v2 }
 0x76b   : > { %v5526_v1 = vpop.f32.mrf.mxu0  ;;  %v5397_v39 = vadd.f32 %v5396_v41, %v13556_v30 }
 0x76c   : > { %v13690_v57 = vadd.f32 %v5526_v1, %v5482_v33  ;;  %v8551_v18 = vmul.f32 -1.442695, %v5786_v29  ;;  %5618 = vmatmul.bf16.gmra.mxu3 %v13465_v10 }
 0x76e   : > { %8548 = vmatmul.msk.bf16.gmra.mxu0 %vm1914_vm6, %v13446_v58  ;;  %9201 = vpow2.f32 %v8551_v18 }
 0x76f   : > { %v5438_v38 = vpop.f32.mrf.mxu3 }
 0x770   : > { %v5439_v26 = vadd.f32 %v5438_v38, %v5395_v42  ;;  %6259 = vrot.lane.b32.xlu0 %v13630_v4, %s9359_s29 }
 0x771   : > { %v5484_v25 = vpop.f32.mrf.mxu2 }
 0x772   : > { %v5399_v2 = vpop.f32.mrf.mxu1  ;;  %v5874_v10 = vadd.f32 %v5439_v26, %v5421_v21 }
 0x773   : > { %v5528_v48 = vpop.f32.mrf.mxu0  ;;  %v5400_v20 = vadd.f32 %v5399_v2, %v13561_v47 }
 0x774   : > { %v13701_v7 = vadd.f32 %v5528_v48, %v5484_v25  ;;  %v9202_v58 = vpop.eup %9201  ;;  %v5878_v63 = vadd.f32 1.0, %v5874_v10  ;;  %8542 = vmatmul.msk.bf16.gmra.mxu1 %vm1914_vm6, %v13481_v32 }
 0x775   : > { %v5802_v23 = vadd.f32 1.0, %v9202_v58 }
 0x776   : > { %5667 = vmatmul.bf16.gmra.mxu2 %v13483_v12  ;;  %v8555_v59 = vmul.f32 -1.442695, %v5878_v63 }
 0x777   : > { %9203 = vrcp.f32 %v5802_v23  ;;  %v5440_v62 = vpop.f32.mrf.mxu3  ;;  %v5829_v33 = vand.u32 2147483647, %v5802_v23  ;;  %v5831_v41 = vand.u32 2147483648, %v5802_v23 }
 0x778   : > { %9205 = vpow2.f32 %v8555_v59  ;;  %v5441_v55 = vadd.f32 %v5440_v62, %v5397_v39  ;;  %6555 = vrot.lane.b32.xlu0 %v13630_v4, %s9357_s25 }
 0x779   : > { %v5487_v46 = vpop.f32.mrf.mxu2  ;;  %v5832_v47 = vor.u32 1.1754944e-38, %v5831_v41  ;;  %vm5830_vm15 = vcmp.eq.f32.partialorder %v5829_v33, 8.507059e+37 }
 0x77a   : > { %v5401_v22 = vpop.f32.mrf.mxu1  ;;  %v5966_v54 = vadd.f32 %v5441_v55, %v13621_v13 }
 0x77b   : > { %v5531_v5 = vpop.f32.mrf.mxu0  ;;  %v5402_v38 = vadd.f32 %v5401_v22, %v13567_v50 }
 0x77c   : > { %v13709_v49 = vadd.f32 %v5531_v5, %v5487_v46  ;;  %5623 = vmatmul.bf16.gmra.mxu3 %v13494_v44  ;;  %9207 = vtanh.f32 %v5966_v54 }
 0x77d   : > { %v9204_v12 = vpop.eup %9203 }
 0x77e   : > { %8549 = vmatmul.msk.bf16.gmra.mxu0 %vm1914_vm6, %v13481_v32  ;;  %v9206_v30 = vpop.eup %9205  ;;  %v5821_v15 = vmul.f32 %v9204_v12, %v5802_v23  ;;  %vm5826_vm13 = vweird.f32 %v9204_v12  ;;  %vm5825_vm6 = vweird.f32 %v5802_v23 }
 0x77f   : > { %v5894_v3 = vadd.f32 1.0, %v9206_v30  ;;  %v5443_v14 = vpop.f32.mrf.mxu3  ;;  %vm5827_vm14 = vmor %vm5825_vm6, %vm5826_vm13 }
 0x780   : > { %v5822_v36 = vsub.f32 1.0, %v5821_v15  ;;  %v5444_v43 = vadd.f32 %v5443_v14, %v5400_v20 }
 0x781   : > { %v5489_v61 = vpop.f32.mrf.mxu2  ;;  %9209 = vrcp.f32 %v5894_v3  ;;  %v5923_v62 = vand.u32 2147483648, %v5894_v3  ;;  %v5921_v46 = vand.u32 2147483647, %v5894_v3  ;;  %vm5917_vm11 = vweird.f32 %v5894_v3 }
 0x782   : > { %v5404_v13 = vpop.f32.mrf.mxu1  ;;  %v5823_v44 = vmul.f32 %v9204_v12, %v5822_v36  ;;  %v13717_v32 = vadd.f32 %v5444_v43, %v13673_v37  ;;  %v9208_v27 = vpop.eup %9207 }
 0x783   : > { %v5533_v1 = vpop.f32.mrf.mxu0  ;;  %v5405_v22 = vadd.f32 %v5404_v13, %v13574_v40  ;;  %v5924_v54 = vor.u32 1.1754944e-38, %v5923_v62  ;;  %vm5922_vm13 = vcmp.eq.f32.partialorder %v5921_v46, 8.507059e+37 }
 0x784   : > { %v13719_v29 = vadd.f32 %v5533_v1, %v5489_v61  ;;  %v5824_v18 = vadd.f32 %v9204_v12, %v5823_v44 }
 0x786   : > { %v5828_v42 = vsel %vm5827_vm14, %v9204_v12, %v5824_v18  ;;  %v5774_v12 = vld [vmem:[#allocation5 + $0x8] sm:$0xff] }
 0x787   : > { %v9210_v21 = vpop.eup %9209  ;;  %v5833_v26 = vsel %vm5830_vm15, %v5832_v47, %v5828_v42  ;;  %v5445_v25 = vpop.f32.mrf.mxu3 }
 0x788   : > { %v5913_v2 = vmul.f32 %v9210_v21, %v5894_v3  ;;  %v5978_v48 = vmul.f32 %v9208_v27, %v5833_v26  ;;  %v5446_v10 = vadd.f32 %v5445_v25, %v5402_v38  ;;  %vm5918_vm9 = vweird.f32 %v9210_v21 }
 0x789   : > { %v5492_v58 = vpop.f32.mrf.mxu2  ;;  %vm5919_vm12 = vmor %vm5917_vm11, %vm5918_vm9 }
 0x78a   : > { %v5406_v37 = vpop.f32.mrf.mxu1  ;;  %v5914_v39 = vsub.f32 1.0, %v5913_v2  ;;  %v5998_v59 = vadd.f32 %v5446_v10, %v13634_v24 }
 0x78b   : > { %v5536_v63 = vpop.f32.mrf.mxu0 }
 0x78c   : > { %v13723_v23 = vadd.f32 %v5536_v63, %v5492_v58  ;;  %v5915_v55 = vmul.f32 %v9210_v21, %v5914_v39  ;;  %v8559_v5 = vmul.f32 -1.442695, %v5998_v59  ;;  %v5407_v58 = vadd.f32 %v5406_v37, %v13580_v17 }
 0x78e   : > { %v5916_v50 = vadd.f32 %v9210_v21, %v5915_v55  ;;  %9211 = vpow2.f32 %v8559_v5  ;;  %v5387_v55 = vadd.f32 %v13640_v28, %v13534_v31 }
 0x78f   : > { %v5448_v30 = vpop.f32.mrf.mxu3 }
 0x790   : > { %v5920_v15 = vsel %vm5919_vm12, %v9210_v21, %v5916_v50  ;;  %v5449_v20 = vadd.f32 %v5448_v30, %v5405_v22  ;;  %v5431_v50 = vadd.f32 %v13661_v56, %v5387_v55 }
 0x791   : > { %v5494_v24 = vpop.f32.mrf.mxu2  ;;  %v5925_v14 = vsel %vm5922_vm13, %v5924_v54, %v5920_v15 }
 0x792   : > { %v5550_v36 = vpop.f32.mrf.mxu1  ;;  %v5974_v61 = vmul.f32 %v5925_v14, %v5774_v12  ;;  %v6086_v33 = vadd.f32 %v5449_v20, %v13648_v11 }
 0x793   : > { %v5538_v43 = vpop.f32.mrf.mxu0  ;;  %v13728_v41 = vadd.f32 %v5550_v36, %v13595_v53 }
 0x794   : > { %v13730_v3 = vadd.f32 %v5538_v43, %v5494_v24  ;;  %v9212_v40 = vpop.eup %9211  ;;  %v13732_v13 = vadd.f32 %v5978_v48, %v5974_v61  ;;  %v6090_v1 = vadd.f32 1.0, %v6086_v33 }
 0x795   : > { %v6014_v44 = vadd.f32 1.0, %v9212_v40 }
 0x796   : > { %5986 = vst [vmem:[#allocation5 + $0x8] sm:$0xff] %v13732_v13  ;;  %v8563_v18 = vmul.f32 -1.442695, %v6090_v1  ;;  %6213 = vrot.lane.b32.xlu0 %v13732_v13, %s9361_s13  ;;  %v6401_v47 = vpack.c.bf16 %v13732_v13, %v13586_v45  ;;  %6509 = vrot.lane.b32.xlu1 %v13732_v13, %s9355_s23 }
 0x797   : > { %9213 = vrcp.f32 %v6014_v44  ;;  %v5450_v53 = vpop.f32.mrf.mxu3  ;;  %v6043_v30 = vand.u32 2147483648, %v6014_v44  ;;  %vm6037_vm14 = vweird.f32 %v6014_v44  ;;  %v6041_v31 = vand.u32 2147483647, %v6014_v44 }
 0x798   : > { %9215 = vpow2.f32 %v8563_v18  ;;  %6405 = vst [vmem:[#allocation7 + $0x80] sm:$0xff] %v6401_v47  ;;  %v5451_v46 = vadd.f32 %v5450_v53, %v5407_v58 }
 0x799   : > { %v5638_v11 = vpop.f32.mrf.mxu2  ;;  %v6044_v61 = vor.u32 1.1754944e-38, %v6043_v30  ;;  %vm6042_vm12 = vcmp.eq.f32.partialorder %v6041_v31, 8.507059e+37 }
 0x79a   : > { %v13741_v27 = vpop.f32.mrf.mxu1  ;;  %v6178_v37 = vadd.f32 %v5451_v46, %v5431_v50 }
 0x79b   : > { %v5682_v42 = vpop.f32.mrf.mxu0 }
 0x79d   : > { %v9214_v38 = vpop.eup %9213 }
 0x79e   : > { %v9216_v21 = vpop.eup %9215  ;;  %v6033_v26 = vmul.f32 %v9214_v38, %v6014_v44  ;;  %6461 = vrot.lane.b32.xlu1 %v13732_v13, %s9358_s26  ;;  %vm6038_vm6 = vweird.f32 %v9214_v38 }
 0x79f   : > { %v6106_v25 = vadd.f32 1.0, %v9216_v21  ;;  %v5594_v2 = vpop.f32.mrf.mxu3  ;;  %vm6039_vm15 = vmor %vm6037_vm14, %vm6038_vm6  ;;  %v9341_v21 = vld [vmem:[#allocation4 + $0x28] sm:$0xff] }
 0x7a0   : > { %v6034_v45 = vsub.f32 1.0, %v6033_v26  ;;  %v5639_v48 = vadd.f32 %v5638_v11, %v5594_v2 }
 0x7a1   : > { %v13745_v10 = vpop.f32.mrf.mxu2  ;;  %9217 = vrcp.f32 %v6106_v25  ;;  %v6135_v56 = vand.u32 2147483648, %v6106_v25  ;;  %v6133_v43 = vand.u32 2147483647, %v6106_v25  ;;  %vm6129_vm11 = vweird.f32 %v6106_v25 }
 0x7a2   : > { %v5555_v63 = vpop.f32.mrf.mxu1  ;;  %v13753_v62 = vadd.f32 %v5682_v42, %v5639_v48  ;;  %v6035_v5 = vmul.f32 %v9214_v38, %v6034_v45  ;;  %9219 = vtanh.f32 %v6178_v37 }
 0x7a3   : > { %v13748_v39 = vpop.f32.mrf.mxu0  ;;  %v13751_v59 = vadd.f32 %v5555_v63, %v13615_v60  ;;  %v6136_v40 = vor.u32 1.1754944e-38, %v6135_v56  ;;  %vm6134_vm10 = vcmp.eq.f32.partialorder %v6133_v43, 8.507059e+37 }
 0x7a4   : > { %v6036_v12 = vadd.f32 %v9214_v38, %v6035_v5 }
 0x7a6   : > { %6413 = vrot.lane.b32.xlu1 %v13732_v13, %s9360_s18  ;;  %v6040_v36 = vsel %vm6039_vm15, %v9214_v38, %v6036_v12 }
 0x7a7   : > { %v9218_v17 = vpop.eup %9217  ;;  %v13760_v22 = vpop.f32.mrf.mxu3  ;;  %v6045_v1 = vsel %vm6042_vm12, %v6044_v61, %v6040_v36 }
 0x7a8   : > { %v6125_v54 = vmul.f32 %v9218_v17, %v6106_v25  ;;  %vm6130_vm9 = vweird.f32 %v9218_v17  ;;  %v9220_v53 = vpop.eup %9219 }
 0x7a9   : > { %v5643_v60 = vpop.f32.mrf.mxu2  ;;  %vm6131_vm13 = vmor %vm6129_vm11, %vm6130_vm9  ;;  %v6190_v25 = vmul.f32 %v9220_v53, %v6045_v1 }
 0x7aa   : > { %v5557_v15 = vpop.f32.mrf.mxu1  ;;  %v6126_v24 = vsub.f32 1.0, %v6125_v54 }
 0x7ab   : > { %v5687_v20 = vpop.f32.mrf.mxu0  ;;  %v13763_v28 = vadd.f32 %v5557_v15, %v13625_v16 }
 0x7ac   : > { %v6127_v14 = vmul.f32 %v9218_v17, %v6126_v24 }
 0x7ae   : > { %v6128_v33 = vadd.f32 %v9218_v17, %v6127_v14  ;;  %6357 = vrot.lane.b32.xlu1 %v13732_v13, %s9354_s22 }
 0x7af   : > { %v5599_v44 = vpop.f32.mrf.mxu3 }
 0x7b0   : > { %v6132_v16 = vsel %vm6131_vm13, %v9218_v17, %v6128_v33  ;;  %v5644_v18 = vadd.f32 %v5643_v60, %v5599_v44  ;;  %v13807_v33 = vpop.permute.xlu2 %6505  ;;  %v5553_v44 = vadd.f32 %v13741_v27, %v13606_v35 }
 0x7b1   : > { %v5645_v47 = vpop.f32.mrf.mxu2  ;;  %v6137_v11 = vsel %vm6134_vm10, %v6136_v40, %v6132_v16 }
 0x7b2   : > { %v5560_v42 = vpop.f32.mrf.mxu1  ;;  %v6186_v26 = vmul.f32 %v9341_v21, %v6137_v11  ;;  %v13770_v45 = vadd.f32 %v5687_v20, %v5644_v18  ;;  %v5524_v20 = vadd.f32 %v13681_v51, %v13675_v19 }
 0x7b3   : > { %v5689_v38 = vpop.f32.mrf.mxu0  ;;  %v13768_v2 = vadd.f32 %v5560_v42, %v13642_v9 }
 0x7b4   : > { %v13772_v48 = vadd.f32 %v6190_v25, %v6186_v26 }
 0x7b6   : > { %6198 = vst [vmem:[#allocation5] sm:$0xff] %v13772_v48  ;;  %6511 = vrot.lane.b32.xlu2 %v13772_v48, %s9355_s23  ;;  %v6403_v58 = vpack.c.bf16 %v13772_v48, %v13630_v4  ;;  %6309 = vrot.lane.b32.xlu1 %v13732_v13, %s9356_s24 }
 0x7b7   : > { %v5601_v63 = vpop.f32.mrf.mxu3 }
 0x7b8   : > { %v5646_v55 = vadd.f32 %v5645_v47, %v5601_v63  ;;  %6407 = vst [vmem:[#allocation7 + $0x90] sm:$0xff] %v6403_v58  ;;  %v13816_v63 = vpop.permute.xlu2 %6457 }
 0x7b9   : > { %v5648_v9 = vpop.f32.mrf.mxu2 }
 0x7ba   : > { %v13781_v46 = vpop.f32.mrf.mxu1  ;;  %v13783_v50 = vadd.f32 %v5689_v38, %v5646_v55 }
 0x7bb   : > { %v5692_v5 = vpop.f32.mrf.mxu0 }
 0x7be   : > { %6463 = vrot.lane.b32.xlu2 %v13772_v48, %s9358_s26  ;;  %6261 = vrot.lane.b32.xlu1 %v13732_v13, %s9359_s29 }
 0x7bf   : > { %v5604_v17 = vpop.f32.mrf.mxu3 }
 0x7c0   : > { %v5649_v4 = vadd.f32 %v5648_v9, %v5604_v17  ;;  %v5641_v9 = vadd.f32 %v13745_v10, %v13760_v22 }
 0x7c1   : > { %v5650_v37 = vpop.f32.mrf.mxu2 }
 0x7c2   : > { %v5565_v54 = vpop.f32.mrf.mxu1  ;;  %v13792_v30 = vadd.f32 %v5692_v5, %v5649_v4 }
 0x7c3   : > { %v5694_v12 = vpop.f32.mrf.mxu0  ;;  %v13790_v60 = vadd.f32 %v5565_v54, %v13667_v34 }
 0x7c6   : > { %6415 = vrot.lane.b32.xlu2 %v13772_v48, %s9360_s18  ;;  %6557 = vrot.lane.b32.xlu1 %v13732_v13, %s9357_s25 }
 0x7c7   : > { %v5606_v15 = vpop.f32.mrf.mxu3 }
 0x7c8   : > { %v5651_v24 = vadd.f32 %v5650_v37, %v5606_v15 }
 0x7c9   : > { %v5653_v31 = vpop.f32.mrf.mxu2 }
 0x7ca   : > { %v5567_v56 = vpop.f32.mrf.mxu1  ;;  %v13800_v43 = vadd.f32 %v5694_v12, %v5651_v24 }
 0x7cb   : > { %v5697_v14 = vpop.f32.mrf.mxu0  ;;  %v5568_v36 = vadd.f32 %v5567_v56, %v5524_v20 }
 0x7cd   : > { %v5787_v34 = vadd.f32 %v5568_v36, %v13728_v41 }
 0x7ce   : > { %6359 = vrot.lane.b32.xlu2 %v13772_v48, %s9354_s22  ;;  %6215 = vrot.lane.b32.xlu1 %v13772_v48, %s9361_s13 }
 0x7cf   : > { %v8552_v61 = vmul.f32 -1.442695, %v5787_v34  ;;  %v5609_v13 = vpop.f32.mrf.mxu3 }
 0x7d0   : > { %v5654_v19 = vadd.f32 %v5653_v31, %v5609_v13 }
 0x7d1   : > { %9221 = vpow2.f32 %v8552_v61  ;;  %v5655_v51 = vpop.f32.mrf.mxu2 }
 0x7d2   : > { %v5570_v40 = vpop.f32.mrf.mxu1  ;;  %v13812_v16 = vadd.f32 %v5697_v14, %v5654_v19  ;;  %v13827_v14 = vpop.permute.xlu2 %6409 }
 0x7d3   : > { %v5699_v1 = vpop.f32.mrf.mxu0  ;;  %v5571_v41 = vadd.f32 %v5570_v40, %v13690_v57 }
 0x7d5   : > { %v5875_v18 = vadd.f32 %v5571_v41, %v5553_v44 }
 0x7d6   : > { %6311 = vrot.lane.b32.xlu2 %v13772_v48, %s9356_s24 }
 0x7d7   : > { %v9222_v47 = vpop.eup %9221  ;;  %v5879_v53 = vadd.f32 1.0, %v5875_v18  ;;  %v5611_v42 = vpop.f32.mrf.mxu3 }
 0x7d8   : > { %v5803_v11 = vadd.f32 1.0, %v9222_v47  ;;  %v5656_v21 = vadd.f32 %v5655_v51, %v5611_v42 }
 0x7d9   : > { %v8556_v38 = vmul.f32 -1.442695, %v5879_v53  ;;  %v5658_v26 = vpop.f32.mrf.mxu2 }
 0x7da   : > { %9223 = vrcp.f32 %v5803_v11  ;;  %v5572_v25 = vpop.f32.mrf.mxu1  ;;  %v5700_v57 = vadd.f32 %v5699_v1, %v5656_v21  ;;  %v5844_v31 = vand.u32 2147483647, %v5803_v11  ;;  %v5846_v56 = vand.u32 2147483648, %v5803_v11 }
 0x7db   : > { %v5702_v58 = vpop.f32.mrf.mxu0  ;;  %9225 = vpow2.f32 %v8556_v38  ;;  %v5573_v35 = vadd.f32 %v5572_v25, %v13701_v7  ;;  %v5685_v7 = vadd.f32 %v13748_v39, %v5641_v9  ;;  %vm5840_vm6 = vweird.f32 %v5803_v11 }
 0x7dc   : > { %v5788_v55 = vadd.f32 %v5700_v57, %v13753_v62  ;;  %vm5845_vm15 = vcmp.eq.f32.partialorder %v5844_v31, 8.507059e+37 }
 0x7dd   : > { %v5967_v27 = vadd.f32 %v5573_v35, %v13751_v59 }
 0x7de   : > { %v8553_v5 = vmul.f32 -1.442695, %v5788_v55  ;;  %6263 = vrot.lane.b32.xlu2 %v13772_v48, %s9359_s29  ;;  %v13840_v55 = vpop.permute.xlu2 %6353 }
 0x7df   : > { %v5614_v4 = vpop.f32.mrf.mxu3 }
 0x7e0   : > { %v9224_v17 = vpop.eup %9223  ;;  %9227 = vpow2.f32 %v8553_v5  ;;  %v5659_v12 = vadd.f32 %v5658_v26, %v5614_v4 }
 0x7e1   : > { %v9226_v37 = vpop.eup %9225  ;;  %v5836_v54 = vmul.f32 %v9224_v17, %v5803_v11  ;;  %v5660_v15 = vpop.f32.mrf.mxu2  ;;  %9229 = vtanh.f32 %v5967_v27  ;;  %vm5841_vm10 = vweird.f32 %v9224_v17 }
 0x7e2   : > { %v5895_v20 = vadd.f32 1.0, %v9226_v37  ;;  %v5575_v59 = vpop.f32.mrf.mxu1  ;;  %v5703_v22 = vadd.f32 %v5702_v58, %v5659_v12  ;;  %vm5842_vm14 = vmor %vm5840_vm6, %vm5841_vm10 }
 0x7e3   : > { %v5704_v24 = vpop.f32.mrf.mxu0  ;;  %v5837_v62 = vsub.f32 1.0, %v5836_v54  ;;  %v5576_v10 = vadd.f32 %v5575_v59, %v13709_v49  ;;  %v5847_v49 = vor.u32 1.1754944e-38, %v5846_v56 }
 0x7e4   : > { %9231 = vrcp.f32 %v5895_v20  ;;  %v5876_v61 = vadd.f32 %v5703_v22, %v5685_v7  ;;  %v5938_v58 = vand.u32 2147483648, %v5895_v20  ;;  %v5936_v35 = vand.u32 2147483647, %v5895_v20  ;;  %v5775_v7 = vld [vmem:[#allocation5 + $0x10] sm:$0xff] }
 0x7e5   : > { %v5838_v36 = vmul.f32 %v9224_v17, %v5837_v62  ;;  %v13830_v34 = vadd.f32 %v5576_v10, %v13790_v60  ;;  %vm5932_vm11 = vweird.f32 %v5895_v20 }
 0x7e6   : > { %v9228_v39 = vpop.eup %9227  ;;  %v5880_v19 = vadd.f32 1.0, %v5876_v61  ;;  %6559 = vrot.lane.b32.xlu2 %v13772_v48, %s9357_s25  ;;  %vm5937_vm13 = vcmp.eq.f32.partialorder %v5936_v35, 8.507059e+37 }
 0x7e7   : > { %v5839_v13 = vadd.f32 %v9224_v17, %v5838_v36  ;;  %v13834_v51 = vadd.f32 1.0, %v9228_v39  ;;  %v5616_v40 = vpop.f32.mrf.mxu3  ;;  %v9230_v1 = vpop.eup %9229 }
 0x7e8   : > { %v8557_v41 = vmul.f32 -1.442695, %v5880_v19  ;;  %v5661_v18 = vadd.f32 %v5660_v15, %v5616_v40  ;;  %v5939_v15 = vor.u32 1.1754944e-38, %v5938_v58 }
 0x7e9   : > { %v5843_v44 = vsel %vm5842_vm14, %v9224_v17, %v5839_v13  ;;  %v5663_v60 = vpop.f32.mrf.mxu2  ;;  %9233 = vrcp.f32 %v13834_v51  ;;  %v5859_v31 = vand.u32 2147483647, %v13834_v51  ;;  %v5861_v56 = vand.u32 2147483648, %v13834_v51 }
 0x7ea   : > { %v9232_v47 = vpop.eup %9231  ;;  %v5848_v53 = vsel %vm5845_vm15, %v5847_v49, %v5843_v44  ;;  %v5577_v11 = vpop.f32.mrf.mxu1  ;;  %9235 = vpow2.f32 %v8557_v41  ;;  %v5705_v21 = vadd.f32 %v5704_v24, %v5661_v18  ;;  %vm5855_vm6 = vweird.f32 %v13834_v51 }
 0x7eb   : > { %v5928_v42 = vmul.f32 %v9232_v47, %v5895_v20  ;;  %v5979_v38 = vmul.f32 %v9230_v1, %v5848_v53  ;;  %v5578_v48 = vadd.f32 %v5577_v11, %v13719_v29  ;;  %v5707_v26 = vpop.f32.mrf.mxu0  ;;  %vm5933_vm9 = vweird.f32 %v9232_v47 }
 0x7ec   : > { %v5968_v27 = vadd.f32 %v5705_v21, %v13770_v45  ;;  %vm5934_vm12 = vmor %vm5932_vm11, %vm5933_vm9  ;;  %vm5860_vm15 = vcmp.eq.f32.partialorder %v5859_v31, 8.507059e+37  ;;  %v5862_v41 = vor.u32 1.1754944e-38, %v5861_v56 }
 0x7ed   : > { %v5929_v25 = vsub.f32 1.0, %v5928_v42  ;;  %v5999_v57 = vadd.f32 %v5578_v48, %v13763_v28 }
 0x7ee   : > { %9237 = vtanh.f32 %v5968_v27 }
 0x7ef   : > { %v5930_v9 = vmul.f32 %v9232_v47, %v5929_v25  ;;  %v9234_v5 = vpop.eup %9233  ;;  %v8560_v17 = vmul.f32 -1.442695, %v5999_v57  ;;  %v5619_v4 = vpop.f32.mrf.mxu3 }
 0x7f0   : > { %v9236_v37 = vpop.eup %9235  ;;  %v5851_v29 = vmul.f32 %v9234_v5, %v13834_v51  ;;  %v5664_v12 = vadd.f32 %v5663_v60, %v5619_v4  ;;  %vm5856_vm10 = vweird.f32 %v9234_v5  ;;  %v13856_v60 = vpop.permute.xlu2 %6305  ;;  %v5519_v51 = vadd.f32 %v13656_v52, %v13650_v8 }
 0x7f1   : > { %v5931_v54 = vadd.f32 %v9232_v47, %v5930_v9  ;;  %v13843_v28 = vadd.f32 1.0, %v9236_v37  ;;  %9239 = vpow2.f32 %v8560_v17  ;;  %v5665_v59 = vpop.f32.mrf.mxu2  ;;  %vm5857_vm14 = vmor %vm5855_vm6, %vm5856_vm10 }
 0x7f2   : > { %v5580_v45 = vpop.f32.mrf.mxu1  ;;  %v5852_v62 = vsub.f32 1.0, %v5851_v29  ;;  %v5708_v10 = vadd.f32 %v5707_v26, %v5664_v12  ;;  %v5563_v26 = vadd.f32 %v13781_v46, %v5519_v51 }
 0x7f3   : > { %v5935_v24 = vsel %vm5934_vm12, %v9232_v47, %v5931_v54  ;;  %v5581_v20 = vadd.f32 %v5580_v45, %v13723_v23  ;;  %9241 = vrcp.f32 %v13843_v28  ;;  %v5709_v19 = vpop.f32.mrf.mxu0  ;;  %v5953_v27 = vand.u32 2147483648, %v13843_v28 }
 0x7f4   : > { %v5940_v22 = vsel %vm5937_vm13, %v5939_v15, %v5935_v24  ;;  %v5853_v61 = vmul.f32 %v9234_v5, %v5852_v62  ;;  %v13851_v13 = vadd.f32 %v5708_v10, %v13812_v16  ;;  %v9238_v49 = vpop.eup %9237  ;;  %v5951_v9 = vand.u32 2147483647, %v13843_v28 }
 0x7f5   : > { %v5975_v36 = vmul.f32 %v5940_v22, %v5775_v7  ;;  %v6087_v39 = vadd.f32 %v5581_v20, %v13768_v2  ;;  %vm5947_vm11 = vweird.f32 %v13843_v28  ;;  %v5954_v12 = vor.u32 1.1754944e-38, %v5953_v27  ;;  %v5776_v7 = vld [vmem:[#allocation5 + $0x30] sm:$0xff] }
 0x7f6   : > { %v5854_v23 = vadd.f32 %v9234_v5, %v5853_v61  ;;  %vm5952_vm13 = vcmp.eq.f32.partialorder %v5951_v9, 8.507059e+37 }
 0x7f7   : > { %v13853_v40 = vadd.f32 %v5979_v38, %v5975_v36  ;;  %v6091_v1 = vadd.f32 1.0, %v6087_v39  ;;  %v9240_v44 = vpop.eup %9239  ;;  %v5621_v18 = vpop.f32.mrf.mxu3 }
 0x7f8   : > { %v13859_v2 = vadd.f32 1.0, %v9240_v44  ;;  %v5858_v16 = vsel %vm5857_vm14, %v9234_v5, %v5854_v23  ;;  %v5666_v53 = vadd.f32 %v5665_v59, %v5621_v18  ;;  %v13876_v45 = vpop.permute.xlu2 %6257 }
 0x7f9   : > { %5987 = vst [vmem:[#allocation5 + $0x10] sm:$0xff] %v13853_v40  ;;  %v8564_v47 = vmul.f32 -1.442695, %v6091_v1  ;;  %6513 = vrot.lane.b32.xlu0 %v13853_v40, %s9355_s23  ;;  %v9242_v11 = vpop.eup %9241  ;;  %v5863_v42 = vsel %vm5860_vm15, %v5862_v41, %v5858_v16  ;;  %v5668_v58 = vpop.f32.mrf.mxu2 }
 0x7fa   : > { %v5582_v38 = vpop.f32.mrf.mxu1  ;;  %v5943_v48 = vmul.f32 %v9242_v11, %v13843_v28  ;;  %9243 = vrcp.f32 %v13859_v2  ;;  %v5980_v21 = vmul.f32 %v9238_v49, %v5863_v42  ;;  %v5710_v57 = vadd.f32 %v5709_v19, %v5666_v53 }
 0x7fb   : > { %9245 = vpow2.f32 %v8564_v47  ;;  %v5583_v25 = vadd.f32 %v5582_v38, %v13730_v3  ;;  %vm5948_vm9 = vweird.f32 %v9242_v11  ;;  %v5712_v4 = vpop.f32.mrf.mxu0  ;;  %v6058_v10 = vand.u32 2147483648, %v13859_v2 }
 0x7fc   : > { %v5944_v35 = vsub.f32 1.0, %v5943_v48  ;;  %v6000_v5 = vadd.f32 %v5710_v57, %v13783_v50  ;;  %vm5949_vm12 = vmor %vm5947_vm11, %vm5948_vm9  ;;  %v6056_v31 = vand.u32 2147483647, %v13859_v2  ;;  %vm6052_vm6 = vweird.f32 %v13859_v2 }
 0x7fd   : > { %v6179_v8 = vadd.f32 %v5583_v25, %v5563_v26  ;;  %v6059_v1 = vor.u32 1.1754944e-38, %v6058_v10 }
 0x7fe   : > { %v5945_v52 = vmul.f32 %v9242_v11, %v5944_v35  ;;  %v8561_v54 = vmul.f32 -1.442695, %v6000_v5  ;;  %vm6057_vm15 = vcmp.eq.f32.partialorder %v6056_v31, 8.507059e+37 }
 0x7ff   : > { %v5624_v17 = vpop.f32.mrf.mxu3 }
 0x800   : > { %v9244_v37 = vpop.eup %9243  ;;  %v5946_v46 = vadd.f32 %v9242_v11, %v5945_v52  ;;  %v5669_v3 = vadd.f32 %v5668_v58, %v5624_v17  ;;  %9247 = vpow2.f32 %v8561_v54  ;;  %v13891_v38 = vpop.permute.xlu2 %6553 }
 0x801   : > { %6465 = vrot.lane.b32.xlu0 %v13853_v40, %s9358_s26  ;;  %v9246_v29 = vpop.eup %9245  ;;  %v6048_v15 = vmul.f32 %v9244_v37, %v13859_v2  ;;  %9249 = vtanh.f32 %v6179_v8  ;;  %vm6053_vm10 = vweird.f32 %v9244_v37  ;;  %v5670_v36 = vpop.f32.mrf.mxu2 }
 0x802   : > { %v5950_v50 = vsel %vm5949_vm12, %v9242_v11, %v5946_v46  ;;  %v6107_v59 = vadd.f32 1.0, %v9246_v29  ;;  %v5713_v24 = vadd.f32 %v5712_v4, %v5669_v3  ;;  %vm6054_vm14 = vmor %vm6052_vm6, %vm6053_vm10 }
 0x803   : > { %v6049_v28 = vsub.f32 1.0, %v6048_v15  ;;  %v5955_v62 = vsel %vm5952_vm13, %v5954_v12, %v5950_v50  ;;  %v5714_v47 = vpop.f32.mrf.mxu0 }
 0x804   : > { %v5976_v20 = vmul.f32 %v5955_v62, %v5776_v7  ;;  %9251 = vrcp.f32 %v6107_v59  ;;  %v6088_v56 = vadd.f32 %v5713_v24, %v13792_v30  ;;  %v6150_v26 = vand.u32 2147483648, %v6107_v59 }
 0x805   : > { %v6050_v22 = vmul.f32 %v9244_v37, %v6049_v28  ;;  %v6148_v58 = vand.u32 2147483647, %v6107_v59  ;;  %vm6144_vm11 = vweird.f32 %v6107_v59 }
 0x806   : > { %v13881_v61 = vadd.f32 %v5980_v21, %v5976_v20  ;;  %v6092_v19 = vadd.f32 1.0, %v6088_v56  ;;  %v9248_v23 = vpop.eup %9247  ;;  %v6151_v8 = vor.u32 1.1754944e-38, %v6150_v26 }
 0x807   : > { %v6051_v39 = vadd.f32 %v9244_v37, %v6050_v22  ;;  %v5626_v49 = vpop.f32.mrf.mxu3  ;;  %v9250_v30 = vpop.eup %9249  ;;  %v6016_v2 = vadd.f32 1.0, %v9248_v23  ;;  %vm6149_vm13 = vcmp.eq.f32.partialorder %v6148_v58, 8.507059e+37 }
 0x808   : > { %5988 = vst [vmem:[#allocation5 + $0x30] sm:$0xff] %v13881_v61  ;;  %v5671_v44 = vadd.f32 %v5670_v36, %v5626_v49  ;;  %v6402_v41 = vpack.c.bf16 %v13881_v61, %v13853_v40  ;;  %6517 = vrot.lane.b32.xlu2 %v13881_v61, %s9355_s23  ;;  %v8565_v16 = vmul.f32 -1.442695, %v6092_v19  ;;  %v13898_v3 = vpop.permute.xlu2 %6211  ;;  %v13907_v22 = vpop.permute.xlu0 %6507 }
 0x809   : > { %6417 = vrot.lane.b32.xlu0 %v13853_v40, %s9360_s18  ;;  %v6055_v18 = vsel %vm6054_vm14, %v9244_v37, %v6051_v39  ;;  %9253 = vrcp.f32 %v6016_v2  ;;  %v6073_v54 = vand.u32 2147483648, %v6016_v2  ;;  %v6071_v12 = vand.u32 2147483647, %v6016_v2 }
 0x80a   : > { %v9252_v53 = vpop.eup %9251  ;;  %v6060_v11 = vsel %vm6057_vm15, %v6059_v1, %v6055_v18  ;;  %6406 = vst [vmem:[#allocation7 + $0x88] sm:$0xff] %v6402_v41  ;;  %9255 = vpow2.f32 %v8565_v16  ;;  %v5715_v48 = vadd.f32 %v5714_v47, %v5671_v44  ;;  %vm6067_vm6 = vweird.f32 %v6016_v2  ;;  %v9343_v41 = vld [vmem:[#allocation4 + $0x10] sm:$0xff] }
 0x80b   : > { %v6140_v51 = vmul.f32 %v9252_v53, %v6107_v59  ;;  %v6191_v42 = vmul.f32 %v9250_v30, %v6060_v11  ;;  %vm6145_vm9 = vweird.f32 %v9252_v53  ;;  %v6074_v50 = vor.u32 1.1754944e-38, %v6073_v54  ;;  %v8609_v54 = vld [vmem:[%s14471_s2 + $0x398] sm:$0xff] }
 0x80c   : > { %v6180_v35 = vadd.f32 %v5715_v48, %v13800_v43  ;;  %vm6146_vm12 = vmor %vm6144_vm11, %vm6145_vm9  ;;  %v9342_v43 = vld [vmem:[#allocation4 + $0x30] sm:$0xff]  ;;  %vm6072_vm15 = vcmp.eq.f32.partialorder %v6071_v12, 8.507059e+37  ;;  %v6233_v12 = vld [vmem:[%s14471_s2] sm:$0xff] }
 0x80d   : > { %v6141_v21 = vsub.f32 1.0, %v6140_v51  ;;  %v6210_v51 = vpop.permute.xlu1 %6209 }
 0x80e   : > { %9257 = vtanh.f32 %v6180_v35 }
 0x80f   : > { %v6142_v25 = vmul.f32 %v9252_v53, %v6141_v21  ;;  %v9254_v57 = vpop.eup %9253 }
 0x810   : > { %6221 = vrot.lane.b32.xlu2 %v13881_v61, %s9361_s13  ;;  %v9256_v9 = vpop.eup %9255  ;;  %v6063_v52 = vmul.f32 %v9254_v57, %v6016_v2  ;;  %vm6068_vm10 = vweird.f32 %v9254_v57  ;;  %v13909_v56 = vpop.permute.xlu2 %6511 }
 0x811   : > { %6365 = vrot.lane.b32.xlu0 %v13881_v61, %s9354_s22  ;;  %v6143_v27 = vadd.f32 %v9252_v53, %v6142_v25  ;;  %v6108_v17 = vadd.f32 1.0, %v9256_v9  ;;  %vm6069_vm14 = vmor %vm6067_vm6, %vm6068_vm10  ;;  %v13915_v18 = vpop.permute.xlu0 %6459  ;;  %vm7056_vm6 = vcmask 1043456  }
 0x812   : > { %v6064_v37 = vsub.f32 1.0, %v6063_v52 }
 0x813   : > { %v6147_v5 = vsel %vm6146_vm12, %v9252_v53, %v6143_v27  ;;  %9259 = vrcp.f32 %v6108_v17  ;;  %v6165_v36 = vand.u32 2147483648, %v6108_v17  ;;  %v6163_v19 = vand.u32 2147483647, %v6108_v17 }
 0x814   : > { %v6152_v4 = vsel %vm6149_vm13, %v6151_v8, %v6147_v5  ;;  %v6065_v29 = vmul.f32 %v9254_v57, %v6064_v37  ;;  %v9258_v59 = vpop.eup %9257  ;;  %vm6159_vm11 = vweird.f32 %v6108_v17  ;;  %v6234_v37 = vld [vmem:[%s14471_s2 + $0x8] sm:$0xff] }
 0x815   : > { %v6187_v46 = vmul.f32 %v9342_v43, %v6152_v4  ;;  %v6166_v23 = vor.u32 1.1754944e-38, %v6165_v36  ;;  %vm6164_vm13 = vcmp.eq.f32.partialorder %v6163_v19, 8.507059e+37  ;;  %v6510_v21 = vpop.permute.xlu1 %6509 }
 0x816   : > { %v6066_v7 = vadd.f32 %v9254_v57, %v6065_v29 }
 0x817   : > { %v13900_v15 = vadd.f32 %v6191_v42, %v6187_v46  ;;  %v8606_v46 = vld [vmem:[%s14471_s2 + $0x380] sm:$0xff] }
 0x818   : > { %v6070_v24 = vsel %vm6069_vm14, %v9254_v57, %v6066_v7  ;;  %v13917_v16 = vpop.permute.xlu2 %6463  ;;  %v8607_v7 = vld [vmem:[%s14471_s2 + $0x388] sm:$0xff] }
 0x819   : > { %6317 = vrot.lane.b32.xlu0 %v13881_v61, %s9356_s24  ;;  %6199 = vst [vmem:[#allocation5 + $0x38] sm:$0xff] %v13900_v15  ;;  %6515 = vrot.lane.b32.xlu1 %v13900_v15, %s9355_s23  ;;  %v9260_v28 = vpop.eup %9259  ;;  %v6075_v62 = vsel %vm6072_vm15, %v6074_v50, %v6070_v24  ;;  %v13928_v53 = vpop.permute.xlu0 %6411  ;;  %v8608_v50 = vld [vmem:[%s14471_s2 + $0x390] sm:$0xff] }
 0x81a   : > { %v6155_v20 = vmul.f32 %v9260_v28, %v6108_v17  ;;  %v6192_v10 = vmul.f32 %v9258_v59, %v6075_v62  ;;  %vm6160_vm9 = vweird.f32 %v9260_v28 }
 0x81b   : > { %vm6161_vm12 = vmor %vm6159_vm11, %vm6160_vm9  ;;  %vm7052_vm11 = vcmask 64512  }
 0x81c   : > { %v6156_v31 = vsub.f32 1.0, %v6155_v20 }
 0x81d   : > { %v6462_v58 = vpop.permute.xlu1 %6461 }
 0x81e   : > { %v6157_v39 = vmul.f32 %v9260_v28, %v6156_v31 }
 0x820   : > { %v6158_v49 = vadd.f32 %v9260_v28, %v6157_v39  ;;  %v13930_v11 = vpop.permute.xlu2 %6415 }
 0x821   : > { %6269 = vrot.lane.b32.xlu0 %v13881_v61, %s9359_s29  ;;  %6467 = vrot.lane.b32.xlu1 %v13900_v15, %s9358_s26  ;;  %v13938_v42 = vpop.permute.xlu0 %6355 }
 0x822   : > { %v6162_v1 = vsel %vm6161_vm12, %v9260_v28, %v6158_v49 }
 0x823   : > { %v6167_v44 = vsel %vm6164_vm13, %v6166_v23, %v6162_v1 }
 0x824   : > { %v6188_v30 = vmul.f32 %v9343_v41, %v6167_v44  ;;  %v8598_v44 = vld [vmem:[%s14471_s2 + $0x300] sm:$0xff]  ;;  %v6477_v41 = vsel %vm1087_vm4, %v13816_v63, %v6462_v58 }
 0x825   : > { %v6414_v27 = vpop.permute.xlu1 %6413 }
 0x826   : > { %v6196_v2 = vadd.f32 %v6192_v10, %v6188_v30  ;;  %v8599_v30 = vld [vmem:[%s14471_s2 + $0x308] sm:$0xff] }
 0x828   : > { %6200 = vst [vmem:[#allocation5 + $0x28] sm:$0xff] %v6196_v2  ;;  %v6404_v47 = vpack.c.bf16 %v6196_v2, %v13900_v15  ;;  %6471 = vrot.lane.b32.xlu2 %v6196_v2, %s9358_s26  ;;  %v13940_v48 = vpop.permute.xlu2 %6359 }
 0x829   : > { %6421 = vrot.lane.b32.xlu0 %v13881_v61, %s9360_s18  ;;  %6419 = vrot.lane.b32.xlu1 %v13900_v15, %s9360_s18  ;;  %v13947_v26 = vpop.permute.xlu0 %6307 }
 0x82a   : > { %6408 = vst [vmem:[#allocation7 + $0x98] sm:$0xff] %v6404_v47 }
 0x82d   : > { %v13970_v52 = vpop.permute.xlu1 %6357 }
 0x830   : > { %6361 = vrot.lane.b32.xlu2 %v13853_v40, %s9354_s22  ;;  %v13949_v25 = vpop.permute.xlu2 %6311 }
 0x831   : > { %6519 = vrot.lane.b32.xlu0 %v6196_v2, %s9355_s23  ;;  %6469 = vrot.lane.b32.xlu1 %v13881_v61, %s9358_s26  ;;  %v13955_v35 = vpop.permute.xlu0 %6259 }
 0x835   : > { %v13976_v4 = vpop.permute.xlu1 %6309 }
 0x838   : > { %6315 = vrot.lane.b32.xlu2 %v13900_v15, %s9356_s24  ;;  %v13957_v57 = vpop.permute.xlu2 %6263 }
 0x839   : > { %6223 = vrot.lane.b32.xlu0 %v6196_v2, %s9361_s13  ;;  %6367 = vrot.lane.b32.xlu1 %v6196_v2, %s9354_s22  ;;  %v13966_v9 = vpop.permute.xlu0 %6555 }
 0x83d   : > { %v14016_v1 = vpop.permute.xlu1 %6261 }
 0x840   : > { %6217 = vrot.lane.b32.xlu2 %v13853_v40, %s9361_s13  ;;  %v13968_v8 = vpop.permute.xlu2 %6559 }
 0x841   : > { %6561 = vrot.lane.b32.xlu0 %v13853_v40, %s9357_s25  ;;  %6319 = vrot.lane.b32.xlu1 %v6196_v2, %s9356_s24  ;;  %v13974_v5 = vpop.permute.xlu0 %6213 }
 0x842   : > { %v6229_v43 = vsel %vm582_vm8, %v6210_v51, %v13974_v5 }
 0x843   : > { %v6242_v59 = vmul.f32 %v6234_v37, %v6229_v43  ;;  %v8590_v37 = vld [vmem:[%s14471_s2 + $0x280] sm:$0xff] }
 0x845   : > { %v14040_v43 = vpop.permute.xlu1 %6557 }
 0x848   : > { %6567 = vrot.lane.b32.xlu2 %v6196_v2, %s9357_s25 }
 0x849   : > { %6363 = vrot.lane.b32.xlu0 %v13900_v15, %s9354_s22  ;;  %6271 = vrot.lane.b32.xlu1 %v6196_v2, %s9359_s29 }
 0x851   : > { %6265 = vrot.lane.b32.xlu0 %v13853_v40, %s9359_s29  ;;  %6563 = vrot.lane.b32.xlu1 %v13900_v15, %s9357_s25 }
 0x859   : > { %6219 = vrot.lane.b32.xlu0 %v13900_v15, %s9361_s13  ;;  %6423 = vrot.lane.b32.xlu1 %v6196_v2, %s9360_s18 }
 0x861   : > { %6313 = vrot.lane.b32.xlu1 %v13853_v40, %s9356_s24  ;;  %v6525_v40 = vsel %vm1185_vm1, %v13807_v33, %v6510_v21 }
 0x862   : > { %v6518_v17 = vpop.permute.xlu2 %6517 }
 0x863   : > { %v6527_v29 = vsel %vm1185_vm1, %v6518_v17, %v13807_v33  ;;  %v6537_v33 = vmul.f32 %v8606_v46, %v6525_v40  ;;  %v8591_v46 = vld [vmem:[%s14471_s2 + $0x288] sm:$0xff] }
 0x864   : > { %v6540_v10 = vmul.f32 %v8609_v54, %v6527_v29 }
 0x869   : > { %6267 = vrot.lane.b32.xlu1 %v13900_v15, %s9359_s29 }
 0x86a   : > { %v14007_v24 = vpop.permute.xlu2 %6221 }
 0x86b   : > { %v6514_v28 = vpop.permute.xlu0 %6513  ;;  %v6231_v15 = vsel %vm582_vm8, %v14007_v24, %v6210_v51  ;;  %v6489_v51 = vmul.f32 %v8598_v44, %v6477_v41  ;;  %v8584_v44 = vld [vmem:[%s14471_s2 + $0x190] sm:$0xff]  ;;  %v8585_v41 = vld [vmem:[%s14471_s2 + $0x198] sm:$0xff] }
 0x86c   : > { %v6521_v62 = vsel %vm1185_vm1, %v6514_v28, %v6518_v17  ;;  %v6523_v20 = vsel %vm1185_vm1, %v6510_v21, %v6514_v28  ;;  %v6241_v31 = vmul.f32 %v6233_v12, %v6231_v15 }
 0x86d   : > { %v6538_v36 = vmul.f32 %v8607_v7, %v6523_v20  ;;  %v6539_v39 = vmul.f32 %v8608_v50, %v6521_v62  ;;  %v8583_v7 = vld [vmem:[%s14471_s2 + $0x188] sm:$0xff]  ;;  %v6373_v50 = vsel %vm875_vm0, %v13840_v55, %v13970_v52 }
 0x86e   : > { %v6249_v19 = vpack.c.bf16 %v6242_v59, %v6241_v31  ;;  %v8582_v59 = vld [vmem:[%s14471_s2 + $0x180] sm:$0xff]  ;;  %v6386_v15 = vmul.f32 %v8583_v7, %v6373_v50  ;;  %v8575_v31 = vld [vmem:[%s14471_s2 + $0x108] sm:$0xff] }
 0x86f   : > { %v6545_v49 = vpack.c.bf16 %v6538_v36, %v6537_v33  ;;  %v6546_v23 = vpack.c.bf16 %v6540_v10, %v6539_v39  ;;  %v14060_v33 = vpop.permute.xlu1 %6215  ;;  %v6325_v36 = vsel %vm777_vm2, %v13856_v60, %v13976_v4  ;;  %v8574_v39 = vld [vmem:[%s14471_s2 + $0x100] sm:$0xff] }
 0x870   : > { %6253 = vst [vmem:[#allocation7] sm:$0xff] %v6249_v19  ;;  %v6526_v19 = vsel %vm1185_vm1, %v13907_v22, %v13909_v56 }
 0x871   : > { %6549 = vst [vmem:[#allocation7 + $0xe0] sm:$0xff] %v6545_v49  ;;  %6565 = vrot.lane.b32.xlu1 %v13881_v61, %s9357_s25  ;;  %v6429_v61 = vsel %vm989_vm7, %v13827_v14, %v6414_v27 }
 0x872   : > { %6550 = vst [vmem:[#allocation7 + $0xe8] sm:$0xff] %v6546_v23  ;;  %v6441_v54 = vmul.f32 %v8590_v37, %v6429_v61  ;;  %v8611_v23 = vld [vmem:[%s14471_s2 + $0x3a8] sm:$0xff] }
 0x873   : > { %v14029_v2 = vpop.permute.xlu0 %6465 }
 0x874   : > { %v6475_v47 = vsel %vm1087_vm4, %v6462_v58, %v14029_v2 }
 0x875   : > { %v6490_v21 = vmul.f32 %v8599_v30, %v6475_v47 }
 0x877   : > { %v6497_v17 = vpack.c.bf16 %v6490_v21, %v6489_v51  ;;  %v6338_v51 = vmul.f32 %v8575_v31, %v6325_v36  ;;  %v8603_v31 = vld [vmem:[%s14471_s2 + $0x328] sm:$0xff]  ;;  %v8604_v36 = vld [vmem:[%s14471_s2 + $0x330] sm:$0xff] }
 0x879   : > { %6501 = vst [vmem:[#allocation7 + $0xc0] sm:$0xff] %v6497_v17 }
 0x87b   : > { %v14045_v40 = vpop.permute.xlu0 %6417 }
 0x87c   : > { %v6427_v58 = vsel %vm989_vm7, %v6414_v27, %v14045_v40 }
 0x87d   : > { %v6442_v29 = vmul.f32 %v8591_v46, %v6427_v58 }
 0x87f   : > { %v6449_v12 = vpack.c.bf16 %v6442_v29, %v6441_v54 }
 0x881   : > { %6453 = vst [vmem:[#allocation7 + $0xa0] sm:$0xff] %v6449_v12 }
 0x882   : > { %v6472_v62 = vpop.permute.xlu2 %6471 }
 0x883   : > { %v6366_v28 = vpop.permute.xlu0 %6365 }
 0x884   : > { %v6375_v27 = vsel %vm875_vm0, %v6366_v28, %v13840_v55  ;;  %v8610_v55 = vld [vmem:[%s14471_s2 + $0x3a0] sm:$0xff] }
 0x885   : > { %v6385_v20 = vmul.f32 %v8582_v59, %v6375_v27  ;;  %v6541_v61 = vmul.f32 %v8610_v55, %v6526_v19  ;;  %v8602_v59 = vld [vmem:[%s14471_s2 + $0x320] sm:$0xff]  ;;  %v6478_v27 = vsel %vm1087_vm4, %v13915_v18, %v13917_v16 }
 0x887   : > { %v6393_v10 = vpack.c.bf16 %v6386_v15, %v6385_v20  ;;  %v8605_v15 = vld [vmem:[%s14471_s2 + $0x338] sm:$0xff]  ;;  %v6480_v20 = vsel %vm1087_vm4, %v6472_v62, %v13915_v18 }
 0x889   : > { %6397 = vst [vmem:[#allocation7 + $0x60] sm:$0xff] %v6393_v10 }
 0x88a   : > { %v6362_v21 = vpop.permute.xlu2 %6361 }
 0x88b   : > { %v14082_v49 = vpop.permute.xlu0 %6317  ;;  %v14097_v47 = vpop.permute.xlu1 %6515  ;;  %v6369_v46 = vsel %vm875_vm0, %v6362_v21, %v6366_v28  ;;  %v6371_v58 = vsel %vm875_vm0, %v13970_v52, %v6362_v21  ;;  %v6277_v52 = vsel %vm679_vm5, %v13876_v45, %v14016_v1  ;;  %v8566_v28 = vld [vmem:[%s14471_s2 + $0x80] sm:$0xff] }
 0x88c   : > { %v6327_v30 = vsel %vm777_vm2, %v14082_v49, %v13856_v60  ;;  %v6524_v37 = vsel %vm1185_vm1, %v13909_v56, %v14097_v47  ;;  %v6387_v60 = vmul.f32 %v8584_v44, %v6371_v58  ;;  %v6388_v29 = vmul.f32 %v8585_v41, %v6369_v46  ;;  %v8567_v56 = vld [vmem:[%s14471_s2 + $0x88] sm:$0xff]  ;;  %v9051_v58 = vld [vmem:[#allocation7 + $0xe4] sm:$0xf] }
 0x88d   : > { %v6337_v17 = vmul.f32 %v8574_v39, %v6327_v30  ;;  %v6542_v54 = vmul.f32 %v8611_v23, %v6524_v37  ;;  %v6290_v19 = vmul.f32 %v8567_v56, %v6277_v52  ;;  %v6493_v30 = vmul.f32 %v8602_v59, %v6478_v27  ;;  %v8595_v56 = vld [vmem:[%s14471_s2 + $0x2a8] sm:$0xff]  ;;  %v6235_v52 = vld [vmem:[%s14471_s2 + $0x10] sm:$0xff] }
 0x88e   : > { %v6394_v50 = vpack.c.bf16 %v6388_v29, %v6387_v60 }
 0x88f   : > { %v6345_v12 = vpack.c.bf16 %v6338_v51, %v6337_v17  ;;  %v6547_v7 = vpack.c.bf16 %v6542_v54, %v6541_v61  ;;  %v6496_v51 = vmul.f32 %v8605_v15, %v6480_v20 }
 0x890   : > { %6398 = vst [vmem:[#allocation7 + $0x68] sm:$0xff] %v6394_v50  ;;  %v6430_v50 = vsel %vm989_vm7, %v13928_v53, %v13930_v11 }
 0x891   : > { %6349 = vst [vmem:[#allocation7 + $0x40] sm:$0xff] %v6345_v12 }
 0x892   : > { %6551 = vst [vmem:[#allocation7 + $0xf0] sm:$0xff] %v6547_v7  ;;  %v14143_v23 = vpop.permute.xlu2 %6315  ;;  %v8594_v7 = vld [vmem:[%s14471_s2 + $0x2a0] sm:$0xff] }
 0x893   : > { %v14131_v10 = vpop.permute.xlu0 %6269  ;;  %v6468_v55 = vpop.permute.xlu1 %6467 }
 0x894   : > { %v6279_v39 = vsel %vm679_vm5, %v14131_v10, %v13876_v45  ;;  %v6474_v44 = vsel %vm1087_vm4, %v6468_v55, %v6472_v62  ;;  %v6476_v41 = vsel %vm1087_vm4, %v13917_v16, %v6468_v55  ;;  %v8744_v45 = vld [vmem:[#allocation7 + $0xe0] sm:$0xf]  ;;  %v8592_v62 = vld [vmem:[%s14471_s2 + $0x290] sm:$0xff]  ;;  %v8593_v16 = vld [vmem:[%s14471_s2 + $0x298] sm:$0xff] }
 0x895   : > { %v6289_v18 = vmul.f32 %v8566_v28, %v6279_v39  ;;  %v6494_v21 = vmul.f32 %v8603_v31, %v6476_v41  ;;  %v6495_v17 = vmul.f32 %v8604_v36, %v6474_v44  ;;  %v6236_v28 = vld [vmem:[%s14471_s2 + $0x18] sm:$0xff] }
 0x897   : > { %v6297_v37 = vpack.c.bf16 %v6290_v19, %v6289_v18  ;;  %v6499_v61 = vpack.c.bf16 %v6494_v21, %v6493_v30  ;;  %v6500_v46 = vpack.c.bf16 %v6496_v51, %v6495_v17  ;;  %v6445_v19 = vmul.f32 %v8594_v7, %v6430_v50  ;;  %v8728_v21 = vld [vmem:[#allocation7 + $0xc0] sm:$0xf]  ;;  %v9047_v17 = vld [vmem:[#allocation7 + $0xc4] sm:$0xf] }
 0x899   : > { %6301 = vst [vmem:[#allocation7 + $0x20] sm:$0xff] %v6297_v37  ;;  %v9053_v54 = vld [vmem:[#allocation7 + $0xec] sm:$0xf0]  ;;  %v8746_v60 = vld [vmem:[#allocation7 + $0xf0] sm:$0xf0] }
 0x89a   : > { %6503 = vst [vmem:[#allocation7 + $0xd0] sm:$0xff] %v6499_v61  ;;  %v8745_v29 = vor.u32 %v9053_v54, %v8744_v45  ;;  %v8749_v12 = vor.u32 %v9051_v58, %v8746_v60  ;;  %v6218_v31 = vpop.permute.xlu2 %6217  ;;  %v8600_v54 = vld [vmem:[%s14471_s2 + $0x310] sm:$0xff]  ;;  %v8601_v60 = vld [vmem:[%s14471_s2 + $0x318] sm:$0xff] }
 0x89b   : > { %6504 = vst [vmem:[#allocation7 + $0xd8] sm:$0xff] %v6500_v46  ;;  %v6422_v59 = vpop.permute.xlu0 %6421  ;;  %v14178_v20 = vpop.permute.xlu1 %6419 }
 0x89c   : > { %v6425_v27 = vsel %vm989_vm7, %v14045_v40, %v6422_v59  ;;  %v6431_v15 = vsel %vm989_vm7, %v6422_v59, %v13827_v14  ;;  %6831 = vmatpush.bf16.msra.mxu1 %v8745_v29  ;;  %6859 = vmatpush.bf16.msrb.mxu2 %v8749_v12  ;;  %v6428_v55 = vsel %vm989_vm7, %v13930_v11, %v14178_v20 }
 0x89d   : > { %v6443_v36 = vmul.f32 %v8592_v62, %v6425_v27  ;;  %v6444_v39 = vmul.f32 %v8593_v16, %v6431_v15  ;;  %v6225_v40 = vsel %vm582_vm8, %v6218_v31, %v14007_v24  ;;  %v6227_v14 = vsel %vm582_vm8, %v13974_v5, %v6218_v31  ;;  %v8612_v24 = vld [vmem:[%s14471_s2 + $0x3b0] sm:$0xff]  ;;  %v8613_v5 = vld [vmem:[%s14471_s2 + $0x3b8] sm:$0xff]  ;;  %v8712_v27 = vld [vmem:[#allocation7 + $0xa0] sm:$0xf] }
 0x89e   : > { %v6446_v18 = vmul.f32 %v8595_v56, %v6428_v55  ;;  %v6243_v44 = vmul.f32 %v6235_v52, %v6227_v14  ;;  %v6244_v41 = vmul.f32 %v6236_v28, %v6225_v40  ;;  %v9043_v15 = vld [vmem:[#allocation7 + $0xa4] sm:$0xf]  ;;  %v8587_v40 = vld [vmem:[%s14471_s2 + $0x1a8] sm:$0xff]  ;;  %v6374_v14 = vsel %vm875_vm0, %v13938_v42, %v13940_v48 }
 0x89f   : > { %v6450_v30 = vpack.c.bf16 %v6444_v39, %v6443_v36  ;;  %v6238_v36 = vld [vmem:[%s14471_s2 + $0x28] sm:$0xff] }
 0x8a0   : > { %v6451_v51 = vpack.c.bf16 %v6446_v18, %v6445_v19  ;;  %v6250_v37 = vpack.c.bf16 %v6244_v41, %v6243_v44  ;;  %v9041_v19 = vld [vmem:[#allocation7 + $0x8c] sm:$0xf0]  ;;  %v8586_v44 = vld [vmem:[%s14471_s2 + $0x1a0] sm:$0xff]  ;;  %v8698_v41 = vld [vmem:[#allocation7 + $0x90] sm:$0xf0] }
 0x8a1   : > { %6454 = vst [vmem:[#allocation7 + $0xa8] sm:$0xff] %v6450_v30  ;;  %v9049_v61 = vld [vmem:[#allocation7 + $0xcc] sm:$0xf0]  ;;  %v8730_v11 = vld [vmem:[#allocation7 + $0xd0] sm:$0xf0] }
 0x8a2   : > { %6455 = vst [vmem:[#allocation7 + $0xb0] sm:$0xff] %v6451_v51  ;;  %v8729_v46 = vor.u32 %v9049_v61, %v8728_v21  ;;  %v8733_v45 = vor.u32 %v9047_v17, %v8730_v11  ;;  %v8696_v61 = vld [vmem:[#allocation7 + $0x80] sm:$0xf]  ;;  %v9039_v11 = vld [vmem:[#allocation7 + $0x84] sm:$0xf] }
 0x8a3   : > { %6254 = vst [vmem:[#allocation7 + $0x8] sm:$0xff] %v6250_v37  ;;  %v6520_v58 = vpop.permute.xlu0 %6519  ;;  %v6470_v29 = vpop.permute.xlu1 %6469 }
 0x8a4   : > { %v6522_v62 = vsel %vm1185_vm1, %v14097_v47, %v6520_v58  ;;  %v6528_v16 = vsel %vm1185_vm1, %v6520_v58, %v13907_v22  ;;  %6832 = vmatpush.bf16.msra.mxu1 %v8729_v46  ;;  %6860 = vmatpush.bf16.msrb.mxu2 %v8733_v45  ;;  %v6473_v50 = vsel %vm1087_vm4, %v14029_v2, %v6470_v29 }
 0x8a5   : > { %v6543_v12 = vmul.f32 %v8612_v24, %v6522_v62  ;;  %v6544_v7 = vmul.f32 %v8613_v5, %v6528_v16  ;;  %v6479_v59 = vsel %vm1087_vm4, %v6470_v29, %v13816_v63  ;;  %v6491_v56 = vmul.f32 %v8600_v54, %v6473_v50  ;;  %v6237_v63 = vld [vmem:[%s14471_s2 + $0x20] sm:$0xff]  ;;  %v8579_v29 = vld [vmem:[%s14471_s2 + $0x128] sm:$0xff] }
 0x8a6   : > { %v6492_v52 = vmul.f32 %v8601_v60, %v6479_v59  ;;  %v6230_v2 = vsel %vm582_vm8, %v13898_v3, %v14060_v33  ;;  %v6390_v24 = vmul.f32 %v8587_v40, %v6374_v14  ;;  %v8697_v46 = vor.u32 %v9041_v19, %v8696_v61  ;;  %v8614_v62 = vld [vmem:[%s14471_s2 + $0x400] sm:$0xff]  ;;  %v8580_v59 = vld [vmem:[%s14471_s2 + $0x130] sm:$0xff] }
 0x8a7   : > { %v6548_v47 = vpack.c.bf16 %v6544_v7, %v6543_v12  ;;  %v6246_v21 = vmul.f32 %v6238_v36, %v6230_v2  ;;  %v8701_v45 = vor.u32 %v9039_v11, %v8698_v41  ;;  %v8615_v12 = vld [vmem:[%s14471_s2 + $0x408] sm:$0xff]  ;;  %v6326_v50 = vsel %vm777_vm2, %v13947_v26, %v13949_v25  ;;  %v8680_v41 = vld [vmem:[#allocation7 + $0x60] sm:$0xf] }
 0x8a8   : > { %v6498_v28 = vpack.c.bf16 %v6492_v52, %v6491_v56  ;;  %v6324_v56 = vsel %vm777_vm2, %v13949_v25, %v14143_v23  ;;  %v8571_v11 = vld [vmem:[%s14471_s2 + $0xa8] sm:$0xff] }
 0x8a9   : > { %6552 = vst [vmem:[#allocation7 + $0xf8] sm:$0xff] %v6548_v47  ;;  %v9045_v22 = vld [vmem:[#allocation7 + $0xac] sm:$0xf0]  ;;  %v8714_v31 = vld [vmem:[#allocation7 + $0xb0] sm:$0xf0]  ;;  %v8578_v47 = vld [vmem:[%s14471_s2 + $0x120] sm:$0xff] }
 0x8aa   : > { %6502 = vst [vmem:[#allocation7 + $0xc8] sm:$0xff] %v6498_v28  ;;  %v8713_v39 = vor.u32 %v9045_v22, %v8712_v27  ;;  %v8717_v55 = vor.u32 %v9043_v15, %v8714_v31  ;;  %v8581_v28 = vld [vmem:[%s14471_s2 + $0x138] sm:$0xff]  ;;  %v8640_v6 = vld [vmem:[#allocation7 + $0x8] sm:$0xf] }
 0x8ab   : > { %v14231_v18 = vpop.permute.xlu0 %6223  ;;  %v14240_v51 = vpop.permute.xlu1 %6367  ;;  %v9050_v31 = vld [vmem:[#allocation7 + $0xd4] sm:$0xf0] }
 0x8ac   : > { %v6232_v30 = vsel %vm582_vm8, %v14231_v18, %v13898_v3  ;;  %6833 = vmatpush.bf16.msra.mxu1 %v8713_v39  ;;  %6861 = vmatpush.bf16.msrb.mxu2 %v8717_v55  ;;  %v6376_v37 = vsel %vm875_vm0, %v14240_v51, %v13938_v42  ;;  %v8752_v3 = vld [vmem:[#allocation7 + $0xe8] sm:$0xf]  ;;  %v6573_v42 = vsel %vm1283_vm3, %v13891_v38, %v14040_v43 }
 0x8ad   : > { %v6245_v17 = vmul.f32 %v6237_v63, %v6232_v30  ;;  %v6389_v5 = vmul.f32 %v8586_v44, %v6376_v37  ;;  %v6585_v27 = vmul.f32 %v8614_v62, %v6573_v42  ;;  %v6342_v39 = vmul.f32 %v8579_v29, %v6326_v50  ;;  %v9035_v30 = vld [vmem:[#allocation7 + $0x64] sm:$0xf] }
 0x8ae   : > { %v6343_v55 = vmul.f32 %v8580_v59, %v6324_v56  ;;  %v9031_v50 = vld [vmem:[#allocation7 + $0x44] sm:$0xf] }
 0x8af   : > { %v6251_v58 = vpack.c.bf16 %v6246_v21, %v6245_v17  ;;  %v6395_v54 = vpack.c.bf16 %v6390_v24, %v6389_v5  ;;  %v6278_v24 = vsel %vm679_vm5, %v13955_v35, %v13957_v57  ;;  %v8618_v56 = vld [vmem:[%s14471_s2 + $0x420] sm:$0xff] }
 0x8b0   : > { %6834 = vmatpush.bf16.msra.mxu1 %v8697_v46  ;;  %6862 = vmatpush.bf16.msrb.mxu2 %v8701_v45  ;;  %v9054_v60 = vld [vmem:[#allocation7 + $0xf4] sm:$0xf0]  ;;  %v8570_v46 = vld [vmem:[%s14471_s2 + $0xa0] sm:$0xff]  ;;  %v6294_v42 = vmul.f32 %v8571_v11, %v6278_v24  ;;  %v8596_v11 = vld [vmem:[%s14471_s2 + $0x2b0] sm:$0xff] }
 0x8b1   : > { %6255 = vst [vmem:[#allocation7 + $0x10] sm:$0xff] %v6251_v58  ;;  %v8753_v16 = vor.u32 %v9054_v60, %v8752_v3  ;;  %v8736_v7 = vld [vmem:[#allocation7 + $0xc8] sm:$0xf] }
 0x8b2   : > { %6399 = vst [vmem:[#allocation7 + $0x70] sm:$0xff] %v6395_v54  ;;  %v8737_v63 = vor.u32 %v9050_v31, %v8736_v7  ;;  %v8664_v7 = vld [vmem:[#allocation7 + $0x40] sm:$0xf] }
 0x8b3   : > { %v14270_v52 = vpop.permute.xlu0 %6561  ;;  %6887 = vmatpush.bf16.msra.mxu0 %v8753_v16  ;;  %v6320_v22 = vpop.permute.xlu1 %6319 }
 0x8b4   : > { %v6571_v15 = vsel %vm1283_vm3, %v14040_v43, %v14270_v52  ;;  %v6322_v36 = vsel %vm777_vm2, %v14143_v23, %v6320_v22  ;;  %v6328_v2 = vsel %vm777_vm2, %v6320_v22, %v13947_v26  ;;  %v8588_v23 = vld [vmem:[%s14471_s2 + $0x1b0] sm:$0xff]  ;;  %v8589_v26 = vld [vmem:[%s14471_s2 + $0x1b8] sm:$0xff] }
 0x8b5   : > { %v6586_v25 = vmul.f32 %v8615_v12, %v6571_v15  ;;  %v6341_v19 = vmul.f32 %v8578_v47, %v6328_v2  ;;  %v6344_v40 = vmul.f32 %v8581_v28, %v6322_v36  ;;  %v6568_v12 = vpop.permute.xlu2 %6567  ;;  %v8568_v47 = vld [vmem:[%s14471_s2 + $0x90] sm:$0xff]  ;;  %v6574_v15 = vsel %vm1283_vm3, %v13966_v9, %v13968_v8  ;;  %v8621_v22 = vld [vmem:[%s14471_s2 + $0x438] sm:$0xff]  ;;  %v8619_v36 = vld [vmem:[%s14471_s2 + $0x428] sm:$0xff] }
 0x8b6   : > { %v6576_v31 = vsel %vm1283_vm3, %v6568_v12, %v13966_v9  ;;  %v8620_v2 = vld [vmem:[%s14471_s2 + $0x430] sm:$0xff] }
 0x8b7   : > { %v6593_v14 = vpack.c.bf16 %v6586_v25, %v6585_v27  ;;  %6888 = vmatpush.bf16.msra.mxu0 %v8737_v63  ;;  %v6347_v44 = vpack.c.bf16 %v6342_v39, %v6341_v19  ;;  %v6348_v43 = vpack.c.bf16 %v6344_v40, %v6343_v55 }
 0x8b9   : > { %6597 = vst [vmem:[#allocation7 + $0x100] sm:$0xff] %v6593_v14  ;;  %v9037_v21 = vld [vmem:[#allocation7 + $0x6c] sm:$0xf0]  ;;  %v8682_v17 = vld [vmem:[#allocation7 + $0x70] sm:$0xf0] }
 0x8ba   : > { %6351 = vst [vmem:[#allocation7 + $0x50] sm:$0xff] %v6347_v44  ;;  %v8681_v37 = vor.u32 %v9037_v21, %v8680_v41  ;;  %v8685_v61 = vor.u32 %v9035_v30, %v8682_v17  ;;  %v6589_v44 = vmul.f32 %v8618_v56, %v6574_v15 }
 0x8bb   : > { %6352 = vst [vmem:[#allocation7 + $0x58] sm:$0xff] %v6348_v43  ;;  %v6364_v5 = vpop.permute.xlu0 %6363  ;;  %v14310_v54 = vpop.permute.xlu1 %6271  ;;  %v6592_v43 = vmul.f32 %v8621_v22, %v6576_v31  ;;  %v9048_v31 = vld [vmem:[#allocation7 + $0xcc] sm:$0xf] }
 0x8bc   : > { %v6370_v45 = vsel %vm875_vm0, %v6364_v5, %v14240_v51  ;;  %v6372_v58 = vsel %vm875_vm0, %v13940_v48, %v6364_v5  ;;  %6835 = vmatpush.bf16.msra.mxu1 %v8681_v37  ;;  %6863 = vmatpush.bf16.msrb.mxu2 %v8685_v61  ;;  %v6280_v62 = vsel %vm679_vm5, %v14310_v54, %v13955_v35  ;;  %v8569_v35 = vld [vmem:[%s14471_s2 + $0x98] sm:$0xff]  ;;  %v6239_v61 = vld [vmem:[%s14471_s2 + $0x30] sm:$0xff]  ;;  %vm14686_vm0 = vcmask 130048  }
 0x8bd   : > { %v6391_v3 = vmul.f32 %v8588_v23, %v6372_v58  ;;  %v6392_v60 = vmul.f32 %v8589_v26, %v6370_v45  ;;  %v6293_v16 = vmul.f32 %v8570_v46, %v6280_v62  ;;  %v9027_v23 = vld [vmem:[#allocation7 + $0x24] sm:$0xf]  ;;  %v8597_v45 = vld [vmem:[%s14471_s2 + $0x2b8] sm:$0xff]  ;;  %v9025_v58 = vld [vmem:[#allocation7 + $0xc] sm:$0xf0] }
 0x8be   : > { %vm14687_vm1 = vmmov %vm14686_vm0 }
 0x8bf   : > { %v6396_v29 = vpack.c.bf16 %v6392_v60, %v6391_v3  ;;  %v6299_v51 = vpack.c.bf16 %v6294_v42, %v6293_v16  ;;  %v8634_v3 = vld [vmem:[#allocation7 + $0x10] sm:$0xf0]  ;;  %v8754_v16 = vld [vmem:[#allocation7 + $0xf8] sm:$0xf0] }
 0x8c1   : > { %6400 = vst [vmem:[#allocation7 + $0x78] sm:$0xff] %v6396_v29  ;;  %v9033_v48 = vld [vmem:[#allocation7 + $0x4c] sm:$0xf0]  ;;  %v8666_v59 = vld [vmem:[#allocation7 + $0x50] sm:$0xf0] }
 0x8c2   : > { %6303 = vst [vmem:[#allocation7 + $0x30] sm:$0xff] %v6299_v51  ;;  %v8665_v28 = vor.u32 %v9033_v48, %v8664_v7  ;;  %v8669_v27 = vor.u32 %v9031_v50, %v8666_v59  ;;  %v8624_v29 = vld [vmem:[%s14475_s6] sm:$0xf]  ;;  %v9023_v48 = vld [vmem:[#allocation7 + $0x4] sm:$0xf] }
 0x8c3   : > { %v6266_v25 = vpop.permute.xlu0 %6265  ;;  %v6564_v55 = vpop.permute.xlu1 %6563  ;;  %v8632_v50 = vld [vmem:[#allocation7] sm:$0xf] }
 0x8c4   : > { %v6273_v63 = vsel %vm679_vm5, %v6266_v25, %v14131_v10  ;;  %v6275_v39 = vsel %vm679_vm5, %v14016_v1, %v6266_v25  ;;  %6836 = vmatpush.bf16.msra.mxu1 %v8665_v28  ;;  %6864 = vmatpush.bf16.msrb.mxu2 %v8669_v27  ;;  %v6570_v40 = vsel %vm1283_vm3, %v6564_v55, %v6568_v12  ;;  %v8648_v1 = vld [vmem:[#allocation7 + $0x20] sm:$0xf]  ;;  %v9022_v12 = vld [vmem:[%s14475_s6 + $0x4] sm:$0xf0]  ;;  %v9052_v28 = vld [vmem:[#allocation7 + $0xec] sm:$0xf] }
 0x8c5   : > { %v6291_v9 = vmul.f32 %v8568_v47, %v6275_v39  ;;  %v6292_v19 = vmul.f32 %v8569_v35, %v6273_v63  ;;  %v6572_v14 = vsel %vm1283_vm3, %v13968_v8, %v6564_v55  ;;  %v6591_v10 = vmul.f32 %v8620_v2, %v6570_v40  ;;  %v6240_v8 = vld [vmem:[%s14471_s2 + $0x38] sm:$0xff]  ;;  %v8626_v2 = vld [vmem:[%s14475_s6 + $0x8] sm:$0xf0]  ;;  %v8576_v40 = vld [vmem:[%s14471_s2 + $0x110] sm:$0xff] }
 0x8c6   : > { %v6590_v41 = vmul.f32 %v8619_v36, %v6572_v14  ;;  %v8633_v47 = vor.u32 %v9025_v58, %v8632_v50  ;;  %v8637_v35 = vor.u32 %v9023_v48, %v8634_v3  ;;  %v8757_v15 = vor.u32 %v9052_v28, %v8754_v16  ;;  %v9055_v36 = vld [vmem:[#allocation7 + $0x104] sm:$0xf]  ;;  %v8577_v14 = vld [vmem:[%s14471_s2 + $0x118] sm:$0xff]  ;;  %v8704_v3 = vld [vmem:[#allocation7 + $0x88] sm:$0xf] }
 0x8c7   : > { %v6298_v30 = vpack.c.bf16 %v6292_v19, %v6291_v9  ;;  %v6596_v17 = vpack.c.bf16 %v6592_v43, %v6591_v10  ;;  %v14382_v22 = vor.u32 %v9022_v12, %v8624_v29  ;;  %v8738_v19 = vld [vmem:[#allocation7 + $0xd8] sm:$0xf0] }
 0x8c8   : > { %v6595_v21 = vpack.c.bf16 %v6590_v41, %v6589_v44  ;;  %v8741_v44 = vor.u32 %v9048_v31, %v8738_v19  ;;  %v9038_v12 = vld [vmem:[#allocation7 + $0x74] sm:$0xf0] }
 0x8c9   : > { %6302 = vst [vmem:[#allocation7 + $0x28] sm:$0xff] %v6298_v30  ;;  %v9029_v26 = vld [vmem:[#allocation7 + $0x2c] sm:$0xf0]  ;;  %v8650_v37 = vld [vmem:[#allocation7 + $0x30] sm:$0xf0]  ;;  %v8617_v48 = vld [vmem:[%s14471_s2 + $0x418] sm:$0xff] }
 0x8ca   : > { %6599 = vst [vmem:[#allocation7 + $0x110] sm:$0xff] %v6595_v21  ;;  %v8649_v24 = vor.u32 %v9029_v26, %v8648_v1  ;;  %v8653_v5 = vor.u32 %v9027_v23, %v8650_v37  ;;  %v8720_v23 = vld [vmem:[#allocation7 + $0xa8] sm:$0xf]  ;;  %v9044_v37 = vld [vmem:[#allocation7 + $0xac] sm:$0xf] }
 0x8cb   : > { %6600 = vst [vmem:[#allocation7 + $0x118] sm:$0xff] %v6596_v17  ;;  %v6220_v46 = vpop.permute.xlu0 %6219  ;;  %v6424_v42 = vpop.permute.xlu1 %6423 }
 0x8cc   : > { %v6226_v60 = vsel %vm582_vm8, %v6220_v46, %v14231_v18  ;;  %v6228_v62 = vsel %vm582_vm8, %v14060_v33, %v6220_v46  ;;  %6837 = vmatpush.bf16.msra.mxu1 %v8649_v24  ;;  %6865 = vmatpush.bf16.msrb.mxu2 %v8653_v5  ;;  %v6426_v18 = vsel %vm989_vm7, %v14178_v20, %v6424_v42  ;;  %v9021_v20 = vld [vmem:[%s14475_s6 + $0x4] sm:$0xf]  ;;  %v9042_v24 = vld [vmem:[#allocation7 + $0x94] sm:$0xf0]  ;;  %v8706_v5 = vld [vmem:[#allocation7 + $0x98] sm:$0xf0] }
 0x8cd   : > { %v6247_v51 = vmul.f32 %v6239_v61, %v6228_v62  ;;  %v6248_v7 = vmul.f32 %v6240_v8, %v6226_v60  ;;  %v6432_v33 = vsel %vm989_vm7, %v6424_v42, %v13928_v53  ;;  %v6447_v59 = vmul.f32 %v8596_v11, %v6426_v18  ;;  %v8760_v53 = vld [vmem:[#allocation7 + $0x100] sm:$0xf]  ;;  %v9040_v60 = vld [vmem:[#allocation7 + $0x8c] sm:$0xf]  ;;  %v8688_v18 = vld [vmem:[#allocation7 + $0x68] sm:$0xf] }
 0x8ce   : > { %v6448_v56 = vmul.f32 %v8597_v45, %v6432_v33  ;;  %v14397_v43 = vor.u32 %v9021_v20, %v8626_v2  ;;  %v8705_v16 = vor.u32 %v9042_v24, %v8704_v3  ;;  %v8709_v29 = vor.u32 %v9040_v60, %v8706_v5  ;;  %v9036_v33 = vld [vmem:[#allocation7 + $0x6c] sm:$0xf] }
 0x8cf   : > { %v6252_v27 = vpack.c.bf16 %v6248_v7, %v6247_v51  ;;  %v8690_v51 = vld [vmem:[#allocation7 + $0x78] sm:$0xf0]  ;;  %v8689_v50 = vor.u32 %v9038_v12, %v8688_v18 }
 0x8d0   : > { %v6452_v25 = vpack.c.bf16 %v6448_v56, %v6447_v59  ;;  %6838 = vmatpush.bf16.msra.mxu1 %v8633_v47  ;;  %6866 = vmatpush.bf16.msrb.mxu2 %v8637_v35  ;;  %v8656_v2 = vld [vmem:[#allocation7 + $0x28] sm:$0xf] }
 0x8d1   : > { %6256 = vst [vmem:[#allocation7 + $0x18] sm:$0xff] %v6252_v27  ;;  %v9057_v63 = vld [vmem:[#allocation7 + $0x10c] sm:$0xf0]  ;;  %v8762_v39 = vld [vmem:[#allocation7 + $0x110] sm:$0xf0] }
 0x8d2   : > { %6456 = vst [vmem:[#allocation7 + $0xb8] sm:$0xff] %v6452_v25  ;;  %v8761_v55 = vor.u32 %v9057_v63, %v8760_v53  ;;  %v8765_v9 = vor.u32 %v9055_v36, %v8762_v39  ;;  %v9034_v27 = vld [vmem:[#allocation7 + $0x54] sm:$0xf0]  ;;  %v9028_v39 = vld [vmem:[#allocation7 + $0x2c] sm:$0xf] }
 0x8d3   : > { %6839 = vmatmul.bf16.vlgmr.msra.gmra.mxu1 %v14382_v22  ;;  %6867 = vmatmul.bf16.vlgmr.msrb.gmra.mxu2 %v14382_v22  ;;  %v6314_v41 = vpop.permute.xlu1 %6313 }
 0x8d4   : > { %6915 = vmatpush.bf16.msra.mxu2 %v8757_v15  ;;  %6852 = vmatpush.bf16.msrb.mxu3 %v8761_v55  ;;  %v6321_v10 = vsel %vm777_vm2, %v6314_v41, %v14082_v49  ;;  %v6323_v30 = vsel %vm777_vm2, %v13976_v4, %v6314_v41  ;;  %v8572_v49 = vld [vmem:[%s14471_s2 + $0xb0] sm:$0xff]  ;;  %v8573_v4 = vld [vmem:[%s14471_s2 + $0xb8] sm:$0xff]  ;;  %vm14688_vm2 = vmmov %vm14686_vm0 }
 0x8d5   : > { %6880 = vmatpush.bf16.msrb.mxu1 %v8765_v9  ;;  %v6339_v21 = vmul.f32 %v8576_v40, %v6323_v30  ;;  %v6340_v17 = vmul.f32 %v8577_v14, %v6321_v10  ;;  %v8674_v15 = vld [vmem:[#allocation7 + $0x58] sm:$0xf0]  ;;  %v9058_v41 = vld [vmem:[#allocation7 + $0x114] sm:$0xf0] }
 0x8d7   : > { %8774 = vmatmul.msk.bf16.vlgmr.msrb.gmra.mxu3 %vm14686_vm0, %v14397_v43  ;;  %v6346_v1 = vpack.c.bf16 %v6340_v17, %v6339_v21  ;;  %v8770_v21 = vld [vmem:[#allocation7 + $0x118] sm:$0xf0] }
 0x8d8   : > { %6916 = vmatpush.bf16.msra.mxu2 %v8741_v44  ;;  %v9026_v19 = vld [vmem:[#allocation7 + $0x14] sm:$0xf0]  ;;  %v8642_v40 = vld [vmem:[#allocation7 + $0x18] sm:$0xf0] }
 0x8d9   : > { %v9046_v26 = vld [vmem:[#allocation7 + $0xb4] sm:$0xf0]  ;;  %v8722_v61 = vld [vmem:[#allocation7 + $0xb8] sm:$0xf0]  ;;  %6350 = vst [vmem:[#allocation7 + $0x48] sm:$0xff] %v6346_v1  ;;  %v8641_v14 = vor.u32 %v9026_v19, %v8640_v6 }
 0x8da   : > { %v8721_v8 = vor.u32 %v9046_v26, %v8720_v23  ;;  %v8725_v11 = vor.u32 %v9044_v37, %v8722_v61 }
 0x8db   : > { %v6268_v46 = vpop.permute.xlu1 %6267 }
 0x8dc   : > { %6889 = vmatpush.bf16.msra.mxu0 %v8721_v8  ;;  %6917 = vmatpush.bf16.msra.mxu2 %v8725_v11  ;;  %v6274_v45 = vsel %vm679_vm5, %v6268_v46, %v14310_v54  ;;  %v6276_v58 = vsel %vm679_vm5, %v13957_v57, %v6268_v46  ;;  %v8616_v54 = vld [vmem:[%s14471_s2 + $0x410] sm:$0xff]  ;;  %v8693_v57 = vor.u32 %v9036_v33, %v8690_v51 }
 0x8dd   : > { %v6295_v62 = vmul.f32 %v8572_v49, %v6276_v58  ;;  %v6296_v42 = vmul.f32 %v8573_v4, %v6274_v45 }
 0x8df   : > { %v6300_v7 = vpack.c.bf16 %v6296_v42, %v6295_v62 }
 0x8e0   : > { %6890 = vmatpush.bf16.msra.mxu0 %v8705_v16  ;;  %6918 = vmatpush.bf16.msra.mxu2 %v8709_v29  ;;  %v8672_v59 = vld [vmem:[#allocation7 + $0x48] sm:$0xf]  ;;  %v9032_v56 = vld [vmem:[#allocation7 + $0x4c] sm:$0xf] }
 0x8e1   : > { %6304 = vst [vmem:[#allocation7 + $0x38] sm:$0xff] %v6300_v7  ;;  %v8673_v25 = vor.u32 %v9034_v27, %v8672_v59  ;;  %v8677_v53 = vor.u32 %v9032_v56, %v8674_v15 }
 0x8e3   : > { %8775 = vmatmul.msk.bf16.vlgmr.msrb.gmra.mxu1 %vm14687_vm1, %v14397_v43  ;;  %v6566_v47 = vpop.permute.xlu1 %6565 }
 0x8e4   : > { %6891 = vmatpush.bf16.msra.mxu0 %v8689_v50  ;;  %6919 = vmatpush.bf16.msra.mxu2 %v8693_v57  ;;  %v6569_v35 = vsel %vm1283_vm3, %v14270_v52, %v6566_v47  ;;  %v6575_v28 = vsel %vm1283_vm3, %v6566_v47, %v13891_v38  ;;  %v9024_v38 = vld [vmem:[#allocation7 + $0xc] sm:$0xf]  ;;  %vm14689_vm3 = vmmov %vm14686_vm0 }
 0x8e5   : > { %v6587_v31 = vmul.f32 %v8616_v54, %v6569_v35  ;;  %v6588_v20 = vmul.f32 %v8617_v48, %v6575_v28  ;;  %v8645_v44 = vor.u32 %v9024_v38, %v8642_v40 }
 0x8e7   : > { %v6594_v36 = vpack.c.bf16 %v6588_v20, %v6587_v31 }
 0x8e8   : > { %6892 = vmatpush.bf16.msra.mxu0 %v8673_v25  ;;  %6920 = vmatpush.bf16.msra.mxu2 %v8677_v53  ;;  %v9030_v63 = vld [vmem:[#allocation7 + $0x34] sm:$0xf0]  ;;  %v8658_v55 = vld [vmem:[#allocation7 + $0x38] sm:$0xf0] }
 0x8e9   : > { %6598 = vst [vmem:[#allocation7 + $0x108] sm:$0xff] %v6594_v36  ;;  %v8657_v9 = vor.u32 %v9030_v63, %v8656_v2  ;;  %v8661_v52 = vor.u32 %v9028_v39, %v8658_v55 }
 0x8ec   : > { %6893 = vmatpush.bf16.msra.mxu0 %v8657_v9  ;;  %6921 = vmatpush.bf16.msra.mxu2 %v8661_v52 }
 0x8f0   : > { %6894 = vmatpush.bf16.msra.mxu0 %v8641_v14  ;;  %6922 = vmatpush.bf16.msra.mxu2 %v8645_v44  ;;  %v8768_v10 = vld [vmem:[#allocation7 + $0x108] sm:$0xf]  ;;  %v9056_v30 = vld [vmem:[#allocation7 + $0x10c] sm:$0xf]  ;;  %v14449_v14 = vld [vmem:[%s14476_s7] sm:$0xf] }
 0x8f1   : > { %v8769_v17 = vor.u32 %v9058_v41, %v8768_v10  ;;  %v8773_v1 = vor.u32 %v9056_v30, %v8770_v21 }
 0x8f3   : > { %6923 = vmatmul.bf16.vlgmr.msra.gmra.mxu2 %v14382_v22  ;;  %6895 = vmatmul.bf16.vlgmr.msra.gmra.mxu0 %v14382_v22 }
 0x8f4   : > { %6908 = vmatpush.bf16.msra.mxu3 %v8769_v17  ;;  %6936 = vmatpush.bf16.msra.mxu1 %v8773_v1 }
 0x8f7   : > { %8776 = vmatmul.msk.bf16.vlgmr.msra.gmra.mxu3 %vm14688_vm2, %v14397_v43  ;;  %8777 = vmatmul.msk.bf16.vlgmr.msra.gmra.mxu1 %vm14689_vm3, %v14397_v43 }
 0x950   : > { %v6840_v23 = vpop.f32.mrf.mxu1 }
 0x956   : > { %v6868_v24 = vpop.f32.mrf.mxu2 }
 0x958   : > { %v6842_v26 = vpop.f32.mrf.mxu1 }
 0x95a   : > { %v6854_v37 = vpop.f32.mrf.mxu3 }
 0x95b   : > { %v6855_v61 = vadd.f32 %v6854_v37, %v6840_v23 }
 0x95d   : > { %v6955_v8 = vadd.f32 %v13571_v0, %v6855_v61 }
 0x95e   : > { %v6870_v60 = vpop.f32.mrf.mxu2 }
 0x95f   : > { %v8778_v11 = vmul.f32 -1.442695, %v6955_v8 }
 0x960   : > { %v6882_v49 = vpop.f32.mrf.mxu1 }
 0x961   : > { %9261 = vpow2.f32 %v8778_v11  ;;  %v6883_v4 = vadd.f32 %v6882_v49, %v6868_v24 }
 0x962   : > { %v6856_v43 = vpop.f32.mrf.mxu3 }
 0x963   : > { %v6956_v22 = vadd.f32 %v13717_v32, %v6883_v4  ;;  %v6857_v0 = vadd.f32 %v6856_v43, %v6842_v26 }
 0x965   : > { %v8779_v5 = vmul.f32 -1.442695, %v6956_v22 }
 0x967   : > { %v9262_v46 = vpop.eup %9261  ;;  %9263 = vpow2.f32 %v8779_v5 }
 0x968   : > { %v6971_v45 = vadd.f32 1.0, %v9262_v46  ;;  %v6884_v62 = vpop.f32.mrf.mxu1 }
 0x969   : > { %v6885_v12 = vadd.f32 %v6884_v62, %v6870_v60 }
 0x96a   : > { %9265 = vrcp.f32 %v6971_v45  ;;  %v6986_v51 = vand.u32 2147483648, %v6971_v45  ;;  %v6984_v32 = vand.u32 2147483647, %v6971_v45  ;;  %vm6980_vm5 = vweird.f32 %v6971_v45 }
 0x96c   : > { %v6987_v59 = vor.u32 1.1754944e-38, %v6986_v51  ;;  %vm6985_vm8 = vcmp.eq.f32.partialorder %v6984_v32, 8.507059e+37 }
 0x96d   : > { %v9264_v58 = vpop.eup %9263 }
 0x96e   : > { %v6972_v3 = vadd.f32 1.0, %v9264_v58 }
 0x970   : > { %v9266_v42 = vpop.eup %9265  ;;  %9267 = vrcp.f32 %v6972_v3  ;;  %v6896_v27 = vpop.f32.mrf.mxu0  ;;  %v6999_v20 = vand.u32 2147483647, %v6972_v3  ;;  %v7001_v25 = vand.u32 2147483648, %v6972_v3  ;;  %vm6995_vm14 = vweird.f32 %v6972_v3 }
 0x971   : > { %v6976_v16 = vmul.f32 %v9266_v42, %v6971_v45  ;;  %9269 = vtanh.f32 %v6857_v0  ;;  %vm6981_vm4 = vweird.f32 %v9266_v42 }
 0x972   : > { %9271 = vtanh.f32 %v6885_v12  ;;  %vm6982_vm7 = vmor %vm6980_vm5, %vm6981_vm4  ;;  %v7002_v52 = vor.u32 1.1754944e-38, %v7001_v25  ;;  %vm7000_vm9 = vcmp.eq.f32.partialorder %v6999_v20, 8.507059e+37 }
 0x973   : > { %v6977_v29 = vsub.f32 1.0, %v6976_v16 }
 0x974   : > { %v6938_v50 = vpop.f32.mrf.mxu1 }
 0x975   : > { %v6978_v7 = vmul.f32 %v9266_v42, %v6977_v29 }
 0x976   : > { %v9268_v18 = vpop.eup %9267  ;;  %v6924_v33 = vpop.f32.mrf.mxu2 }
 0x977   : > { %v6991_v54 = vmul.f32 %v9268_v18, %v6972_v3  ;;  %v6939_v57 = vadd.f32 %v6938_v50, %v6924_v33  ;;  %v6979_v48 = vadd.f32 %v9266_v42, %v6978_v7  ;;  %v9270_v28 = vpop.eup %9269  ;;  %vm6996_vm10 = vweird.f32 %v9268_v18 }
 0x978   : > { %v9272_v9 = vpop.eup %9271  ;;  %vm6997_vm15 = vmor %vm6995_vm14, %vm6996_vm10  ;;  %v6898_v24 = vpop.f32.mrf.mxu0 }
 0x979   : > { %v6992_v56 = vsub.f32 1.0, %v6991_v54  ;;  %v6958_v47 = vadd.f32 %v13851_v13, %v6939_v57  ;;  %v6983_v35 = vsel %vm6982_vm7, %v9266_v42, %v6979_v48 }
 0x97a   : > { %v6910_v15 = vpop.f32.mrf.mxu3  ;;  %v6988_v31 = vsel %vm6985_vm8, %v6987_v59, %v6983_v35 }
 0x97b   : > { %v8781_v53 = vmul.f32 -1.442695, %v6958_v47  ;;  %v6911_v36 = vadd.f32 %v6910_v15, %v6896_v27  ;;  %v7039_v2 = vmul.f32 %v9270_v28, %v6988_v31  ;;  %v6993_v63 = vmul.f32 %v9268_v18, %v6992_v56 }
 0x97c   : > { %v6940_v23 = vpop.f32.mrf.mxu1 }
 0x97d   : > { %9273 = vpow2.f32 %v8781_v53  ;;  %v6957_v39 = vadd.f32 %v13830_v34, %v6911_v36  ;;  %7043 = vst [vmem:[#allocation3 + $0x48] sm:$0xff] %v7039_v2  ;;  %v7048_v13 = vpack.c.bf16 %v7039_v2, %v7039_v2  ;;  %v6994_v55 = vadd.f32 %v9268_v18, %v6993_v63 }
 0x97e   : > { %v6926_v1 = vpop.f32.mrf.mxu2 }
 0x97f   : > { %v8780_v19 = vmul.f32 -1.442695, %v6957_v39  ;;  %v7058_v40 = vsel %vm7056_vm6, %v7048_v13, 0  ;;  %v6998_v6 = vsel %vm6997_vm15, %v9268_v18, %v6994_v55  ;;  %v6941_v37 = vadd.f32 %v6940_v23, %v6926_v1 }
 0x980   : > { %7076 = vmatpush.bf16.msrb.mxu3 %v7058_v40  ;;  %v7003_v38 = vsel %vm7000_vm9, %v7002_v52, %v6998_v6 }
 0x981   : > { %9275 = vpow2.f32 %v8780_v19  ;;  %v7040_v34 = vmul.f32 %v9272_v9, %v7003_v38 }
 0x982   : > { %v6912_v8 = vpop.f32.mrf.mxu3 }
 0x983   : > { %v9274_v44 = vpop.eup %9273  ;;  %7044 = vst [vmem:[#allocation3 + $0x30] sm:$0xff] %v7040_v34  ;;  %v7049_v41 = vpack.c.bf16 %v7040_v34, %v7040_v34  ;;  %8782 = vmatmul.msk.bf16.vlgmr.msrb.gmra.mxu3 %vm7052_vm11, %v14449_v14  ;;  %v6913_v4 = vadd.f32 %v6912_v8, %v6898_v24 }
 0x984   : > { %v6974_v10 = vadd.f32 1.0, %v9274_v44 }
 0x985   : > { %v7061_v30 = vsel %vm7056_vm6, %v7049_v41, 0 }
 0x986   : > { %9277 = vrcp.f32 %v6974_v10  ;;  %7089 = vmatpush.bf16.msrb.mxu0 %v7061_v30  ;;  %v7029_v22 = vand.u32 2147483647, %v6974_v10  ;;  %v7031_v5 = vand.u32 2147483648, %v6974_v10  ;;  %vm7025_vm13 = vweird.f32 %v6974_v10 }
 0x987   : > { %v9276_v21 = vpop.eup %9275 }
 0x988   : > { %v6973_v17 = vadd.f32 1.0, %v9276_v21  ;;  %vm7030_vm1 = vcmp.eq.f32.partialorder %v7029_v22, 8.507059e+37  ;;  %v7032_v3 = vor.u32 1.1754944e-38, %v7031_v5 }
 0x989   : > { %8783 = vmatmul.msk.bf16.vlgmr.msrb.gmra.mxu0 %vm7052_vm11, %v14449_v14 }
 0x98a   : > { %9279 = vrcp.f32 %v6973_v17  ;;  %v7016_v60 = vand.u32 2147483648, %v6973_v17  ;;  %v7014_v0 = vand.u32 2147483647, %v6973_v17  ;;  %vm7010_vm3 = vweird.f32 %v6973_v17 }
 0x98b   : > { %9281 = vtanh.f32 %v6941_v37 }
 0x98c   : > { %v9278_v26 = vpop.eup %9277  ;;  %9283 = vtanh.f32 %v6913_v4  ;;  %v7017_v7 = vor.u32 1.1754944e-38, %v7016_v60  ;;  %vm7015_vm5 = vcmp.eq.f32.partialorder %v7014_v0, 8.507059e+37 }
 0x98d   : > { %v7021_v61 = vmul.f32 %v9278_v26, %v6974_v10  ;;  %vm7026_vm12 = vweird.f32 %v9278_v26 }
 0x98e   : > { %vm7027_vm0 = vmor %vm7025_vm13, %vm7026_vm12 }
 0x98f   : > { %v7022_v11 = vsub.f32 1.0, %v7021_v61 }
 0x990   : > { %v9280_v49 = vpop.eup %9279 }
 0x991   : > { %v7006_v46 = vmul.f32 %v9280_v49, %v6973_v17  ;;  %v7023_v45 = vmul.f32 %v9278_v26, %v7022_v11  ;;  %vm7011_vm2 = vweird.f32 %v9280_v49  ;;  %v9282_v16 = vpop.eup %9281 }
 0x992   : > { %vm7012_vm4 = vmor %vm7010_vm3, %vm7011_vm2  ;;  %v9284_v33 = vpop.eup %9283 }
 0x993   : > { %v7007_v58 = vsub.f32 1.0, %v7006_v46  ;;  %v7024_v43 = vadd.f32 %v9278_v26, %v7023_v45 }
 0x995   : > { %v7028_v62 = vsel %vm7027_vm0, %v9278_v26, %v7024_v43  ;;  %v7008_v42 = vmul.f32 %v9280_v49, %v7007_v58 }
 0x996   : > { %v7033_v29 = vsel %vm7030_vm1, %v7032_v3, %v7028_v62 }
 0x997   : > { %v7042_v12 = vmul.f32 %v9282_v16, %v7033_v29  ;;  %v7009_v51 = vadd.f32 %v9280_v49, %v7008_v42 }
 0x999   : > { %7046 = vst [vmem:[#allocation3 + $0x38] sm:$0xff] %v7042_v12  ;;  %v7051_v32 = vpack.c.bf16 %v7042_v12, %v7042_v12  ;;  %v7013_v18 = vsel %vm7012_vm4, %v9280_v49, %v7009_v51 }
 0x99a   : > { %v7018_v50 = vsel %vm7015_vm5, %v7017_v7, %v7013_v18 }
 0x99b   : > { %v7067_v54 = vsel %vm7056_vm6, %v7051_v32, 0  ;;  %v7041_v57 = vmul.f32 %v9284_v33, %v7018_v50 }
 0x99c   : > { %7115 = vmatpush.bf16.msra.mxu3 %v7067_v54 }
 0x99d   : > { %7045 = vst [vmem:[#allocation3 + $0x70] sm:$0xff] %v7041_v57  ;;  %v7050_v48 = vpack.c.bf16 %v7041_v57, %v7041_v57 }
 0x99f   : > { %v7064_v59 = vsel %vm7056_vm6, %v7050_v48, 0  ;;  %8785 = vmatmul.msk.bf16.vlgmr.msra.gmra.mxu3 %vm7052_vm11, %v14449_v14 }
 0x9a0   : > { %7102 = vmatpush.bf16.msrb.mxu1 %v7064_v59 }
 0x9a3   : > { %8784 = vmatmul.msk.bf16.vlgmr.msrb.gmra.mxu1 %vm7052_vm11, %v14449_v14 }
 0xa06   : > { %v7078_v56 = vpop.f32.mrf.mxu3  ;;  %v7091_v47 = vpop.f32.mrf.mxu0 }
 0xa07   : > { %v8786_v35 = vmul.f32 -1.442695, %v7078_v56  ;;  %v8787_v28 = vmul.f32 -1.442695, %v7091_v47 }
 0xa09   : > { %9285 = vpow2.f32 %v8786_v35 }
 0xa0a   : > { %9287 = vpow2.f32 %v8787_v28 }
 0xa0e   : > { %v7080_v27 = vpop.f32.mrf.mxu3  ;;  %v7093_v15 = vpop.f32.mrf.mxu0 }
 0xa0f   : > { %v9286_v31 = vpop.eup %9285 }
 0xa10   : > { %v9288_v20 = vpop.eup %9287  ;;  %v7133_v25 = vadd.f32 1.0, %v9286_v31 }
 0xa11   : > { %v7134_v53 = vadd.f32 1.0, %v9288_v20 }
 0xa12   : > { %9289 = vrcp.f32 %v7133_v25  ;;  %vm7142_vm7 = vweird.f32 %v7133_v25  ;;  %v7148_v39 = vand.u32 2147483648, %v7133_v25  ;;  %v7146_v9 = vand.u32 2147483647, %v7133_v25 }
 0xa13   : > { %9291 = vrcp.f32 %v7134_v53  ;;  %v7163_v52 = vand.u32 2147483648, %v7134_v53  ;;  %vm7157_vm10 = vweird.f32 %v7134_v53  ;;  %v7161_v40 = vand.u32 2147483647, %v7134_v53 }
 0xa14   : > { %v7149_v38 = vor.u32 1.1754944e-38, %v7148_v39  ;;  %vm7147_vm15 = vcmp.eq.f32.partialorder %v7146_v9, 8.507059e+37 }
 0xa15   : > { %v7164_v44 = vor.u32 1.1754944e-38, %v7163_v52  ;;  %vm7162_vm11 = vcmp.eq.f32.partialorder %v7161_v40, 8.507059e+37 }
 0xa18   : > { %v9290_v36 = vpop.eup %9289 }
 0xa19   : > { %v9292_v2 = vpop.eup %9291  ;;  %v7138_v63 = vmul.f32 %v9290_v36, %v7133_v25  ;;  %vm7143_vm8 = vweird.f32 %v9290_v36 }
 0xa1a   : > { %v7153_v13 = vmul.f32 %v9292_v2, %v7134_v53  ;;  %vm7158_vm6 = vweird.f32 %v9292_v2  ;;  %vm7144_vm14 = vmor %vm7142_vm7, %vm7143_vm8 }
 0xa1b   : > { %v7139_v55 = vsub.f32 1.0, %v7138_v63  ;;  %vm7159_vm9 = vmor %vm7157_vm10, %vm7158_vm6 }
 0xa1c   : > { %v7154_v19 = vsub.f32 1.0, %v7153_v13 }
 0xa1d   : > { %v7140_v6 = vmul.f32 %v9290_v36, %v7139_v55 }
 0xa1e   : > { %v7155_v14 = vmul.f32 %v9292_v2, %v7154_v19 }
 0xa1f   : > { %v7141_v34 = vadd.f32 %v9290_v36, %v7140_v6 }
 0xa20   : > { %v7156_v41 = vadd.f32 %v9292_v2, %v7155_v14  ;;  %v7104_v10 = vpop.f32.mrf.mxu1 }
 0xa21   : > { %v7145_v30 = vsel %vm7144_vm14, %v9290_v36, %v7141_v34  ;;  %v8788_v21 = vmul.f32 -1.442695, %v7104_v10 }
 0xa22   : > { %v7150_v17 = vsel %vm7147_vm15, %v7149_v38, %v7145_v30  ;;  %v7160_v1 = vsel %vm7159_vm9, %v9292_v2, %v7156_v41  ;;  %v7117_v23 = vpop.f32.mrf.mxu3 }
 0xa23   : > { %7197 = vst [vmem:[#allocation6 + $0x8] sm:$0xff] %v7150_v17  ;;  %v7165_v26 = vsel %vm7162_vm11, %v7164_v44, %v7160_v1  ;;  %9293 = vpow2.f32 %v8788_v21  ;;  %v8789_v37 = vmul.f32 -1.442695, %v7117_v23 }
 0xa24   : > { %7201 = vst [vmem:[%s9435_s21] sm:$0xff] %v7150_v17 }
 0xa25   : > { %7198 = vst [vmem:[#allocation6 + $0x18] sm:$0xff] %v7165_v26  ;;  %9295 = vpow2.f32 %v8789_v37 }
 0xa26   : > { %7202 = vst [vmem:[%s9435_s21 + $0x8] sm:$0xff] %v7165_v26 }
 0xa28   : > { %v7106_v61 = vpop.f32.mrf.mxu1 }
 0xa29   : > { %v9294_v8 = vpop.eup %9293 }
 0xa2a   : > { %v7135_v11 = vadd.f32 1.0, %v9294_v8  ;;  %v7119_v24 = vpop.f32.mrf.mxu3 }
 0xa2b   : > { %v9296_v49 = vpop.eup %9295 }
 0xa2c   : > { %9297 = vrcp.f32 %v7135_v11  ;;  %v7136_v4 = vadd.f32 1.0, %v9296_v49  ;;  %v7178_v58 = vand.u32 2147483648, %v7135_v11  ;;  %v7176_v60 = vand.u32 2147483647, %v7135_v11 }
 0xa2d   : > { %vm7172_vm13 = vweird.f32 %v7135_v11 }
 0xa2e   : > { %9299 = vrcp.f32 %v7136_v4  ;;  %v7193_v0 = vand.u32 2147483648, %v7136_v4  ;;  %v7179_v16 = vor.u32 1.1754944e-38, %v7178_v58  ;;  %v7191_v12 = vand.u32 2147483647, %v7136_v4 }
 0xa2f   : > { %vm7177_vm2 = vcmp.eq.f32.partialorder %v7176_v60, 8.507059e+37  ;;  %vm7187_vm3 = vweird.f32 %v7136_v4 }
 0xa30   : > { %v7194_v18 = vor.u32 1.1754944e-38, %v7193_v0  ;;  %vm7192_vm5 = vcmp.eq.f32.partialorder %v7191_v12, 8.507059e+37 }
 0xa32   : > { %v9298_v22 = vpop.eup %9297 }
 0xa33   : > { %v7168_v5 = vmul.f32 %v9298_v22, %v7135_v11  ;;  %vm7173_vm12 = vweird.f32 %v9298_v22 }
 0xa34   : > { %v9300_v46 = vpop.eup %9299  ;;  %vm7174_vm0 = vmor %vm7172_vm13, %vm7173_vm12 }
 0xa35   : > { %v7169_v45 = vsub.f32 1.0, %v7168_v5  ;;  %v7183_v43 = vmul.f32 %v9300_v46, %v7136_v4  ;;  %vm7188_vm1 = vweird.f32 %v9300_v46 }
 0xa36   : > { %vm7189_vm4 = vmor %vm7187_vm3, %vm7188_vm1 }
 0xa37   : > { %v7170_v3 = vmul.f32 %v9298_v22, %v7169_v45  ;;  %v7184_v62 = vsub.f32 1.0, %v7183_v43 }
 0xa39   : > { %v7171_v42 = vadd.f32 %v9298_v22, %v7170_v3  ;;  %v7185_v29 = vmul.f32 %v9300_v46, %v7184_v62 }
 0xa3b   : > { %v7175_v51 = vsel %vm7174_vm0, %v9298_v22, %v7171_v42  ;;  %v7186_v32 = vadd.f32 %v9300_v46, %v7185_v29 }
 0xa3c   : > { %v7180_v7 = vsel %vm7177_vm2, %v7179_v16, %v7175_v51 }
 0xa3d   : > { %7199 = vst [vmem:[#allocation6 + $0x10] sm:$0xff] %v7180_v7  ;;  %v7190_v33 = vsel %vm7189_vm4, %v9300_v46, %v7186_v32 }
 0xa3e   : > { %7203 = vst [vmem:[%s9435_s21 + $0x10] sm:$0xff] %v7180_v7  ;;  %v7195_v50 = vsel %vm7192_vm5, %v7194_v18, %v7190_v33 }
 0xa3f   : > { %7200 = vst [vmem:[#allocation6] sm:$0xff] %v7195_v50 }
 0xa40   : > { %7204 = vst [vmem:[%s9435_s21 + $0x18] sm:$0xff] %v7195_v50 }
 0xa41 PF: > { %s18_s27 = sadd.s32 1, %s9350_s27  }
 0xa42   : > { %p15_p10 = scmp.ge.s32.totalorder %s18_s27, 9  }
 0xa44   :  { %17 = sbr.rel (!%p15_p10) target bundleno = 1 (0x1), region = 104 }

</bundles_post_ra>
